<compile_context>
chip_gen: v5e
topology: v5e:2x2
jax: 0.10.0
libtpu: 0.0.40
codegen_flags: <defaults>
</compile_context>

<pallas_src>
import jax
import jax.numpy as jnp
from jax.experimental import pallas as pl
from jax.experimental.pallas import tpu as pltpu


def _ceil_to(v, m):
    return ((v + m - 1) // m) * m


def _pad_to(x, shape):
    pads = [(0, t - s) for s, t in zip(x.shape, shape)]
    return jnp.pad(x, pads)


# Padded problem dimensions (TPU lane/sublane friendly).
K1_PAD = _ceil_to(28 * 28, 128)   # 896
H_PAD = _ceil_to(4000, 128)       # 4096
O_PAD = 128                       # pad 10 -> 128
TK = 512                          # layer-2 reduction tile (8 MB f32 W2 block / step)


def _fused_mlp_kernel(x_ref, w1_ref, w2_ref, w3_ref, o_ref, acc_ref):
    k = pl.program_id(0)

    @pl.when(k == 0)
    def _():
        acc_ref[...] = jnp.zeros_like(acc_ref)

    # Layer 1, column block k, fused ReLU: (M, K1) @ (K1, TK) -> (M, TK).
    h = jnp.dot(x_ref[...], w1_ref[...], preferred_element_type=jnp.float32)
    h = jnp.maximum(h, 0.0)
    # Layer 2 partial sum: (M, TK) @ (TK, H) accumulated into resident (M, H).
    acc_ref[...] += jnp.dot(h, w2_ref[...], preferred_element_type=jnp.float32)

    @pl.when(k == pl.num_programs(0) - 1)
    def _():
        a2 = jnp.maximum(acc_ref[...], 0.0)          # layer-2 ReLU
        o_ref[...] = jnp.dot(
            a2, w3_ref[...], preferred_element_type=jnp.float32
        ).astype(o_ref.dtype)


def fused_mlp(x_p, w1_t, w2_t, w3_t):
    """x_p: (M_pad, 896); weights pre-laid-out by prepare_weights -> (M_pad, 128)."""
    M, K1 = x_p.shape
    assert K1 == K1_PAD and M % 8 == 0
    assert w1_t.shape == (K1_PAD, H_PAD)
    assert w2_t.shape == (H_PAD, H_PAD)
    assert w3_t.shape == (H_PAD, O_PAD)
    # Resident x + (M, 4096) accumulator strategy assumes a modest batch.
    # TODO(synk): for M_pad > 512, add an outer M grid axis (re-streams weights).
    assert M <= 512

    return pl.pallas_call(
        _fused_mlp_kernel,
        out_shape=jax.ShapeDtypeStruct((M, O_PAD), x_p.dtype),
        grid_spec=pltpu.PrefetchScalarGridSpec(
            num_scalar_prefetch=0,
            grid=(H_PAD // TK,),
            in_specs=[
                # Activation: constant block index -> fetched once, VMEM-resident.
                pl.BlockSpec((M, K1_PAD), lambda k: (0, 0)),
                # W1 column stream (1.75 MB tiles).
                pl.BlockSpec((K1_PAD, TK), lambda k: (0, k)),
                # W2 row stream (8 MB lane-dense tiles) -- the dominant HBM traffic.
                pl.BlockSpec((TK, H_PAD), lambda k: (k, 0)),
                # W3: constant block index -> fetched once (2 MB), used on last step.
                pl.BlockSpec((H_PAD, O_PAD), lambda k: (0, 0)),
            ],
            out_specs=pl.BlockSpec((M, O_PAD), lambda k: (0, 0)),
            scratch_shapes=[pltpu.VMEM((M, H_PAD), jnp.float32)],
        ),
        compiler_params=pltpu.CompilerParams(
            dimension_semantics=("arbitrary",),   # reduction axis (accumulator)
            vmem_limit_bytes=48 * 1024 * 1024,
        ),
    )(x_p, w1_t, w2_t, w3_t)


def prepare_weights(w1, w2, w3):
    """One-time layout prep: transpose PyTorch (out, in) weights to (K_pad, N_pad).

    Kept OUT of the per-call forward path (w2's 64 MB transpose happens once).
    Zero padding is benign: padded inputs are 0, padded columns give 0,
    ReLU(0) = 0, and padded logit columns are sliced away.
    """
    w1_t = _pad_to(w1.T, (K1_PAD, H_PAD))   # (896, 4096)
    w2_t = _pad_to(w2.T, (H_PAD, H_PAD))    # (4096, 4096)
    w3_t = _pad_to(w3.T, (H_PAD, O_PAD))    # (4096, 128)
    return w1_t, w2_t, w3_t


def mlp_forward(image, w1_t, w2_t, w3_t):
    """image: (N, 1, 28, 28) f32 -> logits (N, 10), matching the PyTorch MLP."""
    n = image.shape[0]
    x = image.reshape(-1, 28 * 28)          # torch .view(-1, 784), row-major
    m_p = _ceil_to(max(n, 8), 8)
    x_p = _pad_to(x, (m_p, K1_PAD))
    out = fused_mlp(x_p, w1_t, w2_t, w3_t)
    return out[:n, :10]


def init_params(key):
    # Deterministic init mimicking torch.nn.Linear default: U(-1/sqrt(in), 1/sqrt(in))
    k1, k2, k3 = jax.random.split(key, 3)

    def lin(k, out_f, in_f):
        bound = 1.0 / jnp.sqrt(jnp.float32(in_f))
        return jax.random.uniform(
            k, (out_f, in_f), jnp.float32, minval=-bound, maxval=bound
        )

    w1 = lin(k1, 4000, 28 * 28)
    w2 = lin(k2, 4000, 4000)
    w3 = lin(k3, 10, 4000)
    return w1, w2, w3


if __name__ == "__main__":
    key = jax.random.PRNGKey(0)
    kimg, kparams = jax.random.split(key)

    batch = 2
    image = jax.random.normal(kimg, (batch, 1, 28, 28), jnp.float32)
    w1, w2, w3 = init_params(kparams)

    # One-time weight layout prep (not part of the per-call path).
    w1_t, w2_t, w3_t = prepare_weights(w1, w2, w3)
    w1_t, w2_t, w3_t = jax.block_until_ready((w1_t, w2_t, w3_t))

    logits = jax.jit(mlp_forward)(image, w1_t, w2_t, w3_t)
    logits = jax.block_until_ready(logits)

    # Reference check (plain JAX) for correctness.
    a = image.reshape(-1, 28 * 28)
    a = jnp.maximum(a @ w1.T, 0.0)
    a = jnp.maximum(a @ w2.T, 0.0)
    ref = a @ w3.T
    assert logits.shape == (batch, 10)
    assert jnp.allclose(logits, ref, atol=1e-3, rtol=1e-3)

    print("KERNEL_OK")
</pallas_src>

<mosaic_0001>
module attributes {stable_mosaic.version = 11 : i64} {
  func.func @_fused_mlp_kernel(%arg0: i32, %arg1: memref<8x896xf32, #tpu.memory_space<vmem>>, %arg2: memref<896x512xf32, #tpu.memory_space<vmem>>, %arg3: memref<512x4096xf32, #tpu.memory_space<vmem>>, %arg4: memref<4096x128xf32, #tpu.memory_space<vmem>>, %arg5: memref<8x128xf32, #tpu.memory_space<vmem>>, %arg6: memref<8x4096xf32, #tpu.memory_space<vmem>>) attributes {dimension_semantics = [#tpu.dimension_semantics<arbitrary>], iteration_bounds = array<i64: 8>, scalar_prefetch = 0 : i64, scratch_operands = 1 : i64, tpu.core_type = #tpu.core_type<tc>, window_params = [{pipeline_mode = #tpu.pipeline_mode<synchronous>, transform_indices = @transform_0, window_bounds = array<i64: 8, 896>}, {transform_indices = @transform_1, window_bounds = array<i64: 896, 512>}, {transform_indices = @transform_2, window_bounds = array<i64: 512, 4096>}, {pipeline_mode = #tpu.pipeline_mode<synchronous>, transform_indices = @transform_3, window_bounds = array<i64: 4096, 128>}, {pipeline_mode = #tpu.pipeline_mode<synchronous>, transform_indices = @transform_4, window_bounds = array<i64: 8, 128>}]} {
    %c0_i32 = arith.constant 0 : i32
    %0 = arith.cmpi eq, %arg0, %c0_i32 : i32
    %1 = arith.extui %0 : i1 to i32
    %c0_i32_0 = arith.constant 0 : i32
    %2 = arith.cmpi ne, %1, %c0_i32_0 : i32
    scf.if %2 {
      %cst_13 = arith.constant 0.000000e+00 : f32
      %16 = vector.broadcast %cst_13 : f32 to vector<8x4096xf32>
      %c0_14 = arith.constant 0 : index
      %c0_15 = arith.constant 0 : index
      %17 = vector.load %arg6[%c0_14, %c0_15] : memref<8x4096xf32, #tpu.memory_space<vmem>>, vector<8x4096xf32>
      tpu.vector_store %arg6[%c0_14, %c0_15], %16 {strides = array<i32>} : memref<8x4096xf32, #tpu.memory_space<vmem>>, vector<8x4096xf32>,
    } else {
    }
    %c0 = arith.constant 0 : index
    %c0_1 = arith.constant 0 : index
    %3 = vector.load %arg1[%c0, %c0_1] : memref<8x896xf32, #tpu.memory_space<vmem>>, vector<8x896xf32>
    %c0_2 = arith.constant 0 : index
    %c0_3 = arith.constant 0 : index
    %4 = vector.load %arg2[%c0_2, %c0_3] : memref<896x512xf32, #tpu.memory_space<vmem>>, vector<896x512xf32>
    %cst = arith.constant dense<0.000000e+00> : vector<8x512xf32>
    %5 = tpu.matmul %3, %4, %cst {dimension_numbers = #tpu.dot_dimension_numbers<[1], [0], [0], [1], [0, 0, 1, 1], [], []>} : vector<8x896xf32>, vector<896x512xf32>, vector<8x512xf32> -> vector<8x512xf32>
    %cst_4 = arith.constant 0.000000e+00 : f32
    %6 = vector.broadcast %cst_4 : f32 to vector<8x512xf32>
    %7 = arith.maximumf %5, %6 : vector<8x512xf32>
    %c0_5 = arith.constant 0 : index
    %c0_6 = arith.constant 0 : index
    %8 = vector.load %arg6[%c0_5, %c0_6] : memref<8x4096xf32, #tpu.memory_space<vmem>>, vector<8x4096xf32>
    %c0_7 = arith.constant 0 : index
    %c0_8 = arith.constant 0 : index
    %9 = vector.load %arg3[%c0_7, %c0_8] : memref<512x4096xf32, #tpu.memory_space<vmem>>, vector<512x4096xf32>
    %cst_9 = arith.constant dense<0.000000e+00> : vector<8x4096xf32>
    %10 = tpu.matmul %7, %9, %cst_9 {dimension_numbers = #tpu.dot_dimension_numbers<[1], [0], [0], [1], [0, 0, 1, 1], [], []>} : vector<8x512xf32>, vector<512x4096xf32>, vector<8x4096xf32> -> vector<8x4096xf32>
    %11 = arith.addf %8, %10 : vector<8x4096xf32>
    %c0_10 = arith.constant 0 : index
    %c0_11 = arith.constant 0 : index
    %12 = vector.load %arg6[%c0_10, %c0_11] : memref<8x4096xf32, #tpu.memory_space<vmem>>, vector<8x4096xf32>
    tpu.vector_store %arg6[%c0_10, %c0_11], %11 {strides = array<i32>} : memref<8x4096xf32, #tpu.memory_space<vmem>>, vector<8x4096xf32>,
    %c7_i32 = arith.constant 7 : i32
    %13 = arith.cmpi eq, %arg0, %c7_i32 : i32
    %14 = arith.extui %13 : i1 to i32
    %c0_i32_12 = arith.constant 0 : i32
    %15 = arith.cmpi ne, %14, %c0_i32_12 : i32
    scf.if %15 {
      %c0_13 = arith.constant 0 : index
      %c0_14 = arith.constant 0 : index
      %16 = vector.load %arg6[%c0_13, %c0_14] : memref<8x4096xf32, #tpu.memory_space<vmem>>, vector<8x4096xf32>
      %cst_15 = arith.constant 0.000000e+00 : f32
      %17 = vector.broadcast %cst_15 : f32 to vector<8x4096xf32>
      %18 = arith.maximumf %16, %17 : vector<8x4096xf32>
      %c0_16 = arith.constant 0 : index
      %c0_17 = arith.constant 0 : index
      %19 = vector.load %arg4[%c0_16, %c0_17] : memref<4096x128xf32, #tpu.memory_space<vmem>>, vector<4096x128xf32>
      %cst_18 = arith.constant dense<0.000000e+00> : vector<8x128xf32>
      %20 = tpu.matmul %18, %19, %cst_18 {dimension_numbers = #tpu.dot_dimension_numbers<[1], [0], [0], [1], [0, 0, 1, 1], [], []>} : vector<8x4096xf32>, vector<4096x128xf32>, vector<8x128xf32> -> vector<8x128xf32>
      %c0_19 = arith.constant 0 : index
      %c0_20 = arith.constant 0 : index
      %21 = vector.load %arg5[%c0_19, %c0_20] : memref<8x128xf32, #tpu.memory_space<vmem>>, vector<8x128xf32>
      tpu.vector_store %arg5[%c0_19, %c0_20], %20 {strides = array<i32>} : memref<8x128xf32, #tpu.memory_space<vmem>>, vector<8x128xf32>,
    } else {
    }
    return
  }
  func.func @transform_0(%arg0: i32) -> (i32, i32) {
    %c0_i32 = arith.constant 0 : i32
    %c0_i32_0 = arith.constant 0 : i32
    %c0_i32_1 = arith.constant 0 : i32
    return %c0_i32, %c0_i32_0 : i32, i32
  }
  func.func @transform_1(%arg0: i32) -> (i32, i32) {
    %c0_i32 = arith.constant 0 : i32
    %c0_i32_0 = arith.constant 0 : i32
    return %c0_i32, %arg0 : i32, i32
  }
  func.func @transform_2(%arg0: i32) -> (i32, i32) {
    %c0_i32 = arith.constant 0 : i32
    %c0_i32_0 = arith.constant 0 : i32
    return %arg0, %c0_i32 : i32, i32
  }
  func.func @transform_3(%arg0: i32) -> (i32, i32) {
    %c0_i32 = arith.constant 0 : i32
    %c0_i32_0 = arith.constant 0 : i32
    %c0_i32_1 = arith.constant 0 : i32
    return %c0_i32, %c0_i32_0 : i32, i32
  }
  func.func @transform_4(%arg0: i32) -> (i32, i32) {
    %c0_i32 = arith.constant 0 : i32
    %c0_i32_0 = arith.constant 0 : i32
    %c0_i32_1 = arith.constant 0 : i32
    return %c0_i32, %c0_i32_0 : i32, i32
  }
}

</mosaic_0001>

<bundles_post_ra>
// kernel: mlp_forward.1
= control target key start
LH: loop header
LB: loop body
LE: loop exit
PB: predicated region body
PF: predicated region fallthrough
CT: control target
= control target key end

     0   :  { %s10440_s0 = inlined_call_operand.vmem [shape: f32[8,896], index: 0, kind: input, shape index: {}]   ;;  %s10441_s1 = inlined_call_operand.hbm [shape: f32[896,4096], index: 1, kind: input, shape index: {}]   ;;  %s10442_s2 = inlined_call_operand.hbm [shape: f32[4096,4096], index: 2, kind: input, shape index: {}]   ;;  %s10443_s3 = inlined_call_operand.hbm [shape: f32[4096,128], index: 3, kind: input, shape index: {}]   ;;  %s10444_s4 = inlined_call_operand.vmem [shape: f32[8,128], index: 4, kind: output, shape index: {}]  }
   0x1   :  { %10445 = sst [smem:[#allocation11_spill]] %s10441_s1 }
   0x2   :  { %10446 = sst [smem:[#allocation12_spill]] %s10443_s3 }
   0x3   :  { %9 = vsyncpa [#allocation4], 0 }
   0x4   :  { %11 = vsyncpa [#allocation4 + $0x1], 0 }
   0x5   :  { %12 = vsyncpa [#allocation6], 0 }
   0x6   :  { %14 = vsyncpa [#allocation6 + $0x1], 0  ;;  %s7575_s15 = smov 0   ;;  %s7577_s16 = smov 0  }
   0x7   :  { %s7579_s17 = smov 0   ;;  %s7581_s18 = smov 0  }
   0x8 LB: > { %s7594_s19 = sadd.s32 4294967295, %s7540_s18   ;;  %p61_p0 = scmp.ne.s32.totalorder %s7532_s16, %s7528_s15  ;;  %s7540_s18 = sphi %s7581_s18, %s10455_s18   ;;  %s7536_s17 = sphi %s7579_s17, %s10454_s17   ;;  %s7532_s16 = sphi %s7577_s16, %s10453_s16   ;;  %s7528_s15 = sphi %s7575_s15, %s10452_s15  }
   0x9   : > { %p62_p1 = scmp.eq.s32.totalorder %s7594_s19, 0  ;;  %p7318_p2 = scmp.ge.s32.totalorder %s7540_s18, 1 }
   0xa   : > { %p140_p3 = scmp.lt.s32.totalorder %s7540_s18, 9  ;;  %p7319_p4 = scmp.ne.s32.totalorder %s7594_s19, 0 }
   0xb   : > { %p7603_p5 = por %p62_p1, %p61_p0  ;;  %s10448_s3 = sld [smem:[#allocation12_spill]] }
   0xc   : > { %p7610_p6 = pnand %p7318_p2, %p140_p3  ;;  %s7542_s25 = smov [#allocation7]  }
   0xd   : > { %s156_s26 = sshll.u32 %s7542_s25, 4  ;;  %s7619_s27 = sadd.s32 1, %s7540_s18   ;;  %s157_s26 = int_to_ptr.vmem [resolvable:$true] %s156_s26 }
   0xe   : > { %p7347_p7 = pneg %p7610_p6  ;;  %s7543_s28 = smov 128  }
   0xf   : > { %s7544_s29 = smov 8   ;;  %s45_s30 = ssub.s32 %s7540_s18, %s7619_s27 }
  0x10   : > { %p7348_p8 = pnand %p7347_p7, %p62_p1  ;;  %s48_s5 = sadd.s32 1, %s7536_s17 }
  0x11   : > { %s154_s23 = sshll.u32 %s10448_s3, 4  ;;  %p46_p9 = scmp.eq.s32.totalorder %s45_s30, 0  ;;  %s155_s23 = int_to_ptr.hbm [resolvable:$true] %s154_s23 }
  0x12   : > { %7350 = dma.hbm_to_vmem [thread:$0]  (!%p7348_p8), %s155_s23, 65536, %s157_s26, [#allocation6], %s7543_s28, %s7543_s28, %s7544_s29  }
  0x13   : > { %p55_p10 = scmp.ne.s32.totalorder %s7536_s17, %s7532_s16  ;;  %p56_p11 = scmp.eq.s32.totalorder %s7540_s18, 0 }
  0x14   : > { %p7359_p12 = scmp.lt.s32.totalorder %s7540_s18, 8  ;;  %s7632_s7 = sand.u32 1, %s7536_s17  }
  0x15   : > { %s7629_s6 = scalar_select %p46_p9, %s7536_s17, %s48_s5  }
  0x16   : > { %p57_p13 = por %p56_p11, %p55_p10  ;;  %s7337_s8 = smul.u32 3584, %s7632_s7 }
  0x17   : > { %s7334_s9 = sshll.u32 %s7540_s18, 5  ;;  %s10451_s1 = sld [smem:[#allocation11_spill]] }
  0x18   : > { %p7636_p0 = pnand %p7359_p12, %p57_p13  ;;  %s174_s15 = scalar_lea.vmem [#allocation3], %s7337_s8 }
  0x19   : > { %s182_s21 = sshll.u32 %s174_s15, 4  ;;  %s171_s22 = scalar_lea.sflag [#allocation4], %s7632_s7  ;;  %s183_s21 = int_to_ptr.vmem [resolvable:$true] %s182_s21 }
  0x1a   : > { %p7442_p3 = pneg %p7636_p0 }
  0x1d   : > { %s179_s13 = scalar_lea.hbm %s10451_s1, %s7334_s9  ;;  %s7445_s29 = scalar_lea.hbm %s10451_s1, 28672 }
  0x1e   : > { %s180_s14 = sshll.u32 %s179_s13, 4  ;;  %s181_s14 = int_to_ptr.hbm [resolvable:$true] %s180_s14 }
  0x1f   : > { %s7438_s23 = sshra.s32 %s181_s14, 4  ;;  %s7439_s23 = int_to_ptr.hbm [resolvable:$true] %s7438_s23 }
  0x20   : > { %s7440_s25 = scalar_lea.hbm %s7439_s23, 3584  ;;  %p7446_p9 = scmp.lt.s32.totalorder %s7439_s23, %s10451_s1 }
  0x21   : > { %p7441_p2 = scmp.ne.s32.totalorder %s7439_s23, %s7440_s25  ;;  %p7447_p10 = scmp.lt.s32.totalorder %s7445_s29, %s7440_s25 }
  0x23   : > { %p7443_p7 = pnand %p7442_p3, %p7441_p2  ;;  %p7448_p11 = por %p7447_p10, %p7446_p9 }
  0x25   : > { %p7444_p8 = pneg %p7443_p7 }
  0x27   : > { %p7449_p12 = pnand %p7448_p11, %p7444_p8 }
  0x29   : > { %7452 = shalt.err (!%p7449_p12)
}
  0x2a   : > { %s7545_s8 = smov 4096   ;;  %s7546_s9 = smov 512  }
  0x2b   : > { %s7547_s11 = smov 32   ;;  %s192_s12 = sand.u32 1, %s7540_s18  }
  0x2c   : > { %7354 = dma.hbm_to_vmem [thread:$0]  (!%p7636_p0), %s181_s14, 57344, %s183_s21, %s171_s22, %s7545_s8, %s7546_s9, %s7547_s11  }
  0x2d   : > { %s7323_s13 = sshll.u32 %s7632_s7, 14  ;;  %s7336_s15 = sshll.u32 %s7540_s18, 14 }
  0x2e   : > { %s196_s26 = scalar_lea.vmem [#allocation5], %s7323_s13  ;;  %s202_s29 = scalar_lea.hbm %s10442_s2, %s7336_s15 }
  0x2f   : > { %s205_s23 = sshll.u32 %s196_s26, 4  ;;  %s203_s30 = sshll.u32 %s202_s29, 4  ;;  %s206_s23 = int_to_ptr.vmem [resolvable:$true] %s205_s23  ;;  %s204_s30 = int_to_ptr.hbm [resolvable:$true] %s203_s30 }
  0x30   : > { %s193_s5 = scalar_lea.sflag [#allocation6], %s192_s12  ;;  %s7468_s1 = sshra.s32 %s204_s30, 4  ;;  %s7469_s1 = int_to_ptr.hbm [resolvable:$true] %s7468_s1 }
  0x31   : > { %s7470_s3 = scalar_lea.hbm %s7469_s1, 16384  ;;  %s7475_s14 = scalar_lea.hbm %s10442_s2, 131072 }
  0x32   : > { %p7471_p13 = scmp.ne.s32.totalorder %s7469_s1, %s7470_s3  ;;  %p7476_p8 = scmp.lt.s32.totalorder %s7469_s1, %s10442_s2 }
  0x33   : > { %p7477_p9 = scmp.lt.s32.totalorder %s7475_s14, %s7470_s3 }
  0x34   : > { %p7473_p2 = pnand %p7471_p13, %p7442_p3 }
  0x35   : > { %p7478_p10 = por %p7477_p9, %p7476_p8 }
  0x36   : > { %p7474_p7 = pneg %p7473_p2 }
  0x38   : > { %p7479_p11 = pnand %p7478_p10, %p7474_p7 }
  0x3a   : > { %7482 = shalt.err (!%p7479_p11)
}
  0x3b   : > { %s7548_s9 = smov 256   ;;  %217 = sbr.rel (%p7610_p6) target bundleno = 2100 (0x834), region = 36 }
  0x3c   : > { %7357 = dma.hbm_to_vmem [thread:$0]  (!%p7636_p0), %s204_s30, 262144, %s206_s23, %s193_s5, %s7545_s8, %s7545_s8, %s7548_s9  }
  0x3d   : > { %s219_s11 = sand.u32 (!%p7610_p6), 1, %s7532_s16  }
  0x3e   : > { %s7338_s12 = smul.u32 (!%p7610_p6), 3584, %s219_s11  ;;  %s220_s13 = scalar_lea.sflag (!%p7610_p6), [#allocation4], %s219_s11 }
  0x40   : > { %s7680_s15 = scalar_lea.vmem [#allocation3], %s7338_s12 }
  0x41   : > { %7515 = dma.done.wait (%p7603_p5), %s220_s13, 57344  }
  0x42   : > { %7517 = vsyncadd (%p7603_p5), %s220_s13, 4294909952  ;;  %s229_s1 = sand.u32 1, %s7594_s19   ;;  %s7328_s3 = sshll.u32 %s219_s11, 14 }
  0x43   : > { %s230_s10 = scalar_lea.sflag [#allocation6], %s229_s1  ;;  %s7687_s8 = scalar_lea.vmem [#allocation5], %s7328_s3 }
  0x44   : > { %7519 = dma.done.wait (%p7603_p5), %s230_s10, 262144  }
  0x45   : > { %7521 = vsyncadd (%p7603_p5), %s230_s10, 4294705152 }
  0x46   : > { %7523 = dma.done.wait (%p62_p1), [#allocation6], 65536  }
  0x47   : > { %7525 = vsyncadd (%p62_p1), [#allocation6], 4294901760  ;;  %269 = sbr.rel (%p7319_p4) target bundleno = 109 (0x6d), region = 52 }
  0x4c   : > { %v7549_v0 = vmov 0.0  }
  0x4d   : > { %270 = vst [vmem:[#allocation2 + $0xb0] sm:$0xff] %v7549_v0 }
  0x4e   : > { %271 = vst [vmem:[#allocation2] sm:$0xff] %v7549_v0 }
  0x4f   : > { %272 = vst [vmem:[#allocation2 + $0xd8] sm:$0xff] %v7549_v0 }
  0x50   : > { %273 = vst [vmem:[#allocation2 + $0x18] sm:$0xff] %v7549_v0 }
  0x51   : > { %274 = vst [vmem:[#allocation2 + $0x50] sm:$0xff] %v7549_v0 }
  0x52   : > { %275 = vst [vmem:[#allocation2 + $0x68] sm:$0xff] %v7549_v0 }
  0x53   : > { %276 = vst [vmem:[#allocation2 + $0x30] sm:$0xff] %v7549_v0 }
  0x54   : > { %277 = vst [vmem:[#allocation2 + $0x48] sm:$0xff] %v7549_v0 }
  0x55   : > { %278 = vst [vmem:[#allocation2 + $0x80] sm:$0xff] %v7549_v0 }
  0x56   : > { %279 = vst [vmem:[#allocation2 + $0x88] sm:$0xff] %v7549_v0 }
  0x57   : > { %280 = vst [vmem:[#allocation2 + $0xe8] sm:$0xff] %v7549_v0 }
  0x58   : > { %281 = vst [vmem:[#allocation2 + $0xb8] sm:$0xff] %v7549_v0 }
  0x59   : > { %282 = vst [vmem:[#allocation2 + $0x60] sm:$0xff] %v7549_v0 }
  0x5a   : > { %283 = vst [vmem:[#allocation2 + $0xf0] sm:$0xff] %v7549_v0 }
  0x5b   : > { %284 = vst [vmem:[#allocation2 + $0x8] sm:$0xff] %v7549_v0 }
  0x5c   : > { %285 = vst [vmem:[#allocation2 + $0x78] sm:$0xff] %v7549_v0 }
  0x5d   : > { %286 = vst [vmem:[#allocation2 + $0x38] sm:$0xff] %v7549_v0 }
  0x5e   : > { %287 = vst [vmem:[#allocation2 + $0x58] sm:$0xff] %v7549_v0 }
  0x5f   : > { %288 = vst [vmem:[#allocation2 + $0x40] sm:$0xff] %v7549_v0 }
  0x60   : > { %289 = vst [vmem:[#allocation2 + $0xc8] sm:$0xff] %v7549_v0 }
  0x61   : > { %290 = vst [vmem:[#allocation2 + $0xe0] sm:$0xff] %v7549_v0 }
  0x62   : > { %291 = vst [vmem:[#allocation2 + $0x90] sm:$0xff] %v7549_v0 }
  0x63   : > { %292 = vst [vmem:[#allocation2 + $0x70] sm:$0xff] %v7549_v0 }
  0x64   : > { %293 = vst [vmem:[#allocation2 + $0xc0] sm:$0xff] %v7549_v0 }
  0x65   : > { %294 = vst [vmem:[#allocation2 + $0xa8] sm:$0xff] %v7549_v0 }
  0x66   : > { %295 = vst [vmem:[#allocation2 + $0xd0] sm:$0xff] %v7549_v0 }
  0x67   : > { %296 = vst [vmem:[#allocation2 + $0x10] sm:$0xff] %v7549_v0 }
  0x68   : > { %297 = vst [vmem:[#allocation2 + $0x28] sm:$0xff] %v7549_v0 }
  0x69   : > { %298 = vst [vmem:[#allocation2 + $0xa0] sm:$0xff] %v7549_v0 }
  0x6a   : > { %299 = vst [vmem:[#allocation2 + $0xf8] sm:$0xff] %v7549_v0 }
  0x6b   : > { %300 = vst [vmem:[#allocation2 + $0x20] sm:$0xff] %v7549_v0 }
  0x6c   : > { %301 = vst [vmem:[#allocation2 + $0x98] sm:$0xff] %v7549_v0 }
  0x6d PF: > { %v369_v1 = vld [vmem:[%s7680_s15 + $0x1e0] sm:$0xff]  ;;  %p7331_p1 = scmp.ne.s32.totalorder %s7594_s19, 7 }
  0x6e   : > { %v433_v2 = vld [vmem:[%s7680_s15 + $0x3e0] sm:$0xff]  ;;  %757 = vmatpush.msra.mxu0 %v369_v1 }
  0x6f   : > { %v497_v3 = vld [vmem:[%s7680_s15 + $0x5e0] sm:$0xff]  ;;  %777 = vmatpush.msra.mxu1 %v433_v2 }
  0x70   : > { %v365_v4 = vld [vmem:[%s7680_s15 + $0x1c0] sm:$0xff]  ;;  %797 = vmatpush.msra.mxu2 %v497_v3 }
  0x71   : > { %v429_v5 = vld [vmem:[%s7680_s15 + $0x3c0] sm:$0xff]  ;;  %758 = vmatpush.msra.mxu0 %v365_v4 }
  0x72   : > { %v493_v6 = vld [vmem:[%s7680_s15 + $0x5c0] sm:$0xff]  ;;  %778 = vmatpush.msra.mxu1 %v429_v5 }
  0x73   : > { %v561_v7 = vld [vmem:[%s7680_s15 + $0x7e0] sm:$0xff]  ;;  %798 = vmatpush.msra.mxu2 %v493_v6 }
  0x74   : > { %v361_v8 = vld [vmem:[%s7680_s15 + $0x1a0] sm:$0xff]  ;;  %817 = vmatpush.msra.mxu3 %v561_v7  ;;  %v370_v7 = vld [vmem:[%s7680_s15 + $0x1e8] sm:$0xff] }
  0x75   : > { %v425_v9 = vld [vmem:[%s7680_s15 + $0x3a0] sm:$0xff]  ;;  %759 = vmatpush.msra.mxu0 %v361_v8 }
  0x76   : > { %v489_v10 = vld [vmem:[%s7680_s15 + $0x5a0] sm:$0xff]  ;;  %779 = vmatpush.msra.mxu1 %v425_v9 }
  0x77   : > { %v557_v11 = vld [vmem:[%s7680_s15 + $0x7c0] sm:$0xff]  ;;  %799 = vmatpush.msra.mxu2 %v489_v10 }
  0x78   : > { %v357_v12 = vld [vmem:[%s7680_s15 + $0x180] sm:$0xff]  ;;  %818 = vmatpush.msra.mxu3 %v557_v11  ;;  %v366_v11 = vld [vmem:[%s7680_s15 + $0x1c8] sm:$0xff] }
  0x79   : > { %v421_v13 = vld [vmem:[%s7680_s15 + $0x380] sm:$0xff]  ;;  %760 = vmatpush.msra.mxu0 %v357_v12 }
  0x7a   : > { %v485_v14 = vld [vmem:[%s7680_s15 + $0x580] sm:$0xff]  ;;  %780 = vmatpush.msra.mxu1 %v421_v13 }
  0x7b   : > { %v553_v15 = vld [vmem:[%s7680_s15 + $0x7a0] sm:$0xff]  ;;  %800 = vmatpush.msra.mxu2 %v485_v14 }
  0x7c   : > { %v353_v16 = vld [vmem:[%s7680_s15 + $0x160] sm:$0xff]  ;;  %819 = vmatpush.msra.mxu3 %v553_v15  ;;  %v362_v15 = vld [vmem:[%s7680_s15 + $0x1a8] sm:$0xff] }
  0x7d   : > { %v417_v17 = vld [vmem:[%s7680_s15 + $0x360] sm:$0xff]  ;;  %761 = vmatpush.msra.mxu0 %v353_v16 }
  0x7e   : > { %v481_v18 = vld [vmem:[%s7680_s15 + $0x560] sm:$0xff]  ;;  %781 = vmatpush.msra.mxu1 %v417_v17 }
  0x7f   : > { %v549_v19 = vld [vmem:[%s7680_s15 + $0x780] sm:$0xff]  ;;  %801 = vmatpush.msra.mxu2 %v481_v18 }
  0x80   : > { %v349_v20 = vld [vmem:[%s7680_s15 + $0x140] sm:$0xff]  ;;  %820 = vmatpush.msra.mxu3 %v549_v19  ;;  %v358_v19 = vld [vmem:[%s7680_s15 + $0x188] sm:$0xff] }
  0x81   : > { %v413_v21 = vld [vmem:[%s7680_s15 + $0x340] sm:$0xff]  ;;  %762 = vmatpush.msra.mxu0 %v349_v20 }
  0x82   : > { %v477_v22 = vld [vmem:[%s7680_s15 + $0x540] sm:$0xff]  ;;  %782 = vmatpush.msra.mxu1 %v413_v21 }
  0x83   : > { %v545_v23 = vld [vmem:[%s7680_s15 + $0x760] sm:$0xff]  ;;  %802 = vmatpush.msra.mxu2 %v477_v22 }
  0x84   : > { %v345_v24 = vld [vmem:[%s7680_s15 + $0x120] sm:$0xff]  ;;  %821 = vmatpush.msra.mxu3 %v545_v23  ;;  %v354_v23 = vld [vmem:[%s7680_s15 + $0x168] sm:$0xff] }
  0x85   : > { %v409_v25 = vld [vmem:[%s7680_s15 + $0x320] sm:$0xff]  ;;  %763 = vmatpush.msra.mxu0 %v345_v24 }
  0x86   : > { %v473_v26 = vld [vmem:[%s7680_s15 + $0x520] sm:$0xff]  ;;  %783 = vmatpush.msra.mxu1 %v409_v25 }
  0x87   : > { %v541_v27 = vld [vmem:[%s7680_s15 + $0x740] sm:$0xff]  ;;  %803 = vmatpush.msra.mxu2 %v473_v26 }
  0x88   : > { %v341_v28 = vld [vmem:[%s7680_s15 + $0x100] sm:$0xff]  ;;  %822 = vmatpush.msra.mxu3 %v541_v27  ;;  %v350_v27 = vld [vmem:[%s7680_s15 + $0x148] sm:$0xff] }
  0x89   : > { %v405_v29 = vld [vmem:[%s7680_s15 + $0x300] sm:$0xff]  ;;  %764 = vmatpush.msra.mxu0 %v341_v28 }
  0x8a   : > { %v469_v30 = vld [vmem:[%s7680_s15 + $0x500] sm:$0xff]  ;;  %784 = vmatpush.msra.mxu1 %v405_v29 }
  0x8b   : > { %v537_v31 = vld [vmem:[%s7680_s15 + $0x720] sm:$0xff]  ;;  %804 = vmatpush.msra.mxu2 %v469_v30 }
  0x8c   : > { %v337_v32 = vld [vmem:[%s7680_s15 + $0xe0] sm:$0xff]  ;;  %823 = vmatpush.msra.mxu3 %v537_v31  ;;  %v346_v31 = vld [vmem:[%s7680_s15 + $0x128] sm:$0xff] }
  0x8d   : > { %v401_v33 = vld [vmem:[%s7680_s15 + $0x2e0] sm:$0xff]  ;;  %765 = vmatpush.msra.mxu0 %v337_v32 }
  0x8e   : > { %v465_v34 = vld [vmem:[%s7680_s15 + $0x4e0] sm:$0xff]  ;;  %785 = vmatpush.msra.mxu1 %v401_v33 }
  0x8f   : > { %v533_v35 = vld [vmem:[%s7680_s15 + $0x700] sm:$0xff]  ;;  %805 = vmatpush.msra.mxu2 %v465_v34 }
  0x90   : > { %v333_v36 = vld [vmem:[%s7680_s15 + $0xc0] sm:$0xff]  ;;  %824 = vmatpush.msra.mxu3 %v533_v35  ;;  %v342_v35 = vld [vmem:[%s7680_s15 + $0x108] sm:$0xff] }
  0x91   : > { %v397_v37 = vld [vmem:[%s7680_s15 + $0x2c0] sm:$0xff]  ;;  %766 = vmatpush.msra.mxu0 %v333_v36 }
  0x92   : > { %v461_v38 = vld [vmem:[%s7680_s15 + $0x4c0] sm:$0xff]  ;;  %786 = vmatpush.msra.mxu1 %v397_v37 }
  0x93   : > { %v529_v39 = vld [vmem:[%s7680_s15 + $0x6e0] sm:$0xff]  ;;  %806 = vmatpush.msra.mxu2 %v461_v38 }
  0x94   : > { %v329_v40 = vld [vmem:[%s7680_s15 + $0xa0] sm:$0xff]  ;;  %825 = vmatpush.msra.mxu3 %v529_v39  ;;  %v338_v39 = vld [vmem:[%s7680_s15 + $0xe8] sm:$0xff] }
  0x95   : > { %v393_v41 = vld [vmem:[%s7680_s15 + $0x2a0] sm:$0xff]  ;;  %767 = vmatpush.msra.mxu0 %v329_v40 }
  0x96   : > { %v457_v42 = vld [vmem:[%s7680_s15 + $0x4a0] sm:$0xff]  ;;  %787 = vmatpush.msra.mxu1 %v393_v41 }
  0x97   : > { %v525_v43 = vld [vmem:[%s7680_s15 + $0x6c0] sm:$0xff]  ;;  %807 = vmatpush.msra.mxu2 %v457_v42 }
  0x98   : > { %v325_v44 = vld [vmem:[%s7680_s15 + $0x80] sm:$0xff]  ;;  %826 = vmatpush.msra.mxu3 %v525_v43  ;;  %v334_v43 = vld [vmem:[%s7680_s15 + $0xc8] sm:$0xff] }
  0x99   : > { %v389_v45 = vld [vmem:[%s7680_s15 + $0x280] sm:$0xff]  ;;  %768 = vmatpush.msra.mxu0 %v325_v44 }
  0x9a   : > { %v453_v46 = vld [vmem:[%s7680_s15 + $0x480] sm:$0xff]  ;;  %788 = vmatpush.msra.mxu1 %v389_v45 }
  0x9b   : > { %v521_v47 = vld [vmem:[%s7680_s15 + $0x6a0] sm:$0xff]  ;;  %808 = vmatpush.msra.mxu2 %v453_v46 }
  0x9c   : > { %v321_v48 = vld [vmem:[%s7680_s15 + $0x60] sm:$0xff]  ;;  %827 = vmatpush.msra.mxu3 %v521_v47  ;;  %v330_v47 = vld [vmem:[%s7680_s15 + $0xa8] sm:$0xff] }
  0x9d   : > { %v385_v49 = vld [vmem:[%s7680_s15 + $0x260] sm:$0xff]  ;;  %769 = vmatpush.msra.mxu0 %v321_v48 }
  0x9e   : > { %v449_v50 = vld [vmem:[%s7680_s15 + $0x460] sm:$0xff]  ;;  %789 = vmatpush.msra.mxu1 %v385_v49 }
  0x9f   : > { %v517_v51 = vld [vmem:[%s7680_s15 + $0x680] sm:$0xff]  ;;  %809 = vmatpush.msra.mxu2 %v449_v50 }
  0xa0   : > { %v317_v52 = vld [vmem:[%s7680_s15 + $0x40] sm:$0xff]  ;;  %828 = vmatpush.msra.mxu3 %v517_v51  ;;  %v326_v51 = vld [vmem:[%s7680_s15 + $0x88] sm:$0xff] }
  0xa1   : > { %v381_v53 = vld [vmem:[%s7680_s15 + $0x240] sm:$0xff]  ;;  %770 = vmatpush.msra.mxu0 %v317_v52 }
  0xa2   : > { %v445_v54 = vld [vmem:[%s7680_s15 + $0x440] sm:$0xff]  ;;  %790 = vmatpush.msra.mxu1 %v381_v53 }
  0xa3   : > { %v513_v55 = vld [vmem:[%s7680_s15 + $0x660] sm:$0xff]  ;;  %810 = vmatpush.msra.mxu2 %v445_v54 }
  0xa4   : > { %v313_v56 = vld [vmem:[%s7680_s15 + $0x20] sm:$0xff]  ;;  %829 = vmatpush.msra.mxu3 %v513_v55  ;;  %v322_v55 = vld [vmem:[%s7680_s15 + $0x68] sm:$0xff] }
  0xa5   : > { %v377_v57 = vld [vmem:[%s7680_s15 + $0x220] sm:$0xff]  ;;  %771 = vmatpush.msra.mxu0 %v313_v56 }
  0xa6   : > { %v441_v58 = vld [vmem:[%s7680_s15 + $0x420] sm:$0xff]  ;;  %791 = vmatpush.msra.mxu1 %v377_v57 }
  0xa7   : > { %v509_v59 = vld [vmem:[%s7680_s15 + $0x640] sm:$0xff]  ;;  %811 = vmatpush.msra.mxu2 %v441_v58 }
  0xa8   : > { %v309_v60 = vld [vmem:[%s7680_s15] sm:$0xff]  ;;  %830 = vmatpush.msra.mxu3 %v509_v59  ;;  %v318_v59 = vld [vmem:[%s7680_s15 + $0x48] sm:$0xff] }
  0xa9   : > { %v373_v61 = vld [vmem:[%s7680_s15 + $0x200] sm:$0xff]  ;;  %772 = vmatpush.msra.mxu0 %v309_v60  ;;  %v7825_v60 = vld [vmem:[%s10440_s0 + $0x10] sm:$0xff] }
  0xaa   : > { %v437_v62 = vld [vmem:[%s7680_s15 + $0x400] sm:$0xff]  ;;  %792 = vmatpush.msra.mxu1 %v373_v61 }
  0xab   : > { %v505_v63 = vld [vmem:[%s7680_s15 + $0x620] sm:$0xff]  ;;  %812 = vmatpush.msra.mxu2 %v437_v62 }
  0xac   : > { %v625_v0 = vld [vmem:[%s7680_s15 + $0x9e0] sm:$0xff]  ;;  %831 = vmatpush.msra.mxu3 %v505_v63  ;;  %813 = vmatmul.f32.vlgmr.msra.gmra.mxu2 %v7825_v60 }
  0xad   : > { %v689_v1 = vld [vmem:[%s7680_s15 + $0xbe0] sm:$0xff]  ;;  %837 = vmatpush.msrb.mxu0 %v625_v0  ;;  %v314_v0 = vld [vmem:[%s7680_s15 + $0x28] sm:$0xff] }
  0xae   : > { %v753_v2 = vld [vmem:[%s7680_s15 + $0xde0] sm:$0xff]  ;;  %857 = vmatpush.msrb.mxu1 %v689_v1 }
  0xaf   : > { %v501_v3 = vld [vmem:[%s7680_s15 + $0x600] sm:$0xff]  ;;  %877 = vmatpush.msrb.mxu2 %v753_v2  ;;  %v7840_v2 = vld [vmem:[%s10440_s0 + $0x8] sm:$0xff] }
  0xb0   : > { %v621_v4 = vld [vmem:[%s7680_s15 + $0x9c0] sm:$0xff]  ;;  %832 = vmatpush.msra.mxu3 %v501_v3  ;;  %v7845_v3 = vld [vmem:[%s10440_s0 + $0x18] sm:$0xff]  ;;  %793 = vmatmul.f32.vlgmr.msra.gmra.mxu1 %v7840_v2 }
  0xb1   : > { %v685_v5 = vld [vmem:[%s7680_s15 + $0xbc0] sm:$0xff]  ;;  %838 = vmatpush.msrb.mxu0 %v621_v4  ;;  %v434_v4 = vld [vmem:[%s7680_s15 + $0x3e8] sm:$0xff]  ;;  %833 = vmatmul.f32.vlgmr.msra.gmra.mxu3 %v7845_v3 }
  0xb2   : > { %v749_v6 = vld [vmem:[%s7680_s15 + $0xdc0] sm:$0xff]  ;;  %858 = vmatpush.msrb.mxu1 %v685_v5  ;;  %897 = vmatpush.msrb.mxu3 %v370_v7  ;;  %v498_v5 = vld [vmem:[%s7680_s15 + $0x5e8] sm:$0xff] }
  0xb3   : > { %v617_v8 = vld [vmem:[%s7680_s15 + $0x9a0] sm:$0xff]  ;;  %878 = vmatpush.msrb.mxu2 %v749_v6  ;;  %v562_v6 = vld [vmem:[%s7680_s15 + $0x7e8] sm:$0xff] }
  0xb4   : > { %v681_v9 = vld [vmem:[%s7680_s15 + $0xba0] sm:$0xff]  ;;  %839 = vmatpush.msrb.mxu0 %v617_v8  ;;  %898 = vmatpush.msrb.mxu3 %v366_v11  ;;  %v310_v7 = vld [vmem:[%s7680_s15 + $0x8] sm:$0xff] }
  0xb5   : > { %v745_v10 = vld [vmem:[%s7680_s15 + $0xda0] sm:$0xff]  ;;  %859 = vmatpush.msrb.mxu1 %v681_v9  ;;  %v430_v8 = vld [vmem:[%s7680_s15 + $0x3c8] sm:$0xff] }
  0xb6   : > { %v613_v12 = vld [vmem:[%s7680_s15 + $0x980] sm:$0xff]  ;;  %879 = vmatpush.msrb.mxu2 %v745_v10  ;;  %899 = vmatpush.msrb.mxu3 %v362_v15  ;;  %v494_v9 = vld [vmem:[%s7680_s15 + $0x5c8] sm:$0xff] }
  0xb7   : > { %v677_v13 = vld [vmem:[%s7680_s15 + $0xb80] sm:$0xff]  ;;  %840 = vmatpush.msrb.mxu0 %v613_v12  ;;  %v558_v10 = vld [vmem:[%s7680_s15 + $0x7c8] sm:$0xff] }
  0xb8   : > { %v741_v14 = vld [vmem:[%s7680_s15 + $0xd80] sm:$0xff]  ;;  %860 = vmatpush.msrb.mxu1 %v677_v13  ;;  %900 = vmatpush.msrb.mxu3 %v358_v19  ;;  %v626_v11 = vld [vmem:[%s7680_s15 + $0x9e8] sm:$0xff] }
  0xb9   : > { %v609_v16 = vld [vmem:[%s7680_s15 + $0x960] sm:$0xff]  ;;  %880 = vmatpush.msrb.mxu2 %v741_v14  ;;  %v426_v12 = vld [vmem:[%s7680_s15 + $0x3a8] sm:$0xff] }
  0xba   : > { %v673_v17 = vld [vmem:[%s7680_s15 + $0xb60] sm:$0xff]  ;;  %841 = vmatpush.msrb.mxu0 %v609_v16  ;;  %901 = vmatpush.msrb.mxu3 %v354_v23  ;;  %v490_v13 = vld [vmem:[%s7680_s15 + $0x5a8] sm:$0xff]  ;;  %v7865_v16 = vld [vmem:[%s10440_s0 + $0x30] sm:$0xff] }
  0xbb   : > { %v737_v18 = vld [vmem:[%s7680_s15 + $0xd60] sm:$0xff]  ;;  %861 = vmatpush.msrb.mxu1 %v673_v17  ;;  %v554_v14 = vld [vmem:[%s7680_s15 + $0x7a8] sm:$0xff] }
  0xbc   : > { %v605_v20 = vld [vmem:[%s7680_s15 + $0x940] sm:$0xff]  ;;  %881 = vmatpush.msrb.mxu2 %v737_v18  ;;  %902 = vmatpush.msrb.mxu3 %v350_v27  ;;  %v622_v15 = vld [vmem:[%s7680_s15 + $0x9c8] sm:$0xff] }
  0xbd   : > { %v669_v21 = vld [vmem:[%s7680_s15 + $0xb40] sm:$0xff]  ;;  %842 = vmatpush.msrb.mxu0 %v605_v20  ;;  %v422_v17 = vld [vmem:[%s7680_s15 + $0x388] sm:$0xff] }
  0xbe   : > { %v733_v22 = vld [vmem:[%s7680_s15 + $0xd40] sm:$0xff]  ;;  %862 = vmatpush.msrb.mxu1 %v669_v21  ;;  %903 = vmatpush.msrb.mxu3 %v346_v31  ;;  %v486_v18 = vld [vmem:[%s7680_s15 + $0x588] sm:$0xff] }
  0xbf   : > { %v601_v24 = vld [vmem:[%s7680_s15 + $0x920] sm:$0xff]  ;;  %882 = vmatpush.msrb.mxu2 %v733_v22  ;;  %v550_v19 = vld [vmem:[%s7680_s15 + $0x788] sm:$0xff] }
  0xc0   : > { %v665_v25 = vld [vmem:[%s7680_s15 + $0xb20] sm:$0xff]  ;;  %843 = vmatpush.msrb.mxu0 %v601_v24  ;;  %904 = vmatpush.msrb.mxu3 %v342_v35  ;;  %v618_v20 = vld [vmem:[%s7680_s15 + $0x9a8] sm:$0xff] }
  0xc1   : > { %v729_v26 = vld [vmem:[%s7680_s15 + $0xd20] sm:$0xff]  ;;  %863 = vmatpush.msrb.mxu1 %v665_v25  ;;  %v418_v22 = vld [vmem:[%s7680_s15 + $0x368] sm:$0xff] }
  0xc2   : > { %v597_v28 = vld [vmem:[%s7680_s15 + $0x900] sm:$0xff]  ;;  %883 = vmatpush.msrb.mxu2 %v729_v26  ;;  %905 = vmatpush.msrb.mxu3 %v338_v39  ;;  %v482_v23 = vld [vmem:[%s7680_s15 + $0x568] sm:$0xff] }
  0xc3   : > { %v661_v29 = vld [vmem:[%s7680_s15 + $0xb00] sm:$0xff]  ;;  %844 = vmatpush.msrb.mxu0 %v597_v28  ;;  %v546_v24 = vld [vmem:[%s7680_s15 + $0x768] sm:$0xff] }
  0xc4   : > { %v725_v30 = vld [vmem:[%s7680_s15 + $0xd00] sm:$0xff]  ;;  %864 = vmatpush.msrb.mxu1 %v661_v29  ;;  %906 = vmatpush.msrb.mxu3 %v334_v43  ;;  %v614_v25 = vld [vmem:[%s7680_s15 + $0x988] sm:$0xff] }
  0xc5   : > { %v593_v32 = vld [vmem:[%s7680_s15 + $0x8e0] sm:$0xff]  ;;  %884 = vmatpush.msrb.mxu2 %v725_v30  ;;  %v7885_v26 = vld [vmem:[%s10440_s0 + $0x28] sm:$0xff] }
  0xc6   : > { %v657_v33 = vld [vmem:[%s7680_s15 + $0xae0] sm:$0xff]  ;;  %845 = vmatpush.msrb.mxu0 %v593_v32  ;;  %907 = vmatpush.msrb.mxu3 %v330_v47  ;;  %v414_v27 = vld [vmem:[%s7680_s15 + $0x348] sm:$0xff] }
  0xc7   : > { %v721_v34 = vld [vmem:[%s7680_s15 + $0xce0] sm:$0xff]  ;;  %865 = vmatpush.msrb.mxu1 %v657_v33  ;;  %v478_v28 = vld [vmem:[%s7680_s15 + $0x548] sm:$0xff] }
  0xc8   : > { %v589_v36 = vld [vmem:[%s7680_s15 + $0x8c0] sm:$0xff]  ;;  %885 = vmatpush.msrb.mxu2 %v721_v34  ;;  %908 = vmatpush.msrb.mxu3 %v326_v51  ;;  %v542_v29 = vld [vmem:[%s7680_s15 + $0x748] sm:$0xff] }
  0xc9   : > { %v653_v37 = vld [vmem:[%s7680_s15 + $0xac0] sm:$0xff]  ;;  %846 = vmatpush.msrb.mxu0 %v589_v36  ;;  %v610_v30 = vld [vmem:[%s7680_s15 + $0x968] sm:$0xff] }
  0xca   : > { %v717_v38 = vld [vmem:[%s7680_s15 + $0xcc0] sm:$0xff]  ;;  %866 = vmatpush.msrb.mxu1 %v653_v37  ;;  %909 = vmatpush.msrb.mxu3 %v322_v55  ;;  %v410_v31 = vld [vmem:[%s7680_s15 + $0x328] sm:$0xff] }
  0xcb   : > { %v585_v40 = vld [vmem:[%s7680_s15 + $0x8a0] sm:$0xff]  ;;  %886 = vmatpush.msrb.mxu2 %v717_v38  ;;  %v474_v32 = vld [vmem:[%s7680_s15 + $0x528] sm:$0xff] }
  0xcc   : > { %v649_v41 = vld [vmem:[%s7680_s15 + $0xaa0] sm:$0xff]  ;;  %847 = vmatpush.msrb.mxu0 %v585_v40  ;;  %910 = vmatpush.msrb.mxu3 %v318_v59  ;;  %v538_v33 = vld [vmem:[%s7680_s15 + $0x728] sm:$0xff] }
  0xcd   : > { %v713_v42 = vld [vmem:[%s7680_s15 + $0xca0] sm:$0xff]  ;;  %867 = vmatpush.msrb.mxu1 %v649_v41  ;;  %v606_v34 = vld [vmem:[%s7680_s15 + $0x948] sm:$0xff] }
  0xce   : > { %v581_v44 = vld [vmem:[%s7680_s15 + $0x880] sm:$0xff]  ;;  %887 = vmatpush.msrb.mxu2 %v713_v42  ;;  %911 = vmatpush.msrb.mxu3 %v314_v0  ;;  %v406_v35 = vld [vmem:[%s7680_s15 + $0x308] sm:$0xff] }
  0xcf   : > { %v645_v45 = vld [vmem:[%s7680_s15 + $0xa80] sm:$0xff]  ;;  %848 = vmatpush.msrb.mxu0 %v581_v44  ;;  %v470_v36 = vld [vmem:[%s7680_s15 + $0x508] sm:$0xff] }
  0xd0   : > { %v709_v46 = vld [vmem:[%s7680_s15 + $0xc80] sm:$0xff]  ;;  %868 = vmatpush.msrb.mxu1 %v645_v45  ;;  %912 = vmatpush.msrb.mxu3 %v310_v7  ;;  %v534_v37 = vld [vmem:[%s7680_s15 + $0x708] sm:$0xff] }
  0xd1   : > { %v577_v48 = vld [vmem:[%s7680_s15 + $0x860] sm:$0xff]  ;;  %888 = vmatpush.msrb.mxu2 %v709_v46  ;;  %v602_v38 = vld [vmem:[%s7680_s15 + $0x928] sm:$0xff] }
  0xd2   : > { %v641_v49 = vld [vmem:[%s7680_s15 + $0xa60] sm:$0xff]  ;;  %849 = vmatpush.msrb.mxu0 %v577_v48  ;;  %977 = vmatpush.msra.mxu3 %v626_v11  ;;  %v402_v39 = vld [vmem:[%s7680_s15 + $0x2e8] sm:$0xff] }
  0xd3   : > { %v705_v50 = vld [vmem:[%s7680_s15 + $0xc60] sm:$0xff]  ;;  %869 = vmatpush.msrb.mxu1 %v641_v49  ;;  %v466_v40 = vld [vmem:[%s7680_s15 + $0x4e8] sm:$0xff] }
  0xd4   : > { %v573_v52 = vld [vmem:[%s7680_s15 + $0x840] sm:$0xff]  ;;  %889 = vmatpush.msrb.mxu2 %v705_v50  ;;  %978 = vmatpush.msra.mxu3 %v622_v15  ;;  %v530_v41 = vld [vmem:[%s7680_s15 + $0x6e8] sm:$0xff] }
  0xd5   : > { %v637_v53 = vld [vmem:[%s7680_s15 + $0xa40] sm:$0xff]  ;;  %850 = vmatpush.msrb.mxu0 %v573_v52  ;;  %v598_v42 = vld [vmem:[%s7680_s15 + $0x908] sm:$0xff] }
  0xd6   : > { %v701_v54 = vld [vmem:[%s7680_s15 + $0xc40] sm:$0xff]  ;;  %870 = vmatpush.msrb.mxu1 %v637_v53  ;;  %979 = vmatpush.msra.mxu3 %v618_v20  ;;  %v398_v43 = vld [vmem:[%s7680_s15 + $0x2c8] sm:$0xff] }
  0xd7   : > { %v569_v56 = vld [vmem:[%s7680_s15 + $0x820] sm:$0xff]  ;;  %890 = vmatpush.msrb.mxu2 %v701_v54  ;;  %v462_v44 = vld [vmem:[%s7680_s15 + $0x4c8] sm:$0xff] }
  0xd8   : > { %v633_v57 = vld [vmem:[%s7680_s15 + $0xa20] sm:$0xff]  ;;  %851 = vmatpush.msrb.mxu0 %v569_v56  ;;  %980 = vmatpush.msra.mxu3 %v614_v25  ;;  %v526_v45 = vld [vmem:[%s7680_s15 + $0x6c8] sm:$0xff] }
  0xd9   : > { %v697_v58 = vld [vmem:[%s7680_s15 + $0xc20] sm:$0xff]  ;;  %871 = vmatpush.msrb.mxu1 %v633_v57  ;;  %v594_v46 = vld [vmem:[%s7680_s15 + $0x8e8] sm:$0xff] }
  0xda   : > { %v565_v61 = vld [vmem:[%s7680_s15 + $0x800] sm:$0xff]  ;;  %891 = vmatpush.msrb.mxu2 %v697_v58  ;;  %981 = vmatpush.msra.mxu3 %v610_v30  ;;  %v394_v47 = vld [vmem:[%s7680_s15 + $0x2a8] sm:$0xff] }
  0xdb   : > { %v629_v62 = vld [vmem:[%s7680_s15 + $0xa00] sm:$0xff]  ;;  %852 = vmatpush.msrb.mxu0 %v565_v61  ;;  %v458_v48 = vld [vmem:[%s7680_s15 + $0x4a8] sm:$0xff] }
  0xdc   : > { %v693_v63 = vld [vmem:[%s7680_s15 + $0xc00] sm:$0xff]  ;;  %872 = vmatpush.msrb.mxu1 %v629_v62  ;;  %982 = vmatpush.msra.mxu3 %v606_v34  ;;  %v522_v49 = vld [vmem:[%s7680_s15 + $0x6a8] sm:$0xff] }
  0xdd   : > { %v7834_v1 = vld [vmem:[%s10440_s0] sm:$0xff]  ;;  %892 = vmatpush.msrb.mxu2 %v693_v63  ;;  %873 = vmatmul.f32.vlgmr.msrb.gmra.mxu1 %v7885_v26  ;;  %v590_v50 = vld [vmem:[%s7680_s15 + $0x8c8] sm:$0xff] }
  0xde   : > { %773 = vmatmul.f32.vlgmr.msra.gmra.mxu0 %v7834_v1  ;;  %937 = vmatpush.msra.mxu1 %v498_v5  ;;  %v7874_v21 = vld [vmem:[%s10440_s0 + $0x20] sm:$0xff]  ;;  %v390_v51 = vld [vmem:[%s7680_s15 + $0x288] sm:$0xff] }
  0xdf   : > { %917 = vmatpush.msra.mxu0 %v434_v4  ;;  %957 = vmatpush.msra.mxu2 %v562_v6  ;;  %v454_v52 = vld [vmem:[%s7680_s15 + $0x488] sm:$0xff] }
  0xe0   : > { %938 = vmatpush.msra.mxu1 %v494_v9  ;;  %893 = vmatmul.f32.vlgmr.msrb.gmra.mxu2 %v7865_v16  ;;  %v518_v53 = vld [vmem:[%s7680_s15 + $0x688] sm:$0xff] }
  0xe1   : > { %918 = vmatpush.msra.mxu0 %v430_v8  ;;  %958 = vmatpush.msra.mxu2 %v558_v10  ;;  %v586_v54 = vld [vmem:[%s7680_s15 + $0x8a8] sm:$0xff] }
  0xe2   : > { %939 = vmatpush.msra.mxu1 %v490_v13  ;;  %983 = vmatpush.msra.mxu3 %v602_v38  ;;  %v386_v55 = vld [vmem:[%s7680_s15 + $0x268] sm:$0xff]  ;;  %v371_v13 = vld [vmem:[%s7680_s15 + $0x1f0] sm:$0xff] }
  0xe3   : > { %919 = vmatpush.msra.mxu0 %v426_v12  ;;  %959 = vmatpush.msra.mxu2 %v554_v14  ;;  %v450_v56 = vld [vmem:[%s7680_s15 + $0x468] sm:$0xff] }
  0xe4   : > { %940 = vmatpush.msra.mxu1 %v486_v18  ;;  %984 = vmatpush.msra.mxu3 %v598_v42  ;;  %v514_v57 = vld [vmem:[%s7680_s15 + $0x668] sm:$0xff]  ;;  %v367_v18 = vld [vmem:[%s7680_s15 + $0x1d0] sm:$0xff] }
  0xe5   : > { %920 = vmatpush.msra.mxu0 %v422_v17  ;;  %960 = vmatpush.msra.mxu2 %v550_v19  ;;  %v582_v58 = vld [vmem:[%s7680_s15 + $0x888] sm:$0xff]  ;;  %v435_v19 = vld [vmem:[%s7680_s15 + $0x3f0] sm:$0xff] }
  0xe6   : > { %853 = vmatmul.f32.vlgmr.msrb.gmra.mxu0 %v7874_v21  ;;  %941 = vmatpush.msra.mxu1 %v482_v23  ;;  %v382_v59 = vld [vmem:[%s7680_s15 + $0x248] sm:$0xff]  ;;  %v363_v23 = vld [vmem:[%s7680_s15 + $0x1b0] sm:$0xff] }
  0xe7   : > { %921 = vmatpush.msra.mxu0 %v418_v22  ;;  %961 = vmatpush.msra.mxu2 %v546_v24  ;;  %v446_v61 = vld [vmem:[%s7680_s15 + $0x448] sm:$0xff]  ;;  %v431_v24 = vld [vmem:[%s7680_s15 + $0x3d0] sm:$0xff] }
  0xe8   : > { %942 = vmatpush.msra.mxu1 %v478_v28  ;;  %985 = vmatpush.msra.mxu3 %v594_v46  ;;  %v510_v62 = vld [vmem:[%s7680_s15 + $0x648] sm:$0xff]  ;;  %v359_v28 = vld [vmem:[%s7680_s15 + $0x190] sm:$0xff] }
  0xe9   : > { %922 = vmatpush.msra.mxu0 %v414_v27  ;;  %962 = vmatpush.msra.mxu2 %v542_v29  ;;  %v578_v63 = vld [vmem:[%s7680_s15 + $0x868] sm:$0xff]  ;;  %v427_v29 = vld [vmem:[%s7680_s15 + $0x3b0] sm:$0xff] }
  0xea   : > { %943 = vmatpush.msra.mxu1 %v474_v32  ;;  %986 = vmatpush.msra.mxu3 %v590_v50  ;;  %v378_v0 = vld [vmem:[%s7680_s15 + $0x228] sm:$0xff]  ;;  %v355_v32 = vld [vmem:[%s7680_s15 + $0x170] sm:$0xff] }
  0xeb   : > { %923 = vmatpush.msra.mxu0 %v410_v31  ;;  %963 = vmatpush.msra.mxu2 %v538_v33  ;;  %v442_v4 = vld [vmem:[%s7680_s15 + $0x428] sm:$0xff]  ;;  %v423_v33 = vld [vmem:[%s7680_s15 + $0x390] sm:$0xff] }
  0xec   : > { %944 = vmatpush.msra.mxu1 %v470_v36  ;;  %987 = vmatpush.msra.mxu3 %v586_v54  ;;  %v506_v5 = vld [vmem:[%s7680_s15 + $0x628] sm:$0xff]  ;;  %v351_v36 = vld [vmem:[%s7680_s15 + $0x150] sm:$0xff] }
  0xed   : > { %924 = vmatpush.msra.mxu0 %v406_v35  ;;  %964 = vmatpush.msra.mxu2 %v534_v37  ;;  %v574_v6 = vld [vmem:[%s7680_s15 + $0x848] sm:$0xff]  ;;  %v419_v37 = vld [vmem:[%s7680_s15 + $0x370] sm:$0xff] }
  0xee   : > { %945 = vmatpush.msra.mxu1 %v466_v40  ;;  %988 = vmatpush.msra.mxu3 %v582_v58  ;;  %v374_v7 = vld [vmem:[%s7680_s15 + $0x208] sm:$0xff]  ;;  %v347_v40 = vld [vmem:[%s7680_s15 + $0x130] sm:$0xff] }
  0xef   : > { %925 = vmatpush.msra.mxu0 %v402_v39  ;;  %965 = vmatpush.msra.mxu2 %v530_v41  ;;  %v438_v8 = vld [vmem:[%s7680_s15 + $0x408] sm:$0xff]  ;;  %v415_v41 = vld [vmem:[%s7680_s15 + $0x350] sm:$0xff] }
  0xf0   : > { %946 = vmatpush.msra.mxu1 %v462_v44  ;;  %989 = vmatpush.msra.mxu3 %v578_v63  ;;  %v502_v9 = vld [vmem:[%s7680_s15 + $0x608] sm:$0xff]  ;;  %v343_v44 = vld [vmem:[%s7680_s15 + $0x110] sm:$0xff] }
  0xf1   : > { %926 = vmatpush.msra.mxu0 %v398_v43  ;;  %966 = vmatpush.msra.mxu2 %v526_v45  ;;  %v570_v10 = vld [vmem:[%s7680_s15 + $0x828] sm:$0xff]  ;;  %v411_v45 = vld [vmem:[%s7680_s15 + $0x330] sm:$0xff] }
  0xf2   : > { %947 = vmatpush.msra.mxu1 %v458_v48  ;;  %v690_v11 = vld [vmem:[%s7680_s15 + $0xbe8] sm:$0xff]  ;;  %990 = vmatpush.msra.mxu3 %v574_v6  ;;  %v339_v48 = vld [vmem:[%s7680_s15 + $0xf0] sm:$0xff] }
  0xf3   : > { %927 = vmatpush.msra.mxu0 %v394_v47  ;;  %967 = vmatpush.msra.mxu2 %v522_v49  ;;  %v754_v12 = vld [vmem:[%s7680_s15 + $0xde8] sm:$0xff]  ;;  %v407_v49 = vld [vmem:[%s7680_s15 + $0x310] sm:$0xff] }
  0xf4   : > { %948 = vmatpush.msra.mxu1 %v454_v52  ;;  %v566_v14 = vld [vmem:[%s7680_s15 + $0x808] sm:$0xff]  ;;  %991 = vmatpush.msra.mxu3 %v570_v10  ;;  %v335_v52 = vld [vmem:[%s7680_s15 + $0xd0] sm:$0xff] }
  0xf5   : > { %928 = vmatpush.msra.mxu0 %v390_v51  ;;  %968 = vmatpush.msra.mxu2 %v518_v53  ;;  %v686_v15 = vld [vmem:[%s7680_s15 + $0xbc8] sm:$0xff]  ;;  %v403_v53 = vld [vmem:[%s7680_s15 + $0x2f0] sm:$0xff] }
  0xf6   : > { %949 = vmatpush.msra.mxu1 %v450_v56  ;;  %v750_v17 = vld [vmem:[%s7680_s15 + $0xdc8] sm:$0xff]  ;;  %913 = vmatmul.f32.vlgmr.msrb.gmra.mxu3 %v7834_v1  ;;  %v331_v56 = vld [vmem:[%s7680_s15 + $0xb0] sm:$0xff] }
  0xf7   : > { %929 = vmatpush.msra.mxu0 %v386_v55  ;;  %969 = vmatpush.msra.mxu2 %v514_v57  ;;  %v682_v20 = vld [vmem:[%s7680_s15 + $0xba8] sm:$0xff]  ;;  %v399_v57 = vld [vmem:[%s7680_s15 + $0x2d0] sm:$0xff] }
  0xf8   : > { %950 = vmatpush.msra.mxu1 %v446_v61  ;;  %992 = vmatpush.msra.mxu3 %v566_v14  ;;  %v746_v22 = vld [vmem:[%s7680_s15 + $0xda8] sm:$0xff]  ;;  %v327_v61 = vld [vmem:[%s7680_s15 + $0x90] sm:$0xff] }
  0xf9   : > { %930 = vmatpush.msra.mxu0 %v382_v59  ;;  %970 = vmatpush.msra.mxu2 %v510_v62  ;;  %v678_v25 = vld [vmem:[%s7680_s15 + $0xb88] sm:$0xff]  ;;  %v395_v62 = vld [vmem:[%s7680_s15 + $0x2b0] sm:$0xff] }
  0xfa   : > { %951 = vmatpush.msra.mxu1 %v442_v4  ;;  %1057 = vmatpush.msrb.mxu3 %v435_v19  ;;  %v742_v27 = vld [vmem:[%s7680_s15 + $0xd88] sm:$0xff]  ;;  %v323_v4 = vld [vmem:[%s7680_s15 + $0x70] sm:$0xff] }
  0xfb   : > { %931 = vmatpush.msra.mxu0 %v378_v0  ;;  %971 = vmatpush.msra.mxu2 %v506_v5  ;;  %v674_v30 = vld [vmem:[%s7680_s15 + $0xb68] sm:$0xff]  ;;  %v391_v5 = vld [vmem:[%s7680_s15 + $0x290] sm:$0xff] }
  0xfc   : > { %952 = vmatpush.msra.mxu1 %v438_v8  ;;  %1058 = vmatpush.msrb.mxu3 %v431_v24  ;;  %v738_v31 = vld [vmem:[%s7680_s15 + $0xd68] sm:$0xff]  ;;  %v319_v8 = vld [vmem:[%s7680_s15 + $0x50] sm:$0xff] }
  0xfd   : > { %932 = vmatpush.msra.mxu0 %v374_v7  ;;  %972 = vmatpush.msra.mxu2 %v502_v9  ;;  %v670_v34 = vld [vmem:[%s7680_s15 + $0xb48] sm:$0xff]  ;;  %v387_v9 = vld [vmem:[%s7680_s15 + $0x270] sm:$0xff] }
  0xfe   : > { %1017 = vmatpush.msrb.mxu1 %v754_v12  ;;  %973 = vmatmul.f32.vlgmr.msra.gmra.mxu2 %v7845_v3  ;;  %v734_v35 = vld [vmem:[%s7680_s15 + $0xd48] sm:$0xff]  ;;  %v315_v12 = vld [vmem:[%s7680_s15 + $0x30] sm:$0xff] }
  0xff   : > { %997 = vmatpush.msrb.mxu0 %v690_v11  ;;  %1037 = vmatpush.msrb.mxu2 %v371_v13  ;;  %v666_v38 = vld [vmem:[%s7680_s15 + $0xb28] sm:$0xff]  ;;  %v383_v13 = vld [vmem:[%s7680_s15 + $0x250] sm:$0xff] }
 0x100   : > { %1018 = vmatpush.msrb.mxu1 %v750_v17  ;;  %1059 = vmatpush.msrb.mxu3 %v427_v29  ;;  %v730_v39 = vld [vmem:[%s7680_s15 + $0xd28] sm:$0xff]  ;;  %v311_v17 = vld [vmem:[%s7680_s15 + $0x10] sm:$0xff] }
 0x101   : > { %998 = vmatpush.msrb.mxu0 %v686_v15  ;;  %1038 = vmatpush.msrb.mxu2 %v367_v18  ;;  %v662_v42 = vld [vmem:[%s7680_s15 + $0xb08] sm:$0xff]  ;;  %v379_v18 = vld [vmem:[%s7680_s15 + $0x230] sm:$0xff] }
 0x102   : > { %1019 = vmatpush.msrb.mxu1 %v746_v22  ;;  %933 = vmatmul.f32.vlgmr.msra.gmra.mxu0 %v7840_v2  ;;  %v726_v43 = vld [vmem:[%s7680_s15 + $0xd08] sm:$0xff]  ;;  %v563_v19 = vld [vmem:[%s7680_s15 + $0x7f0] sm:$0xff] }
 0x103   : > { %999 = vmatpush.msrb.mxu0 %v682_v20  ;;  %1039 = vmatpush.msrb.mxu2 %v363_v23  ;;  %v658_v46 = vld [vmem:[%s7680_s15 + $0xae8] sm:$0xff]  ;;  %v499_v20 = vld [vmem:[%s7680_s15 + $0x5f0] sm:$0xff] }
 0x104   : > { %1020 = vmatpush.msrb.mxu1 %v742_v27  ;;  %993 = vmatmul.f32.vlgmr.msra.gmra.mxu3 %v7874_v21  ;;  %v722_v47 = vld [vmem:[%s7680_s15 + $0xce8] sm:$0xff]  ;;  %v627_v22 = vld [vmem:[%s7680_s15 + $0x9f0] sm:$0xff] }
 0x105   : > { %1000 = vmatpush.msrb.mxu0 %v678_v25  ;;  %1040 = vmatpush.msrb.mxu2 %v359_v28  ;;  %v654_v50 = vld [vmem:[%s7680_s15 + $0xac8] sm:$0xff]  ;;  %v375_v23 = vld [vmem:[%s7680_s15 + $0x210] sm:$0xff] }
 0x106   : > { %1021 = vmatpush.msrb.mxu1 %v738_v31  ;;  %1060 = vmatpush.msrb.mxu3 %v423_v33  ;;  %v718_v51 = vld [vmem:[%s7680_s15 + $0xcc8] sm:$0xff]  ;;  %v495_v24 = vld [vmem:[%s7680_s15 + $0x5d0] sm:$0xff] }
 0x107   : > { %1001 = vmatpush.msrb.mxu0 %v674_v30  ;;  %1041 = vmatpush.msrb.mxu2 %v355_v32  ;;  %v650_v54 = vld [vmem:[%s7680_s15 + $0xaa8] sm:$0xff]  ;;  %v559_v25 = vld [vmem:[%s7680_s15 + $0x7d0] sm:$0xff] }
 0x108   : > { %953 = vmatmul.f32.vlgmr.msra.gmra.mxu1 %v7825_v60  ;;  %1061 = vmatpush.msrb.mxu3 %v419_v37  ;;  %v714_v55 = vld [vmem:[%s7680_s15 + $0xca8] sm:$0xff]  ;;  %v623_v27 = vld [vmem:[%s7680_s15 + $0x9d0] sm:$0xff] }
 0x109   : > { %1002 = vmatpush.msrb.mxu0 %v670_v34  ;;  %1022 = vmatpush.msrb.mxu1 %v734_v35  ;;  %v646_v58 = vld [vmem:[%s7680_s15 + $0xa88] sm:$0xff]  ;;  %v691_v28 = vld [vmem:[%s7680_s15 + $0xbf0] sm:$0xff] }
 0x10a   : > { %1042 = vmatpush.msrb.mxu2 %v351_v36  ;;  %1062 = vmatpush.msrb.mxu3 %v415_v41  ;;  %v710_v59 = vld [vmem:[%s7680_s15 + $0xc88] sm:$0xff]  ;;  %v491_v29 = vld [vmem:[%s7680_s15 + $0x5b0] sm:$0xff] }
 0x10b   : > { %1003 = vmatpush.msrb.mxu0 %v666_v38  ;;  %1023 = vmatpush.msrb.mxu1 %v730_v39  ;;  %v642_v63 = vld [vmem:[%s7680_s15 + $0xa68] sm:$0xff]  ;;  %v555_v30 = vld [vmem:[%s7680_s15 + $0x7b0] sm:$0xff] }
 0x10c   : > { %1043 = vmatpush.msrb.mxu2 %v347_v40  ;;  %1063 = vmatpush.msrb.mxu3 %v411_v45  ;;  %v706_v0 = vld [vmem:[%s7680_s15 + $0xc68] sm:$0xff]  ;;  %v619_v31 = vld [vmem:[%s7680_s15 + $0x9b0] sm:$0xff] }
 0x10d   : > { %1004 = vmatpush.msrb.mxu0 %v662_v42  ;;  %1024 = vmatpush.msrb.mxu1 %v726_v43  ;;  %v638_v6 = vld [vmem:[%s7680_s15 + $0xa48] sm:$0xff]  ;;  %v687_v32 = vld [vmem:[%s7680_s15 + $0xbd0] sm:$0xff] }
 0x10e   : > { %1044 = vmatpush.msrb.mxu2 %v343_v44  ;;  %1064 = vmatpush.msrb.mxu3 %v407_v49  ;;  %v702_v7 = vld [vmem:[%s7680_s15 + $0xc48] sm:$0xff]  ;;  %v487_v33 = vld [vmem:[%s7680_s15 + $0x590] sm:$0xff] }
 0x10f   : > { %1005 = vmatpush.msrb.mxu0 %v658_v46  ;;  %1025 = vmatpush.msrb.mxu1 %v722_v47  ;;  %v634_v10 = vld [vmem:[%s7680_s15 + $0xa28] sm:$0xff]  ;;  %v551_v34 = vld [vmem:[%s7680_s15 + $0x790] sm:$0xff] }
 0x110   : > { %1045 = vmatpush.msrb.mxu2 %v339_v48  ;;  %1065 = vmatpush.msrb.mxu3 %v403_v53  ;;  %v698_v11 = vld [vmem:[%s7680_s15 + $0xc28] sm:$0xff]  ;;  %v615_v35 = vld [vmem:[%s7680_s15 + $0x990] sm:$0xff] }
 0x111   : > { %1006 = vmatpush.msrb.mxu0 %v654_v50  ;;  %1026 = vmatpush.msrb.mxu1 %v718_v51  ;;  %v630_v14 = vld [vmem:[%s7680_s15 + $0xa08] sm:$0xff]  ;;  %v483_v36 = vld [vmem:[%s7680_s15 + $0x570] sm:$0xff] }
 0x112   : > { %1046 = vmatpush.msrb.mxu2 %v335_v52  ;;  %1066 = vmatpush.msrb.mxu3 %v399_v57  ;;  %v694_v15 = vld [vmem:[%s7680_s15 + $0xc08] sm:$0xff]  ;;  %v547_v37 = vld [vmem:[%s7680_s15 + $0x770] sm:$0xff] }
 0x113   : > { %1007 = vmatpush.msrb.mxu0 %v650_v54  ;;  %1027 = vmatpush.msrb.mxu1 %v714_v55  ;;  %v611_v38 = vld [vmem:[%s7680_s15 + $0x970] sm:$0xff] }
 0x114   : > { %1047 = vmatpush.msrb.mxu2 %v331_v56  ;;  %1067 = vmatpush.msrb.mxu3 %v395_v62  ;;  %v679_v39 = vld [vmem:[%s7680_s15 + $0xb90] sm:$0xff] }
 0x115   : > { %1008 = vmatpush.msrb.mxu0 %v646_v58  ;;  %1028 = vmatpush.msrb.mxu1 %v710_v59  ;;  %v479_v40 = vld [vmem:[%s7680_s15 + $0x550] sm:$0xff] }
 0x116   : > { %1048 = vmatpush.msrb.mxu2 %v327_v61  ;;  %1068 = vmatpush.msrb.mxu3 %v391_v5  ;;  %v543_v41 = vld [vmem:[%s7680_s15 + $0x750] sm:$0xff] }
 0x117   : > { %1009 = vmatpush.msrb.mxu0 %v642_v63  ;;  %1029 = vmatpush.msrb.mxu1 %v706_v0  ;;  %v607_v42 = vld [vmem:[%s7680_s15 + $0x950] sm:$0xff] }
 0x118   : > { %1049 = vmatpush.msrb.mxu2 %v323_v4  ;;  %1069 = vmatpush.msrb.mxu3 %v387_v9  ;;  %v675_v43 = vld [vmem:[%s7680_s15 + $0xb70] sm:$0xff] }
 0x119   : > { %1010 = vmatpush.msrb.mxu0 %v638_v6  ;;  %1030 = vmatpush.msrb.mxu1 %v702_v7  ;;  %v475_v44 = vld [vmem:[%s7680_s15 + $0x530] sm:$0xff] }
 0x11a   : > { %1050 = vmatpush.msrb.mxu2 %v319_v8  ;;  %1070 = vmatpush.msrb.mxu3 %v383_v13  ;;  %v539_v45 = vld [vmem:[%s7680_s15 + $0x730] sm:$0xff] }
 0x11b   : > { %1011 = vmatpush.msrb.mxu0 %v634_v10  ;;  %1031 = vmatpush.msrb.mxu1 %v698_v11  ;;  %v603_v46 = vld [vmem:[%s7680_s15 + $0x930] sm:$0xff] }
 0x11c   : > { %1051 = vmatpush.msrb.mxu2 %v315_v12  ;;  %1071 = vmatpush.msrb.mxu3 %v379_v18  ;;  %v671_v47 = vld [vmem:[%s7680_s15 + $0xb50] sm:$0xff] }
 0x11d   : > { %1012 = vmatpush.msrb.mxu0 %v630_v14  ;;  %1032 = vmatpush.msrb.mxu1 %v694_v15  ;;  %v471_v48 = vld [vmem:[%s7680_s15 + $0x510] sm:$0xff] }
 0x11e   : > { %1052 = vmatpush.msrb.mxu2 %v311_v17  ;;  %1013 = vmatmul.f32.vlgmr.msrb.gmra.mxu0 %v7885_v26  ;;  %v535_v49 = vld [vmem:[%s7680_s15 + $0x710] sm:$0xff] }
 0x11f   : > { %1097 = vmatpush.msra.mxu1 %v563_v19  ;;  %1077 = vmatpush.msra.mxu0 %v499_v20  ;;  %v599_v50 = vld [vmem:[%s7680_s15 + $0x910] sm:$0xff] }
 0x120   : > { %1117 = vmatpush.msra.mxu2 %v627_v22  ;;  %1072 = vmatpush.msrb.mxu3 %v375_v23  ;;  %v667_v51 = vld [vmem:[%s7680_s15 + $0xb30] sm:$0xff] }
 0x121   : > { %1033 = vmatmul.f32.vlgmr.msrb.gmra.mxu1 %v7865_v16  ;;  %1078 = vmatpush.msra.mxu0 %v495_v24  ;;  %v683_v16 = vld [vmem:[%s7680_s15 + $0xbb0] sm:$0xff] }
 0x122   : > { %1098 = vmatpush.msra.mxu1 %v559_v25  ;;  %1118 = vmatpush.msra.mxu2 %v623_v27  ;;  %v467_v52 = vld [vmem:[%s7680_s15 + $0x4f0] sm:$0xff] }
 0x123   : > { %1137 = vmatpush.msra.mxu3 %v691_v28  ;;  %1079 = vmatpush.msra.mxu0 %v491_v29  ;;  %v531_v53 = vld [vmem:[%s7680_s15 + $0x6f0] sm:$0xff]  ;;  %v372_v28 = vld [vmem:[%s7680_s15 + $0x1f8] sm:$0xff] }
 0x124   : > { %1099 = vmatpush.msra.mxu1 %v555_v30  ;;  %1119 = vmatpush.msra.mxu2 %v619_v31  ;;  %v595_v54 = vld [vmem:[%s7680_s15 + $0x8f0] sm:$0xff]  ;;  %v436_v29 = vld [vmem:[%s7680_s15 + $0x3f8] sm:$0xff] }
 0x125   : > { %1138 = vmatpush.msra.mxu3 %v687_v32  ;;  %1080 = vmatpush.msra.mxu0 %v487_v33  ;;  %v663_v55 = vld [vmem:[%s7680_s15 + $0xb10] sm:$0xff]  ;;  %v368_v32 = vld [vmem:[%s7680_s15 + $0x1d8] sm:$0xff] }
 0x126   : > { %1100 = vmatpush.msra.mxu1 %v551_v34  ;;  %1120 = vmatpush.msra.mxu2 %v615_v35  ;;  %v463_v56 = vld [vmem:[%s7680_s15 + $0x4d0] sm:$0xff]  ;;  %v500_v33 = vld [vmem:[%s7680_s15 + $0x5f8] sm:$0xff] }
 0x127   : > { %1139 = vmatpush.msra.mxu3 %v683_v16  ;;  %1081 = vmatpush.msra.mxu0 %v483_v36  ;;  %v527_v57 = vld [vmem:[%s7680_s15 + $0x6d0] sm:$0xff]  ;;  %v364_v35 = vld [vmem:[%s7680_s15 + $0x1b8] sm:$0xff] }
 0x128   : > { %1101 = vmatpush.msra.mxu1 %v547_v37  ;;  %1121 = vmatpush.msra.mxu2 %v611_v38  ;;  %v591_v58 = vld [vmem:[%s7680_s15 + $0x8d0] sm:$0xff]  ;;  %v428_v16 = vld [vmem:[%s7680_s15 + $0x3b8] sm:$0xff] }
 0x129   : > { %1140 = vmatpush.msra.mxu3 %v679_v39  ;;  %1082 = vmatpush.msra.mxu0 %v479_v40  ;;  %v659_v59 = vld [vmem:[%s7680_s15 + $0xaf0] sm:$0xff]  ;;  %v496_v36 = vld [vmem:[%s7680_s15 + $0x5d8] sm:$0xff] }
 0x12a   : > { %1102 = vmatpush.msra.mxu1 %v543_v41  ;;  %1122 = vmatpush.msra.mxu2 %v607_v42  ;;  %v459_v61 = vld [vmem:[%s7680_s15 + $0x4b0] sm:$0xff]  ;;  %v360_v37 = vld [vmem:[%s7680_s15 + $0x198] sm:$0xff] }
 0x12b   : > { %1141 = vmatpush.msra.mxu3 %v675_v43  ;;  %1083 = vmatpush.msra.mxu0 %v475_v44  ;;  %v523_v62 = vld [vmem:[%s7680_s15 + $0x6b0] sm:$0xff]  ;;  %v424_v38 = vld [vmem:[%s7680_s15 + $0x398] sm:$0xff] }
 0x12c   : > { %1103 = vmatpush.msra.mxu1 %v539_v45  ;;  %1123 = vmatpush.msra.mxu2 %v603_v46  ;;  %v587_v63 = vld [vmem:[%s7680_s15 + $0x8b0] sm:$0xff]  ;;  %v492_v39 = vld [vmem:[%s7680_s15 + $0x5b8] sm:$0xff] }
 0x12d   : > { %1142 = vmatpush.msra.mxu3 %v671_v47  ;;  %1084 = vmatpush.msra.mxu0 %v471_v48  ;;  %v655_v0 = vld [vmem:[%s7680_s15 + $0xad0] sm:$0xff]  ;;  %v356_v41 = vld [vmem:[%s7680_s15 + $0x178] sm:$0xff] }
 0x12e   : > { %1104 = vmatpush.msra.mxu1 %v535_v49  ;;  %1124 = vmatpush.msra.mxu2 %v599_v50  ;;  %v455_v4 = vld [vmem:[%s7680_s15 + $0x490] sm:$0xff]  ;;  %v420_v42 = vld [vmem:[%s7680_s15 + $0x378] sm:$0xff] }
 0x12f   : > { %1143 = vmatpush.msra.mxu3 %v667_v51  ;;  %1085 = vmatpush.msra.mxu0 %v467_v52  ;;  %v519_v5 = vld [vmem:[%s7680_s15 + $0x690] sm:$0xff]  ;;  %v488_v43 = vld [vmem:[%s7680_s15 + $0x598] sm:$0xff] }
 0x130   : > { %1105 = vmatpush.msra.mxu1 %v531_v53  ;;  %1125 = vmatpush.msra.mxu2 %v595_v54  ;;  %v583_v6 = vld [vmem:[%s7680_s15 + $0x890] sm:$0xff]  ;;  %v352_v44 = vld [vmem:[%s7680_s15 + $0x158] sm:$0xff] }
 0x131   : > { %1144 = vmatpush.msra.mxu3 %v663_v55  ;;  %1086 = vmatpush.msra.mxu0 %v463_v56  ;;  %v651_v7 = vld [vmem:[%s7680_s15 + $0xab0] sm:$0xff]  ;;  %v416_v45 = vld [vmem:[%s7680_s15 + $0x358] sm:$0xff] }
 0x132   : > { %1106 = vmatpush.msra.mxu1 %v527_v57  ;;  %1126 = vmatpush.msra.mxu2 %v591_v58  ;;  %v451_v8 = vld [vmem:[%s7680_s15 + $0x470] sm:$0xff]  ;;  %v484_v46 = vld [vmem:[%s7680_s15 + $0x578] sm:$0xff] }
 0x133   : > { %1145 = vmatpush.msra.mxu3 %v659_v59  ;;  %1087 = vmatpush.msra.mxu0 %v459_v61  ;;  %v515_v9 = vld [vmem:[%s7680_s15 + $0x670] sm:$0xff]  ;;  %v348_v47 = vld [vmem:[%s7680_s15 + $0x138] sm:$0xff] }
 0x134   : > { %1107 = vmatpush.msra.mxu1 %v523_v62  ;;  %1127 = vmatpush.msra.mxu2 %v587_v63  ;;  %v579_v10 = vld [vmem:[%s7680_s15 + $0x870] sm:$0xff]  ;;  %v480_v48 = vld [vmem:[%s7680_s15 + $0x558] sm:$0xff] }
 0x135   : > { %1146 = vmatpush.msra.mxu3 %v655_v0  ;;  %1088 = vmatpush.msra.mxu0 %v455_v4  ;;  %v647_v11 = vld [vmem:[%s7680_s15 + $0xa90] sm:$0xff]  ;;  %v344_v50 = vld [vmem:[%s7680_s15 + $0x118] sm:$0xff] }
 0x136   : > { %1108 = vmatpush.msra.mxu1 %v519_v5  ;;  %1128 = vmatpush.msra.mxu2 %v583_v6  ;;  %v447_v12 = vld [vmem:[%s7680_s15 + $0x450] sm:$0xff]  ;;  %v408_v51 = vld [vmem:[%s7680_s15 + $0x318] sm:$0xff] }
 0x137   : > { %1147 = vmatpush.msra.mxu3 %v651_v7  ;;  %v511_v13 = vld [vmem:[%s7680_s15 + $0x650] sm:$0xff]  ;;  %1089 = vmatpush.msra.mxu0 %v451_v8  ;;  %v340_v53 = vld [vmem:[%s7680_s15 + $0xf8] sm:$0xff] }
 0x138   : > { %1109 = vmatpush.msra.mxu1 %v515_v9  ;;  %v575_v14 = vld [vmem:[%s7680_s15 + $0x850] sm:$0xff]  ;;  %1129 = vmatpush.msra.mxu2 %v579_v10  ;;  %v404_v54 = vld [vmem:[%s7680_s15 + $0x2f8] sm:$0xff] }
 0x139   : > { %v643_v15 = vld [vmem:[%s7680_s15 + $0xa70] sm:$0xff]  ;;  %1148 = vmatpush.msra.mxu3 %v647_v11  ;;  %1090 = vmatpush.msra.mxu0 %v447_v12  ;;  %v472_v55 = vld [vmem:[%s7680_s15 + $0x518] sm:$0xff] }
 0x13a   : > { %v443_v17 = vld [vmem:[%s7680_s15 + $0x430] sm:$0xff]  ;;  %1110 = vmatpush.msra.mxu1 %v511_v13  ;;  %1130 = vmatpush.msra.mxu2 %v575_v14  ;;  %v336_v57 = vld [vmem:[%s7680_s15 + $0xd8] sm:$0xff] }
 0x13b   : > { %v507_v18 = vld [vmem:[%s7680_s15 + $0x630] sm:$0xff]  ;;  %1149 = vmatpush.msra.mxu3 %v643_v15  ;;  %1091 = vmatpush.msra.mxu0 %v443_v17  ;;  %v400_v58 = vld [vmem:[%s7680_s15 + $0x2d8] sm:$0xff] }
 0x13c   : > { %v571_v19 = vld [vmem:[%s7680_s15 + $0x830] sm:$0xff]  ;;  %1111 = vmatpush.msra.mxu1 %v507_v18  ;;  %1053 = vmatmul.f32.vlgmr.msrb.gmra.mxu2 %v7834_v1  ;;  %v432_v1 = vld [vmem:[%s7680_s15 + $0x3d8] sm:$0xff] }
 0x13d   : > { %v639_v20 = vld [vmem:[%s7680_s15 + $0xa50] sm:$0xff]  ;;  %1131 = vmatpush.msra.mxu2 %v571_v19  ;;  %1073 = vmatmul.f32.vlgmr.msrb.gmra.mxu3 %v7840_v2  ;;  %v468_v59 = vld [vmem:[%s7680_s15 + $0x4f8] sm:$0xff] }
 0x13e   : > { %v439_v22 = vld [vmem:[%s7680_s15 + $0x410] sm:$0xff]  ;;  %1150 = vmatpush.msra.mxu3 %v639_v20  ;;  %v332_v62 = vld [vmem:[%s7680_s15 + $0xb8] sm:$0xff] }
 0x13f   : > { %v503_v23 = vld [vmem:[%s7680_s15 + $0x610] sm:$0xff]  ;;  %1092 = vmatpush.msra.mxu0 %v439_v22  ;;  %v396_v63 = vld [vmem:[%s7680_s15 + $0x2b8] sm:$0xff] }
 0x140   : > { %v567_v24 = vld [vmem:[%s7680_s15 + $0x810] sm:$0xff]  ;;  %1112 = vmatpush.msra.mxu1 %v503_v23  ;;  %1093 = vmatmul.f32.vlgmr.msra.gmra.mxu0 %v7825_v60  ;;  %v464_v0 = vld [vmem:[%s7680_s15 + $0x4d8] sm:$0xff] }
 0x141   : > { %v635_v25 = vld [vmem:[%s7680_s15 + $0xa30] sm:$0xff]  ;;  %1132 = vmatpush.msra.mxu2 %v567_v24  ;;  %1113 = vmatmul.f32.vlgmr.msra.gmra.mxu1 %v7845_v3  ;;  %v476_v3 = vld [vmem:[%s7680_s15 + $0x538] sm:$0xff] }
 0x142   : > { %v755_v27 = vld [vmem:[%s7680_s15 + $0xdf0] sm:$0xff]  ;;  %1151 = vmatpush.msra.mxu3 %v635_v25  ;;  %1177 = vmatpush.msrb.mxu1 %v372_v28  ;;  %v328_v5 = vld [vmem:[%s7680_s15 + $0x98] sm:$0xff] }
 0x143   : > { %v631_v30 = vld [vmem:[%s7680_s15 + $0xa10] sm:$0xff]  ;;  %1157 = vmatpush.msrb.mxu0 %v755_v27  ;;  %1197 = vmatpush.msrb.mxu2 %v436_v29  ;;  %v392_v6 = vld [vmem:[%s7680_s15 + $0x298] sm:$0xff] }
 0x144   : > { %v751_v31 = vld [vmem:[%s7680_s15 + $0xdd0] sm:$0xff]  ;;  %1152 = vmatpush.msra.mxu3 %v631_v30  ;;  %1178 = vmatpush.msrb.mxu1 %v368_v32  ;;  %v460_v7 = vld [vmem:[%s7680_s15 + $0x4b8] sm:$0xff] }
 0x145   : > { %v747_v34 = vld [vmem:[%s7680_s15 + $0xdb0] sm:$0xff]  ;;  %1158 = vmatpush.msrb.mxu0 %v751_v31  ;;  %1198 = vmatpush.msrb.mxu2 %v432_v1  ;;  %v324_v9 = vld [vmem:[%s7680_s15 + $0x78] sm:$0xff] }
 0x146   : > { %1217 = vmatpush.msrb.mxu3 %v500_v33  ;;  %v743_v2 = vld [vmem:[%s7680_s15 + $0xd90] sm:$0xff]  ;;  %1179 = vmatpush.msrb.mxu1 %v364_v35  ;;  %v388_v10 = vld [vmem:[%s7680_s15 + $0x278] sm:$0xff] }
 0x147   : > { %1159 = vmatpush.msrb.mxu0 %v747_v34  ;;  %1199 = vmatpush.msrb.mxu2 %v428_v16  ;;  %v739_v40 = vld [vmem:[%s7680_s15 + $0xd70] sm:$0xff]  ;;  %v456_v11 = vld [vmem:[%s7680_s15 + $0x498] sm:$0xff] }
 0x148   : > { %1218 = vmatpush.msrb.mxu3 %v496_v36  ;;  %1133 = vmatmul.f32.vlgmr.msra.gmra.mxu2 %v7874_v21  ;;  %v735_v21 = vld [vmem:[%s7680_s15 + $0xd50] sm:$0xff]  ;;  %v320_v13 = vld [vmem:[%s7680_s15 + $0x58] sm:$0xff] }
 0x149   : > { %1160 = vmatpush.msrb.mxu0 %v743_v2  ;;  %1180 = vmatpush.msrb.mxu1 %v360_v37  ;;  %v731_v60 = vld [vmem:[%s7680_s15 + $0xd30] sm:$0xff]  ;;  %v384_v14 = vld [vmem:[%s7680_s15 + $0x258] sm:$0xff] }
 0x14a   : > { %1200 = vmatpush.msrb.mxu2 %v424_v38  ;;  %1219 = vmatpush.msrb.mxu3 %v492_v39  ;;  %v727_v49 = vld [vmem:[%s7680_s15 + $0xd10] sm:$0xff]  ;;  %v452_v15 = vld [vmem:[%s7680_s15 + $0x478] sm:$0xff] }
 0x14b   : > { %1153 = vmatmul.f32.vlgmr.msra.gmra.mxu3 %v7885_v26  ;;  %1161 = vmatpush.msrb.mxu0 %v739_v40  ;;  %v412_v26 = vld [vmem:[%s7680_s15 + $0x338] sm:$0xff]  ;;  %v723_v52 = vld [vmem:[%s7680_s15 + $0xcf0] sm:$0xff] }
 0x14c   : > { %1181 = vmatpush.msrb.mxu1 %v356_v41  ;;  %1201 = vmatpush.msrb.mxu2 %v420_v42  ;;  %v719_v56 = vld [vmem:[%s7680_s15 + $0xcd0] sm:$0xff]  ;;  %v316_v18 = vld [vmem:[%s7680_s15 + $0x38] sm:$0xff] }
 0x14d   : > { %1220 = vmatpush.msrb.mxu3 %v488_v43  ;;  %1162 = vmatpush.msrb.mxu0 %v735_v21  ;;  %v715_v61 = vld [vmem:[%s7680_s15 + $0xcb0] sm:$0xff]  ;;  %v380_v19 = vld [vmem:[%s7680_s15 + $0x238] sm:$0xff] }
 0x14e   : > { %1182 = vmatpush.msrb.mxu1 %v352_v44  ;;  %1202 = vmatpush.msrb.mxu2 %v416_v45  ;;  %v711_v4 = vld [vmem:[%s7680_s15 + $0xc90] sm:$0xff]  ;;  %v448_v20 = vld [vmem:[%s7680_s15 + $0x458] sm:$0xff] }
 0x14f   : > { %1221 = vmatpush.msrb.mxu3 %v484_v46  ;;  %1163 = vmatpush.msrb.mxu0 %v731_v60  ;;  %v707_v8 = vld [vmem:[%s7680_s15 + $0xc70] sm:$0xff]  ;;  %v312_v23 = vld [vmem:[%s7680_s15 + $0x18] sm:$0xff] }
 0x150   : > { %1183 = vmatpush.msrb.mxu1 %v348_v47  ;;  %1203 = vmatpush.msrb.mxu2 %v412_v26  ;;  %v703_v12 = vld [vmem:[%s7680_s15 + $0xc50] sm:$0xff]  ;;  %v376_v24 = vld [vmem:[%s7680_s15 + $0x218] sm:$0xff] }
 0x151   : > { %1222 = vmatpush.msrb.mxu3 %v480_v48  ;;  %1164 = vmatpush.msrb.mxu0 %v727_v49  ;;  %v699_v17 = vld [vmem:[%s7680_s15 + $0xc30] sm:$0xff]  ;;  %v444_v25 = vld [vmem:[%s7680_s15 + $0x438] sm:$0xff] }
 0x152   : > { %1184 = vmatpush.msrb.mxu1 %v344_v50  ;;  %1204 = vmatpush.msrb.mxu2 %v408_v51  ;;  %v695_v22 = vld [vmem:[%s7680_s15 + $0xc10] sm:$0xff]  ;;  %v628_v27 = vld [vmem:[%s7680_s15 + $0x9f8] sm:$0xff] }
 0x153   : > { %1223 = vmatpush.msrb.mxu3 %v476_v3  ;;  %1165 = vmatpush.msrb.mxu0 %v723_v52  ;;  %v564_v28 = vld [vmem:[%s7680_s15 + $0x7f8] sm:$0xff]  ;;  %v8145_v32 = vld [vmem:[%s10440_s0 + $0x30] sm:$0xff] }
 0x154   : > { %1185 = vmatpush.msrb.mxu1 %v340_v53  ;;  %1205 = vmatpush.msrb.mxu2 %v404_v54  ;;  %v692_v29 = vld [vmem:[%s7680_s15 + $0xbf8] sm:$0xff] }
 0x155   : > { %1224 = vmatpush.msrb.mxu3 %v472_v55  ;;  %1166 = vmatpush.msrb.mxu0 %v719_v56  ;;  %v440_v30 = vld [vmem:[%s7680_s15 + $0x418] sm:$0xff] }
 0x156   : > { %1186 = vmatpush.msrb.mxu1 %v336_v57  ;;  %1206 = vmatpush.msrb.mxu2 %v400_v58  ;;  %v624_v31 = vld [vmem:[%s7680_s15 + $0x9d8] sm:$0xff] }
 0x157   : > { %1225 = vmatpush.msrb.mxu3 %v468_v59  ;;  %1167 = vmatpush.msrb.mxu0 %v715_v61  ;;  %v560_v1 = vld [vmem:[%s7680_s15 + $0x7d8] sm:$0xff] }
 0x158   : > { %1187 = vmatpush.msrb.mxu1 %v332_v62  ;;  %1207 = vmatpush.msrb.mxu2 %v396_v63  ;;  %v688_v33 = vld [vmem:[%s7680_s15 + $0xbd8] sm:$0xff] }
 0x159   : > { %1226 = vmatpush.msrb.mxu3 %v464_v0  ;;  %1168 = vmatpush.msrb.mxu0 %v711_v4  ;;  %v756_v34 = vld [vmem:[%s7680_s15 + $0xdf8] sm:$0xff] }
 0x15a   : > { %1188 = vmatpush.msrb.mxu1 %v328_v5  ;;  %1208 = vmatpush.msrb.mxu2 %v392_v6  ;;  %v620_v35 = vld [vmem:[%s7680_s15 + $0x9b8] sm:$0xff] }
 0x15b   : > { %1227 = vmatpush.msrb.mxu3 %v460_v7  ;;  %1169 = vmatpush.msrb.mxu0 %v707_v8  ;;  %v556_v16 = vld [vmem:[%s7680_s15 + $0x7b8] sm:$0xff] }
 0x15c   : > { %1189 = vmatpush.msrb.mxu1 %v324_v9  ;;  %1209 = vmatpush.msrb.mxu2 %v388_v10  ;;  %v684_v36 = vld [vmem:[%s7680_s15 + $0xbb8] sm:$0xff]  ;;  %v7402_v9 = vld [vmem:[%s10440_s0 + $0x8] sm:$0xff] }
 0x15d   : > { %1228 = vmatpush.msrb.mxu3 %v456_v11  ;;  %1170 = vmatpush.msrb.mxu0 %v703_v12  ;;  %v752_v2 = vld [vmem:[%s7680_s15 + $0xdd8] sm:$0xff]  ;;  %v8195_v11 = vpop.f32.mrf.mxu0 }
 0x15e   : > { %1190 = vmatpush.msrb.mxu1 %v320_v13  ;;  %1210 = vmatpush.msrb.mxu2 %v384_v14  ;;  %v616_v37 = vld [vmem:[%s7680_s15 + $0x998] sm:$0xff] }
 0x15f   : > { %1229 = vmatpush.msrb.mxu3 %v452_v15  ;;  %1171 = vmatpush.msrb.mxu0 %v699_v17  ;;  %v552_v38 = vld [vmem:[%s7680_s15 + $0x798] sm:$0xff]  ;;  %v7403_v15 = vld [vmem:[%s10440_s0 + $0x10] sm:$0xff] }
 0x160   : > { %1191 = vmatpush.msrb.mxu1 %v316_v18  ;;  %1211 = vmatpush.msrb.mxu2 %v380_v19  ;;  %v680_v39 = vld [vmem:[%s7680_s15 + $0xb98] sm:$0xff] }
 0x161   : > { %1230 = vmatpush.msrb.mxu3 %v448_v20  ;;  %1172 = vmatpush.msrb.mxu0 %v695_v22  ;;  %v748_v40 = vld [vmem:[%s7680_s15 + $0xdb8] sm:$0xff]  ;;  %v794_v22 = vpop.f32.mrf.mxu1 }
 0x162   : > { %1192 = vmatpush.msrb.mxu1 %v312_v23  ;;  %1212 = vmatpush.msrb.mxu2 %v376_v24  ;;  %v612_v41 = vld [vmem:[%s7680_s15 + $0x978] sm:$0xff]  ;;  %v7404_v23 = vld [vmem:[%s10440_s0] sm:$0xff] }
 0x163   : > { %1231 = vmatpush.msrb.mxu3 %v444_v25  ;;  %1173 = vmatmul.f32.vlgmr.msrb.gmra.mxu0 %v8145_v32  ;;  %v548_v42 = vld [vmem:[%s7680_s15 + $0x778] sm:$0xff] }
 0x164   : > { %1257 = vmatpush.msra.mxu1 %v628_v27  ;;  %1237 = vmatpush.msra.mxu0 %v564_v28  ;;  %v676_v43 = vld [vmem:[%s7680_s15 + $0xb78] sm:$0xff] }
 0x165   : > { %1277 = vmatpush.msra.mxu2 %v692_v29  ;;  %1232 = vmatpush.msrb.mxu3 %v440_v30  ;;  %v744_v21 = vld [vmem:[%s7680_s15 + $0xd98] sm:$0xff] }
 0x166   : > { %1258 = vmatpush.msra.mxu1 %v624_v31  ;;  %1238 = vmatpush.msra.mxu0 %v560_v1  ;;  %v608_v44 = vld [vmem:[%s7680_s15 + $0x958] sm:$0xff] }
 0x167   : > { %1278 = vmatpush.msra.mxu2 %v688_v33  ;;  %1297 = vmatpush.msra.mxu3 %v756_v34  ;;  %v544_v45 = vld [vmem:[%s7680_s15 + $0x758] sm:$0xff]  ;;  %v814_v33 = vpop.f32.mrf.mxu2  ;;  %v1833_v34 = vld [vmem:[%s7687_s8 + $0xf00] sm:$0xff] }
 0x168   : > { %1259 = vmatpush.msra.mxu1 %v620_v35  ;;  %1239 = vmatpush.msra.mxu0 %v556_v16  ;;  %v672_v46 = vld [vmem:[%s7680_s15 + $0xb58] sm:$0xff]  ;;  %v2345_v35 = vld [vmem:[%s7687_s8 + $0x1f00] sm:$0xff]  ;;  %v8220_v16 = vpop.f32.mrf.mxu0 }
 0x169   : > { %1279 = vmatpush.msra.mxu2 %v684_v36  ;;  %1298 = vmatpush.msra.mxu3 %v752_v2  ;;  %v740_v60 = vld [vmem:[%s7680_s15 + $0xd78] sm:$0xff] }
 0x16a   : > { %1260 = vmatpush.msra.mxu1 %v616_v37  ;;  %1240 = vmatpush.msra.mxu0 %v552_v38  ;;  %v604_v47 = vld [vmem:[%s7680_s15 + $0x938] sm:$0xff]  ;;  %v7406_v37 = vld [vmem:[%s10440_s0 + $0x28] sm:$0xff]  ;;  %v1801_v38 = vld [vmem:[%s7687_s8 + $0xe00] sm:$0xff] }
 0x16b   : > { %1280 = vmatpush.msra.mxu2 %v680_v39  ;;  %1299 = vmatpush.msra.mxu3 %v748_v40  ;;  %v540_v26 = vld [vmem:[%s7680_s15 + $0x738] sm:$0xff]  ;;  %v834_v39 = vpop.f32.mrf.mxu3  ;;  %v2313_v40 = vld [vmem:[%s7687_s8 + $0x1e00] sm:$0xff] }
 0x16c   : > { %1261 = vmatpush.msra.mxu1 %v612_v41  ;;  %1241 = vmatpush.msra.mxu0 %v548_v42  ;;  %v668_v48 = vld [vmem:[%s7680_s15 + $0xb38] sm:$0xff]  ;;  %v7407_v41 = vld [vmem:[%s10440_s0 + $0x20] sm:$0xff] }
 0x16d   : > { %1281 = vmatpush.msra.mxu2 %v676_v43  ;;  %1300 = vmatpush.msra.mxu3 %v744_v21  ;;  %v736_v49 = vld [vmem:[%s7680_s15 + $0xd58] sm:$0xff]  ;;  %v1769_v42 = vld [vmem:[%s7687_s8 + $0xd00] sm:$0xff]  ;;  %v8235_v43 = vpop.f32.mrf.mxu1 }
 0x16e   : > { %1262 = vmatpush.msra.mxu1 %v608_v44  ;;  %1242 = vmatpush.msra.mxu0 %v544_v45  ;;  %v600_v50 = vld [vmem:[%s7680_s15 + $0x918] sm:$0xff]  ;;  %v2281_v21 = vld [vmem:[%s7687_s8 + $0x1d00] sm:$0xff] }
 0x16f   : > { %1282 = vmatpush.msra.mxu2 %v672_v46  ;;  %1301 = vmatpush.msra.mxu3 %v740_v60  ;;  %v536_v51 = vld [vmem:[%s7680_s15 + $0x718] sm:$0xff]  ;;  %v1737_v44 = vld [vmem:[%s7687_s8 + $0xc00] sm:$0xff]  ;;  %v795_v60 = vadd.f32 %v794_v22, %v8195_v11 }
 0x170   : > { %1263 = vmatpush.msra.mxu1 %v604_v47  ;;  %v664_v3 = vld [vmem:[%s7680_s15 + $0xb18] sm:$0xff]  ;;  %1243 = vmatpush.msra.mxu0 %v540_v26  ;;  %v2249_v45 = vld [vmem:[%s7687_s8 + $0x1c00] sm:$0xff]  ;;  %v8244_v26 = vpop.f32.mrf.mxu2 }
 0x171   : > { %1283 = vmatpush.msra.mxu2 %v668_v48  ;;  %v732_v52 = vld [vmem:[%s7680_s15 + $0xd38] sm:$0xff]  ;;  %1302 = vmatpush.msra.mxu3 %v736_v49  ;;  %v2857_v46 = vld [vmem:[%s7687_s8 + $0x2f00] sm:$0xff] }
 0x172   : > { %v596_v53 = vld [vmem:[%s7680_s15 + $0x8f8] sm:$0xff]  ;;  %1264 = vmatpush.msra.mxu1 %v600_v50  ;;  %1244 = vmatpush.msra.mxu0 %v536_v51  ;;  %v1705_v47 = vld [vmem:[%s7687_s8 + $0xb00] sm:$0xff] }
 0x173   : > { %v532_v54 = vld [vmem:[%s7680_s15 + $0x6f8] sm:$0xff]  ;;  %1284 = vmatpush.msra.mxu2 %v664_v3  ;;  %1303 = vmatpush.msra.mxu3 %v732_v52  ;;  %v2825_v49 = vld [vmem:[%s7687_s8 + $0x2e00] sm:$0xff] }
 0x174   : > { %v660_v55 = vld [vmem:[%s7680_s15 + $0xaf8] sm:$0xff]  ;;  %1265 = vmatpush.msra.mxu1 %v596_v53  ;;  %1245 = vmatpush.msra.mxu0 %v532_v54  ;;  %v1673_v50 = vld [vmem:[%s7687_s8 + $0xa00] sm:$0xff]  ;;  %v815_v53 = vadd.f32 %v814_v33, %v795_v60  ;;  %v2282_v60 = vld [vmem:[%s7687_s8 + $0x1d08] sm:$0xff] }
 0x175   : > { %v728_v56 = vld [vmem:[%s7680_s15 + $0xd18] sm:$0xff]  ;;  %1285 = vmatpush.msra.mxu2 %v660_v55  ;;  %1233 = vmatmul.f32.vlgmr.msrb.gmra.mxu3 %v7403_v15  ;;  %v2185_v3 = vld [vmem:[%s7687_s8 + $0x1a00] sm:$0xff] }
 0x176   : > { %v592_v57 = vld [vmem:[%s7680_s15 + $0x8d8] sm:$0xff]  ;;  %1304 = vmatpush.msra.mxu3 %v728_v56  ;;  %1213 = vmatmul.f32.vlgmr.msrb.gmra.mxu2 %v7402_v9  ;;  %v2793_v52 = vld [vmem:[%s7687_s8 + $0x2d00] sm:$0xff] }
 0x177   : > { %v528_v58 = vld [vmem:[%s7680_s15 + $0x6d8] sm:$0xff]  ;;  %1266 = vmatpush.msra.mxu1 %v592_v57  ;;  %v1641_v55 = vld [vmem:[%s7687_s8 + $0x900] sm:$0xff] }
 0x178   : > { %v656_v59 = vld [vmem:[%s7680_s15 + $0xad8] sm:$0xff]  ;;  %1246 = vmatpush.msra.mxu0 %v528_v58  ;;  %1193 = vmatmul.f32.vlgmr.msrb.gmra.mxu1 %v7404_v23  ;;  %v2153_v57 = vld [vmem:[%s7687_s8 + $0x1900] sm:$0xff] }
 0x179   : > { %v724_v61 = vld [vmem:[%s7680_s15 + $0xcf8] sm:$0xff]  ;;  %1286 = vmatpush.msra.mxu2 %v656_v59  ;;  %v914_v51 = vpop.f32.mrf.mxu3  ;;  %v2761_v58 = vld [vmem:[%s7687_s8 + $0x2c00] sm:$0xff] }
 0x17a   : > { %v588_v62 = vld [vmem:[%s7680_s15 + $0x8b8] sm:$0xff]  ;;  %1305 = vmatpush.msra.mxu3 %v724_v61  ;;  %v1609_v59 = vld [vmem:[%s7687_s8 + $0x800] sm:$0xff] }
 0x17b   : > { %v524_v63 = vld [vmem:[%s7680_s15 + $0x6b8] sm:$0xff]  ;;  %1267 = vmatpush.msra.mxu1 %v588_v62  ;;  %v2121_v61 = vld [vmem:[%s7687_s8 + $0x1800] sm:$0xff] }
 0x17c   : > { %v652_v0 = vld [vmem:[%s7680_s15 + $0xab8] sm:$0xff]  ;;  %1247 = vmatpush.msra.mxu0 %v524_v63  ;;  %v2729_v62 = vld [vmem:[%s7687_s8 + $0x2b00] sm:$0xff]  ;;  %v835_v63 = vadd.f32 %v834_v39, %v815_v53  ;;  %v2186_v53 = vld [vmem:[%s7687_s8 + $0x1a08] sm:$0xff] }
 0x17d   : > { %v720_v4 = vld [vmem:[%s7680_s15 + $0xcd8] sm:$0xff]  ;;  %1287 = vmatpush.msra.mxu2 %v652_v0  ;;  %v2057_v9 = vld [vmem:[%s7687_s8 + $0x1600] sm:$0xff] }
 0x17e   : > { %v520_v5 = vld [vmem:[%s7680_s15 + $0x698] sm:$0xff]  ;;  %1306 = vmatpush.msra.mxu3 %v720_v4  ;;  %v1577_v4 = vld [vmem:[%s7687_s8 + $0x700] sm:$0xff]  ;;  %v855_v11 = vadd.f32 %v8220_v16, %v835_v63  ;;  %v1578_v63 = vld [vmem:[%s7687_s8 + $0x708] sm:$0xff] }
 0x17f   : > { %v584_v6 = vld [vmem:[%s7680_s15 + $0x898] sm:$0xff]  ;;  %1248 = vmatpush.msra.mxu0 %v520_v5  ;;  %v934_v48 = vpop.f32.mrf.mxu0  ;;  %v2025_v15 = vld [vmem:[%s7687_s8 + $0x1500] sm:$0xff] }
 0x180   : > { %v648_v7 = vld [vmem:[%s7680_s15 + $0xa98] sm:$0xff]  ;;  %1268 = vmatpush.msra.mxu1 %v584_v6  ;;  %v935_v54 = vadd.f32 %v934_v48, %v914_v51  ;;  %v2089_v6 = vld [vmem:[%s7687_s8 + $0x1700] sm:$0xff]  ;;  %v875_v22 = vadd.f32 %v8235_v43, %v855_v11  ;;  %v2218_v51 = vld [vmem:[%s7687_s8 + $0x1b08] sm:$0xff] }
 0x181   : > { %v716_v8 = vld [vmem:[%s7680_s15 + $0xcb8] sm:$0xff]  ;;  %1288 = vmatpush.msra.mxu2 %v648_v7  ;;  %v974_v5 = vpop.f32.mrf.mxu2  ;;  %v2697_v7 = vld [vmem:[%s7687_s8 + $0x2a00] sm:$0xff]  ;;  %v2026_v11 = vld [vmem:[%s7687_s8 + $0x1508] sm:$0xff] }
 0x182   : > { %v516_v10 = vld [vmem:[%s7680_s15 + $0x678] sm:$0xff]  ;;  %1307 = vmatpush.msra.mxu3 %v716_v8  ;;  %v1545_v8 = vld [vmem:[%s7687_s8 + $0x600] sm:$0xff] }
 0x183   : > { %v580_v12 = vld [vmem:[%s7680_s15 + $0x878] sm:$0xff]  ;;  %1249 = vmatpush.msra.mxu0 %v516_v10  ;;  %v2665_v10 = vld [vmem:[%s7687_s8 + $0x2900] sm:$0xff] }
 0x184   : > { %v644_v13 = vld [vmem:[%s7680_s15 + $0xa78] sm:$0xff]  ;;  %1269 = vmatpush.msra.mxu1 %v580_v12  ;;  %v2537_v33 = vld [vmem:[%s7687_s8 + $0x2500] sm:$0xff] }
 0x185   : > { %v712_v14 = vld [vmem:[%s7680_s15 + $0xc98] sm:$0xff]  ;;  %1289 = vmatpush.msra.mxu2 %v644_v13  ;;  %v954_v56 = vpop.f32.mrf.mxu1  ;;  %v1513_v13 = vld [vmem:[%s7687_s8 + $0x500] sm:$0xff] }
 0x186   : > { %v512_v17 = vld [vmem:[%s7680_s15 + $0x658] sm:$0xff]  ;;  %1308 = vmatpush.msra.mxu3 %v712_v14  ;;  %v955_v0 = vadd.f32 %v954_v56, %v935_v54  ;;  %v2473_v39 = vld [vmem:[%s7687_s8 + $0x2300] sm:$0xff]  ;;  %v2794_v54 = vld [vmem:[%s7687_s8 + $0x2d08] sm:$0xff] }
 0x187   : > { %v576_v18 = vld [vmem:[%s7680_s15 + $0x858] sm:$0xff]  ;;  %1250 = vmatpush.msra.mxu0 %v512_v17  ;;  %v994_v14 = vpop.f32.mrf.mxu3  ;;  %v2633_v17 = vld [vmem:[%s7687_s8 + $0x2800] sm:$0xff]  ;;  %v2154_v56 = vld [vmem:[%s7687_s8 + $0x1908] sm:$0xff] }
 0x188   : > { %v640_v19 = vld [vmem:[%s7680_s15 + $0xa58] sm:$0xff]  ;;  %1270 = vmatpush.msra.mxu1 %v576_v18  ;;  %v975_v12 = vadd.f32 %v974_v5, %v955_v0  ;;  %v1481_v18 = vld [vmem:[%s7687_s8 + $0x400] sm:$0xff]  ;;  %v2090_v0 = vld [vmem:[%s7687_s8 + $0x1708] sm:$0xff] }
 0x189   : > { %v708_v20 = vld [vmem:[%s7680_s15 + $0xc78] sm:$0xff]  ;;  %1290 = vmatpush.msra.mxu2 %v640_v19  ;;  %v1993_v19 = vld [vmem:[%s7687_s8 + $0x1400] sm:$0xff]  ;;  %v2698_v5 = vld [vmem:[%s7687_s8 + $0x2a08] sm:$0xff] }
 0x18a   : > { %v508_v24 = vld [vmem:[%s7680_s15 + $0x638] sm:$0xff]  ;;  %1309 = vmatpush.msra.mxu3 %v708_v20  ;;  %v2601_v20 = vld [vmem:[%s7687_s8 + $0x2700] sm:$0xff]  ;;  %v995_v23 = vadd.f32 %v994_v14, %v975_v12  ;;  %v1482_v14 = vld [vmem:[%s7687_s8 + $0x408] sm:$0xff] }
 0x18b   : > { %v572_v25 = vld [vmem:[%s7680_s15 + $0x838] sm:$0xff]  ;;  %1251 = vmatpush.msra.mxu0 %v508_v24  ;;  %v1449_v24 = vld [vmem:[%s7687_s8 + $0x300] sm:$0xff] }
 0x18c   : > { %v636_v27 = vld [vmem:[%s7680_s15 + $0xa38] sm:$0xff]  ;;  %1271 = vmatpush.msra.mxu1 %v572_v25  ;;  %v1961_v25 = vld [vmem:[%s7687_s8 + $0x1300] sm:$0xff] }
 0x18d   : > { %v704_v28 = vld [vmem:[%s7680_s15 + $0xc58] sm:$0xff]  ;;  %1291 = vmatpush.msra.mxu2 %v636_v27  ;;  %v2377_v48 = vld [vmem:[%s7687_s8 + $0x2000] sm:$0xff] }
 0x18e   : > { %v504_v29 = vld [vmem:[%s7680_s15 + $0x618] sm:$0xff]  ;;  %1310 = vmatpush.msra.mxu3 %v704_v28  ;;  %v2569_v28 = vld [vmem:[%s7687_s8 + $0x2600] sm:$0xff] }
 0x18f   : > { %v568_v30 = vld [vmem:[%s7680_s15 + $0x818] sm:$0xff]  ;;  %1252 = vmatpush.msra.mxu0 %v504_v29  ;;  %v1417_v29 = vld [vmem:[%s7687_s8 + $0x200] sm:$0xff] }
 0x190   : > { %v632_v31 = vld [vmem:[%s7680_s15 + $0xa18] sm:$0xff]  ;;  %1272 = vmatpush.msra.mxu1 %v568_v30  ;;  %v3273_v12 = vld [vmem:[%s7687_s8 + $0x3c00] sm:$0xff] }
 0x191   : > { %v700_v1 = vld [vmem:[%s7680_s15 + $0xc38] sm:$0xff]  ;;  %1292 = vmatpush.msra.mxu2 %v632_v31  ;;  %3401 = vmatpush.msrb.mxu0 %v1833_v34  ;;  %v1929_v31 = vld [vmem:[%s7687_s8 + $0x1200] sm:$0xff]  ;;  %v895_v34 = vadd.f32 %v8244_v26, %v875_v22  ;;  %v1738_v26 = vld [vmem:[%s7687_s8 + $0xc08] sm:$0xff] }
 0x192   : > { %1311 = vmatpush.msra.mxu3 %v700_v1  ;;  %v696_v36 = vld [vmem:[%s7680_s15 + $0xc18] sm:$0xff]  ;;  %1293 = vmatmul.f32.vlgmr.msra.gmra.mxu2 %v7406_v37  ;;  %v1353_v37 = vld [vmem:[%s7687_s8] sm:$0xff] }
 0x193   : > { %v7405_v2 = vld [vmem:[%s10440_s0 + $0x18] sm:$0xff]  ;;  %3421 = vmatpush.msrb.mxu1 %v2345_v35  ;;  %3402 = vmatpush.msrb.mxu0 %v1801_v38  ;;  %v1385_v35 = vld [vmem:[%s7687_s8 + $0x100] sm:$0xff] }
 0x194   : > { %1253 = vmatmul.f32.vlgmr.msra.gmra.mxu0 %v7405_v2  ;;  %1312 = vmatpush.msra.mxu3 %v696_v36  ;;  %v1897_v36 = vld [vmem:[%s7687_s8 + $0x1100] sm:$0xff] }
 0x195   : > { %1273 = vmatmul.f32.vlgmr.msra.gmra.mxu1 %v7407_v41  ;;  %1313 = vmatmul.f32.vlgmr.msra.gmra.mxu3 %v8145_v32  ;;  %v2217_v32 = vld [vmem:[%s7687_s8 + $0x1b00] sm:$0xff]  ;;  %v1834_v41 = vld [vmem:[%s7687_s8 + $0xf08] sm:$0xff] }
 0x196   : > { %3422 = vmatpush.msrb.mxu1 %v2313_v40  ;;  %3403 = vmatpush.msrb.mxu0 %v1769_v42  ;;  %v2505_v2 = vld [vmem:[%s7687_s8 + $0x2400] sm:$0xff]  ;;  %v8284_v40 = vmax.f32 %v895_v34, 0.0  ;;  %v2346_v42 = vld [vmem:[%s7687_s8 + $0x1f08] sm:$0xff] }
 0x197   : > { %3441 = vmatpush.msrb.mxu2 %v2857_v46  ;;  %v1865_v38 = vld [vmem:[%s7687_s8 + $0x1000] sm:$0xff]  ;;  %v1770_v46 = vld [vmem:[%s7687_s8 + $0xd08] sm:$0xff] }
 0x198   : > { %3423 = vmatpush.msrb.mxu1 %v2281_v21  ;;  %3404 = vmatpush.msrb.mxu0 %v1737_v44  ;;  %v1802_v21 = vld [vmem:[%s7687_s8 + $0xe08] sm:$0xff]  ;;  %v3209_v22 = vld [vmem:[%s7687_s8 + $0x3a00] sm:$0xff] }
 0x199   : > { %3442 = vmatpush.msrb.mxu2 %v2825_v49  ;;  %v2314_v44 = vld [vmem:[%s7687_s8 + $0x1e08] sm:$0xff] }
 0x19a   : > { %3424 = vmatpush.msrb.mxu1 %v2249_v45  ;;  %3405 = vmatpush.msrb.mxu0 %v1705_v47  ;;  %v2441_v45 = vld [vmem:[%s7687_s8 + $0x2200] sm:$0xff]  ;;  %v2858_v49 = vld [vmem:[%s7687_s8 + $0x2f08] sm:$0xff] }
 0x19b   : > { %3443 = vmatpush.msrb.mxu2 %v2793_v52  ;;  %v1014_v27 = vpop.f32.mrf.mxu0  ;;  %v2409_v47 = vld [vmem:[%s7687_s8 + $0x2100] sm:$0xff]  ;;  %v1674_v52 = vld [vmem:[%s7687_s8 + $0xa08] sm:$0xff] }
 0x19c   : > { %3425 = vmatpush.msrb.mxu1 %v2217_v32  ;;  %3406 = vmatpush.msrb.mxu0 %v1673_v50  ;;  %v1015_v30 = vadd.f32 %v1014_v27, %v995_v23  ;;  %v2250_v32 = vld [vmem:[%s7687_s8 + $0x1c08] sm:$0xff]  ;;  %v3177_v27 = vld [vmem:[%s7687_s8 + $0x3900] sm:$0xff] }
 0x19d   : > { %3444 = vmatpush.msrb.mxu2 %v2761_v58  ;;  %v1706_v50 = vld [vmem:[%s7687_s8 + $0xb08] sm:$0xff] }
 0x19e   : > { %3426 = vmatpush.msrb.mxu1 %v2185_v3  ;;  %3407 = vmatpush.msrb.mxu0 %v1641_v55  ;;  %v1034_v1 = vpop.f32.mrf.mxu1  ;;  %v2826_v3 = vld [vmem:[%s7687_s8 + $0x2e08] sm:$0xff] }
 0x19f   : > { %3445 = vmatpush.msrb.mxu2 %v2729_v62  ;;  %v1035_v16 = vadd.f32 %v1034_v1, %v1015_v30  ;;  %v1642_v55 = vld [vmem:[%s7687_s8 + $0x908] sm:$0xff] }
 0x1a0   : > { %3427 = vmatpush.msrb.mxu1 %v2153_v57  ;;  %3408 = vmatpush.msrb.mxu0 %v1609_v59  ;;  %v2762_v57 = vld [vmem:[%s7687_s8 + $0x2c08] sm:$0xff] }
 0x1a1   : > { %3446 = vmatpush.msrb.mxu2 %v2697_v7  ;;  %v8288_v43 = vmax.f32 %v1035_v16, 0.0  ;;  %v1610_v58 = vld [vmem:[%s7687_s8 + $0x808] sm:$0xff]  ;;  %v1835_v16 = vld [vmem:[%s7687_s8 + $0xf10] sm:$0xff] }
 0x1a2   : > { %3428 = vmatpush.msrb.mxu1 %v2121_v61  ;;  %3409 = vmatpush.msrb.mxu0 %v1577_v4  ;;  %v2122_v59 = vld [vmem:[%s7687_s8 + $0x1808] sm:$0xff]  ;;  %v3369_v61 = vld [vmem:[%s7687_s8 + $0x3f00] sm:$0xff] }
 0x1a3   : > { %3447 = vmatpush.msrb.mxu2 %v2665_v10  ;;  %v2730_v62 = vld [vmem:[%s7687_s8 + $0x2b08] sm:$0xff]  ;;  %3461 = vmatpush.msrb.mxu3 %v3369_v61  ;;  %v3337_v4 = vld [vmem:[%s7687_s8 + $0x3e00] sm:$0xff]  ;;  %v2123_v61 = vld [vmem:[%s7687_s8 + $0x1810] sm:$0xff] }
 0x1a4   : > { %3429 = vmatpush.msrb.mxu1 %v2089_v6  ;;  %3410 = vmatpush.msrb.mxu0 %v1545_v8  ;;  %v1546_v6 = vld [vmem:[%s7687_s8 + $0x608] sm:$0xff]  ;;  %v3305_v8 = vld [vmem:[%s7687_s8 + $0x3d00] sm:$0xff] }
 0x1a5   : > { %3448 = vmatpush.msrb.mxu2 %v2633_v17  ;;  %v2058_v7 = vld [vmem:[%s7687_s8 + $0x1608] sm:$0xff]  ;;  %3462 = vmatpush.msrb.mxu3 %v3337_v4  ;;  %v3241_v17 = vld [vmem:[%s7687_s8 + $0x3b00] sm:$0xff]  ;;  %v1579_v4 = vld [vmem:[%s7687_s8 + $0x710] sm:$0xff] }
 0x1a6   : > { %3430 = vmatpush.msrb.mxu1 %v2057_v9  ;;  %3411 = vmatpush.msrb.mxu0 %v1513_v13  ;;  %v2666_v9 = vld [vmem:[%s7687_s8 + $0x2908] sm:$0xff] }
 0x1a7   : > { %3449 = vmatpush.msrb.mxu2 %v2601_v20  ;;  %v1514_v10 = vld [vmem:[%s7687_s8 + $0x508] sm:$0xff]  ;;  %3463 = vmatpush.msrb.mxu3 %v3305_v8  ;;  %v1547_v8 = vld [vmem:[%s7687_s8 + $0x610] sm:$0xff] }
 0x1a8   : > { %3431 = vmatpush.msrb.mxu1 %v2025_v15  ;;  %3412 = vmatpush.msrb.mxu0 %v1481_v18  ;;  %v2634_v13 = vld [vmem:[%s7687_s8 + $0x2808] sm:$0xff] }
 0x1a9   : > { %3450 = vmatpush.msrb.mxu2 %v2569_v28  ;;  %v1994_v15 = vld [vmem:[%s7687_s8 + $0x1408] sm:$0xff]  ;;  %3464 = vmatpush.msrb.mxu3 %v3273_v12  ;;  %v1515_v12 = vld [vmem:[%s7687_s8 + $0x510] sm:$0xff] }
 0x1aa   : > { %3432 = vmatpush.msrb.mxu1 %v1993_v19  ;;  %3413 = vmatpush.msrb.mxu0 %v1449_v24  ;;  %v2602_v18 = vld [vmem:[%s7687_s8 + $0x2708] sm:$0xff] }
 0x1ab   : > { %3451 = vmatpush.msrb.mxu2 %v2537_v33  ;;  %v1450_v19 = vld [vmem:[%s7687_s8 + $0x308] sm:$0xff]  ;;  %3465 = vmatpush.msrb.mxu3 %v3241_v17  ;;  %v1483_v17 = vld [vmem:[%s7687_s8 + $0x410] sm:$0xff] }
 0x1ac   : > { %3433 = vmatpush.msrb.mxu1 %v1961_v25  ;;  %3414 = vmatpush.msrb.mxu0 %v1417_v29  ;;  %v1962_v20 = vld [vmem:[%s7687_s8 + $0x1308] sm:$0xff] }
 0x1ad   : > { %3452 = vmatpush.msrb.mxu2 %v2505_v2  ;;  %v2570_v23 = vld [vmem:[%s7687_s8 + $0x2608] sm:$0xff]  ;;  %3466 = vmatpush.msrb.mxu3 %v3209_v22  ;;  %v1451_v22 = vld [vmem:[%s7687_s8 + $0x310] sm:$0xff] }
 0x1ae   : > { %3434 = vmatpush.msrb.mxu1 %v1929_v31  ;;  %3415 = vmatpush.msrb.mxu0 %v1385_v35  ;;  %v1418_v24 = vld [vmem:[%s7687_s8 + $0x208] sm:$0xff]  ;;  %v3145_v31 = vld [vmem:[%s7687_s8 + $0x3800] sm:$0xff] }
 0x1af   : > { %3453 = vmatpush.msrb.mxu2 %v2473_v39  ;;  %v1930_v25 = vld [vmem:[%s7687_s8 + $0x1208] sm:$0xff]  ;;  %3467 = vmatpush.msrb.mxu3 %v3177_v27  ;;  %v3113_v35 = vld [vmem:[%s7687_s8 + $0x3700] sm:$0xff]  ;;  %v1419_v27 = vld [vmem:[%s7687_s8 + $0x210] sm:$0xff] }
 0x1b0   : > { %3435 = vmatpush.msrb.mxu1 %v1897_v36  ;;  %3416 = vmatpush.msrb.mxu0 %v1353_v37  ;;  %v2538_v28 = vld [vmem:[%s7687_s8 + $0x2508] sm:$0xff]  ;;  %v2347_v36 = vld [vmem:[%s7687_s8 + $0x1f10] sm:$0xff]  ;;  %v3081_v39 = vld [vmem:[%s7687_s8 + $0x3600] sm:$0xff] }
 0x1b1   : > { %3417 = vmatmul.f32.vlgmr.msrb.gmra.mxu0 %v8284_v40  ;;  %3454 = vmatpush.msrb.mxu2 %v2441_v45  ;;  %v1386_v29 = vld [vmem:[%s7687_s8 + $0x108] sm:$0xff]  ;;  %v1803_v37 = vld [vmem:[%s7687_s8 + $0xe10] sm:$0xff] }
 0x1b2   : > { %3436 = vmatpush.msrb.mxu1 %v1865_v38  ;;  %3481 = vmatpush.msra.mxu0 %v1834_v41  ;;  %v1898_v30 = vld [vmem:[%s7687_s8 + $0x1108] sm:$0xff]  ;;  %v2315_v38 = vld [vmem:[%s7687_s8 + $0x1e10] sm:$0xff] }
 0x1b3   : > { %3437 = vmatmul.f32.vlgmr.msrb.gmra.mxu1 %v8288_v43  ;;  %3455 = vmatpush.msrb.mxu2 %v2409_v47  ;;  %v2506_v1 = vld [vmem:[%s7687_s8 + $0x2408] sm:$0xff]  ;;  %v3017_v47 = vld [vmem:[%s7687_s8 + $0x3400] sm:$0xff] }
 0x1b4   : > { %3501 = vmatpush.msra.mxu1 %v2346_v42  ;;  %3482 = vmatpush.msra.mxu0 %v1802_v21  ;;  %v1354_v33 = vld [vmem:[%s7687_s8 + $0x8] sm:$0xff]  ;;  %v1771_v42 = vld [vmem:[%s7687_s8 + $0xd10] sm:$0xff] }
 0x1b5   : > { %3456 = vmatpush.msrb.mxu2 %v2377_v48  ;;  %v1866_v34 = vld [vmem:[%s7687_s8 + $0x1008] sm:$0xff]  ;;  %3468 = vmatpush.msrb.mxu3 %v3145_v31  ;;  %v2283_v21 = vld [vmem:[%s7687_s8 + $0x1d10] sm:$0xff] }
 0x1b6   : > { %3502 = vmatpush.msra.mxu1 %v2314_v44  ;;  %3483 = vmatpush.msra.mxu0 %v1770_v46  ;;  %v2474_v2 = vld [vmem:[%s7687_s8 + $0x2308] sm:$0xff]  ;;  %v3049_v44 = vld [vmem:[%s7687_s8 + $0x3500] sm:$0xff]  ;;  %v1739_v46 = vld [vmem:[%s7687_s8 + $0xc10] sm:$0xff] }
 0x1b7   : > { %3521 = vmatpush.msra.mxu2 %v2858_v49  ;;  %3469 = vmatpush.msrb.mxu3 %v3113_v35  ;;  %v2442_v41 = vld [vmem:[%s7687_s8 + $0x2208] sm:$0xff]  ;;  %v2219_v48 = vld [vmem:[%s7687_s8 + $0x1b10] sm:$0xff] }
 0x1b8   : > { %3503 = vmatpush.msra.mxu1 %v2282_v60  ;;  %3484 = vmatpush.msra.mxu0 %v1738_v26  ;;  %v2410_v45 = vld [vmem:[%s7687_s8 + $0x2108] sm:$0xff]  ;;  %v2251_v60 = vld [vmem:[%s7687_s8 + $0x1c10] sm:$0xff] }
 0x1b9   : > { %3522 = vmatpush.msra.mxu2 %v2826_v3  ;;  %3470 = vmatpush.msrb.mxu3 %v3081_v39  ;;  %v2378_v26 = vld [vmem:[%s7687_s8 + $0x2008] sm:$0xff]  ;;  %v2187_v3 = vld [vmem:[%s7687_s8 + $0x1a10] sm:$0xff] }
 0x1ba   : > { %3504 = vmatpush.msra.mxu1 %v2250_v32  ;;  %3485 = vmatpush.msra.mxu0 %v1706_v50  ;;  %v1707_v32 = vld [vmem:[%s7687_s8 + $0xb10] sm:$0xff]  ;;  %v2985_v50 = vld [vmem:[%s7687_s8 + $0x3300] sm:$0xff]  ;;  %v3114_v39 = vld [vmem:[%s7687_s8 + $0x3708] sm:$0xff] }
 0x1bb   : > { %3523 = vmatpush.msra.mxu2 %v2794_v54  ;;  %3471 = vmatpush.msrb.mxu3 %v3049_v44  ;;  %v1387_v31 = vld [vmem:[%s7687_s8 + $0x110] sm:$0xff]  ;;  %v3082_v44 = vld [vmem:[%s7687_s8 + $0x3608] sm:$0xff] }
 0x1bc   : > { %3505 = vmatpush.msra.mxu1 %v2218_v51  ;;  %3486 = vmatpush.msra.mxu0 %v1674_v52  ;;  %v1675_v51 = vld [vmem:[%s7687_s8 + $0xa10] sm:$0xff] }
 0x1bd   : > { %3524 = vmatpush.msra.mxu2 %v2762_v57  ;;  %3472 = vmatpush.msrb.mxu3 %v3017_v47  ;;  %v1094_v57 = vpop.f32.mrf.mxu0  ;;  %v1355_v35 = vld [vmem:[%s7687_s8 + $0x10] sm:$0xff]  ;;  %v3050_v47 = vld [vmem:[%s7687_s8 + $0x3508] sm:$0xff] }
 0x1be   : > { %3506 = vmatpush.msra.mxu1 %v2186_v53  ;;  %3487 = vmatpush.msra.mxu0 %v1642_v55  ;;  %v2953_v53 = vld [vmem:[%s7687_s8 + $0x3200] sm:$0xff]  ;;  %v1643_v55 = vld [vmem:[%s7687_s8 + $0x910] sm:$0xff] }
 0x1bf   : > { %3525 = vmatpush.msra.mxu2 %v2730_v62  ;;  %3473 = vmatpush.msrb.mxu3 %v2985_v50  ;;  %v1054_v52 = vpop.f32.mrf.mxu2  ;;  %v2889_v62 = vld [vmem:[%s7687_s8 + $0x3000] sm:$0xff]  ;;  %v1708_v50 = vld [vmem:[%s7687_s8 + $0xb18] sm:$0xff] }
 0x1c0   : > { %3507 = vmatpush.msra.mxu1 %v2154_v56  ;;  %3488 = vmatpush.msra.mxu0 %v1610_v58  ;;  %v1074_v49 = vpop.f32.mrf.mxu3  ;;  %v2155_v56 = vld [vmem:[%s7687_s8 + $0x1910] sm:$0xff]  ;;  %v2921_v58 = vld [vmem:[%s7687_s8 + $0x3100] sm:$0xff] }
 0x1c1   : > { %3526 = vmatpush.msra.mxu2 %v2698_v5  ;;  %v1075_v54 = vadd.f32 %v1074_v49, %v1054_v52  ;;  %3474 = vmatpush.msrb.mxu3 %v2953_v53  ;;  %v2091_v5 = vld [vmem:[%s7687_s8 + $0x1710] sm:$0xff]  ;;  %v3018_v49 = vld [vmem:[%s7687_s8 + $0x3408] sm:$0xff]  ;;  %v1676_v52 = vld [vmem:[%s7687_s8 + $0xa18] sm:$0xff] }
 0x1c2   : > { %3508 = vmatpush.msra.mxu1 %v2122_v59  ;;  %3489 = vmatpush.msra.mxu0 %v1578_v63  ;;  %v1611_v59 = vld [vmem:[%s7687_s8 + $0x810] sm:$0xff]  ;;  %v3370_v63 = vld [vmem:[%s7687_s8 + $0x3f08] sm:$0xff]  ;;  %v2188_v53 = vld [vmem:[%s7687_s8 + $0x1a18] sm:$0xff] }
 0x1c3   : > { %3527 = vmatpush.msra.mxu2 %v2666_v9  ;;  %3475 = vmatpush.msrb.mxu3 %v2921_v58  ;;  %v2059_v9 = vld [vmem:[%s7687_s8 + $0x1610] sm:$0xff] }
 0x1c4   : > { %3509 = vmatpush.msra.mxu1 %v2090_v0  ;;  %3490 = vmatpush.msra.mxu0 %v1546_v6  ;;  %v1095_v0 = vadd.f32 %v1094_v57, %v1075_v54  ;;  %v1114_v6 = vpop.f32.mrf.mxu1  ;;  %v2986_v54 = vld [vmem:[%s7687_s8 + $0x3308] sm:$0xff]  ;;  %v2731_v58 = vld [vmem:[%s7687_s8 + $0x2b10] sm:$0xff] }
 0x1c5   : > { %3528 = vmatpush.msra.mxu2 %v2634_v13  ;;  %3476 = vmatpush.msrb.mxu3 %v2889_v62  ;;  %v2027_v13 = vld [vmem:[%s7687_s8 + $0x1510] sm:$0xff]  ;;  %v2954_v57 = vld [vmem:[%s7687_s8 + $0x3208] sm:$0xff] }
 0x1c6   : > { %3510 = vmatpush.msra.mxu1 %v2058_v7  ;;  %3491 = vmatpush.msra.mxu0 %v1514_v10  ;;  %v3338_v7 = vld [vmem:[%s7687_s8 + $0x3e08] sm:$0xff] }
 0x1c7   : > { %3529 = vmatpush.msra.mxu2 %v2602_v18  ;;  %3541 = vmatpush.msra.mxu3 %v3370_v63  ;;  %v3306_v10 = vld [vmem:[%s7687_s8 + $0x3d08] sm:$0xff]  ;;  %v1995_v18 = vld [vmem:[%s7687_s8 + $0x1410] sm:$0xff] }
 0x1c8   : > { %3511 = vmatpush.msra.mxu1 %v2026_v11  ;;  %3492 = vmatpush.msra.mxu0 %v1482_v14  ;;  %v1115_v11 = vadd.f32 %v1114_v6, %v1095_v0  ;;  %v2922_v62 = vld [vmem:[%s7687_s8 + $0x3108] sm:$0xff]  ;;  %v2699_v63 = vld [vmem:[%s7687_s8 + $0x2a10] sm:$0xff]  ;;  %v1580_v0 = vld [vmem:[%s7687_s8 + $0x718] sm:$0xff] }
 0x1c9   : > { %3530 = vmatpush.msra.mxu2 %v2570_v23  ;;  %3542 = vmatpush.msra.mxu3 %v3338_v7  ;;  %v1963_v23 = vld [vmem:[%s7687_s8 + $0x1310] sm:$0xff]  ;;  %v1548_v7 = vld [vmem:[%s7687_s8 + $0x618] sm:$0xff] }
 0x1ca   : > { %3512 = vmatpush.msra.mxu1 %v1994_v15  ;;  %3493 = vmatpush.msra.mxu0 %v1450_v19  ;;  %v3274_v15 = vld [vmem:[%s7687_s8 + $0x3c08] sm:$0xff]  ;;  %v2667_v6 = vld [vmem:[%s7687_s8 + $0x2910] sm:$0xff] }
 0x1cb   : > { %3531 = vmatpush.msra.mxu2 %v2538_v28  ;;  %v1134_v14 = vpop.f32.mrf.mxu2  ;;  %3543 = vmatpush.msra.mxu3 %v3306_v10  ;;  %v3242_v19 = vld [vmem:[%s7687_s8 + $0x3b08] sm:$0xff]  ;;  %v1931_v28 = vld [vmem:[%s7687_s8 + $0x1210] sm:$0xff]  ;;  %v1516_v10 = vld [vmem:[%s7687_s8 + $0x518] sm:$0xff] }
 0x1cc   : > { %3513 = vmatpush.msra.mxu1 %v1962_v20  ;;  %3494 = vmatpush.msra.mxu0 %v1418_v24  ;;  %v1135_v20 = vadd.f32 %v1134_v14, %v1115_v11  ;;  %v2028_v11 = vld [vmem:[%s7687_s8 + $0x1518] sm:$0xff] }
 0x1cd   : > { %3532 = vmatpush.msra.mxu2 %v2506_v1  ;;  %3544 = vmatpush.msra.mxu3 %v3274_v15  ;;  %v1899_v1 = vld [vmem:[%s7687_s8 + $0x1110] sm:$0xff]  ;;  %v1996_v14 = vld [vmem:[%s7687_s8 + $0x1418] sm:$0xff] }
 0x1ce   : > { %3514 = vmatpush.msra.mxu1 %v1930_v25  ;;  %3495 = vmatpush.msra.mxu0 %v1386_v29  ;;  %v1154_v24 = vpop.f32.mrf.mxu3  ;;  %v3210_v25 = vld [vmem:[%s7687_s8 + $0x3a08] sm:$0xff]  ;;  %v2571_v15 = vld [vmem:[%s7687_s8 + $0x2610] sm:$0xff] }
 0x1cf   : > { %3533 = vmatpush.msra.mxu2 %v2474_v2  ;;  %3545 = vmatpush.msra.mxu3 %v3242_v19  ;;  %v3178_v29 = vld [vmem:[%s7687_s8 + $0x3908] sm:$0xff]  ;;  %v1836_v2 = vld [vmem:[%s7687_s8 + $0xf18] sm:$0xff] }
 0x1d0   : > { %3515 = vmatpush.msra.mxu1 %v1898_v30  ;;  %3496 = vmatpush.msra.mxu0 %v1354_v33  ;;  %v1155_v30 = vadd.f32 %v1154_v24, %v1135_v20  ;;  %v2539_v20 = vld [vmem:[%s7687_s8 + $0x2510] sm:$0xff]  ;;  %v1932_v24 = vld [vmem:[%s7687_s8 + $0x1218] sm:$0xff] }
 0x1d1   : > { %3497 = vmatmul.f32.vlgmr.msra.gmra.mxu0 %v8284_v40  ;;  %3534 = vmatpush.msra.mxu2 %v2442_v41  ;;  %v1804_v41 = vld [vmem:[%s7687_s8 + $0xe18] sm:$0xff] }
 0x1d2   : > { %3516 = vmatpush.msra.mxu1 %v1866_v34  ;;  %3561 = vmatpush.msrb.mxu0 %v1835_v16  ;;  %v3146_v34 = vld [vmem:[%s7687_s8 + $0x3808] sm:$0xff]  ;;  %v1867_v16 = vld [vmem:[%s7687_s8 + $0x1010] sm:$0xff] }
 0x1d3   : > { %3517 = vmatmul.f32.vlgmr.msra.gmra.mxu1 %v8288_v43  ;;  %3535 = vmatpush.msra.mxu2 %v2410_v45  ;;  %v1772_v45 = vld [vmem:[%s7687_s8 + $0xd18] sm:$0xff] }
 0x1d4   : > { %3581 = vmatpush.msrb.mxu1 %v2347_v36  ;;  %3562 = vmatpush.msrb.mxu0 %v1803_v37  ;;  %v2348_v37 = vld [vmem:[%s7687_s8 + $0x1f18] sm:$0xff] }
 0x1d5   : > { %3536 = vmatpush.msra.mxu2 %v2378_v26  ;;  %3546 = vmatpush.msra.mxu3 %v3210_v25  ;;  %v1740_v26 = vld [vmem:[%s7687_s8 + $0xc18] sm:$0xff] }
 0x1d6   : > { %3582 = vmatpush.msrb.mxu1 %v2315_v38  ;;  %3563 = vmatpush.msrb.mxu0 %v1771_v42  ;;  %v2316_v42 = vld [vmem:[%s7687_s8 + $0x1e18] sm:$0xff] }
 0x1d7   : > { %3547 = vmatpush.msra.mxu3 %v3178_v29  ;;  %v1900_v29 = vld [vmem:[%s7687_s8 + $0x1118] sm:$0xff] }
 0x1d8   : > { %3583 = vmatpush.msrb.mxu1 %v2283_v21  ;;  %3564 = vmatpush.msrb.mxu0 %v1739_v46  ;;  %v2859_v21 = vld [vmem:[%s7687_s8 + $0x2f10] sm:$0xff]  ;;  %v2284_v46 = vld [vmem:[%s7687_s8 + $0x1d18] sm:$0xff] }
 0x1d9   : > { %3548 = vmatpush.msra.mxu3 %v3146_v34  ;;  %v1868_v34 = vld [vmem:[%s7687_s8 + $0x1018] sm:$0xff] }
 0x1da   : > { %3584 = vmatpush.msrb.mxu1 %v2251_v60  ;;  %3565 = vmatpush.msrb.mxu0 %v1707_v32  ;;  %v2827_v60 = vld [vmem:[%s7687_s8 + $0x2e10] sm:$0xff]  ;;  %v2252_v32 = vld [vmem:[%s7687_s8 + $0x1c18] sm:$0xff] }
 0x1db   : > { %3549 = vmatpush.msra.mxu3 %v3114_v39 }
 0x1dc   : > { %3585 = vmatpush.msrb.mxu1 %v2219_v48  ;;  %3566 = vmatpush.msrb.mxu0 %v1675_v51  ;;  %v2795_v48 = vld [vmem:[%s7687_s8 + $0x2d10] sm:$0xff]  ;;  %v2220_v51 = vld [vmem:[%s7687_s8 + $0x1b18] sm:$0xff] }
 0x1dd   : > { %3550 = vmatpush.msra.mxu3 %v3082_v44 }
 0x1de   : > { %3586 = vmatpush.msrb.mxu1 %v2187_v3  ;;  %3567 = vmatpush.msrb.mxu0 %v1643_v55  ;;  %v2763_v3 = vld [vmem:[%s7687_s8 + $0x2c10] sm:$0xff]  ;;  %v1644_v55 = vld [vmem:[%s7687_s8 + $0x918] sm:$0xff] }
 0x1df   : > { %3551 = vmatpush.msra.mxu3 %v3050_v47 }
 0x1e0   : > { %3587 = vmatpush.msrb.mxu1 %v2155_v56  ;;  %3568 = vmatpush.msrb.mxu0 %v1611_v59  ;;  %v1174_v33 = vpop.f32.mrf.mxu0  ;;  %v2156_v56 = vld [vmem:[%s7687_s8 + $0x1918] sm:$0xff] }
 0x1e1   : > { %v1175_v36 = vadd.f32 %v1174_v33, %v1155_v30  ;;  %3552 = vmatpush.msra.mxu3 %v3018_v49  ;;  %v1612_v59 = vld [vmem:[%s7687_s8 + $0x818] sm:$0xff]  ;;  %v2253_v49 = vld [vmem:[%s7687_s8 + $0x1c20] sm:$0xff] }
 0x1e2   : > { %3588 = vmatpush.msrb.mxu1 %v2123_v61  ;;  %3569 = vmatpush.msrb.mxu0 %v1579_v4  ;;  %v2124_v61 = vld [vmem:[%s7687_s8 + $0x1818] sm:$0xff] }
 0x1e3   : > { %v8401_v38 = vmax.f32 %v1175_v36, 0.0  ;;  %3553 = vmatpush.msra.mxu3 %v2986_v54  ;;  %v2092_v4 = vld [vmem:[%s7687_s8 + $0x1718] sm:$0xff]  ;;  %v2349_v36 = vld [vmem:[%s7687_s8 + $0x1f20] sm:$0xff] }
 0x1e4   : > { %3589 = vmatpush.msrb.mxu1 %v2091_v5  ;;  %3570 = vmatpush.msrb.mxu0 %v1547_v8  ;;  %v2890_v5 = vld [vmem:[%s7687_s8 + $0x3008] sm:$0xff]  ;;  %v2060_v8 = vld [vmem:[%s7687_s8 + $0x1618] sm:$0xff]  ;;  %v1677_v54 = vld [vmem:[%s7687_s8 + $0xa20] sm:$0xff] }
 0x1e5   : > { %3457 = vmatmul.f32.vlgmr.msrb.gmra.mxu2 %v8401_v38  ;;  %3554 = vmatpush.msra.mxu3 %v2954_v57  ;;  %v1356_v33 = vld [vmem:[%s7687_s8 + $0x18] sm:$0xff]  ;;  %v2189_v57 = vld [vmem:[%s7687_s8 + $0x1a20] sm:$0xff] }
 0x1e6   : > { %3590 = vmatpush.msrb.mxu1 %v2059_v9  ;;  %3571 = vmatpush.msrb.mxu0 %v1515_v12  ;;  %v2635_v9 = vld [vmem:[%s7687_s8 + $0x2810] sm:$0xff] }
 0x1e7   : > { %3601 = vmatpush.msrb.mxu2 %v2859_v21  ;;  %3555 = vmatpush.msra.mxu3 %v2922_v62  ;;  %v2603_v12 = vld [vmem:[%s7687_s8 + $0x2710] sm:$0xff]  ;;  %v2157_v62 = vld [vmem:[%s7687_s8 + $0x1920] sm:$0xff] }
 0x1e8   : > { %3591 = vmatpush.msrb.mxu1 %v2027_v13  ;;  %3572 = vmatpush.msrb.mxu0 %v1483_v17  ;;  %v1484_v13 = vld [vmem:[%s7687_s8 + $0x418] sm:$0xff]  ;;  %v2411_v21 = vld [vmem:[%s7687_s8 + $0x2110] sm:$0xff] }
 0x1e9   : > { %3602 = vmatpush.msrb.mxu2 %v2827_v60  ;;  %3556 = vmatpush.msra.mxu3 %v2890_v5  ;;  %v1452_v17 = vld [vmem:[%s7687_s8 + $0x318] sm:$0xff]  ;;  %v2379_v60 = vld [vmem:[%s7687_s8 + $0x2010] sm:$0xff]  ;;  %v2125_v5 = vld [vmem:[%s7687_s8 + $0x1820] sm:$0xff] }
 0x1ea   : > { %3592 = vmatpush.msrb.mxu1 %v1995_v18  ;;  %3573 = vmatpush.msrb.mxu0 %v1451_v22  ;;  %v1964_v18 = vld [vmem:[%s7687_s8 + $0x1318] sm:$0xff] }
 0x1eb   : > { %3603 = vmatpush.msrb.mxu2 %v2795_v48  ;;  %v2860_v48 = vld [vmem:[%s7687_s8 + $0x2f18] sm:$0xff] }
 0x1ec   : > { %3593 = vmatpush.msrb.mxu1 %v1963_v23  ;;  %3574 = vmatpush.msrb.mxu0 %v1419_v27  ;;  %v1420_v23 = vld [vmem:[%s7687_s8 + $0x218] sm:$0xff]  ;;  %v2507_v27 = vld [vmem:[%s7687_s8 + $0x2410] sm:$0xff] }
 0x1ed   : > { %3604 = vmatpush.msrb.mxu2 %v2763_v3  ;;  %v2828_v3 = vld [vmem:[%s7687_s8 + $0x2e18] sm:$0xff] }
 0x1ee   : > { %3594 = vmatpush.msrb.mxu1 %v1931_v28  ;;  %3575 = vmatpush.msrb.mxu0 %v1387_v31  ;;  %v1388_v28 = vld [vmem:[%s7687_s8 + $0x118] sm:$0xff] }
 0x1ef   : > { %3537 = vmatmul.f32.vlgmr.msra.gmra.mxu2 %v8401_v38 }
 0x1f0   : > { %3595 = vmatpush.msrb.mxu1 %v1899_v1  ;;  %3576 = vmatpush.msrb.mxu0 %v1355_v35  ;;  %v2475_v1 = vld [vmem:[%s7687_s8 + $0x2310] sm:$0xff] }
 0x1f1   : > { %3577 = vmatmul.f32.vlgmr.msrb.gmra.mxu0 %v8284_v40  ;;  %3605 = vmatpush.msrb.mxu2 %v2731_v58  ;;  %v1645_v58 = vld [vmem:[%s7687_s8 + $0x920] sm:$0xff] }
 0x1f2   : > { %3596 = vmatpush.msrb.mxu1 %v1867_v16  ;;  %3641 = vmatpush.msra.mxu0 %v1836_v2  ;;  %v1837_v16 = vld [vmem:[%s7687_s8 + $0xf20] sm:$0xff] }
 0x1f3   : > { %3597 = vmatmul.f32.vlgmr.msrb.gmra.mxu1 %v8288_v43  ;;  %3606 = vmatpush.msrb.mxu2 %v2699_v63  ;;  %v1613_v63 = vld [vmem:[%s7687_s8 + $0x820] sm:$0xff] }
 0x1f4   : > { %3661 = vmatpush.msra.mxu1 %v2348_v37  ;;  %3642 = vmatpush.msra.mxu0 %v1804_v41  ;;  %v2443_v37 = vld [vmem:[%s7687_s8 + $0x2210] sm:$0xff]  ;;  %v1805_v41 = vld [vmem:[%s7687_s8 + $0xe20] sm:$0xff] }
 0x1f5   : > { %3607 = vmatpush.msrb.mxu2 %v2667_v6  ;;  %v1194_v19 = vpop.f32.mrf.mxu1  ;;  %v1581_v6 = vld [vmem:[%s7687_s8 + $0x720] sm:$0xff] }
 0x1f6   : > { %3662 = vmatpush.msra.mxu1 %v2316_v42  ;;  %3643 = vmatpush.msra.mxu0 %v1772_v45  ;;  %v2317_v42 = vld [vmem:[%s7687_s8 + $0x1e20] sm:$0xff] }
 0x1f7   : > { %3608 = vmatpush.msrb.mxu2 %v2635_v9  ;;  %v1773_v45 = vld [vmem:[%s7687_s8 + $0xd20] sm:$0xff] }
 0x1f8   : > { %3663 = vmatpush.msra.mxu1 %v2284_v46  ;;  %3644 = vmatpush.msra.mxu0 %v1740_v26  ;;  %v1234_v30 = vpop.f32.mrf.mxu3  ;;  %v2285_v46 = vld [vmem:[%s7687_s8 + $0x1d20] sm:$0xff] }
 0x1f9   : > { %3609 = vmatpush.msrb.mxu2 %v2603_v12  ;;  %v1214_v22 = vpop.f32.mrf.mxu2  ;;  %v1741_v26 = vld [vmem:[%s7687_s8 + $0xc20] sm:$0xff]  ;;  %v2668_v12 = vld [vmem:[%s7687_s8 + $0x2918] sm:$0xff] }
 0x1fa   : > { %3664 = vmatpush.msra.mxu1 %v2252_v32  ;;  %3645 = vmatpush.msra.mxu0 %v1708_v50  ;;  %v1215_v25 = vadd.f32 %v1214_v22, %v1194_v19  ;;  %v1709_v50 = vld [vmem:[%s7687_s8 + $0xb20] sm:$0xff] }
 0x1fb   : > { %3610 = vmatpush.msrb.mxu2 %v2571_v15  ;;  %v2093_v9 = vld [vmem:[%s7687_s8 + $0x1720] sm:$0xff]  ;;  %v2636_v15 = vld [vmem:[%s7687_s8 + $0x2818] sm:$0xff] }
 0x1fc   : > { %3665 = vmatpush.msra.mxu1 %v2220_v51  ;;  %3646 = vmatpush.msra.mxu0 %v1676_v52  ;;  %v1235_v31 = vadd.f32 %v1234_v30, %v1215_v25  ;;  %v2221_v52 = vld [vmem:[%s7687_s8 + $0x1b20] sm:$0xff]  ;;  %v2572_v25 = vld [vmem:[%s7687_s8 + $0x2618] sm:$0xff] }
 0x1fd   : > { %3611 = vmatpush.msrb.mxu2 %v2539_v20  ;;  %v1485_v19 = vld [vmem:[%s7687_s8 + $0x420] sm:$0xff]  ;;  %v2604_v20 = vld [vmem:[%s7687_s8 + $0x2718] sm:$0xff] }
 0x1fe   : > { %3666 = vmatpush.msra.mxu1 %v2188_v53  ;;  %3647 = vmatpush.msra.mxu0 %v1644_v55  ;;  %v1997_v22 = vld [vmem:[%s7687_s8 + $0x1420] sm:$0xff]  ;;  %v2540_v30 = vld [vmem:[%s7687_s8 + $0x2518] sm:$0xff] }
 0x1ff   : > { %3612 = vmatpush.msrb.mxu2 %v2507_v27  ;;  %v1965_v27 = vld [vmem:[%s7687_s8 + $0x1320] sm:$0xff] }
 0x200   : > { %3667 = vmatpush.msra.mxu1 %v2156_v56  ;;  %3648 = vmatpush.msra.mxu0 %v1612_v59  ;;  %v2796_v56 = vld [vmem:[%s7687_s8 + $0x2d18] sm:$0xff]  ;;  %v3371_v59 = vld [vmem:[%s7687_s8 + $0x3f10] sm:$0xff] }
 0x201   : > { %3613 = vmatpush.msrb.mxu2 %v2475_v1  ;;  %v3147_v1 = vld [vmem:[%s7687_s8 + $0x3810] sm:$0xff] }
 0x202   : > { %3668 = vmatpush.msra.mxu1 %v2124_v61  ;;  %3649 = vmatpush.msra.mxu0 %v1580_v0  ;;  %v2764_v61 = vld [vmem:[%s7687_s8 + $0x2c18] sm:$0xff]  ;;  %v3339_v0 = vld [vmem:[%s7687_s8 + $0x3e10] sm:$0xff] }
 0x203   : > { %3614 = vmatpush.msrb.mxu2 %v2443_v37  ;;  %v1869_v37 = vld [vmem:[%s7687_s8 + $0x1020] sm:$0xff] }
 0x204   : > { %3669 = vmatpush.msra.mxu1 %v2092_v4  ;;  %3650 = vmatpush.msra.mxu0 %v1548_v7  ;;  %v2732_v4 = vld [vmem:[%s7687_s8 + $0x2b18] sm:$0xff]  ;;  %v3307_v7 = vld [vmem:[%s7687_s8 + $0x3d10] sm:$0xff] }
 0x205   : > { %3615 = vmatpush.msrb.mxu2 %v2411_v21  ;;  %v2444_v21 = vld [vmem:[%s7687_s8 + $0x2218] sm:$0xff] }
 0x206   : > { %3670 = vmatpush.msra.mxu1 %v2060_v8  ;;  %3651 = vmatpush.msra.mxu0 %v1516_v10  ;;  %v2700_v8 = vld [vmem:[%s7687_s8 + $0x2a18] sm:$0xff]  ;;  %v1549_v10 = vld [vmem:[%s7687_s8 + $0x620] sm:$0xff] }
 0x207   : > { %3616 = vmatpush.msrb.mxu2 %v2379_v60  ;;  %v2412_v60 = vld [vmem:[%s7687_s8 + $0x2118] sm:$0xff] }
 0x208   : > { %3671 = vmatpush.msra.mxu1 %v2028_v11  ;;  %3652 = vmatpush.msra.mxu0 %v1484_v13  ;;  %v3275_v11 = vld [vmem:[%s7687_s8 + $0x3c10] sm:$0xff]  ;;  %v2061_v13 = vld [vmem:[%s7687_s8 + $0x1620] sm:$0xff] }
 0x209   : > { %3617 = vmatmul.f32.vlgmr.msrb.gmra.mxu2 %v8401_v38 }
 0x20a   : > { %3672 = vmatpush.msra.mxu1 %v1996_v14  ;;  %3653 = vmatpush.msra.mxu0 %v1452_v17  ;;  %v1517_v14 = vld [vmem:[%s7687_s8 + $0x520] sm:$0xff] }
 0x20b   : > { %3681 = vmatpush.msra.mxu2 %v2860_v48  ;;  %v2029_v17 = vld [vmem:[%s7687_s8 + $0x1520] sm:$0xff]  ;;  %v2380_v48 = vld [vmem:[%s7687_s8 + $0x2018] sm:$0xff] }
 0x20c   : > { %3673 = vmatpush.msra.mxu1 %v1964_v18  ;;  %3654 = vmatpush.msra.mxu0 %v1420_v23  ;;  %v3243_v18 = vld [vmem:[%s7687_s8 + $0x3b10] sm:$0xff] }
 0x20d   : > { %3682 = vmatpush.msra.mxu2 %v2828_v3  ;;  %v3211_v23 = vld [vmem:[%s7687_s8 + $0x3a10] sm:$0xff] }
 0x20e   : > { %3674 = vmatpush.msra.mxu1 %v1932_v24  ;;  %3655 = vmatpush.msra.mxu0 %v1388_v28  ;;  %v1453_v24 = vld [vmem:[%s7687_s8 + $0x320] sm:$0xff]  ;;  %v3179_v28 = vld [vmem:[%s7687_s8 + $0x3910] sm:$0xff] }
 0x20f   : > { %3683 = vmatpush.msra.mxu2 %v2796_v56  ;;  %v2987_v3 = vld [vmem:[%s7687_s8 + $0x3310] sm:$0xff] }
 0x210   : > { %3675 = vmatpush.msra.mxu1 %v1900_v29  ;;  %3656 = vmatpush.msra.mxu0 %v1356_v33  ;;  %v1421_v29 = vld [vmem:[%s7687_s8 + $0x220] sm:$0xff]  ;;  %v2955_v56 = vld [vmem:[%s7687_s8 + $0x3210] sm:$0xff] }
 0x211   : > { %v1254_v35 = vpop.f32.mrf.mxu0  ;;  %3657 = vmatmul.f32.vlgmr.msra.gmra.mxu0 %v8284_v40  ;;  %3684 = vmatpush.msra.mxu2 %v2764_v61  ;;  %v1389_v33 = vld [vmem:[%s7687_s8 + $0x120] sm:$0xff]  ;;  %v2923_v61 = vld [vmem:[%s7687_s8 + $0x3110] sm:$0xff] }
 0x212   : > { %v1255_v2 = vadd.f32 %v1254_v35, %v1235_v31  ;;  %3676 = vmatpush.msra.mxu1 %v1868_v34  ;;  %v1274_v39 = vpop.f32.mrf.mxu1  ;;  %3721 = vmatpush.msrb.mxu0 %v1837_v16  ;;  %v1933_v31 = vld [vmem:[%s7687_s8 + $0x1220] sm:$0xff]  ;;  %v2508_v34 = vld [vmem:[%s7687_s8 + $0x2418] sm:$0xff]  ;;  %v3115_v16 = vld [vmem:[%s7687_s8 + $0x3710] sm:$0xff] }
 0x213   : > { %3677 = vmatmul.f32.vlgmr.msra.gmra.mxu1 %v8288_v43  ;;  %3685 = vmatpush.msra.mxu2 %v2732_v4  ;;  %v1901_v35 = vld [vmem:[%s7687_s8 + $0x1120] sm:$0xff]  ;;  %v2891_v4 = vld [vmem:[%s7687_s8 + $0x3010] sm:$0xff] }
 0x214   : > { %3741 = vmatpush.msrb.mxu1 %v2349_v36  ;;  %v1275_v44 = vadd.f32 %v1274_v39, %v1255_v2  ;;  %3722 = vmatpush.msrb.mxu0 %v1805_v41  ;;  %v1357_v36 = vld [vmem:[%s7687_s8 + $0x20] sm:$0xff]  ;;  %v2476_v2 = vld [vmem:[%s7687_s8 + $0x2318] sm:$0xff]  ;;  %v1838_v39 = vld [vmem:[%s7687_s8 + $0xf28] sm:$0xff] }
 0x215   : > { %v1294_v47 = vpop.f32.mrf.mxu2  ;;  %3686 = vmatpush.msra.mxu2 %v2700_v8  ;;  %v2350_v41 = vld [vmem:[%s7687_s8 + $0x1f28] sm:$0xff] }
 0x216   : > { %3742 = vmatpush.msrb.mxu1 %v2317_v42  ;;  %v1295_v32 = vadd.f32 %v1294_v47, %v1275_v44  ;;  %3723 = vmatpush.msrb.mxu0 %v1773_v45  ;;  %v3083_v42 = vld [vmem:[%s7687_s8 + $0x3610] sm:$0xff]  ;;  %v1806_v44 = vld [vmem:[%s7687_s8 + $0xe28] sm:$0xff] }
 0x217   : > { %3687 = vmatpush.msra.mxu2 %v2668_v12  ;;  %v2318_v45 = vld [vmem:[%s7687_s8 + $0x1e28] sm:$0xff] }
 0x218   : > { %3743 = vmatpush.msrb.mxu1 %v2285_v46  ;;  %v1314_v51 = vpop.f32.mrf.mxu3  ;;  %3724 = vmatpush.msrb.mxu0 %v1741_v26  ;;  %v3051_v46 = vld [vmem:[%s7687_s8 + $0x3510] sm:$0xff]  ;;  %v1774_v47 = vld [vmem:[%s7687_s8 + $0xd28] sm:$0xff] }
 0x219   : > { %v1315_v53 = vadd.f32 %v1314_v51, %v1295_v32  ;;  %3688 = vmatpush.msra.mxu2 %v2636_v15  ;;  %v2286_v26 = vld [vmem:[%s7687_s8 + $0x1d28] sm:$0xff]  ;;  %v3019_v32 = vld [vmem:[%s7687_s8 + $0x3410] sm:$0xff]  ;;  %v3308_v15 = vld [vmem:[%s7687_s8 + $0x3d18] sm:$0xff] }
 0x21a   : > { %3744 = vmatpush.msrb.mxu1 %v2253_v49  ;;  %3725 = vmatpush.msrb.mxu0 %v1709_v50  ;;  %v1742_v49 = vld [vmem:[%s7687_s8 + $0xc28] sm:$0xff]  ;;  %v2861_v50 = vld [vmem:[%s7687_s8 + $0x2f20] sm:$0xff] }
 0x21b   : > { %v8477_v55 = vmax.f32 %v1315_v53, 0.0  ;;  %3689 = vmatpush.msra.mxu2 %v2604_v20  ;;  %v2254_v51 = vld [vmem:[%s7687_s8 + $0x1c28] sm:$0xff]  ;;  %v2829_v53 = vld [vmem:[%s7687_s8 + $0x2e20] sm:$0xff]  ;;  %v3276_v20 = vld [vmem:[%s7687_s8 + $0x3c18] sm:$0xff] }
 0x21c   : > { %3745 = vmatpush.msrb.mxu1 %v2221_v52  ;;  %3726 = vmatpush.msrb.mxu0 %v1677_v54  ;;  %v1710_v52 = vld [vmem:[%s7687_s8 + $0xb28] sm:$0xff] }
 0x21d   : > { %3477 = vmatmul.f32.vlgmr.msrb.gmra.mxu3 %v8477_v55  ;;  %3690 = vmatpush.msra.mxu2 %v2572_v25  ;;  %v2222_v54 = vld [vmem:[%s7687_s8 + $0x1b28] sm:$0xff]  ;;  %v3244_v25 = vld [vmem:[%s7687_s8 + $0x3b18] sm:$0xff] }
 0x21e   : > { %3746 = vmatpush.msrb.mxu1 %v2189_v57  ;;  %3727 = vmatpush.msrb.mxu0 %v1645_v58  ;;  %v1678_v57 = vld [vmem:[%s7687_s8 + $0xa28] sm:$0xff]  ;;  %v2797_v58 = vld [vmem:[%s7687_s8 + $0x2d20] sm:$0xff] }
 0x21f   : > { %3621 = vmatpush.msrb.mxu3 %v3371_v59  ;;  %3691 = vmatpush.msra.mxu2 %v2540_v30  ;;  %v2190_v59 = vld [vmem:[%s7687_s8 + $0x1a28] sm:$0xff]  ;;  %v3212_v30 = vld [vmem:[%s7687_s8 + $0x3a18] sm:$0xff] }
 0x220   : > { %3747 = vmatpush.msrb.mxu1 %v2157_v62  ;;  %3728 = vmatpush.msrb.mxu0 %v1613_v63  ;;  %v1646_v62 = vld [vmem:[%s7687_s8 + $0x928] sm:$0xff]  ;;  %v2765_v63 = vld [vmem:[%s7687_s8 + $0x2c20] sm:$0xff] }
 0x221   : > { %3622 = vmatpush.msrb.mxu3 %v3339_v0  ;;  %3692 = vmatpush.msra.mxu2 %v2508_v34  ;;  %v2158_v0 = vld [vmem:[%s7687_s8 + $0x1928] sm:$0xff]  ;;  %v3180_v34 = vld [vmem:[%s7687_s8 + $0x3918] sm:$0xff] }
 0x222   : > { %3748 = vmatpush.msrb.mxu1 %v2125_v5  ;;  %3729 = vmatpush.msrb.mxu0 %v1581_v6  ;;  %v1614_v5 = vld [vmem:[%s7687_s8 + $0x828] sm:$0xff]  ;;  %v2733_v6 = vld [vmem:[%s7687_s8 + $0x2b20] sm:$0xff] }
 0x223   : > { %3623 = vmatpush.msrb.mxu3 %v3307_v7  ;;  %3693 = vmatpush.msra.mxu2 %v2476_v2  ;;  %v3372_v7 = vld [vmem:[%s7687_s8 + $0x3f18] sm:$0xff]  ;;  %v2126_v8 = vld [vmem:[%s7687_s8 + $0x1828] sm:$0xff] }
 0x224   : > { %3749 = vmatpush.msrb.mxu1 %v2093_v9  ;;  %3730 = vmatpush.msrb.mxu0 %v1549_v10  ;;  %v2701_v9 = vld [vmem:[%s7687_s8 + $0x2a20] sm:$0xff]  ;;  %v1582_v10 = vld [vmem:[%s7687_s8 + $0x728] sm:$0xff]  ;;  %v3148_v2 = vld [vmem:[%s7687_s8 + $0x3818] sm:$0xff] }
 0x225   : > { %3624 = vmatpush.msrb.mxu3 %v3275_v11  ;;  %3694 = vmatpush.msra.mxu2 %v2444_v21  ;;  %v3340_v11 = vld [vmem:[%s7687_s8 + $0x3e18] sm:$0xff]  ;;  %v2094_v12 = vld [vmem:[%s7687_s8 + $0x1728] sm:$0xff] }
 0x226   : > { %3750 = vmatpush.msrb.mxu1 %v2061_v13  ;;  %3731 = vmatpush.msrb.mxu0 %v1517_v14  ;;  %v2669_v13 = vld [vmem:[%s7687_s8 + $0x2920] sm:$0xff]  ;;  %v1550_v14 = vld [vmem:[%s7687_s8 + $0x628] sm:$0xff] }
 0x227   : > { %3557 = vmatmul.f32.vlgmr.msra.gmra.mxu3 %v8477_v55  ;;  %3695 = vmatpush.msra.mxu2 %v2412_v60  ;;  %v1870_v21 = vld [vmem:[%s7687_s8 + $0x1028] sm:$0xff]  ;;  %v2445_v60 = vld [vmem:[%s7687_s8 + $0x2220] sm:$0xff] }
 0x228   : > { %3751 = vmatpush.msrb.mxu1 %v2029_v17  ;;  %3625 = vmatpush.msrb.mxu3 %v3243_v18  ;;  %v2062_v17 = vld [vmem:[%s7687_s8 + $0x1628] sm:$0xff]  ;;  %v2637_v18 = vld [vmem:[%s7687_s8 + $0x2820] sm:$0xff] }
 0x229   : > { %3732 = vmatpush.msrb.mxu0 %v1485_v19  ;;  %3696 = vmatpush.msra.mxu2 %v2380_v48  ;;  %v1518_v19 = vld [vmem:[%s7687_s8 + $0x528] sm:$0xff]  ;;  %v2413_v48 = vld [vmem:[%s7687_s8 + $0x2120] sm:$0xff] }
 0x22a   : > { %3752 = vmatpush.msrb.mxu1 %v1997_v22  ;;  %3626 = vmatpush.msrb.mxu3 %v3211_v23  ;;  %v2030_v22 = vld [vmem:[%s7687_s8 + $0x1528] sm:$0xff]  ;;  %v2605_v23 = vld [vmem:[%s7687_s8 + $0x2720] sm:$0xff] }
 0x22b   : > { %3733 = vmatpush.msrb.mxu0 %v1453_v24  ;;  %3697 = vmatmul.f32.vlgmr.msra.gmra.mxu2 %v8401_v38  ;;  %v1486_v24 = vld [vmem:[%s7687_s8 + $0x428] sm:$0xff] }
 0x22c   : > { %3753 = vmatpush.msrb.mxu1 %v1965_v27  ;;  %3627 = vmatpush.msrb.mxu3 %v3179_v28  ;;  %v1998_v27 = vld [vmem:[%s7687_s8 + $0x1428] sm:$0xff]  ;;  %v2573_v28 = vld [vmem:[%s7687_s8 + $0x2620] sm:$0xff] }
 0x22d   : > { %3734 = vmatpush.msrb.mxu0 %v1421_v29  ;;  %3761 = vmatpush.msrb.mxu2 %v2861_v50  ;;  %v1454_v29 = vld [vmem:[%s7687_s8 + $0x328] sm:$0xff]  ;;  %v2287_v50 = vld [vmem:[%s7687_s8 + $0x1d30] sm:$0xff] }
 0x22e   : > { %3754 = vmatpush.msrb.mxu1 %v1933_v31  ;;  %3628 = vmatpush.msrb.mxu3 %v3147_v1  ;;  %v1966_v31 = vld [vmem:[%s7687_s8 + $0x1328] sm:$0xff]  ;;  %v2541_v1 = vld [vmem:[%s7687_s8 + $0x2520] sm:$0xff] }
 0x22f   : > { %3735 = vmatpush.msrb.mxu0 %v1389_v33  ;;  %3762 = vmatpush.msrb.mxu2 %v2829_v53  ;;  %v1422_v33 = vld [vmem:[%s7687_s8 + $0x228] sm:$0xff] }
 0x230   : > { %3755 = vmatpush.msrb.mxu1 %v1901_v35  ;;  %3629 = vmatpush.msrb.mxu3 %v3115_v16  ;;  %v1934_v35 = vld [vmem:[%s7687_s8 + $0x1228] sm:$0xff]  ;;  %v2509_v16 = vld [vmem:[%s7687_s8 + $0x2420] sm:$0xff] }
 0x231   : > { %3736 = vmatpush.msrb.mxu0 %v1357_v36  ;;  %3763 = vmatpush.msrb.mxu2 %v2797_v58  ;;  %v1390_v36 = vld [vmem:[%s7687_s8 + $0x128] sm:$0xff] }
 0x232   : > { %3756 = vmatpush.msrb.mxu1 %v1869_v37  ;;  %3737 = vmatmul.f32.vlgmr.msrb.gmra.mxu0 %v8284_v40  ;;  %v1902_v37 = vld [vmem:[%s7687_s8 + $0x1128] sm:$0xff] }
 0x233   : > { %3757 = vmatmul.f32.vlgmr.msrb.gmra.mxu1 %v8288_v43  ;;  %3801 = vmatpush.msra.mxu0 %v1838_v39  ;;  %v2477_v39 = vld [vmem:[%s7687_s8 + $0x2320] sm:$0xff]  ;;  %v2862_v53 = vld [vmem:[%s7687_s8 + $0x2f28] sm:$0xff] }
 0x234   : > { %3821 = vmatpush.msra.mxu1 %v2350_v41  ;;  %3630 = vmatpush.msrb.mxu3 %v3083_v42  ;;  %v1358_v41 = vld [vmem:[%s7687_s8 + $0x28] sm:$0xff]  ;;  %v3116_v42 = vld [vmem:[%s7687_s8 + $0x3718] sm:$0xff] }
 0x235   : > { %3802 = vmatpush.msra.mxu0 %v1806_v44  ;;  %3764 = vmatpush.msrb.mxu2 %v2765_v63  ;;  %v1839_v44 = vld [vmem:[%s7687_s8 + $0xf30] sm:$0xff]  ;;  %v2830_v58 = vld [vmem:[%s7687_s8 + $0x2e28] sm:$0xff] }
 0x236   : > { %3822 = vmatpush.msra.mxu1 %v2318_v45  ;;  %3631 = vmatpush.msrb.mxu3 %v3051_v46  ;;  %v2351_v45 = vld [vmem:[%s7687_s8 + $0x1f30] sm:$0xff]  ;;  %v3084_v46 = vld [vmem:[%s7687_s8 + $0x3618] sm:$0xff]  ;;  %v2798_v63 = vld [vmem:[%s7687_s8 + $0x2d28] sm:$0xff] }
 0x237   : > { %3803 = vmatpush.msra.mxu0 %v1774_v47  ;;  %3765 = vmatpush.msrb.mxu2 %v2733_v6  ;;  %v1807_v47 = vld [vmem:[%s7687_s8 + $0xe30] sm:$0xff]  ;;  %v2766_v6 = vld [vmem:[%s7687_s8 + $0x2c28] sm:$0xff] }
 0x238   : > { %3823 = vmatpush.msra.mxu1 %v2286_v26  ;;  %3632 = vmatpush.msrb.mxu3 %v3019_v32  ;;  %v2319_v26 = vld [vmem:[%s7687_s8 + $0x1e30] sm:$0xff]  ;;  %v3052_v32 = vld [vmem:[%s7687_s8 + $0x3518] sm:$0xff] }
 0x239   : > { %3804 = vmatpush.msra.mxu0 %v1742_v49  ;;  %3766 = vmatpush.msrb.mxu2 %v2701_v9  ;;  %v1775_v49 = vld [vmem:[%s7687_s8 + $0xd30] sm:$0xff] }
 0x23a   : > { %3824 = vmatpush.msra.mxu1 %v2254_v51  ;;  %3633 = vmatpush.msrb.mxu3 %v2987_v3  ;;  %v3020_v51 = vld [vmem:[%s7687_s8 + $0x3418] sm:$0xff]  ;;  %v2381_v3 = vld [vmem:[%s7687_s8 + $0x2020] sm:$0xff]  ;;  %v1615_v9 = vld [vmem:[%s7687_s8 + $0x830] sm:$0xff] }
 0x23b   : > { %3805 = vmatpush.msra.mxu0 %v1710_v52  ;;  %3767 = vmatpush.msrb.mxu2 %v2669_v13  ;;  %v1743_v52 = vld [vmem:[%s7687_s8 + $0xc30] sm:$0xff]  ;;  %v2702_v13 = vld [vmem:[%s7687_s8 + $0x2a28] sm:$0xff] }
 0x23c   : > { %3825 = vmatpush.msra.mxu1 %v2222_v54  ;;  %3634 = vmatpush.msrb.mxu3 %v2955_v56  ;;  %v2255_v54 = vld [vmem:[%s7687_s8 + $0x1c30] sm:$0xff]  ;;  %v2988_v56 = vld [vmem:[%s7687_s8 + $0x3318] sm:$0xff] }
 0x23d   : > { %3806 = vmatpush.msra.mxu0 %v1678_v57  ;;  %3768 = vmatpush.msrb.mxu2 %v2637_v18  ;;  %v1711_v57 = vld [vmem:[%s7687_s8 + $0xb30] sm:$0xff]  ;;  %v2670_v18 = vld [vmem:[%s7687_s8 + $0x2928] sm:$0xff] }
 0x23e   : > { %3826 = vmatpush.msra.mxu1 %v2190_v59  ;;  %3635 = vmatpush.msrb.mxu3 %v2923_v61  ;;  %v2223_v59 = vld [vmem:[%s7687_s8 + $0x1b30] sm:$0xff]  ;;  %v2956_v61 = vld [vmem:[%s7687_s8 + $0x3218] sm:$0xff] }
 0x23f   : > { %3807 = vmatpush.msra.mxu0 %v1646_v62  ;;  %3769 = vmatpush.msrb.mxu2 %v2605_v23  ;;  %v1679_v62 = vld [vmem:[%s7687_s8 + $0xa30] sm:$0xff]  ;;  %v2638_v23 = vld [vmem:[%s7687_s8 + $0x2828] sm:$0xff] }
 0x240   : > { %3827 = vmatpush.msra.mxu1 %v2158_v0  ;;  %3636 = vmatpush.msrb.mxu3 %v2891_v4  ;;  %v2191_v0 = vld [vmem:[%s7687_s8 + $0x1a30] sm:$0xff]  ;;  %v2924_v4 = vld [vmem:[%s7687_s8 + $0x3118] sm:$0xff] }
 0x241   : > { %3808 = vmatpush.msra.mxu0 %v1614_v5  ;;  %3637 = vmatmul.f32.vlgmr.msrb.gmra.mxu3 %v8477_v55  ;;  %v1647_v5 = vld [vmem:[%s7687_s8 + $0x930] sm:$0xff] }
 0x242   : > { %3701 = vmatpush.msra.mxu3 %v3372_v7  ;;  %3828 = vmatpush.msra.mxu1 %v2126_v8  ;;  %v2159_v7 = vld [vmem:[%s7687_s8 + $0x1930] sm:$0xff]  ;;  %v2892_v8 = vld [vmem:[%s7687_s8 + $0x3018] sm:$0xff] }
 0x243   : > { %3809 = vmatpush.msra.mxu0 %v1582_v10  ;;  %3770 = vmatpush.msrb.mxu2 %v2573_v28  ;;  %v2734_v10 = vld [vmem:[%s7687_s8 + $0x2b28] sm:$0xff] }
 0x244   : > { %3702 = vmatpush.msra.mxu3 %v3340_v11  ;;  %3829 = vmatpush.msra.mxu1 %v2094_v12  ;;  %v3373_v11 = vld [vmem:[%s7687_s8 + $0x3f20] sm:$0xff]  ;;  %v2127_v12 = vld [vmem:[%s7687_s8 + $0x1830] sm:$0xff]  ;;  %v2606_v28 = vld [vmem:[%s7687_s8 + $0x2728] sm:$0xff] }
 0x245   : > { %3810 = vmatpush.msra.mxu0 %v1550_v14  ;;  %3771 = vmatpush.msrb.mxu2 %v2541_v1  ;;  %v1583_v14 = vld [vmem:[%s7687_s8 + $0x730] sm:$0xff]  ;;  %v2574_v1 = vld [vmem:[%s7687_s8 + $0x2628] sm:$0xff] }
 0x246   : > { %3703 = vmatpush.msra.mxu3 %v3308_v15  ;;  %3830 = vmatpush.msra.mxu1 %v2062_v17  ;;  %v3341_v15 = vld [vmem:[%s7687_s8 + $0x3e20] sm:$0xff]  ;;  %v2095_v17 = vld [vmem:[%s7687_s8 + $0x1730] sm:$0xff] }
 0x247   : > { %3811 = vmatpush.msra.mxu0 %v1518_v19  ;;  %3772 = vmatpush.msrb.mxu2 %v2509_v16  ;;  %v1551_v19 = vld [vmem:[%s7687_s8 + $0x630] sm:$0xff]  ;;  %v2542_v16 = vld [vmem:[%s7687_s8 + $0x2528] sm:$0xff] }
 0x248   : > { %3704 = vmatpush.msra.mxu3 %v3276_v20  ;;  %3831 = vmatpush.msra.mxu1 %v2030_v22  ;;  %v3309_v20 = vld [vmem:[%s7687_s8 + $0x3d20] sm:$0xff]  ;;  %v2063_v22 = vld [vmem:[%s7687_s8 + $0x1630] sm:$0xff] }
 0x249   : > { %3812 = vmatpush.msra.mxu0 %v1486_v24  ;;  %3773 = vmatpush.msrb.mxu2 %v2477_v39  ;;  %v1519_v24 = vld [vmem:[%s7687_s8 + $0x530] sm:$0xff]  ;;  %v2510_v39 = vld [vmem:[%s7687_s8 + $0x2428] sm:$0xff] }
 0x24a   : > { %3705 = vmatpush.msra.mxu3 %v3244_v25  ;;  %3832 = vmatpush.msra.mxu1 %v1998_v27  ;;  %v3277_v25 = vld [vmem:[%s7687_s8 + $0x3c20] sm:$0xff]  ;;  %v2031_v27 = vld [vmem:[%s7687_s8 + $0x1530] sm:$0xff] }
 0x24b   : > { %3813 = vmatpush.msra.mxu0 %v1454_v29  ;;  %3774 = vmatpush.msrb.mxu2 %v2445_v60  ;;  %v1487_v29 = vld [vmem:[%s7687_s8 + $0x430] sm:$0xff] }
 0x24c   : > { %3706 = vmatpush.msra.mxu3 %v3212_v30  ;;  %3833 = vmatpush.msra.mxu1 %v1966_v31  ;;  %v3245_v30 = vld [vmem:[%s7687_s8 + $0x3b20] sm:$0xff]  ;;  %v1999_v31 = vld [vmem:[%s7687_s8 + $0x1430] sm:$0xff] }
 0x24d   : > { %3814 = vmatpush.msra.mxu0 %v1422_v33  ;;  %3775 = vmatpush.msrb.mxu2 %v2413_v48  ;;  %v1455_v33 = vld [vmem:[%s7687_s8 + $0x330] sm:$0xff]  ;;  %v2446_v48 = vld [vmem:[%s7687_s8 + $0x2228] sm:$0xff] }
 0x24e   : > { %3707 = vmatpush.msra.mxu3 %v3180_v34  ;;  %3834 = vmatpush.msra.mxu1 %v1934_v35  ;;  %v3213_v34 = vld [vmem:[%s7687_s8 + $0x3a20] sm:$0xff]  ;;  %v1967_v35 = vld [vmem:[%s7687_s8 + $0x1330] sm:$0xff] }
 0x24f   : > { %3815 = vmatpush.msra.mxu0 %v1390_v36  ;;  %3776 = vmatpush.msrb.mxu2 %v2381_v3  ;;  %v1423_v36 = vld [vmem:[%s7687_s8 + $0x230] sm:$0xff]  ;;  %v2414_v3 = vld [vmem:[%s7687_s8 + $0x2128] sm:$0xff] }
 0x250   : > { %3708 = vmatpush.msra.mxu3 %v3148_v2  ;;  %3835 = vmatpush.msra.mxu1 %v1902_v37  ;;  %v3181_v2 = vld [vmem:[%s7687_s8 + $0x3920] sm:$0xff]  ;;  %v1935_v37 = vld [vmem:[%s7687_s8 + $0x1230] sm:$0xff] }
 0x251   : > { %3816 = vmatpush.msra.mxu0 %v1358_v41  ;;  %3777 = vmatmul.f32.vlgmr.msrb.gmra.mxu2 %v8401_v38  ;;  %v1391_v41 = vld [vmem:[%s7687_s8 + $0x130] sm:$0xff] }
 0x252   : > { %3709 = vmatpush.msra.mxu3 %v3116_v42  ;;  %3836 = vmatpush.msra.mxu1 %v1870_v21  ;;  %v3149_v42 = vld [vmem:[%s7687_s8 + $0x3820] sm:$0xff]  ;;  %v1903_v21 = vld [vmem:[%s7687_s8 + $0x1130] sm:$0xff] }
 0x253   : > { %3817 = vmatmul.f32.vlgmr.msra.gmra.mxu0 %v8284_v40  ;;  %3837 = vmatmul.f32.vlgmr.msra.gmra.mxu1 %v8288_v43  ;;  %v1871_v60 = vld [vmem:[%s7687_s8 + $0x1030] sm:$0xff] }
 0x254   : > { %3881 = vmatpush.msrb.mxu0 %v1839_v44  ;;  %3901 = vmatpush.msrb.mxu1 %v2351_v45  ;;  %v2478_v44 = vld [vmem:[%s7687_s8 + $0x2328] sm:$0xff]  ;;  %v1359_v45 = vld [vmem:[%s7687_s8 + $0x30] sm:$0xff] }
 0x255   : > { %3710 = vmatpush.msra.mxu3 %v3084_v46  ;;  %3841 = vmatpush.msra.mxu2 %v2862_v53  ;;  %v3117_v46 = vld [vmem:[%s7687_s8 + $0x3720] sm:$0xff]  ;;  %v2288_v53 = vld [vmem:[%s7687_s8 + $0x1d38] sm:$0xff] }
 0x256   : > { %3882 = vmatpush.msrb.mxu0 %v1807_v47  ;;  %3902 = vmatpush.msrb.mxu1 %v2319_v26  ;;  %v1840_v47 = vld [vmem:[%s7687_s8 + $0xf38] sm:$0xff] }
 0x257   : > { %3711 = vmatpush.msra.mxu3 %v3052_v32  ;;  %3842 = vmatpush.msra.mxu2 %v2830_v58  ;;  %v2352_v26 = vld [vmem:[%s7687_s8 + $0x1f38] sm:$0xff]  ;;  %v3085_v32 = vld [vmem:[%s7687_s8 + $0x3620] sm:$0xff]  ;;  %v2863_v58 = vld [vmem:[%s7687_s8 + $0x2f30] sm:$0xff] }
 0x258   : > { %3883 = vmatpush.msrb.mxu0 %v1775_v49  ;;  %3903 = vmatpush.msrb.mxu1 %v2287_v50  ;;  %v1808_v49 = vld [vmem:[%s7687_s8 + $0xe38] sm:$0xff] }
 0x259   : > { %3712 = vmatpush.msra.mxu3 %v3020_v51  ;;  %3843 = vmatpush.msra.mxu2 %v2798_v63  ;;  %v2320_v50 = vld [vmem:[%s7687_s8 + $0x1e38] sm:$0xff]  ;;  %v3053_v51 = vld [vmem:[%s7687_s8 + $0x3520] sm:$0xff]  ;;  %v2831_v63 = vld [vmem:[%s7687_s8 + $0x2e30] sm:$0xff] }
 0x25a   : > { %3884 = vmatpush.msrb.mxu0 %v1743_v52  ;;  %3904 = vmatpush.msrb.mxu1 %v2255_v54  ;;  %v1776_v52 = vld [vmem:[%s7687_s8 + $0xd38] sm:$0xff]  ;;  %v3021_v54 = vld [vmem:[%s7687_s8 + $0x3420] sm:$0xff] }
 0x25b   : > { %3713 = vmatpush.msra.mxu3 %v2988_v56  ;;  %3844 = vmatpush.msra.mxu2 %v2766_v6  ;;  %v2382_v56 = vld [vmem:[%s7687_s8 + $0x2028] sm:$0xff]  ;;  %v2799_v6 = vld [vmem:[%s7687_s8 + $0x2d30] sm:$0xff] }
 0x25c   : > { %3885 = vmatpush.msrb.mxu0 %v1711_v57  ;;  %3905 = vmatpush.msrb.mxu1 %v2223_v59  ;;  %v1744_v57 = vld [vmem:[%s7687_s8 + $0xc38] sm:$0xff] }
 0x25d   : > { %3714 = vmatpush.msra.mxu3 %v2956_v61  ;;  %3845 = vmatpush.msra.mxu2 %v2734_v10  ;;  %v2256_v59 = vld [vmem:[%s7687_s8 + $0x1c38] sm:$0xff]  ;;  %v2989_v61 = vld [vmem:[%s7687_s8 + $0x3320] sm:$0xff]  ;;  %v2767_v10 = vld [vmem:[%s7687_s8 + $0x2c30] sm:$0xff] }
 0x25e   : > { %3886 = vmatpush.msrb.mxu0 %v1679_v62  ;;  %3906 = vmatpush.msrb.mxu1 %v2191_v0  ;;  %v1712_v62 = vld [vmem:[%s7687_s8 + $0xb38] sm:$0xff] }
 0x25f   : > { %3715 = vmatpush.msra.mxu3 %v2924_v4  ;;  %3846 = vmatpush.msra.mxu2 %v2702_v13  ;;  %v2224_v0 = vld [vmem:[%s7687_s8 + $0x1b38] sm:$0xff]  ;;  %v2957_v4 = vld [vmem:[%s7687_s8 + $0x3220] sm:$0xff] }
 0x260   : > { %3887 = vmatpush.msrb.mxu0 %v1647_v5  ;;  %3907 = vmatpush.msrb.mxu1 %v2159_v7  ;;  %v1680_v5 = vld [vmem:[%s7687_s8 + $0xa38] sm:$0xff] }
 0x261   : > { %3716 = vmatpush.msra.mxu3 %v2892_v8  ;;  %3847 = vmatpush.msra.mxu2 %v2670_v18  ;;  %v2192_v7 = vld [vmem:[%s7687_s8 + $0x1a38] sm:$0xff]  ;;  %v2925_v8 = vld [vmem:[%s7687_s8 + $0x3120] sm:$0xff]  ;;  %v2703_v18 = vld [vmem:[%s7687_s8 + $0x2a30] sm:$0xff] }
 0x262   : > { %3888 = vmatpush.msrb.mxu0 %v1615_v9  ;;  %3717 = vmatmul.f32.vlgmr.msra.gmra.mxu3 %v8477_v55  ;;  %v1648_v9 = vld [vmem:[%s7687_s8 + $0x938] sm:$0xff] }
 0x263   : > { %3781 = vmatpush.msrb.mxu3 %v3373_v11  ;;  %3908 = vmatpush.msrb.mxu1 %v2127_v12  ;;  %v2160_v11 = vld [vmem:[%s7687_s8 + $0x1938] sm:$0xff]  ;;  %v2893_v12 = vld [vmem:[%s7687_s8 + $0x3020] sm:$0xff] }
 0x264   : > { %3889 = vmatpush.msrb.mxu0 %v1583_v14  ;;  %3848 = vmatpush.msra.mxu2 %v2638_v23  ;;  %v1616_v13 = vld [vmem:[%s7687_s8 + $0x838] sm:$0xff]  ;;  %v2735_v14 = vld [vmem:[%s7687_s8 + $0x2b30] sm:$0xff] }
 0x265   : > { %3782 = vmatpush.msrb.mxu3 %v3341_v15  ;;  %3909 = vmatpush.msrb.mxu1 %v2095_v17  ;;  %v3374_v15 = vld [vmem:[%s7687_s8 + $0x3f28] sm:$0xff]  ;;  %v2128_v17 = vld [vmem:[%s7687_s8 + $0x1838] sm:$0xff]  ;;  %v2671_v23 = vld [vmem:[%s7687_s8 + $0x2930] sm:$0xff] }
 0x266   : > { %3890 = vmatpush.msrb.mxu0 %v1551_v19  ;;  %3849 = vmatpush.msra.mxu2 %v2606_v28  ;;  %v1584_v19 = vld [vmem:[%s7687_s8 + $0x738] sm:$0xff]  ;;  %v2639_v28 = vld [vmem:[%s7687_s8 + $0x2830] sm:$0xff] }
 0x267   : > { %3783 = vmatpush.msrb.mxu3 %v3309_v20  ;;  %3910 = vmatpush.msrb.mxu1 %v2063_v22  ;;  %v3342_v20 = vld [vmem:[%s7687_s8 + $0x3e28] sm:$0xff]  ;;  %v2096_v22 = vld [vmem:[%s7687_s8 + $0x1738] sm:$0xff] }
 0x268   : > { %3891 = vmatpush.msrb.mxu0 %v1519_v24  ;;  %3850 = vmatpush.msra.mxu2 %v2574_v1  ;;  %v1552_v24 = vld [vmem:[%s7687_s8 + $0x638] sm:$0xff]  ;;  %v2607_v1 = vld [vmem:[%s7687_s8 + $0x2730] sm:$0xff] }
 0x269   : > { %3784 = vmatpush.msrb.mxu3 %v3277_v25  ;;  %3911 = vmatpush.msrb.mxu1 %v2031_v27  ;;  %v3310_v25 = vld [vmem:[%s7687_s8 + $0x3d28] sm:$0xff]  ;;  %v2064_v27 = vld [vmem:[%s7687_s8 + $0x1638] sm:$0xff] }
 0x26a   : > { %3892 = vmatpush.msrb.mxu0 %v1487_v29  ;;  %3851 = vmatpush.msra.mxu2 %v2542_v16  ;;  %v1520_v29 = vld [vmem:[%s7687_s8 + $0x538] sm:$0xff]  ;;  %v2575_v16 = vld [vmem:[%s7687_s8 + $0x2630] sm:$0xff] }
 0x26b   : > { %3785 = vmatpush.msrb.mxu3 %v3245_v30  ;;  %3912 = vmatpush.msrb.mxu1 %v1999_v31  ;;  %v3278_v30 = vld [vmem:[%s7687_s8 + $0x3c28] sm:$0xff]  ;;  %v2032_v31 = vld [vmem:[%s7687_s8 + $0x1538] sm:$0xff] }
 0x26c   : > { %3893 = vmatpush.msrb.mxu0 %v1455_v33  ;;  %3852 = vmatpush.msra.mxu2 %v2510_v39  ;;  %v1488_v33 = vld [vmem:[%s7687_s8 + $0x438] sm:$0xff]  ;;  %v2543_v39 = vld [vmem:[%s7687_s8 + $0x2530] sm:$0xff] }
 0x26d   : > { %3786 = vmatpush.msrb.mxu3 %v3213_v34  ;;  %3913 = vmatpush.msrb.mxu1 %v1967_v35  ;;  %v3246_v34 = vld [vmem:[%s7687_s8 + $0x3b28] sm:$0xff]  ;;  %v2000_v35 = vld [vmem:[%s7687_s8 + $0x1438] sm:$0xff] }
 0x26e   : > { %3894 = vmatpush.msrb.mxu0 %v1423_v36  ;;  %3853 = vmatpush.msra.mxu2 %v2478_v44  ;;  %v1456_v36 = vld [vmem:[%s7687_s8 + $0x338] sm:$0xff]  ;;  %v2511_v44 = vld [vmem:[%s7687_s8 + $0x2430] sm:$0xff] }
 0x26f   : > { %3787 = vmatpush.msrb.mxu3 %v3181_v2  ;;  %3914 = vmatpush.msrb.mxu1 %v1935_v37  ;;  %v3214_v2 = vld [vmem:[%s7687_s8 + $0x3a28] sm:$0xff]  ;;  %v1968_v37 = vld [vmem:[%s7687_s8 + $0x1338] sm:$0xff] }
 0x270   : > { %3895 = vmatpush.msrb.mxu0 %v1391_v41  ;;  %3854 = vmatpush.msra.mxu2 %v2446_v48  ;;  %v1424_v41 = vld [vmem:[%s7687_s8 + $0x238] sm:$0xff] }
 0x271   : > { %3788 = vmatpush.msrb.mxu3 %v3149_v42  ;;  %3915 = vmatpush.msrb.mxu1 %v1903_v21  ;;  %v3182_v42 = vld [vmem:[%s7687_s8 + $0x3928] sm:$0xff]  ;;  %v1936_v21 = vld [vmem:[%s7687_s8 + $0x1238] sm:$0xff] }
 0x272   : > { %3896 = vmatpush.msrb.mxu0 %v1359_v45  ;;  %3855 = vmatpush.msra.mxu2 %v2414_v3  ;;  %v1392_v45 = vld [vmem:[%s7687_s8 + $0x138] sm:$0xff]  ;;  %v2447_v3 = vld [vmem:[%s7687_s8 + $0x2230] sm:$0xff] }
 0x273   : > { %3789 = vmatpush.msrb.mxu3 %v3117_v46  ;;  %3916 = vmatpush.msrb.mxu1 %v1871_v60  ;;  %v3150_v46 = vld [vmem:[%s7687_s8 + $0x3828] sm:$0xff]  ;;  %v1904_v60 = vld [vmem:[%s7687_s8 + $0x1138] sm:$0xff] }
 0x274   : > { %3897 = vmatmul.f32.vlgmr.msrb.gmra.mxu0 %v8284_v40  ;;  %3917 = vmatmul.f32.vlgmr.msrb.gmra.mxu1 %v8288_v43  ;;  %v1872_v48 = vld [vmem:[%s7687_s8 + $0x1038] sm:$0xff] }
 0x275   : > { %3961 = vmatpush.msra.mxu0 %v1840_v47  ;;  %3981 = vmatpush.msra.mxu1 %v2352_v26  ;;  %v2479_v47 = vld [vmem:[%s7687_s8 + $0x2330] sm:$0xff]  ;;  %v1360_v26 = vld [vmem:[%s7687_s8 + $0x38] sm:$0xff] }
 0x276   : > { %3790 = vmatpush.msrb.mxu3 %v3085_v32  ;;  %3856 = vmatpush.msra.mxu2 %v2382_v56  ;;  %v3118_v32 = vld [vmem:[%s7687_s8 + $0x3728] sm:$0xff] }
 0x277   : > { %3962 = vmatpush.msra.mxu0 %v1808_v49  ;;  %3982 = vmatpush.msra.mxu1 %v2320_v50  ;;  %v1841_v49 = vld [vmem:[%s7687_s8 + $0xf40] sm:$0xff]  ;;  %v3054_v56 = vld [vmem:[%s7687_s8 + $0x3528] sm:$0xff] }
 0x278   : > { %3791 = vmatpush.msrb.mxu3 %v3053_v51  ;;  %3857 = vmatmul.f32.vlgmr.msra.gmra.mxu2 %v8401_v38  ;;  %v2353_v50 = vld [vmem:[%s7687_s8 + $0x1f40] sm:$0xff]  ;;  %v3086_v51 = vld [vmem:[%s7687_s8 + $0x3628] sm:$0xff] }
 0x279   : > { %3963 = vmatpush.msra.mxu0 %v1776_v52  ;;  %3983 = vmatpush.msra.mxu1 %v2288_v53  ;;  %v1809_v52 = vld [vmem:[%s7687_s8 + $0xe40] sm:$0xff] }
 0x27a   : > { %3792 = vmatpush.msrb.mxu3 %v3021_v54  ;;  %3921 = vmatpush.msrb.mxu2 %v2863_v58  ;;  %v2321_v53 = vld [vmem:[%s7687_s8 + $0x1e40] sm:$0xff]  ;;  %v3438_v54 = vpop.f32.mrf.mxu1 }
 0x27b   : > { %3964 = vmatpush.msra.mxu0 %v1744_v57  ;;  %3984 = vmatpush.msra.mxu1 %v2256_v59  ;;  %v2415_v57 = vld [vmem:[%s7687_s8 + $0x2130] sm:$0xff]  ;;  %v1777_v58 = vld [vmem:[%s7687_s8 + $0xd40] sm:$0xff] }
 0x27c   : > { %3793 = vmatpush.msrb.mxu3 %v2989_v61  ;;  %3922 = vmatpush.msrb.mxu2 %v2831_v63  ;;  %v2289_v59 = vld [vmem:[%s7687_s8 + $0x1d40] sm:$0xff]  ;;  %v3418_v61 = vpop.f32.mrf.mxu0  ;;  %v3022_v63 = vld [vmem:[%s7687_s8 + $0x3428] sm:$0xff] }
 0x27d   : > { %3965 = vmatpush.msra.mxu0 %v1712_v62  ;;  %3985 = vmatpush.msra.mxu1 %v2224_v0  ;;  %v3458_v62 = vpop.f32.mrf.mxu2  ;;  %v2383_v0 = vld [vmem:[%s7687_s8 + $0x2030] sm:$0xff] }
 0x27e   : > { %3794 = vmatpush.msrb.mxu3 %v2957_v4  ;;  %3923 = vmatpush.msrb.mxu2 %v2799_v6  ;;  %v3439_v4 = vadd.f32 %v3438_v54, %v3418_v61  ;;  %v2864_v6 = vld [vmem:[%s7687_s8 + $0x2f38] sm:$0xff]  ;;  %v1425_v61 = vld [vmem:[%s7687_s8 + $0x240] sm:$0xff] }
 0x27f   : > { %3966 = vmatpush.msra.mxu0 %v1680_v5  ;;  %3986 = vmatpush.msra.mxu1 %v2192_v7  ;;  %v1745_v5 = vld [vmem:[%s7687_s8 + $0xc40] sm:$0xff]  ;;  %v2576_v54 = vld [vmem:[%s7687_s8 + $0x2638] sm:$0xff] }
 0x280   : > { %3795 = vmatpush.msrb.mxu3 %v2925_v8  ;;  %3924 = vmatpush.msrb.mxu2 %v2767_v10  ;;  %v2257_v7 = vld [vmem:[%s7687_s8 + $0x1c40] sm:$0xff]  ;;  %v3459_v8 = vadd.f32 %v3458_v62, %v3439_v4  ;;  %v3183_v62 = vld [vmem:[%s7687_s8 + $0x3930] sm:$0xff] }
 0x281   : > { %3967 = vmatpush.msra.mxu0 %v1648_v9  ;;  %3987 = vmatpush.msra.mxu1 %v2160_v11  ;;  %v2990_v9 = vld [vmem:[%s7687_s8 + $0x3328] sm:$0xff]  ;;  %v1713_v10 = vld [vmem:[%s7687_s8 + $0xb40] sm:$0xff]  ;;  %v2832_v11 = vld [vmem:[%s7687_s8 + $0x2e38] sm:$0xff] }
 0x282   : > { %3796 = vmatpush.msrb.mxu3 %v2893_v12  ;;  %3925 = vmatpush.msrb.mxu2 %v2735_v14  ;;  %v2225_v12 = vld [vmem:[%s7687_s8 + $0x1b40] sm:$0xff] }
 0x283   : > { %3968 = vmatpush.msra.mxu0 %v1616_v13  ;;  %3797 = vmatmul.f32.vlgmr.msrb.gmra.mxu3 %v8477_v55  ;;  %v1321_v13 = vld [vmem:[#allocation2 + $0xb0] sm:$0xff]  ;;  %v1393_v4 = vld [vmem:[%s7687_s8 + $0x140] sm:$0xff] }
 0x284   : > { %3861 = vmatpush.msra.mxu3 %v3374_v15  ;;  %3988 = vmatpush.msra.mxu1 %v2128_v17  ;;  %v2958_v15 = vld [vmem:[%s7687_s8 + $0x3228] sm:$0xff]  ;;  %v1681_v17 = vld [vmem:[%s7687_s8 + $0xa40] sm:$0xff] }
 0x285   : > { %3926 = vmatpush.msrb.mxu2 %v2703_v18  ;;  %3969 = vmatpush.msra.mxu0 %v1584_v19  ;;  %v2800_v19 = vld [vmem:[%s7687_s8 + $0x2d38] sm:$0xff] }
 0x286   : > { %3862 = vmatpush.msra.mxu3 %v3342_v20  ;;  %3989 = vmatpush.msra.mxu1 %v2096_v22  ;;  %v2193_v20 = vld [vmem:[%s7687_s8 + $0x1a40] sm:$0xff]  ;;  %v2926_v22 = vld [vmem:[%s7687_s8 + $0x3128] sm:$0xff] }
 0x287   : > { %3927 = vmatpush.msrb.mxu2 %v2671_v23  ;;  %3970 = vmatpush.msra.mxu0 %v1552_v24  ;;  %v1649_v23 = vld [vmem:[%s7687_s8 + $0x940] sm:$0xff] }
 0x288   : > { %3863 = vmatpush.msra.mxu3 %v3310_v25  ;;  %3990 = vmatpush.msra.mxu1 %v2064_v27  ;;  %v3498_v25 = vpop.f32.mrf.mxu0  ;;  %v3518_v27 = vpop.f32.mrf.mxu1 }
 0x289   : > { %3928 = vmatpush.msrb.mxu2 %v2639_v28  ;;  %3971 = vmatpush.msra.mxu0 %v1520_v29  ;;  %v2768_v28 = vld [vmem:[%s7687_s8 + $0x2c38] sm:$0xff]  ;;  %v2161_v29 = vld [vmem:[%s7687_s8 + $0x1940] sm:$0xff] }
 0x28a   : > { %3864 = vmatpush.msra.mxu3 %v3278_v30  ;;  %3991 = vmatpush.msra.mxu1 %v2032_v31  ;;  %v2894_v30 = vld [vmem:[%s7687_s8 + $0x3028] sm:$0xff]  ;;  %v1617_v31 = vld [vmem:[%s7687_s8 + $0x840] sm:$0xff] }
 0x28b   : > { %3929 = vmatpush.msrb.mxu2 %v2607_v1  ;;  %3972 = vmatpush.msra.mxu0 %v1488_v33  ;;  %v3538_v1 = vpop.f32.mrf.mxu2  ;;  %v2736_v33 = vld [vmem:[%s7687_s8 + $0x2b38] sm:$0xff] }
 0x28c   : > { %3865 = vmatpush.msra.mxu3 %v3246_v34  ;;  %3992 = vmatpush.msra.mxu1 %v2000_v35  ;;  %v3519_v34 = vadd.f32 %v3518_v27, %v3498_v25  ;;  %v3375_v35 = vld [vmem:[%s7687_s8 + $0x3f30] sm:$0xff]  ;;  %v1746_v25 = vld [vmem:[%s7687_s8 + $0xc48] sm:$0xff] }
 0x28d   : > { %3930 = vmatpush.msrb.mxu2 %v2575_v16  ;;  %3973 = vmatpush.msra.mxu0 %v1456_v36  ;;  %v2129_v16 = vld [vmem:[%s7687_s8 + $0x1840] sm:$0xff]  ;;  %v2704_v36 = vld [vmem:[%s7687_s8 + $0x2a38] sm:$0xff] }
 0x28e   : > { %3866 = vmatpush.msra.mxu3 %v3214_v2  ;;  %3993 = vmatpush.msra.mxu1 %v1968_v37  ;;  %v1585_v2 = vld [vmem:[%s7687_s8 + $0x740] sm:$0xff]  ;;  %v3539_v37 = vadd.f32 %v3538_v1, %v3519_v34  ;;  %v1714_v1 = vld [vmem:[%s7687_s8 + $0xb48] sm:$0xff] }
 0x28f   : > { %3931 = vmatpush.msrb.mxu2 %v2543_v39  ;;  %3974 = vmatpush.msra.mxu0 %v1424_v41  ;;  %v3343_v39 = vld [vmem:[%s7687_s8 + $0x3e30] sm:$0xff]  ;;  %v2097_v41 = vld [vmem:[%s7687_s8 + $0x1740] sm:$0xff] }
 0x290   : > { %3867 = vmatpush.msra.mxu3 %v3182_v42  ;;  %3994 = vmatpush.msra.mxu1 %v1936_v21  ;;  %v2672_v42 = vld [vmem:[%s7687_s8 + $0x2938] sm:$0xff]  ;;  %v1553_v21 = vld [vmem:[%s7687_s8 + $0x640] sm:$0xff]  ;;  %v3578_v27 = vpop.f32.mrf.mxu0 }
 0x291   : > { %3932 = vmatpush.msrb.mxu2 %v2511_v44  ;;  %3975 = vmatpush.msra.mxu0 %v1392_v45  ;;  %v1322_v44 = vld [vmem:[#allocation2] sm:$0xff] }
 0x292   : > { %3868 = vmatpush.msra.mxu3 %v3150_v46  ;;  %3995 = vmatpush.msra.mxu1 %v1904_v60  ;;  %v3311_v46 = vld [vmem:[%s7687_s8 + $0x3d30] sm:$0xff]  ;;  %v2065_v60 = vld [vmem:[%s7687_s8 + $0x1640] sm:$0xff] }
 0x293   : > { %3933 = vmatpush.msrb.mxu2 %v2479_v47  ;;  %3976 = vmatpush.msra.mxu0 %v1360_v26  ;;  %v2640_v26 = vld [vmem:[%s7687_s8 + $0x2838] sm:$0xff]  ;;  %v2833_v34 = vld [vmem:[%s7687_s8 + $0x2e40] sm:$0xff] }
 0x294   : > { %3869 = vmatpush.msra.mxu3 %v3118_v32  ;;  %3996 = vmatpush.msra.mxu1 %v1872_v48  ;;  %v1521_v32 = vld [vmem:[%s7687_s8 + $0x540] sm:$0xff]  ;;  %v3279_v48 = vld [vmem:[%s7687_s8 + $0x3c30] sm:$0xff] }
 0x295   : > { %3977 = vmatmul.f32.vlgmr.msra.gmra.mxu0 %v8284_v40  ;;  %3997 = vmatmul.f32.vlgmr.msra.gmra.mxu1 %v8288_v43 }
 0x296   : > { %4041 = vmatpush.msrb.mxu0 %v1841_v49  ;;  %4061 = vmatpush.msrb.mxu1 %v2353_v50  ;;  %v2033_v49 = vld [vmem:[%s7687_s8 + $0x1540] sm:$0xff] }
 0x297   : > { %3870 = vmatpush.msra.mxu3 %v3086_v51  ;;  %3934 = vmatpush.msrb.mxu2 %v2447_v3  ;;  %v2608_v51 = vld [vmem:[%s7687_s8 + $0x2738] sm:$0xff]  ;;  %v1489_v3 = vld [vmem:[%s7687_s8 + $0x440] sm:$0xff] }
 0x298   : > { %4042 = vmatpush.msrb.mxu0 %v1809_v52  ;;  %4062 = vmatpush.msrb.mxu1 %v2321_v53  ;;  %v3247_v52 = vld [vmem:[%s7687_s8 + $0x3b30] sm:$0xff]  ;;  %v2001_v53 = vld [vmem:[%s7687_s8 + $0x1440] sm:$0xff] }
 0x299   : > { %3871 = vmatpush.msra.mxu3 %v3054_v56  ;;  %3935 = vmatpush.msrb.mxu2 %v2415_v57  ;;  %v1457_v56 = vld [vmem:[%s7687_s8 + $0x340] sm:$0xff]  ;;  %v3215_v57 = vld [vmem:[%s7687_s8 + $0x3a30] sm:$0xff] }
 0x29a   : > { %4043 = vmatpush.msrb.mxu0 %v1777_v58  ;;  %4063 = vmatpush.msrb.mxu1 %v2289_v59  ;;  %v1969_v58 = vld [vmem:[%s7687_s8 + $0x1340] sm:$0xff]  ;;  %v2544_v59 = vld [vmem:[%s7687_s8 + $0x2538] sm:$0xff] }
 0x29b   : > { %3872 = vmatpush.msra.mxu3 %v3022_v63  ;;  %3936 = vmatpush.msrb.mxu2 %v2383_v0  ;;  %v1937_v63 = vld [vmem:[%s7687_s8 + $0x1240] sm:$0xff]  ;;  %v2512_v0 = vld [vmem:[%s7687_s8 + $0x2438] sm:$0xff] }
 0x29c   : > { %3937 = vmatmul.f32.vlgmr.msrb.gmra.mxu2 %v8401_v38  ;;  %4044 = vmatpush.msrb.mxu0 %v1745_v5  ;;  %v3151_v5 = vld [vmem:[%s7687_s8 + $0x3830] sm:$0xff] }
 0x29d   : > { %4001 = vmatpush.msra.mxu2 %v2864_v6  ;;  %4064 = vmatpush.msrb.mxu1 %v2257_v7  ;;  %v1905_v6 = vld [vmem:[%s7687_s8 + $0x1140] sm:$0xff]  ;;  %v2480_v7 = vld [vmem:[%s7687_s8 + $0x2338] sm:$0xff] }
 0x29e   : > { %3873 = vmatpush.msra.mxu3 %v2990_v9  ;;  %4045 = vmatpush.msrb.mxu0 %v1713_v10  ;;  %v3119_v9 = vld [vmem:[%s7687_s8 + $0x3730] sm:$0xff]  ;;  %v1873_v10 = vld [vmem:[%s7687_s8 + $0x1040] sm:$0xff] }
 0x29f   : > { %4002 = vmatpush.msra.mxu2 %v2832_v11  ;;  %4065 = vmatpush.msrb.mxu1 %v2225_v12  ;;  %v1842_v11 = vld [vmem:[%s7687_s8 + $0xf48] sm:$0xff] }
 0x2a0   : > { %v3478_v14 = vpop.f32.mrf.mxu3  ;;  %3874 = vmatpush.msra.mxu3 %v2958_v15  ;;  %4046 = vmatpush.msrb.mxu0 %v1681_v17  ;;  %v2354_v12 = vld [vmem:[%s7687_s8 + $0x1f48] sm:$0xff] }
 0x2a1   : > { %v3479_v18 = vadd.f32 %v3478_v14, %v3459_v8  ;;  %4003 = vmatpush.msra.mxu2 %v2800_v19  ;;  %4066 = vmatpush.msrb.mxu1 %v2193_v20  ;;  %v1361_v8 = vld [vmem:[%s7687_s8 + $0x40] sm:$0xff]  ;;  %v2448_v14 = vld [vmem:[%s7687_s8 + $0x2238] sm:$0xff]  ;;  %v1810_v15 = vld [vmem:[%s7687_s8 + $0xe48] sm:$0xff] }
 0x2a2   : > { %3875 = vmatpush.msra.mxu3 %v2926_v22  ;;  %4047 = vmatpush.msrb.mxu0 %v1649_v23  ;;  %v2322_v17 = vld [vmem:[%s7687_s8 + $0x1e48] sm:$0xff]  ;;  %v2416_v19 = vld [vmem:[%s7687_s8 + $0x2138] sm:$0xff]  ;;  %v3023_v23 = vld [vmem:[%s7687_s8 + $0x3430] sm:$0xff] }
 0x2a3   : > { %v5961_v24 = vadd.f32 %v3479_v18, %v1321_v13  ;;  %4004 = vmatpush.msra.mxu2 %v2768_v28  ;;  %4067 = vmatpush.msrb.mxu1 %v2161_v29  ;;  %v3087_v13 = vld [vmem:[%s7687_s8 + $0x3630] sm:$0xff]  ;;  %v1778_v20 = vld [vmem:[%s7687_s8 + $0xd48] sm:$0xff]  ;;  %v3598_v28 = vpop.f32.mrf.mxu1  ;;  %v2865_v29 = vld [vmem:[%s7687_s8 + $0x2f40] sm:$0xff] }
 0x2a4   : > { %3876 = vmatpush.msra.mxu3 %v2894_v30  ;;  %4048 = vmatpush.msrb.mxu0 %v1617_v31  ;;  %v3055_v18 = vld [vmem:[%s7687_s8 + $0x3530] sm:$0xff]  ;;  %v2290_v22 = vld [vmem:[%s7687_s8 + $0x1d48] sm:$0xff] }
 0x2a5   : > { %5993 = vst [vmem:[#allocation2 + $0xb0] sm:$0xff] %v5961_v24  ;;  %3877 = vmatmul.f32.vlgmr.msra.gmra.mxu3 %v8477_v55  ;;  %4005 = vmatpush.msra.mxu2 %v2736_v33  ;;  %v2384_v24 = vld [vmem:[%s7687_s8 + $0x2038] sm:$0xff]  ;;  %v2258_v30 = vld [vmem:[%s7687_s8 + $0x1c48] sm:$0xff]  ;;  %v2991_v31 = vld [vmem:[%s7687_s8 + $0x3330] sm:$0xff]  ;;  %v3618_v33 = vpop.f32.mrf.mxu2 }
 0x2a6   : > { %3941 = vmatpush.msrb.mxu3 %v3375_v35  ;;  %4068 = vmatpush.msrb.mxu1 %v2129_v16  ;;  %v2226_v35 = vld [vmem:[%s7687_s8 + $0x1b48] sm:$0xff]  ;;  %v3599_v16 = vadd.f32 %v3598_v28, %v3578_v27  ;;  %v1843_v27 = vld [vmem:[%s7687_s8 + $0xf50] sm:$0xff] }
 0x2a7   : > { %4006 = vmatpush.msra.mxu2 %v2704_v36  ;;  %4049 = vmatpush.msrb.mxu0 %v1585_v2  ;;  %v2959_v36 = vld [vmem:[%s7687_s8 + $0x3230] sm:$0xff]  ;;  %v1682_v2 = vld [vmem:[%s7687_s8 + $0xa48] sm:$0xff] }
 0x2a8   : > { %3942 = vmatpush.msrb.mxu3 %v3343_v39  ;;  %4069 = vmatpush.msrb.mxu1 %v2097_v41  ;;  %v2194_v39 = vld [vmem:[%s7687_s8 + $0x1a48] sm:$0xff]  ;;  %v3619_v41 = vadd.f32 %v3618_v33, %v3599_v16  ;;  %v2355_v28 = vld [vmem:[%s7687_s8 + $0x1f50] sm:$0xff]  ;;  %v3056_v33 = vld [vmem:[%s7687_s8 + $0x3538] sm:$0xff] }
 0x2a9   : > { %4007 = vmatpush.msra.mxu2 %v2672_v42  ;;  %4050 = vmatpush.msrb.mxu0 %v1553_v21  ;;  %v2927_v42 = vld [vmem:[%s7687_s8 + $0x3130] sm:$0xff]  ;;  %v1650_v21 = vld [vmem:[%s7687_s8 + $0x948] sm:$0xff] }
 0x2aa   : > { %v3558_v45 = vpop.f32.mrf.mxu3  ;;  %3943 = vmatpush.msrb.mxu3 %v3311_v46  ;;  %4070 = vmatpush.msrb.mxu1 %v2065_v60  ;;  %v1323_v46 = vld [vmem:[#allocation2 + $0xd8] sm:$0xff]  ;;  %v2291_v16 = vld [vmem:[%s7687_s8 + $0x1d50] sm:$0xff] }
 0x2ab   : > { %v3559_v47 = vadd.f32 %v3558_v45, %v3539_v37  ;;  %4008 = vmatpush.msra.mxu2 %v2640_v26  ;;  %4051 = vmatpush.msrb.mxu0 %v1521_v32  ;;  %v2801_v37 = vld [vmem:[%s7687_s8 + $0x2d40] sm:$0xff]  ;;  %v2162_v45 = vld [vmem:[%s7687_s8 + $0x1948] sm:$0xff] }
 0x2ac   : > { %3944 = vmatpush.msrb.mxu3 %v3279_v48  ;;  %4071 = vmatpush.msrb.mxu1 %v2033_v49  ;;  %v1618_v26 = vld [vmem:[%s7687_s8 + $0x848] sm:$0xff]  ;;  %v2737_v48 = vld [vmem:[%s7687_s8 + $0x2b40] sm:$0xff]  ;;  %v3376_v49 = vld [vmem:[%s7687_s8 + $0x3f38] sm:$0xff] }
 0x2ad   : > { %v5962_v50 = vadd.f32 %v3559_v47, %v1322_v44  ;;  %4009 = vmatpush.msra.mxu2 %v2608_v51  ;;  %4052 = vmatpush.msrb.mxu0 %v1489_v3  ;;  %v2769_v44 = vld [vmem:[%s7687_s8 + $0x2c40] sm:$0xff]  ;;  %v2895_v47 = vld [vmem:[%s7687_s8 + $0x3030] sm:$0xff] }
 0x2ae   : > { %3945 = vmatpush.msrb.mxu3 %v3247_v52  ;;  %4072 = vmatpush.msrb.mxu1 %v2001_v53  ;;  %v2705_v3 = vld [vmem:[%s7687_s8 + $0x2a40] sm:$0xff]  ;;  %v1586_v52 = vld [vmem:[%s7687_s8 + $0x748] sm:$0xff]  ;;  %v3344_v53 = vld [vmem:[%s7687_s8 + $0x3e38] sm:$0xff] }
 0x2af   : > { %5994 = vst [vmem:[#allocation2] sm:$0xff] %v5962_v50  ;;  %4010 = vmatpush.msra.mxu2 %v2576_v54  ;;  %4053 = vmatpush.msrb.mxu0 %v1457_v56  ;;  %v2130_v50 = vld [vmem:[%s7687_s8 + $0x1848] sm:$0xff]  ;;  %v2673_v56 = vld [vmem:[%s7687_s8 + $0x2940] sm:$0xff] }
 0x2b0   : > { %3946 = vmatpush.msrb.mxu3 %v3215_v57  ;;  %4073 = vmatpush.msrb.mxu1 %v1969_v58  ;;  %v2098_v54 = vld [vmem:[%s7687_s8 + $0x1748] sm:$0xff]  ;;  %v3312_v58 = vld [vmem:[%s7687_s8 + $0x3d38] sm:$0xff] }
 0x2b1   : > { %4011 = vmatpush.msra.mxu2 %v2544_v59  ;;  %4054 = vmatpush.msrb.mxu0 %v1425_v61  ;;  %v1554_v57 = vld [vmem:[%s7687_s8 + $0x648] sm:$0xff]  ;;  %v2641_v61 = vld [vmem:[%s7687_s8 + $0x2840] sm:$0xff] }
 0x2b2   : > { %3947 = vmatpush.msrb.mxu3 %v3183_v62  ;;  %4074 = vmatpush.msrb.mxu1 %v1937_v63  ;;  %v2066_v59 = vld [vmem:[%s7687_s8 + $0x1648] sm:$0xff]  ;;  %v3280_v63 = vld [vmem:[%s7687_s8 + $0x3c38] sm:$0xff] }
 0x2b3   : > { %4012 = vmatpush.msra.mxu2 %v2512_v0  ;;  %4055 = vmatpush.msrb.mxu0 %v1393_v4  ;;  %v1522_v62 = vld [vmem:[%s7687_s8 + $0x548] sm:$0xff]  ;;  %v2609_v4 = vld [vmem:[%s7687_s8 + $0x2740] sm:$0xff] }
 0x2b4   : > { %3948 = vmatpush.msrb.mxu3 %v3151_v5  ;;  %4075 = vmatpush.msrb.mxu1 %v1905_v6  ;;  %v2034_v0 = vld [vmem:[%s7687_s8 + $0x1548] sm:$0xff]  ;;  %v3248_v6 = vld [vmem:[%s7687_s8 + $0x3b38] sm:$0xff] }
 0x2b5   : > { %4013 = vmatpush.msra.mxu2 %v2480_v7  ;;  %4056 = vmatpush.msrb.mxu0 %v1361_v8  ;;  %v1490_v5 = vld [vmem:[%s7687_s8 + $0x448] sm:$0xff]  ;;  %v2577_v8 = vld [vmem:[%s7687_s8 + $0x2640] sm:$0xff] }
 0x2b6   : > { %3949 = vmatpush.msrb.mxu3 %v3119_v9  ;;  %4076 = vmatpush.msrb.mxu1 %v1873_v10  ;;  %v2002_v7 = vld [vmem:[%s7687_s8 + $0x1448] sm:$0xff]  ;;  %v3216_v10 = vld [vmem:[%s7687_s8 + $0x3a38] sm:$0xff] }
 0x2b7   : > { %4057 = vmatmul.f32.vlgmr.msrb.gmra.mxu0 %v8284_v40  ;;  %4077 = vmatmul.f32.vlgmr.msrb.gmra.mxu1 %v8288_v43  ;;  %v1458_v9 = vld [vmem:[%s7687_s8 + $0x348] sm:$0xff] }
 0x2b8   : > { %4121 = vmatpush.msra.mxu0 %v1842_v11  ;;  %4141 = vmatpush.msra.mxu1 %v2354_v12  ;;  %v1970_v11 = vld [vmem:[%s7687_s8 + $0x1348] sm:$0xff]  ;;  %v2545_v12 = vld [vmem:[%s7687_s8 + $0x2540] sm:$0xff] }
 0x2b9   : > { %3950 = vmatpush.msrb.mxu3 %v3087_v13  ;;  %4014 = vmatpush.msra.mxu2 %v2448_v14  ;;  %v1426_v13 = vld [vmem:[%s7687_s8 + $0x248] sm:$0xff]  ;;  %v3184_v14 = vld [vmem:[%s7687_s8 + $0x3938] sm:$0xff] }
 0x2ba   : > { %4122 = vmatpush.msra.mxu0 %v1810_v15  ;;  %4142 = vmatpush.msra.mxu1 %v2322_v17  ;;  %v1938_v15 = vld [vmem:[%s7687_s8 + $0x1248] sm:$0xff]  ;;  %v2513_v17 = vld [vmem:[%s7687_s8 + $0x2440] sm:$0xff] }
 0x2bb   : > { %3951 = vmatpush.msrb.mxu3 %v3055_v18  ;;  %4015 = vmatpush.msra.mxu2 %v2416_v19  ;;  %v1394_v18 = vld [vmem:[%s7687_s8 + $0x148] sm:$0xff]  ;;  %v3152_v19 = vld [vmem:[%s7687_s8 + $0x3838] sm:$0xff] }
 0x2bc   : > { %4123 = vmatpush.msra.mxu0 %v1778_v20  ;;  %4143 = vmatpush.msra.mxu1 %v2290_v22  ;;  %v1906_v20 = vld [vmem:[%s7687_s8 + $0x1148] sm:$0xff]  ;;  %v2481_v22 = vld [vmem:[%s7687_s8 + $0x2340] sm:$0xff] }
 0x2bd   : > { %3952 = vmatpush.msrb.mxu3 %v3023_v23  ;;  %4016 = vmatpush.msra.mxu2 %v2384_v24  ;;  %v1362_v23 = vld [vmem:[%s7687_s8 + $0x48] sm:$0xff]  ;;  %v3120_v24 = vld [vmem:[%s7687_s8 + $0x3738] sm:$0xff] }
 0x2be   : > { %4017 = vmatmul.f32.vlgmr.msra.gmra.mxu2 %v8401_v38  ;;  %4124 = vmatpush.msra.mxu0 %v1746_v25  ;;  %v1874_v25 = vld [vmem:[%s7687_s8 + $0x1048] sm:$0xff] }
 0x2bf   : > { %4081 = vmatpush.msrb.mxu2 %v2865_v29  ;;  %4144 = vmatpush.msra.mxu1 %v2258_v30  ;;  %v3088_v29 = vld [vmem:[%s7687_s8 + $0x3638] sm:$0xff]  ;;  %v2449_v30 = vld [vmem:[%s7687_s8 + $0x2240] sm:$0xff] }
 0x2c0   : > { %3953 = vmatpush.msrb.mxu3 %v2991_v31  ;;  %4125 = vmatpush.msra.mxu0 %v1714_v1  ;;  %v1811_v31 = vld [vmem:[%s7687_s8 + $0xe50] sm:$0xff] }
 0x2c1   : > { %4082 = vmatpush.msrb.mxu2 %v2833_v34  ;;  %4145 = vmatpush.msra.mxu1 %v2226_v35  ;;  %v2323_v1 = vld [vmem:[%s7687_s8 + $0x1e50] sm:$0xff]  ;;  %v2417_v34 = vld [vmem:[%s7687_s8 + $0x2140] sm:$0xff] }
 0x2c2   : > { %3954 = vmatpush.msrb.mxu3 %v2959_v36  ;;  %4126 = vmatpush.msra.mxu0 %v1682_v2  ;;  %v1779_v35 = vld [vmem:[%s7687_s8 + $0xd50] sm:$0xff]  ;;  %v3024_v36 = vld [vmem:[%s7687_s8 + $0x3438] sm:$0xff]  ;;  %v2385_v2 = vld [vmem:[%s7687_s8 + $0x2040] sm:$0xff] }
 0x2c3   : > { %4083 = vmatpush.msrb.mxu2 %v2801_v37  ;;  %4146 = vmatpush.msra.mxu1 %v2194_v39  ;;  %v1747_v37 = vld [vmem:[%s7687_s8 + $0xc50] sm:$0xff]  ;;  %v3658_v39 = vpop.f32.mrf.mxu0 }
 0x2c4   : > { %v3638_v60 = vpop.f32.mrf.mxu3  ;;  %3955 = vmatpush.msrb.mxu3 %v2927_v42  ;;  %4127 = vmatpush.msra.mxu0 %v1650_v21  ;;  %v2866_v42 = vld [vmem:[%s7687_s8 + $0x2f48] sm:$0xff]  ;;  %v2259_v21 = vld [vmem:[%s7687_s8 + $0x1c50] sm:$0xff] }
 0x2c5   : > { %v3639_v32 = vadd.f32 %v3638_v60, %v3619_v41  ;;  %4084 = vmatpush.msrb.mxu2 %v2769_v44  ;;  %4147 = vmatpush.msra.mxu1 %v2162_v45  ;;  %v3678_v41 = vpop.f32.mrf.mxu1  ;;  %v2992_v44 = vld [vmem:[%s7687_s8 + $0x3338] sm:$0xff]  ;;  %v1715_v45 = vld [vmem:[%s7687_s8 + $0xb50] sm:$0xff]  ;;  %v2834_v60 = vld [vmem:[%s7687_s8 + $0x2e48] sm:$0xff] }
 0x2c6   : > { %3956 = vmatpush.msrb.mxu3 %v2895_v47  ;;  %4128 = vmatpush.msra.mxu0 %v1618_v26  ;;  %v2227_v47 = vld [vmem:[%s7687_s8 + $0x1b50] sm:$0xff]  ;;  %v3679_v26 = vadd.f32 %v3678_v41, %v3658_v39  ;;  %v1844_v39 = vld [vmem:[%s7687_s8 + $0xf58] sm:$0xff] }
 0x2c7   : > { %v5963_v51 = vadd.f32 %v3639_v32, %v1323_v46  ;;  %3957 = vmatmul.f32.vlgmr.msrb.gmra.mxu3 %v8477_v55  ;;  %4085 = vmatpush.msrb.mxu2 %v2737_v48  ;;  %v3698_v46 = vpop.f32.mrf.mxu2  ;;  %v2960_v32 = vld [vmem:[%s7687_s8 + $0x3238] sm:$0xff]  ;;  %v1683_v48 = vld [vmem:[%s7687_s8 + $0xa50] sm:$0xff] }
 0x2c8   : > { %4021 = vmatpush.msra.mxu3 %v3376_v49  ;;  %4148 = vmatpush.msra.mxu1 %v2130_v50  ;;  %v2802_v49 = vld [vmem:[%s7687_s8 + $0x2d48] sm:$0xff]  ;;  %v2195_v50 = vld [vmem:[%s7687_s8 + $0x1a50] sm:$0xff]  ;;  %v2356_v41 = vld [vmem:[%s7687_s8 + $0x1f58] sm:$0xff] }
 0x2c9   : > { %5995 = vst [vmem:[#allocation2 + $0xd8] sm:$0xff] %v5963_v51  ;;  %4086 = vmatpush.msrb.mxu2 %v2705_v3  ;;  %4129 = vmatpush.msra.mxu0 %v1586_v52  ;;  %v3699_v51 = vadd.f32 %v3698_v46, %v3679_v26  ;;  %v2928_v3 = vld [vmem:[%s7687_s8 + $0x3138] sm:$0xff]  ;;  %v1651_v52 = vld [vmem:[%s7687_s8 + $0x950] sm:$0xff]  ;;  %v3057_v46 = vld [vmem:[%s7687_s8 + $0x3540] sm:$0xff] }
 0x2ca   : > { %4022 = vmatpush.msra.mxu3 %v3344_v53  ;;  %4149 = vmatpush.msra.mxu1 %v2098_v54  ;;  %v2770_v53 = vld [vmem:[%s7687_s8 + $0x2c48] sm:$0xff]  ;;  %v2163_v54 = vld [vmem:[%s7687_s8 + $0x1950] sm:$0xff]  ;;  %v2292_v26 = vld [vmem:[%s7687_s8 + $0x1d58] sm:$0xff] }
 0x2cb   : > { %4087 = vmatpush.msrb.mxu2 %v2673_v56  ;;  %4130 = vmatpush.msra.mxu0 %v1554_v57  ;;  %v1324_v56 = vld [vmem:[#allocation2 + $0x18] sm:$0xff] }
 0x2cc   : > { %4023 = vmatpush.msra.mxu3 %v3312_v58  ;;  %4150 = vmatpush.msra.mxu1 %v2066_v59  ;;  %v2896_v58 = vld [vmem:[%s7687_s8 + $0x3038] sm:$0xff]  ;;  %v1619_v59 = vld [vmem:[%s7687_s8 + $0x850] sm:$0xff] }
 0x2cd   : > { %4088 = vmatpush.msrb.mxu2 %v2641_v61  ;;  %4131 = vmatpush.msra.mxu0 %v1522_v62  ;;  %v2738_v62 = vld [vmem:[%s7687_s8 + $0x2b48] sm:$0xff] }
 0x2ce   : > { %4024 = vmatpush.msra.mxu3 %v3280_v63  ;;  %4151 = vmatpush.msra.mxu1 %v2034_v0  ;;  %v3377_v63 = vld [vmem:[%s7687_s8 + $0x3f40] sm:$0xff]  ;;  %v2131_v0 = vld [vmem:[%s7687_s8 + $0x1850] sm:$0xff] }
 0x2cf   : > { %4089 = vmatpush.msrb.mxu2 %v2609_v4  ;;  %4132 = vmatpush.msra.mxu0 %v1490_v5  ;;  %v2706_v5 = vld [vmem:[%s7687_s8 + $0x2a48] sm:$0xff] }
 0x2d0   : > { %4025 = vmatpush.msra.mxu3 %v3248_v6  ;;  %4152 = vmatpush.msra.mxu1 %v2002_v7  ;;  %v1587_v6 = vld [vmem:[%s7687_s8 + $0x750] sm:$0xff]  ;;  %v3345_v7 = vld [vmem:[%s7687_s8 + $0x3e40] sm:$0xff] }
 0x2d1   : > { %4090 = vmatpush.msrb.mxu2 %v2577_v8  ;;  %4133 = vmatpush.msra.mxu0 %v1458_v9  ;;  %v2099_v8 = vld [vmem:[%s7687_s8 + $0x1750] sm:$0xff]  ;;  %v2674_v9 = vld [vmem:[%s7687_s8 + $0x2948] sm:$0xff] }
 0x2d2   : > { %4026 = vmatpush.msra.mxu3 %v3216_v10  ;;  %4153 = vmatpush.msra.mxu1 %v1970_v11  ;;  %v1555_v10 = vld [vmem:[%s7687_s8 + $0x650] sm:$0xff]  ;;  %v3313_v11 = vld [vmem:[%s7687_s8 + $0x3d40] sm:$0xff] }
 0x2d3   : > { %4091 = vmatpush.msrb.mxu2 %v2545_v12  ;;  %4134 = vmatpush.msra.mxu0 %v1426_v13  ;;  %v2067_v12 = vld [vmem:[%s7687_s8 + $0x1650] sm:$0xff]  ;;  %v2642_v13 = vld [vmem:[%s7687_s8 + $0x2848] sm:$0xff] }
 0x2d4   : > { %4027 = vmatpush.msra.mxu3 %v3184_v14  ;;  %4154 = vmatpush.msra.mxu1 %v1938_v15  ;;  %v1523_v14 = vld [vmem:[%s7687_s8 + $0x550] sm:$0xff]  ;;  %v3281_v15 = vld [vmem:[%s7687_s8 + $0x3c40] sm:$0xff] }
 0x2d5   : > { %4092 = vmatpush.msrb.mxu2 %v2513_v17  ;;  %4135 = vmatpush.msra.mxu0 %v1394_v18  ;;  %v2035_v17 = vld [vmem:[%s7687_s8 + $0x1550] sm:$0xff]  ;;  %v2610_v18 = vld [vmem:[%s7687_s8 + $0x2748] sm:$0xff] }
 0x2d6   : > { %4028 = vmatpush.msra.mxu3 %v3152_v19  ;;  %4155 = vmatpush.msra.mxu1 %v1906_v20  ;;  %v1491_v19 = vld [vmem:[%s7687_s8 + $0x450] sm:$0xff]  ;;  %v3249_v20 = vld [vmem:[%s7687_s8 + $0x3b40] sm:$0xff] }
 0x2d7   : > { %4093 = vmatpush.msrb.mxu2 %v2481_v22  ;;  %4136 = vmatpush.msra.mxu0 %v1362_v23  ;;  %v2003_v22 = vld [vmem:[%s7687_s8 + $0x1450] sm:$0xff]  ;;  %v2578_v23 = vld [vmem:[%s7687_s8 + $0x2648] sm:$0xff] }
 0x2d8   : > { %4029 = vmatpush.msra.mxu3 %v3120_v24  ;;  %4156 = vmatpush.msra.mxu1 %v1874_v25  ;;  %v1459_v24 = vld [vmem:[%s7687_s8 + $0x350] sm:$0xff]  ;;  %v3217_v25 = vld [vmem:[%s7687_s8 + $0x3a40] sm:$0xff] }
 0x2d9   : > { %4137 = vmatmul.f32.vlgmr.msra.gmra.mxu0 %v8284_v40  ;;  %4157 = vmatmul.f32.vlgmr.msra.gmra.mxu1 %v8288_v43 }
 0x2da   : > { %4201 = vmatpush.msrb.mxu0 %v1843_v27  ;;  %4221 = vmatpush.msrb.mxu1 %v2355_v28  ;;  %v1971_v27 = vld [vmem:[%s7687_s8 + $0x1350] sm:$0xff]  ;;  %v2546_v28 = vld [vmem:[%s7687_s8 + $0x2548] sm:$0xff] }
 0x2db   : > { %4030 = vmatpush.msra.mxu3 %v3088_v29  ;;  %4094 = vmatpush.msrb.mxu2 %v2449_v30  ;;  %v1427_v29 = vld [vmem:[%s7687_s8 + $0x250] sm:$0xff]  ;;  %v3185_v30 = vld [vmem:[%s7687_s8 + $0x3940] sm:$0xff] }
 0x2dc   : > { %4202 = vmatpush.msrb.mxu0 %v1811_v31  ;;  %4222 = vmatpush.msrb.mxu1 %v2323_v1  ;;  %v1939_v31 = vld [vmem:[%s7687_s8 + $0x1250] sm:$0xff]  ;;  %v2514_v1 = vld [vmem:[%s7687_s8 + $0x2448] sm:$0xff] }
 0x2dd   : > { %4031 = vmatpush.msra.mxu3 %v3056_v33  ;;  %4095 = vmatpush.msrb.mxu2 %v2417_v34  ;;  %v1395_v33 = vld [vmem:[%s7687_s8 + $0x150] sm:$0xff]  ;;  %v3153_v34 = vld [vmem:[%s7687_s8 + $0x3840] sm:$0xff] }
 0x2de   : > { %4203 = vmatpush.msrb.mxu0 %v1779_v35  ;;  %4223 = vmatpush.msrb.mxu1 %v2291_v16  ;;  %v1907_v35 = vld [vmem:[%s7687_s8 + $0x1150] sm:$0xff]  ;;  %v2482_v16 = vld [vmem:[%s7687_s8 + $0x2348] sm:$0xff] }
 0x2df   : > { %4032 = vmatpush.msra.mxu3 %v3024_v36  ;;  %4096 = vmatpush.msrb.mxu2 %v2385_v2  ;;  %v1363_v36 = vld [vmem:[%s7687_s8 + $0x50] sm:$0xff]  ;;  %v3121_v2 = vld [vmem:[%s7687_s8 + $0x3740] sm:$0xff] }
 0x2e0   : > { %4097 = vmatmul.f32.vlgmr.msrb.gmra.mxu2 %v8401_v38  ;;  %4204 = vmatpush.msrb.mxu0 %v1747_v37  ;;  %v1875_v37 = vld [vmem:[%s7687_s8 + $0x1050] sm:$0xff] }
 0x2e1   : > { %4161 = vmatpush.msra.mxu2 %v2866_v42  ;;  %4224 = vmatpush.msrb.mxu1 %v2259_v21  ;;  %v3089_v42 = vld [vmem:[%s7687_s8 + $0x3640] sm:$0xff]  ;;  %v2450_v21 = vld [vmem:[%s7687_s8 + $0x2248] sm:$0xff] }
 0x2e2   : > { %4033 = vmatpush.msra.mxu3 %v2992_v44  ;;  %4205 = vmatpush.msrb.mxu0 %v1715_v45  ;;  %v1812_v44 = vld [vmem:[%s7687_s8 + $0xe58] sm:$0xff] }
 0x2e3   : > { %4162 = vmatpush.msra.mxu2 %v2834_v60  ;;  %4225 = vmatpush.msrb.mxu1 %v2227_v47  ;;  %v2324_v45 = vld [vmem:[%s7687_s8 + $0x1e58] sm:$0xff]  ;;  %v2418_v60 = vld [vmem:[%s7687_s8 + $0x2148] sm:$0xff] }
 0x2e4   : > { %4034 = vmatpush.msra.mxu3 %v2960_v32  ;;  %4206 = vmatpush.msrb.mxu0 %v1683_v48  ;;  %v1780_v47 = vld [vmem:[%s7687_s8 + $0xd58] sm:$0xff]  ;;  %v3025_v32 = vld [vmem:[%s7687_s8 + $0x3440] sm:$0xff]  ;;  %v2386_v48 = vld [vmem:[%s7687_s8 + $0x2048] sm:$0xff] }
 0x2e5   : > { %v3718_v57 = vpop.f32.mrf.mxu3  ;;  %4163 = vmatpush.msra.mxu2 %v2802_v49  ;;  %4226 = vmatpush.msrb.mxu1 %v2195_v50  ;;  %v1748_v49 = vld [vmem:[%s7687_s8 + $0xc58] sm:$0xff]  ;;  %v3738_v50 = vpop.f32.mrf.mxu0 }
 0x2e6   : > { %v3719_v61 = vadd.f32 %v3718_v57, %v3699_v51  ;;  %4035 = vmatpush.msra.mxu3 %v2928_v3  ;;  %4207 = vmatpush.msrb.mxu0 %v1651_v52  ;;  %v3758_v51 = vpop.f32.mrf.mxu1  ;;  %v2867_v3 = vld [vmem:[%s7687_s8 + $0x2f50] sm:$0xff]  ;;  %v2260_v52 = vld [vmem:[%s7687_s8 + $0x1c58] sm:$0xff] }
 0x2e7   : > { %4164 = vmatpush.msra.mxu2 %v2770_v53  ;;  %4227 = vmatpush.msrb.mxu1 %v2163_v54  ;;  %v2993_v53 = vld [vmem:[%s7687_s8 + $0x3340] sm:$0xff]  ;;  %v1716_v54 = vld [vmem:[%s7687_s8 + $0xb58] sm:$0xff]  ;;  %v2835_v57 = vld [vmem:[%s7687_s8 + $0x2e50] sm:$0xff] }
 0x2e8   : > { %v5964_v4 = vadd.f32 %v3719_v61, %v1324_v56  ;;  %4036 = vmatpush.msra.mxu3 %v2896_v58  ;;  %4208 = vmatpush.msrb.mxu0 %v1619_v59  ;;  %v3778_v56 = vpop.f32.mrf.mxu2  ;;  %v2228_v58 = vld [vmem:[%s7687_s8 + $0x1b58] sm:$0xff]  ;;  %v3759_v59 = vadd.f32 %v3758_v51, %v3738_v50  ;;  %v2961_v61 = vld [vmem:[%s7687_s8 + $0x3240] sm:$0xff] }
 0x2e9   : > { %4037 = vmatmul.f32.vlgmr.msra.gmra.mxu3 %v8477_v55  ;;  %4165 = vmatpush.msra.mxu2 %v2738_v62  ;;  %v1684_v62 = vld [vmem:[%s7687_s8 + $0xa58] sm:$0xff]  ;;  %v1845_v50 = vld [vmem:[%s7687_s8 + $0xf60] sm:$0xff] }
 0x2ea   : > { %5996 = vst [vmem:[#allocation2 + $0x18] sm:$0xff] %v5964_v4  ;;  %4101 = vmatpush.msrb.mxu3 %v3377_v63  ;;  %4228 = vmatpush.msrb.mxu1 %v2131_v0  ;;  %v2803_v63 = vld [vmem:[%s7687_s8 + $0x2d50] sm:$0xff]  ;;  %v2196_v0 = vld [vmem:[%s7687_s8 + $0x1a58] sm:$0xff]  ;;  %v3779_v4 = vadd.f32 %v3778_v56, %v3759_v59  ;;  %v2357_v51 = vld [vmem:[%s7687_s8 + $0x1f60] sm:$0xff] }
 0x2eb   : > { %4166 = vmatpush.msra.mxu2 %v2706_v5  ;;  %4209 = vmatpush.msrb.mxu0 %v1587_v6  ;;  %v2929_v5 = vld [vmem:[%s7687_s8 + $0x3140] sm:$0xff]  ;;  %v1652_v6 = vld [vmem:[%s7687_s8 + $0x958] sm:$0xff]  ;;  %v3058_v56 = vld [vmem:[%s7687_s8 + $0x3548] sm:$0xff] }
 0x2ec   : > { %4102 = vmatpush.msrb.mxu3 %v3345_v7  ;;  %4229 = vmatpush.msrb.mxu1 %v2099_v8  ;;  %v2771_v7 = vld [vmem:[%s7687_s8 + $0x2c50] sm:$0xff]  ;;  %v2164_v8 = vld [vmem:[%s7687_s8 + $0x1958] sm:$0xff]  ;;  %v2293_v59 = vld [vmem:[%s7687_s8 + $0x1d60] sm:$0xff] }
 0x2ed   : > { %4167 = vmatpush.msra.mxu2 %v2674_v9  ;;  %4210 = vmatpush.msrb.mxu0 %v1555_v10  ;;  %v1325_v9 = vld [vmem:[#allocation2 + $0x50] sm:$0xff] }
 0x2ee   : > { %4103 = vmatpush.msrb.mxu3 %v3313_v11  ;;  %4230 = vmatpush.msrb.mxu1 %v2067_v12  ;;  %v2897_v11 = vld [vmem:[%s7687_s8 + $0x3040] sm:$0xff]  ;;  %v1620_v12 = vld [vmem:[%s7687_s8 + $0x858] sm:$0xff] }
 0x2ef   : > { %4168 = vmatpush.msra.mxu2 %v2642_v13  ;;  %4211 = vmatpush.msrb.mxu0 %v1523_v14  ;;  %v2739_v14 = vld [vmem:[%s7687_s8 + $0x2b50] sm:$0xff] }
 0x2f0   : > { %4104 = vmatpush.msrb.mxu3 %v3281_v15  ;;  %4231 = vmatpush.msrb.mxu1 %v2035_v17  ;;  %v3378_v15 = vld [vmem:[%s7687_s8 + $0x3f48] sm:$0xff]  ;;  %v2132_v17 = vld [vmem:[%s7687_s8 + $0x1858] sm:$0xff] }
 0x2f1   : > { %4169 = vmatpush.msra.mxu2 %v2610_v18  ;;  %4212 = vmatpush.msrb.mxu0 %v1491_v19  ;;  %v2707_v19 = vld [vmem:[%s7687_s8 + $0x2a50] sm:$0xff] }
 0x2f2   : > { %4105 = vmatpush.msrb.mxu3 %v3249_v20  ;;  %4232 = vmatpush.msrb.mxu1 %v2003_v22  ;;  %v1588_v20 = vld [vmem:[%s7687_s8 + $0x758] sm:$0xff]  ;;  %v3346_v22 = vld [vmem:[%s7687_s8 + $0x3e48] sm:$0xff] }
 0x2f3   : > { %4170 = vmatpush.msra.mxu2 %v2578_v23  ;;  %4213 = vmatpush.msrb.mxu0 %v1459_v24  ;;  %v2100_v23 = vld [vmem:[%s7687_s8 + $0x1758] sm:$0xff]  ;;  %v2675_v24 = vld [vmem:[%s7687_s8 + $0x2950] sm:$0xff] }
 0x2f4   : > { %4106 = vmatpush.msrb.mxu3 %v3217_v25  ;;  %4233 = vmatpush.msrb.mxu1 %v1971_v27  ;;  %v1556_v25 = vld [vmem:[%s7687_s8 + $0x658] sm:$0xff]  ;;  %v3314_v27 = vld [vmem:[%s7687_s8 + $0x3d48] sm:$0xff] }
 0x2f5   : > { %4171 = vmatpush.msra.mxu2 %v2546_v28  ;;  %4214 = vmatpush.msrb.mxu0 %v1427_v29  ;;  %v2068_v28 = vld [vmem:[%s7687_s8 + $0x1658] sm:$0xff]  ;;  %v2643_v29 = vld [vmem:[%s7687_s8 + $0x2850] sm:$0xff] }
 0x2f6   : > { %4107 = vmatpush.msrb.mxu3 %v3185_v30  ;;  %4234 = vmatpush.msrb.mxu1 %v1939_v31  ;;  %v1524_v30 = vld [vmem:[%s7687_s8 + $0x558] sm:$0xff]  ;;  %v3282_v31 = vld [vmem:[%s7687_s8 + $0x3c48] sm:$0xff] }
 0x2f7   : > { %4172 = vmatpush.msra.mxu2 %v2514_v1  ;;  %4215 = vmatpush.msrb.mxu0 %v1395_v33  ;;  %v2036_v1 = vld [vmem:[%s7687_s8 + $0x1558] sm:$0xff]  ;;  %v2611_v33 = vld [vmem:[%s7687_s8 + $0x2750] sm:$0xff] }
 0x2f8   : > { %4108 = vmatpush.msrb.mxu3 %v3153_v34  ;;  %4235 = vmatpush.msrb.mxu1 %v1907_v35  ;;  %v1492_v34 = vld [vmem:[%s7687_s8 + $0x458] sm:$0xff]  ;;  %v3250_v35 = vld [vmem:[%s7687_s8 + $0x3b48] sm:$0xff] }
 0x2f9   : > { %4173 = vmatpush.msra.mxu2 %v2482_v16  ;;  %4216 = vmatpush.msrb.mxu0 %v1363_v36  ;;  %v2004_v16 = vld [vmem:[%s7687_s8 + $0x1458] sm:$0xff]  ;;  %v2579_v36 = vld [vmem:[%s7687_s8 + $0x2650] sm:$0xff] }
 0x2fa   : > { %4109 = vmatpush.msrb.mxu3 %v3121_v2  ;;  %4236 = vmatpush.msrb.mxu1 %v1875_v37  ;;  %v1460_v2 = vld [vmem:[%s7687_s8 + $0x358] sm:$0xff]  ;;  %v3218_v37 = vld [vmem:[%s7687_s8 + $0x3a48] sm:$0xff] }
 0x2fb   : > { %4217 = vmatmul.f32.vlgmr.msrb.gmra.mxu0 %v8284_v40  ;;  %4237 = vmatmul.f32.vlgmr.msrb.gmra.mxu1 %v8288_v43 }
 0x2fc   : > { %4281 = vmatpush.msra.mxu0 %v1844_v39  ;;  %4301 = vmatpush.msra.mxu1 %v2356_v41  ;;  %v1972_v39 = vld [vmem:[%s7687_s8 + $0x1358] sm:$0xff]  ;;  %v2547_v41 = vld [vmem:[%s7687_s8 + $0x2550] sm:$0xff] }
 0x2fd   : > { %4110 = vmatpush.msrb.mxu3 %v3089_v42  ;;  %4174 = vmatpush.msra.mxu2 %v2450_v21  ;;  %v1428_v42 = vld [vmem:[%s7687_s8 + $0x258] sm:$0xff]  ;;  %v3186_v21 = vld [vmem:[%s7687_s8 + $0x3948] sm:$0xff] }
 0x2fe   : > { %4282 = vmatpush.msra.mxu0 %v1812_v44  ;;  %4302 = vmatpush.msra.mxu1 %v2324_v45  ;;  %v1940_v44 = vld [vmem:[%s7687_s8 + $0x1258] sm:$0xff]  ;;  %v2515_v45 = vld [vmem:[%s7687_s8 + $0x2450] sm:$0xff] }
 0x2ff   : > { %4111 = vmatpush.msrb.mxu3 %v3057_v46  ;;  %4175 = vmatpush.msra.mxu2 %v2418_v60  ;;  %v1396_v46 = vld [vmem:[%s7687_s8 + $0x158] sm:$0xff]  ;;  %v3154_v60 = vld [vmem:[%s7687_s8 + $0x3848] sm:$0xff] }
 0x300   : > { %4283 = vmatpush.msra.mxu0 %v1780_v47  ;;  %4303 = vmatpush.msra.mxu1 %v2292_v26  ;;  %v1908_v47 = vld [vmem:[%s7687_s8 + $0x1158] sm:$0xff]  ;;  %v2483_v26 = vld [vmem:[%s7687_s8 + $0x2350] sm:$0xff] }
 0x301   : > { %4112 = vmatpush.msrb.mxu3 %v3025_v32  ;;  %4176 = vmatpush.msra.mxu2 %v2386_v48  ;;  %v1364_v32 = vld [vmem:[%s7687_s8 + $0x58] sm:$0xff]  ;;  %v3122_v48 = vld [vmem:[%s7687_s8 + $0x3748] sm:$0xff] }
 0x302   : > { %4177 = vmatmul.f32.vlgmr.msra.gmra.mxu2 %v8401_v38  ;;  %4284 = vmatpush.msra.mxu0 %v1748_v49  ;;  %v1876_v49 = vld [vmem:[%s7687_s8 + $0x1058] sm:$0xff] }
 0x303   : > { %4241 = vmatpush.msrb.mxu2 %v2867_v3  ;;  %4304 = vmatpush.msra.mxu1 %v2260_v52  ;;  %v3090_v3 = vld [vmem:[%s7687_s8 + $0x3648] sm:$0xff]  ;;  %v2451_v52 = vld [vmem:[%s7687_s8 + $0x2250] sm:$0xff] }
 0x304   : > { %4113 = vmatpush.msrb.mxu3 %v2993_v53  ;;  %4285 = vmatpush.msra.mxu0 %v1716_v54  ;;  %v1813_v53 = vld [vmem:[%s7687_s8 + $0xe60] sm:$0xff] }
 0x305   : > { %4242 = vmatpush.msrb.mxu2 %v2835_v57  ;;  %4305 = vmatpush.msra.mxu1 %v2228_v58  ;;  %v2325_v54 = vld [vmem:[%s7687_s8 + $0x1e60] sm:$0xff]  ;;  %v2419_v57 = vld [vmem:[%s7687_s8 + $0x2150] sm:$0xff] }
 0x306   : > { %4114 = vmatpush.msrb.mxu3 %v2961_v61  ;;  %4286 = vmatpush.msra.mxu0 %v1684_v62  ;;  %v3798_v10 = vpop.f32.mrf.mxu3  ;;  %v1781_v58 = vld [vmem:[%s7687_s8 + $0xd60] sm:$0xff]  ;;  %v3026_v61 = vld [vmem:[%s7687_s8 + $0x3448] sm:$0xff]  ;;  %v2387_v62 = vld [vmem:[%s7687_s8 + $0x2050] sm:$0xff] }
 0x307   : > { %4243 = vmatpush.msrb.mxu2 %v2803_v63  ;;  %4306 = vmatpush.msra.mxu1 %v2196_v0  ;;  %v3799_v13 = vadd.f32 %v3798_v10, %v3779_v4  ;;  %v1749_v63 = vld [vmem:[%s7687_s8 + $0xc60] sm:$0xff]  ;;  %v3818_v0 = vpop.f32.mrf.mxu0  ;;  %v3838_v4 = vpop.f32.mrf.mxu1  ;;  %v2836_v10 = vld [vmem:[%s7687_s8 + $0x2e58] sm:$0xff] }
 0x308   : > { %4115 = vmatpush.msrb.mxu3 %v2929_v5  ;;  %4287 = vmatpush.msra.mxu0 %v1652_v6  ;;  %v2868_v5 = vld [vmem:[%s7687_s8 + $0x2f58] sm:$0xff]  ;;  %v2261_v6 = vld [vmem:[%s7687_s8 + $0x1c60] sm:$0xff] }
 0x309   : > { %4244 = vmatpush.msrb.mxu2 %v2771_v7  ;;  %4307 = vmatpush.msra.mxu1 %v2164_v8  ;;  %v5965_v18 = vadd.f32 %v3799_v13, %v1325_v9  ;;  %v2994_v7 = vld [vmem:[%s7687_s8 + $0x3348] sm:$0xff]  ;;  %v1717_v8 = vld [vmem:[%s7687_s8 + $0xb60] sm:$0xff]  ;;  %v3858_v9 = vpop.f32.mrf.mxu2 }
 0x30a   : > { %4116 = vmatpush.msrb.mxu3 %v2897_v11  ;;  %4288 = vmatpush.msra.mxu0 %v1620_v12  ;;  %v2229_v11 = vld [vmem:[%s7687_s8 + $0x1b60] sm:$0xff]  ;;  %v3839_v12 = vadd.f32 %v3838_v4, %v3818_v0  ;;  %v2962_v13 = vld [vmem:[%s7687_s8 + $0x3248] sm:$0xff] }
 0x30b   : > { %4117 = vmatmul.f32.vlgmr.msrb.gmra.mxu3 %v8477_v55  ;;  %4245 = vmatpush.msrb.mxu2 %v2739_v14  ;;  %5997 = vst [vmem:[#allocation2 + $0x50] sm:$0xff] %v5965_v18  ;;  %v1685_v14 = vld [vmem:[%s7687_s8 + $0xa60] sm:$0xff]  ;;  %v1846_v0 = vld [vmem:[%s7687_s8 + $0xf68] sm:$0xff] }
 0x30c   : > { %4181 = vmatpush.msra.mxu3 %v3378_v15  ;;  %4308 = vmatpush.msra.mxu1 %v2132_v17  ;;  %v2804_v15 = vld [vmem:[%s7687_s8 + $0x2d58] sm:$0xff]  ;;  %v2197_v17 = vld [vmem:[%s7687_s8 + $0x1a60] sm:$0xff]  ;;  %v3859_v18 = vadd.f32 %v3858_v9, %v3839_v12  ;;  %v2358_v4 = vld [vmem:[%s7687_s8 + $0x1f68] sm:$0xff] }
 0x30d   : > { %4246 = vmatpush.msrb.mxu2 %v2707_v19  ;;  %4289 = vmatpush.msra.mxu0 %v1588_v20  ;;  %v2930_v19 = vld [vmem:[%s7687_s8 + $0x3148] sm:$0xff]  ;;  %v1653_v20 = vld [vmem:[%s7687_s8 + $0x960] sm:$0xff]  ;;  %v3059_v9 = vld [vmem:[%s7687_s8 + $0x3550] sm:$0xff] }
 0x30e   : > { %4182 = vmatpush.msra.mxu3 %v3346_v22  ;;  %4309 = vmatpush.msra.mxu1 %v2100_v23  ;;  %v2772_v22 = vld [vmem:[%s7687_s8 + $0x2c58] sm:$0xff]  ;;  %v2165_v23 = vld [vmem:[%s7687_s8 + $0x1960] sm:$0xff]  ;;  %v2294_v12 = vld [vmem:[%s7687_s8 + $0x1d68] sm:$0xff] }
 0x30f   : > { %4247 = vmatpush.msrb.mxu2 %v2675_v24  ;;  %4290 = vmatpush.msra.mxu0 %v1556_v25  ;;  %v1326_v24 = vld [vmem:[#allocation2 + $0x68] sm:$0xff] }
 0x310   : > { %4183 = vmatpush.msra.mxu3 %v3314_v27  ;;  %4310 = vmatpush.msra.mxu1 %v2068_v28  ;;  %v2898_v27 = vld [vmem:[%s7687_s8 + $0x3048] sm:$0xff]  ;;  %v1621_v28 = vld [vmem:[%s7687_s8 + $0x860] sm:$0xff] }
 0x311   : > { %4248 = vmatpush.msrb.mxu2 %v2643_v29  ;;  %4291 = vmatpush.msra.mxu0 %v1524_v30  ;;  %v2740_v30 = vld [vmem:[%s7687_s8 + $0x2b58] sm:$0xff] }
 0x312   : > { %4184 = vmatpush.msra.mxu3 %v3282_v31  ;;  %4311 = vmatpush.msra.mxu1 %v2036_v1  ;;  %v3379_v31 = vld [vmem:[%s7687_s8 + $0x3f50] sm:$0xff]  ;;  %v2133_v1 = vld [vmem:[%s7687_s8 + $0x1860] sm:$0xff] }
 0x313   : > { %4249 = vmatpush.msrb.mxu2 %v2611_v33  ;;  %4292 = vmatpush.msra.mxu0 %v1492_v34  ;;  %v2708_v34 = vld [vmem:[%s7687_s8 + $0x2a58] sm:$0xff] }
 0x314   : > { %4185 = vmatpush.msra.mxu3 %v3250_v35  ;;  %4312 = vmatpush.msra.mxu1 %v2004_v16  ;;  %v1589_v35 = vld [vmem:[%s7687_s8 + $0x760] sm:$0xff]  ;;  %v3347_v16 = vld [vmem:[%s7687_s8 + $0x3e50] sm:$0xff] }
 0x315   : > { %4250 = vmatpush.msrb.mxu2 %v2579_v36  ;;  %4293 = vmatpush.msra.mxu0 %v1460_v2  ;;  %v2101_v36 = vld [vmem:[%s7687_s8 + $0x1760] sm:$0xff]  ;;  %v2676_v2 = vld [vmem:[%s7687_s8 + $0x2958] sm:$0xff] }
 0x316   : > { %4186 = vmatpush.msra.mxu3 %v3218_v37  ;;  %4313 = vmatpush.msra.mxu1 %v1972_v39  ;;  %v1557_v37 = vld [vmem:[%s7687_s8 + $0x660] sm:$0xff]  ;;  %v3315_v39 = vld [vmem:[%s7687_s8 + $0x3d50] sm:$0xff] }
 0x317   : > { %4251 = vmatpush.msrb.mxu2 %v2547_v41  ;;  %4294 = vmatpush.msra.mxu0 %v1428_v42  ;;  %v2069_v41 = vld [vmem:[%s7687_s8 + $0x1660] sm:$0xff]  ;;  %v2644_v42 = vld [vmem:[%s7687_s8 + $0x2858] sm:$0xff] }
 0x318   : > { %4187 = vmatpush.msra.mxu3 %v3186_v21  ;;  %4314 = vmatpush.msra.mxu1 %v1940_v44  ;;  %v1525_v21 = vld [vmem:[%s7687_s8 + $0x560] sm:$0xff]  ;;  %v3283_v44 = vld [vmem:[%s7687_s8 + $0x3c50] sm:$0xff] }
 0x319   : > { %4252 = vmatpush.msrb.mxu2 %v2515_v45  ;;  %4295 = vmatpush.msra.mxu0 %v1396_v46  ;;  %v2037_v45 = vld [vmem:[%s7687_s8 + $0x1560] sm:$0xff]  ;;  %v2612_v46 = vld [vmem:[%s7687_s8 + $0x2758] sm:$0xff] }
 0x31a   : > { %4188 = vmatpush.msra.mxu3 %v3154_v60  ;;  %4315 = vmatpush.msra.mxu1 %v1908_v47  ;;  %v1493_v60 = vld [vmem:[%s7687_s8 + $0x460] sm:$0xff]  ;;  %v3251_v47 = vld [vmem:[%s7687_s8 + $0x3b50] sm:$0xff] }
 0x31b   : > { %4253 = vmatpush.msrb.mxu2 %v2483_v26  ;;  %4296 = vmatpush.msra.mxu0 %v1364_v32  ;;  %v2005_v26 = vld [vmem:[%s7687_s8 + $0x1460] sm:$0xff]  ;;  %v2580_v32 = vld [vmem:[%s7687_s8 + $0x2658] sm:$0xff] }
 0x31c   : > { %4189 = vmatpush.msra.mxu3 %v3122_v48  ;;  %4316 = vmatpush.msra.mxu1 %v1876_v49  ;;  %v1461_v48 = vld [vmem:[%s7687_s8 + $0x360] sm:$0xff]  ;;  %v3219_v49 = vld [vmem:[%s7687_s8 + $0x3a50] sm:$0xff] }
 0x31d   : > { %4297 = vmatmul.f32.vlgmr.msra.gmra.mxu0 %v8284_v40  ;;  %4317 = vmatmul.f32.vlgmr.msra.gmra.mxu1 %v8288_v43 }
 0x31e   : > { %4361 = vmatpush.msrb.mxu0 %v1845_v50  ;;  %4381 = vmatpush.msrb.mxu1 %v2357_v51  ;;  %v1973_v50 = vld [vmem:[%s7687_s8 + $0x1360] sm:$0xff]  ;;  %v2548_v51 = vld [vmem:[%s7687_s8 + $0x2558] sm:$0xff] }
 0x31f   : > { %4190 = vmatpush.msra.mxu3 %v3090_v3  ;;  %4254 = vmatpush.msrb.mxu2 %v2451_v52  ;;  %v1429_v3 = vld [vmem:[%s7687_s8 + $0x260] sm:$0xff]  ;;  %v3187_v52 = vld [vmem:[%s7687_s8 + $0x3950] sm:$0xff] }
 0x320   : > { %4362 = vmatpush.msrb.mxu0 %v1813_v53  ;;  %4382 = vmatpush.msrb.mxu1 %v2325_v54  ;;  %v1941_v53 = vld [vmem:[%s7687_s8 + $0x1260] sm:$0xff]  ;;  %v2516_v54 = vld [vmem:[%s7687_s8 + $0x2458] sm:$0xff] }
 0x321   : > { %4191 = vmatpush.msra.mxu3 %v3058_v56  ;;  %4255 = vmatpush.msrb.mxu2 %v2419_v57  ;;  %v1397_v56 = vld [vmem:[%s7687_s8 + $0x160] sm:$0xff]  ;;  %v3155_v57 = vld [vmem:[%s7687_s8 + $0x3850] sm:$0xff] }
 0x322   : > { %4363 = vmatpush.msrb.mxu0 %v1781_v58  ;;  %4383 = vmatpush.msrb.mxu1 %v2293_v59  ;;  %v1909_v58 = vld [vmem:[%s7687_s8 + $0x1160] sm:$0xff]  ;;  %v2484_v59 = vld [vmem:[%s7687_s8 + $0x2358] sm:$0xff] }
 0x323   : > { %4192 = vmatpush.msra.mxu3 %v3026_v61  ;;  %4256 = vmatpush.msrb.mxu2 %v2387_v62  ;;  %v1365_v61 = vld [vmem:[%s7687_s8 + $0x60] sm:$0xff]  ;;  %v3123_v62 = vld [vmem:[%s7687_s8 + $0x3750] sm:$0xff] }
 0x324   : > { %4257 = vmatmul.f32.vlgmr.msrb.gmra.mxu2 %v8401_v38  ;;  %4364 = vmatpush.msrb.mxu0 %v1749_v63  ;;  %v1877_v63 = vld [vmem:[%s7687_s8 + $0x1060] sm:$0xff] }
 0x325   : > { %4321 = vmatpush.msra.mxu2 %v2868_v5  ;;  %4384 = vmatpush.msrb.mxu1 %v2261_v6  ;;  %v3091_v5 = vld [vmem:[%s7687_s8 + $0x3650] sm:$0xff]  ;;  %v2452_v6 = vld [vmem:[%s7687_s8 + $0x2258] sm:$0xff] }
 0x326   : > { %4193 = vmatpush.msra.mxu3 %v2994_v7  ;;  %4365 = vmatpush.msrb.mxu0 %v1717_v8  ;;  %v1814_v7 = vld [vmem:[%s7687_s8 + $0xe68] sm:$0xff] }
 0x327   : > { %4322 = vmatpush.msra.mxu2 %v2836_v10  ;;  %4385 = vmatpush.msrb.mxu1 %v2229_v11  ;;  %v2326_v8 = vld [vmem:[%s7687_s8 + $0x1e68] sm:$0xff]  ;;  %v2420_v10 = vld [vmem:[%s7687_s8 + $0x2158] sm:$0xff] }
 0x328   : > { %4194 = vmatpush.msra.mxu3 %v2962_v13  ;;  %4366 = vmatpush.msrb.mxu0 %v1685_v14  ;;  %v3878_v25 = vpop.f32.mrf.mxu3  ;;  %v1782_v11 = vld [vmem:[%s7687_s8 + $0xd68] sm:$0xff]  ;;  %v3027_v13 = vld [vmem:[%s7687_s8 + $0x3450] sm:$0xff]  ;;  %v2388_v14 = vld [vmem:[%s7687_s8 + $0x2058] sm:$0xff] }
 0x329   : > { %4323 = vmatpush.msra.mxu2 %v2804_v15  ;;  %4386 = vmatpush.msrb.mxu1 %v2197_v17  ;;  %v3879_v29 = vadd.f32 %v3878_v25, %v3859_v18  ;;  %v1750_v15 = vld [vmem:[%s7687_s8 + $0xc68] sm:$0xff]  ;;  %v3898_v17 = vpop.f32.mrf.mxu0  ;;  %v3918_v18 = vpop.f32.mrf.mxu1  ;;  %v2837_v25 = vld [vmem:[%s7687_s8 + $0x2e60] sm:$0xff] }
 0x32a   : > { %4195 = vmatpush.msra.mxu3 %v2930_v19  ;;  %4367 = vmatpush.msrb.mxu0 %v1653_v20  ;;  %v2869_v19 = vld [vmem:[%s7687_s8 + $0x2f60] sm:$0xff]  ;;  %v2262_v20 = vld [vmem:[%s7687_s8 + $0x1c68] sm:$0xff] }
 0x32b   : > { %4324 = vmatpush.msra.mxu2 %v2772_v22  ;;  %4387 = vmatpush.msrb.mxu1 %v2165_v23  ;;  %v5966_v33 = vadd.f32 %v3879_v29, %v1326_v24  ;;  %v2995_v22 = vld [vmem:[%s7687_s8 + $0x3350] sm:$0xff]  ;;  %v1718_v23 = vld [vmem:[%s7687_s8 + $0xb68] sm:$0xff]  ;;  %v3938_v24 = vpop.f32.mrf.mxu2 }
 0x32c   : > { %4196 = vmatpush.msra.mxu3 %v2898_v27  ;;  %4368 = vmatpush.msrb.mxu0 %v1621_v28  ;;  %v2230_v27 = vld [vmem:[%s7687_s8 + $0x1b68] sm:$0xff]  ;;  %v3919_v28 = vadd.f32 %v3918_v18, %v3898_v17  ;;  %v2963_v29 = vld [vmem:[%s7687_s8 + $0x3250] sm:$0xff] }
 0x32d   : > { %4197 = vmatmul.f32.vlgmr.msra.gmra.mxu3 %v8477_v55  ;;  %4325 = vmatpush.msra.mxu2 %v2740_v30  ;;  %5998 = vst [vmem:[#allocation2 + $0x68] sm:$0xff] %v5966_v33  ;;  %v1686_v30 = vld [vmem:[%s7687_s8 + $0xa68] sm:$0xff]  ;;  %v1847_v17 = vld [vmem:[%s7687_s8 + $0xf70] sm:$0xff] }
 0x32e   : > { %4261 = vmatpush.msrb.mxu3 %v3379_v31  ;;  %4388 = vmatpush.msrb.mxu1 %v2133_v1  ;;  %v2805_v31 = vld [vmem:[%s7687_s8 + $0x2d60] sm:$0xff]  ;;  %v2198_v1 = vld [vmem:[%s7687_s8 + $0x1a68] sm:$0xff]  ;;  %v3939_v33 = vadd.f32 %v3938_v24, %v3919_v28  ;;  %v2359_v18 = vld [vmem:[%s7687_s8 + $0x1f70] sm:$0xff] }
 0x32f   : > { %4326 = vmatpush.msra.mxu2 %v2708_v34  ;;  %4369 = vmatpush.msrb.mxu0 %v1589_v35  ;;  %v2931_v34 = vld [vmem:[%s7687_s8 + $0x3150] sm:$0xff]  ;;  %v1654_v35 = vld [vmem:[%s7687_s8 + $0x968] sm:$0xff]  ;;  %v3060_v24 = vld [vmem:[%s7687_s8 + $0x3558] sm:$0xff] }
 0x330   : > { %4262 = vmatpush.msrb.mxu3 %v3347_v16  ;;  %4389 = vmatpush.msrb.mxu1 %v2101_v36  ;;  %v2773_v16 = vld [vmem:[%s7687_s8 + $0x2c60] sm:$0xff]  ;;  %v2166_v36 = vld [vmem:[%s7687_s8 + $0x1968] sm:$0xff]  ;;  %v2295_v28 = vld [vmem:[%s7687_s8 + $0x1d70] sm:$0xff] }
 0x331   : > { %4327 = vmatpush.msra.mxu2 %v2676_v2  ;;  %4370 = vmatpush.msrb.mxu0 %v1557_v37  ;;  %v1327_v2 = vld [vmem:[#allocation2 + $0x30] sm:$0xff] }
 0x332   : > { %4263 = vmatpush.msrb.mxu3 %v3315_v39  ;;  %4390 = vmatpush.msrb.mxu1 %v2069_v41  ;;  %v2899_v39 = vld [vmem:[%s7687_s8 + $0x3050] sm:$0xff]  ;;  %v1622_v41 = vld [vmem:[%s7687_s8 + $0x868] sm:$0xff] }
 0x333   : > { %4328 = vmatpush.msra.mxu2 %v2644_v42  ;;  %4371 = vmatpush.msrb.mxu0 %v1525_v21  ;;  %v2741_v21 = vld [vmem:[%s7687_s8 + $0x2b60] sm:$0xff] }
 0x334   : > { %4264 = vmatpush.msrb.mxu3 %v3283_v44  ;;  %4391 = vmatpush.msrb.mxu1 %v2037_v45  ;;  %v3380_v44 = vld [vmem:[%s7687_s8 + $0x3f58] sm:$0xff]  ;;  %v2134_v45 = vld [vmem:[%s7687_s8 + $0x1868] sm:$0xff] }
 0x335   : > { %4329 = vmatpush.msra.mxu2 %v2612_v46  ;;  %4372 = vmatpush.msrb.mxu0 %v1493_v60  ;;  %v2709_v60 = vld [vmem:[%s7687_s8 + $0x2a60] sm:$0xff] }
 0x336   : > { %4265 = vmatpush.msrb.mxu3 %v3251_v47  ;;  %4392 = vmatpush.msrb.mxu1 %v2005_v26  ;;  %v1590_v47 = vld [vmem:[%s7687_s8 + $0x768] sm:$0xff]  ;;  %v3348_v26 = vld [vmem:[%s7687_s8 + $0x3e58] sm:$0xff] }
 0x337   : > { %4330 = vmatpush.msra.mxu2 %v2580_v32  ;;  %4373 = vmatpush.msrb.mxu0 %v1461_v48  ;;  %v2102_v32 = vld [vmem:[%s7687_s8 + $0x1768] sm:$0xff]  ;;  %v2677_v48 = vld [vmem:[%s7687_s8 + $0x2960] sm:$0xff] }
 0x338   : > { %4266 = vmatpush.msrb.mxu3 %v3219_v49  ;;  %4393 = vmatpush.msrb.mxu1 %v1973_v50  ;;  %v1558_v49 = vld [vmem:[%s7687_s8 + $0x668] sm:$0xff]  ;;  %v3316_v50 = vld [vmem:[%s7687_s8 + $0x3d58] sm:$0xff] }
 0x339   : > { %4331 = vmatpush.msra.mxu2 %v2548_v51  ;;  %4374 = vmatpush.msrb.mxu0 %v1429_v3  ;;  %v2070_v51 = vld [vmem:[%s7687_s8 + $0x1668] sm:$0xff]  ;;  %v2645_v3 = vld [vmem:[%s7687_s8 + $0x2860] sm:$0xff] }
 0x33a   : > { %4267 = vmatpush.msrb.mxu3 %v3187_v52  ;;  %4394 = vmatpush.msrb.mxu1 %v1941_v53  ;;  %v1526_v52 = vld [vmem:[%s7687_s8 + $0x568] sm:$0xff]  ;;  %v3284_v53 = vld [vmem:[%s7687_s8 + $0x3c58] sm:$0xff] }
 0x33b   : > { %4332 = vmatpush.msra.mxu2 %v2516_v54  ;;  %4375 = vmatpush.msrb.mxu0 %v1397_v56  ;;  %v2038_v54 = vld [vmem:[%s7687_s8 + $0x1568] sm:$0xff]  ;;  %v2613_v56 = vld [vmem:[%s7687_s8 + $0x2760] sm:$0xff] }
 0x33c   : > { %4268 = vmatpush.msrb.mxu3 %v3155_v57  ;;  %4395 = vmatpush.msrb.mxu1 %v1909_v58  ;;  %v1494_v57 = vld [vmem:[%s7687_s8 + $0x468] sm:$0xff]  ;;  %v3252_v58 = vld [vmem:[%s7687_s8 + $0x3b58] sm:$0xff] }
 0x33d   : > { %4333 = vmatpush.msra.mxu2 %v2484_v59  ;;  %4376 = vmatpush.msrb.mxu0 %v1365_v61  ;;  %v2006_v59 = vld [vmem:[%s7687_s8 + $0x1468] sm:$0xff]  ;;  %v2581_v61 = vld [vmem:[%s7687_s8 + $0x2660] sm:$0xff] }
 0x33e   : > { %4269 = vmatpush.msrb.mxu3 %v3123_v62  ;;  %4396 = vmatpush.msrb.mxu1 %v1877_v63  ;;  %v1462_v62 = vld [vmem:[%s7687_s8 + $0x368] sm:$0xff]  ;;  %v3220_v63 = vld [vmem:[%s7687_s8 + $0x3a58] sm:$0xff] }
 0x33f   : > { %4377 = vmatmul.f32.vlgmr.msrb.gmra.mxu0 %v8284_v40  ;;  %4397 = vmatmul.f32.vlgmr.msrb.gmra.mxu1 %v8288_v43 }
 0x340   : > { %4441 = vmatpush.msra.mxu0 %v1846_v0  ;;  %4461 = vmatpush.msra.mxu1 %v2358_v4  ;;  %v1974_v0 = vld [vmem:[%s7687_s8 + $0x1368] sm:$0xff]  ;;  %v2549_v4 = vld [vmem:[%s7687_s8 + $0x2560] sm:$0xff] }
 0x341   : > { %4270 = vmatpush.msrb.mxu3 %v3091_v5  ;;  %4334 = vmatpush.msra.mxu2 %v2452_v6  ;;  %v1430_v5 = vld [vmem:[%s7687_s8 + $0x268] sm:$0xff]  ;;  %v3188_v6 = vld [vmem:[%s7687_s8 + $0x3958] sm:$0xff] }
 0x342   : > { %4442 = vmatpush.msra.mxu0 %v1814_v7  ;;  %4462 = vmatpush.msra.mxu1 %v2326_v8  ;;  %v1942_v7 = vld [vmem:[%s7687_s8 + $0x1268] sm:$0xff]  ;;  %v2517_v8 = vld [vmem:[%s7687_s8 + $0x2460] sm:$0xff] }
 0x343   : > { %4271 = vmatpush.msrb.mxu3 %v3059_v9  ;;  %4335 = vmatpush.msra.mxu2 %v2420_v10  ;;  %v1398_v9 = vld [vmem:[%s7687_s8 + $0x168] sm:$0xff]  ;;  %v3156_v10 = vld [vmem:[%s7687_s8 + $0x3858] sm:$0xff] }
 0x344   : > { %4443 = vmatpush.msra.mxu0 %v1782_v11  ;;  %4463 = vmatpush.msra.mxu1 %v2294_v12  ;;  %v1910_v11 = vld [vmem:[%s7687_s8 + $0x1168] sm:$0xff]  ;;  %v2485_v12 = vld [vmem:[%s7687_s8 + $0x2360] sm:$0xff] }
 0x345   : > { %4272 = vmatpush.msrb.mxu3 %v3027_v13  ;;  %4336 = vmatpush.msra.mxu2 %v2388_v14  ;;  %v1366_v13 = vld [vmem:[%s7687_s8 + $0x68] sm:$0xff]  ;;  %v3124_v14 = vld [vmem:[%s7687_s8 + $0x3758] sm:$0xff] }
 0x346   : > { %4337 = vmatmul.f32.vlgmr.msra.gmra.mxu2 %v8401_v38  ;;  %4444 = vmatpush.msra.mxu0 %v1750_v15  ;;  %v1878_v15 = vld [vmem:[%s7687_s8 + $0x1068] sm:$0xff] }
 0x347   : > { %4401 = vmatpush.msrb.mxu2 %v2869_v19  ;;  %4464 = vmatpush.msra.mxu1 %v2262_v20  ;;  %v3092_v19 = vld [vmem:[%s7687_s8 + $0x3658] sm:$0xff]  ;;  %v2453_v20 = vld [vmem:[%s7687_s8 + $0x2260] sm:$0xff] }
 0x348   : > { %4273 = vmatpush.msrb.mxu3 %v2995_v22  ;;  %4445 = vmatpush.msra.mxu0 %v1718_v23  ;;  %v1815_v22 = vld [vmem:[%s7687_s8 + $0xe70] sm:$0xff] }
 0x349   : > { %4402 = vmatpush.msrb.mxu2 %v2837_v25  ;;  %4465 = vmatpush.msra.mxu1 %v2230_v27  ;;  %v2327_v23 = vld [vmem:[%s7687_s8 + $0x1e70] sm:$0xff]  ;;  %v2421_v25 = vld [vmem:[%s7687_s8 + $0x2160] sm:$0xff] }
 0x34a   : > { %4274 = vmatpush.msrb.mxu3 %v2963_v29  ;;  %4446 = vmatpush.msra.mxu0 %v1686_v30  ;;  %v3958_v37 = vpop.f32.mrf.mxu3  ;;  %v1783_v27 = vld [vmem:[%s7687_s8 + $0xd70] sm:$0xff]  ;;  %v3028_v29 = vld [vmem:[%s7687_s8 + $0x3458] sm:$0xff]  ;;  %v2389_v30 = vld [vmem:[%s7687_s8 + $0x2060] sm:$0xff] }
 0x34b   : > { %4403 = vmatpush.msrb.mxu2 %v2805_v31  ;;  %4466 = vmatpush.msra.mxu1 %v2198_v1  ;;  %v3959_v42 = vadd.f32 %v3958_v37, %v3939_v33  ;;  %v1751_v31 = vld [vmem:[%s7687_s8 + $0xc70] sm:$0xff]  ;;  %v3978_v1 = vpop.f32.mrf.mxu0  ;;  %v3998_v33 = vpop.f32.mrf.mxu1  ;;  %v2838_v37 = vld [vmem:[%s7687_s8 + $0x2e68] sm:$0xff] }
 0x34c   : > { %4275 = vmatpush.msrb.mxu3 %v2931_v34  ;;  %4447 = vmatpush.msra.mxu0 %v1654_v35  ;;  %v2870_v34 = vld [vmem:[%s7687_s8 + $0x2f68] sm:$0xff]  ;;  %v2263_v35 = vld [vmem:[%s7687_s8 + $0x1c70] sm:$0xff] }
 0x34d   : > { %4404 = vmatpush.msrb.mxu2 %v2773_v16  ;;  %4467 = vmatpush.msra.mxu1 %v2166_v36  ;;  %v5967_v46 = vadd.f32 %v3959_v42, %v1327_v2  ;;  %v2996_v16 = vld [vmem:[%s7687_s8 + $0x3358] sm:$0xff]  ;;  %v1719_v36 = vld [vmem:[%s7687_s8 + $0xb70] sm:$0xff]  ;;  %v4018_v2 = vpop.f32.mrf.mxu2 }
 0x34e   : > { %4276 = vmatpush.msrb.mxu3 %v2899_v39  ;;  %4448 = vmatpush.msra.mxu0 %v1622_v41  ;;  %v2231_v39 = vld [vmem:[%s7687_s8 + $0x1b70] sm:$0xff]  ;;  %v3999_v41 = vadd.f32 %v3998_v33, %v3978_v1  ;;  %v2964_v42 = vld [vmem:[%s7687_s8 + $0x3258] sm:$0xff] }
 0x34f   : > { %4277 = vmatmul.f32.vlgmr.msrb.gmra.mxu3 %v8477_v55  ;;  %4405 = vmatpush.msrb.mxu2 %v2741_v21  ;;  %5999 = vst [vmem:[#allocation2 + $0x30] sm:$0xff] %v5967_v46  ;;  %v1687_v21 = vld [vmem:[%s7687_s8 + $0xa70] sm:$0xff]  ;;  %v1848_v1 = vld [vmem:[%s7687_s8 + $0xf78] sm:$0xff] }
 0x350   : > { %4341 = vmatpush.msra.mxu3 %v3380_v44  ;;  %4468 = vmatpush.msra.mxu1 %v2134_v45  ;;  %v2806_v44 = vld [vmem:[%s7687_s8 + $0x2d68] sm:$0xff]  ;;  %v2199_v45 = vld [vmem:[%s7687_s8 + $0x1a70] sm:$0xff]  ;;  %v4019_v46 = vadd.f32 %v4018_v2, %v3999_v41  ;;  %v2360_v33 = vld [vmem:[%s7687_s8 + $0x1f78] sm:$0xff] }
 0x351   : > { %4406 = vmatpush.msrb.mxu2 %v2709_v60  ;;  %4449 = vmatpush.msra.mxu0 %v1590_v47  ;;  %v2932_v60 = vld [vmem:[%s7687_s8 + $0x3158] sm:$0xff]  ;;  %v1655_v47 = vld [vmem:[%s7687_s8 + $0x970] sm:$0xff]  ;;  %v3061_v2 = vld [vmem:[%s7687_s8 + $0x3560] sm:$0xff] }
 0x352   : > { %4342 = vmatpush.msra.mxu3 %v3348_v26  ;;  %4469 = vmatpush.msra.mxu1 %v2102_v32  ;;  %v2774_v26 = vld [vmem:[%s7687_s8 + $0x2c68] sm:$0xff]  ;;  %v2167_v32 = vld [vmem:[%s7687_s8 + $0x1970] sm:$0xff]  ;;  %v2296_v41 = vld [vmem:[%s7687_s8 + $0x1d78] sm:$0xff] }
 0x353   : > { %4407 = vmatpush.msrb.mxu2 %v2677_v48  ;;  %4450 = vmatpush.msra.mxu0 %v1558_v49  ;;  %v1328_v48 = vld [vmem:[#allocation2 + $0x48] sm:$0xff] }
 0x354   : > { %4343 = vmatpush.msra.mxu3 %v3316_v50  ;;  %4470 = vmatpush.msra.mxu1 %v2070_v51  ;;  %v2900_v50 = vld [vmem:[%s7687_s8 + $0x3058] sm:$0xff]  ;;  %v1623_v51 = vld [vmem:[%s7687_s8 + $0x870] sm:$0xff] }
 0x355   : > { %4408 = vmatpush.msrb.mxu2 %v2645_v3  ;;  %4451 = vmatpush.msra.mxu0 %v1526_v52  ;;  %v2742_v52 = vld [vmem:[%s7687_s8 + $0x2b68] sm:$0xff] }
 0x356   : > { %4344 = vmatpush.msra.mxu3 %v3284_v53  ;;  %4471 = vmatpush.msra.mxu1 %v2038_v54  ;;  %v3381_v53 = vld [vmem:[%s7687_s8 + $0x3f60] sm:$0xff]  ;;  %v2135_v54 = vld [vmem:[%s7687_s8 + $0x1870] sm:$0xff] }
 0x357   : > { %4409 = vmatpush.msrb.mxu2 %v2613_v56  ;;  %4452 = vmatpush.msra.mxu0 %v1494_v57  ;;  %v2710_v57 = vld [vmem:[%s7687_s8 + $0x2a68] sm:$0xff] }
 0x358   : > { %4345 = vmatpush.msra.mxu3 %v3252_v58  ;;  %4472 = vmatpush.msra.mxu1 %v2006_v59  ;;  %v1591_v58 = vld [vmem:[%s7687_s8 + $0x770] sm:$0xff]  ;;  %v3349_v59 = vld [vmem:[%s7687_s8 + $0x3e60] sm:$0xff] }
 0x359   : > { %4410 = vmatpush.msrb.mxu2 %v2581_v61  ;;  %4453 = vmatpush.msra.mxu0 %v1462_v62  ;;  %v2103_v61 = vld [vmem:[%s7687_s8 + $0x1770] sm:$0xff]  ;;  %v2678_v62 = vld [vmem:[%s7687_s8 + $0x2968] sm:$0xff] }
 0x35a   : > { %4346 = vmatpush.msra.mxu3 %v3220_v63  ;;  %4473 = vmatpush.msra.mxu1 %v1974_v0  ;;  %v1559_v63 = vld [vmem:[%s7687_s8 + $0x670] sm:$0xff]  ;;  %v3317_v0 = vld [vmem:[%s7687_s8 + $0x3d60] sm:$0xff] }
 0x35b   : > { %4411 = vmatpush.msrb.mxu2 %v2549_v4  ;;  %4454 = vmatpush.msra.mxu0 %v1430_v5  ;;  %v2071_v4 = vld [vmem:[%s7687_s8 + $0x1670] sm:$0xff]  ;;  %v2646_v5 = vld [vmem:[%s7687_s8 + $0x2868] sm:$0xff] }
 0x35c   : > { %4347 = vmatpush.msra.mxu3 %v3188_v6  ;;  %4474 = vmatpush.msra.mxu1 %v1942_v7  ;;  %v1527_v6 = vld [vmem:[%s7687_s8 + $0x570] sm:$0xff]  ;;  %v3285_v7 = vld [vmem:[%s7687_s8 + $0x3c60] sm:$0xff] }
 0x35d   : > { %4412 = vmatpush.msrb.mxu2 %v2517_v8  ;;  %4455 = vmatpush.msra.mxu0 %v1398_v9  ;;  %v2039_v8 = vld [vmem:[%s7687_s8 + $0x1570] sm:$0xff]  ;;  %v2614_v9 = vld [vmem:[%s7687_s8 + $0x2768] sm:$0xff] }
 0x35e   : > { %4348 = vmatpush.msra.mxu3 %v3156_v10  ;;  %4475 = vmatpush.msra.mxu1 %v1910_v11  ;;  %v1495_v10 = vld [vmem:[%s7687_s8 + $0x470] sm:$0xff]  ;;  %v3253_v11 = vld [vmem:[%s7687_s8 + $0x3b60] sm:$0xff] }
 0x35f   : > { %4413 = vmatpush.msrb.mxu2 %v2485_v12  ;;  %4456 = vmatpush.msra.mxu0 %v1366_v13  ;;  %v2007_v12 = vld [vmem:[%s7687_s8 + $0x1470] sm:$0xff]  ;;  %v2582_v13 = vld [vmem:[%s7687_s8 + $0x2668] sm:$0xff] }
 0x360   : > { %4349 = vmatpush.msra.mxu3 %v3124_v14  ;;  %4476 = vmatpush.msra.mxu1 %v1878_v15  ;;  %v1463_v14 = vld [vmem:[%s7687_s8 + $0x370] sm:$0xff]  ;;  %v3221_v15 = vld [vmem:[%s7687_s8 + $0x3a60] sm:$0xff] }
 0x361   : > { %4457 = vmatmul.f32.vlgmr.msra.gmra.mxu0 %v8284_v40  ;;  %4477 = vmatmul.f32.vlgmr.msra.gmra.mxu1 %v8288_v43 }
 0x362   : > { %4521 = vmatpush.msrb.mxu0 %v1847_v17  ;;  %4541 = vmatpush.msrb.mxu1 %v2359_v18  ;;  %v1975_v17 = vld [vmem:[%s7687_s8 + $0x1370] sm:$0xff]  ;;  %v2550_v18 = vld [vmem:[%s7687_s8 + $0x2568] sm:$0xff] }
 0x363   : > { %4350 = vmatpush.msra.mxu3 %v3092_v19  ;;  %4414 = vmatpush.msrb.mxu2 %v2453_v20  ;;  %v1431_v19 = vld [vmem:[%s7687_s8 + $0x270] sm:$0xff]  ;;  %v3189_v20 = vld [vmem:[%s7687_s8 + $0x3960] sm:$0xff] }
 0x364   : > { %4522 = vmatpush.msrb.mxu0 %v1815_v22  ;;  %4542 = vmatpush.msrb.mxu1 %v2327_v23  ;;  %v1943_v22 = vld [vmem:[%s7687_s8 + $0x1270] sm:$0xff]  ;;  %v2518_v23 = vld [vmem:[%s7687_s8 + $0x2468] sm:$0xff] }
 0x365   : > { %4351 = vmatpush.msra.mxu3 %v3060_v24  ;;  %4415 = vmatpush.msrb.mxu2 %v2421_v25  ;;  %v1399_v24 = vld [vmem:[%s7687_s8 + $0x170] sm:$0xff]  ;;  %v3157_v25 = vld [vmem:[%s7687_s8 + $0x3860] sm:$0xff] }
 0x366   : > { %4523 = vmatpush.msrb.mxu0 %v1783_v27  ;;  %4543 = vmatpush.msrb.mxu1 %v2295_v28  ;;  %v1911_v27 = vld [vmem:[%s7687_s8 + $0x1170] sm:$0xff]  ;;  %v2486_v28 = vld [vmem:[%s7687_s8 + $0x2368] sm:$0xff] }
 0x367   : > { %4352 = vmatpush.msra.mxu3 %v3028_v29  ;;  %4416 = vmatpush.msrb.mxu2 %v2389_v30  ;;  %v1367_v29 = vld [vmem:[%s7687_s8 + $0x70] sm:$0xff]  ;;  %v3125_v30 = vld [vmem:[%s7687_s8 + $0x3760] sm:$0xff] }
 0x368   : > { %4417 = vmatmul.f32.vlgmr.msrb.gmra.mxu2 %v8401_v38  ;;  %4524 = vmatpush.msrb.mxu0 %v1751_v31  ;;  %v1879_v31 = vld [vmem:[%s7687_s8 + $0x1070] sm:$0xff] }
 0x369   : > { %4481 = vmatpush.msra.mxu2 %v2870_v34  ;;  %4544 = vmatpush.msrb.mxu1 %v2263_v35  ;;  %v3093_v34 = vld [vmem:[%s7687_s8 + $0x3660] sm:$0xff]  ;;  %v2454_v35 = vld [vmem:[%s7687_s8 + $0x2268] sm:$0xff] }
 0x36a   : > { %4353 = vmatpush.msra.mxu3 %v2996_v16  ;;  %4525 = vmatpush.msrb.mxu0 %v1719_v36  ;;  %v1816_v16 = vld [vmem:[%s7687_s8 + $0xe78] sm:$0xff] }
 0x36b   : > { %4482 = vmatpush.msra.mxu2 %v2838_v37  ;;  %4545 = vmatpush.msrb.mxu1 %v2231_v39  ;;  %v2328_v36 = vld [vmem:[%s7687_s8 + $0x1e78] sm:$0xff]  ;;  %v2422_v37 = vld [vmem:[%s7687_s8 + $0x2168] sm:$0xff] }
 0x36c   : > { %4354 = vmatpush.msra.mxu3 %v2964_v42  ;;  %4526 = vmatpush.msrb.mxu0 %v1687_v21  ;;  %v4038_v49 = vpop.f32.mrf.mxu3  ;;  %v1784_v39 = vld [vmem:[%s7687_s8 + $0xd78] sm:$0xff]  ;;  %v3029_v42 = vld [vmem:[%s7687_s8 + $0x3460] sm:$0xff]  ;;  %v2390_v21 = vld [vmem:[%s7687_s8 + $0x2068] sm:$0xff] }
 0x36d   : > { %4483 = vmatpush.msra.mxu2 %v2806_v44  ;;  %4546 = vmatpush.msrb.mxu1 %v2199_v45  ;;  %v4039_v3 = vadd.f32 %v4038_v49, %v4019_v46  ;;  %v1752_v44 = vld [vmem:[%s7687_s8 + $0xc78] sm:$0xff]  ;;  %v4058_v45 = vpop.f32.mrf.mxu0  ;;  %v4078_v46 = vpop.f32.mrf.mxu1  ;;  %v2839_v49 = vld [vmem:[%s7687_s8 + $0x2e70] sm:$0xff] }
 0x36e   : > { %4355 = vmatpush.msra.mxu3 %v2932_v60  ;;  %4527 = vmatpush.msrb.mxu0 %v1655_v47  ;;  %v2871_v60 = vld [vmem:[%s7687_s8 + $0x2f70] sm:$0xff]  ;;  %v2264_v47 = vld [vmem:[%s7687_s8 + $0x1c78] sm:$0xff] }
 0x36f   : > { %4484 = vmatpush.msra.mxu2 %v2774_v26  ;;  %4547 = vmatpush.msrb.mxu1 %v2167_v32  ;;  %v5968_v56 = vadd.f32 %v4039_v3, %v1328_v48  ;;  %v2997_v26 = vld [vmem:[%s7687_s8 + $0x3360] sm:$0xff]  ;;  %v1720_v32 = vld [vmem:[%s7687_s8 + $0xb78] sm:$0xff]  ;;  %v4098_v48 = vpop.f32.mrf.mxu2 }
 0x370   : > { %4356 = vmatpush.msra.mxu3 %v2900_v50  ;;  %4528 = vmatpush.msrb.mxu0 %v1623_v51  ;;  %v2232_v50 = vld [vmem:[%s7687_s8 + $0x1b78] sm:$0xff]  ;;  %v4079_v51 = vadd.f32 %v4078_v46, %v4058_v45  ;;  %v2965_v3 = vld [vmem:[%s7687_s8 + $0x3260] sm:$0xff] }
 0x371   : > { %4357 = vmatmul.f32.vlgmr.msra.gmra.mxu3 %v8477_v55  ;;  %4485 = vmatpush.msra.mxu2 %v2742_v52  ;;  %6000 = vst [vmem:[#allocation2 + $0x48] sm:$0xff] %v5968_v56  ;;  %v1688_v52 = vld [vmem:[%s7687_s8 + $0xa78] sm:$0xff]  ;;  %v1849_v45 = vld [vmem:[%s7687_s8 + $0xf80] sm:$0xff] }
 0x372   : > { %4421 = vmatpush.msrb.mxu3 %v3381_v53  ;;  %4548 = vmatpush.msrb.mxu1 %v2135_v54  ;;  %v2807_v53 = vld [vmem:[%s7687_s8 + $0x2d70] sm:$0xff]  ;;  %v2200_v54 = vld [vmem:[%s7687_s8 + $0x1a78] sm:$0xff]  ;;  %v4099_v56 = vadd.f32 %v4098_v48, %v4079_v51  ;;  %v2361_v46 = vld [vmem:[%s7687_s8 + $0x1f80] sm:$0xff] }
 0x373   : > { %4486 = vmatpush.msra.mxu2 %v2710_v57  ;;  %4529 = vmatpush.msrb.mxu0 %v1591_v58  ;;  %v2933_v57 = vld [vmem:[%s7687_s8 + $0x3160] sm:$0xff]  ;;  %v1656_v58 = vld [vmem:[%s7687_s8 + $0x978] sm:$0xff]  ;;  %v3062_v48 = vld [vmem:[%s7687_s8 + $0x3568] sm:$0xff] }
 0x374   : > { %4422 = vmatpush.msrb.mxu3 %v3349_v59  ;;  %4549 = vmatpush.msrb.mxu1 %v2103_v61  ;;  %v2775_v59 = vld [vmem:[%s7687_s8 + $0x2c70] sm:$0xff]  ;;  %v2168_v61 = vld [vmem:[%s7687_s8 + $0x1978] sm:$0xff]  ;;  %v2297_v51 = vld [vmem:[%s7687_s8 + $0x1d80] sm:$0xff] }
 0x375   : > { %4487 = vmatpush.msra.mxu2 %v2678_v62  ;;  %4530 = vmatpush.msrb.mxu0 %v1559_v63  ;;  %v1329_v62 = vld [vmem:[#allocation2 + $0x80] sm:$0xff] }
 0x376   : > { %4423 = vmatpush.msrb.mxu3 %v3317_v0  ;;  %4550 = vmatpush.msrb.mxu1 %v2071_v4  ;;  %v2901_v0 = vld [vmem:[%s7687_s8 + $0x3060] sm:$0xff]  ;;  %v1624_v4 = vld [vmem:[%s7687_s8 + $0x878] sm:$0xff] }
 0x377   : > { %4488 = vmatpush.msra.mxu2 %v2646_v5  ;;  %4531 = vmatpush.msrb.mxu0 %v1527_v6  ;;  %v2743_v6 = vld [vmem:[%s7687_s8 + $0x2b70] sm:$0xff] }
 0x378   : > { %4424 = vmatpush.msrb.mxu3 %v3285_v7  ;;  %4551 = vmatpush.msrb.mxu1 %v2039_v8  ;;  %v3382_v7 = vld [vmem:[%s7687_s8 + $0x3f68] sm:$0xff]  ;;  %v2136_v8 = vld [vmem:[%s7687_s8 + $0x1878] sm:$0xff] }
 0x379   : > { %4489 = vmatpush.msra.mxu2 %v2614_v9  ;;  %4532 = vmatpush.msrb.mxu0 %v1495_v10  ;;  %v2711_v10 = vld [vmem:[%s7687_s8 + $0x2a70] sm:$0xff] }
 0x37a   : > { %4425 = vmatpush.msrb.mxu3 %v3253_v11  ;;  %4552 = vmatpush.msrb.mxu1 %v2007_v12  ;;  %v1592_v11 = vld [vmem:[%s7687_s8 + $0x778] sm:$0xff]  ;;  %v3350_v12 = vld [vmem:[%s7687_s8 + $0x3e68] sm:$0xff] }
 0x37b   : > { %4490 = vmatpush.msra.mxu2 %v2582_v13  ;;  %4533 = vmatpush.msrb.mxu0 %v1463_v14  ;;  %v2104_v13 = vld [vmem:[%s7687_s8 + $0x1778] sm:$0xff]  ;;  %v2679_v14 = vld [vmem:[%s7687_s8 + $0x2970] sm:$0xff] }
 0x37c   : > { %4426 = vmatpush.msrb.mxu3 %v3221_v15  ;;  %4553 = vmatpush.msrb.mxu1 %v1975_v17  ;;  %v1560_v15 = vld [vmem:[%s7687_s8 + $0x678] sm:$0xff]  ;;  %v3318_v17 = vld [vmem:[%s7687_s8 + $0x3d68] sm:$0xff] }
 0x37d   : > { %4491 = vmatpush.msra.mxu2 %v2550_v18  ;;  %4534 = vmatpush.msrb.mxu0 %v1431_v19  ;;  %v2072_v18 = vld [vmem:[%s7687_s8 + $0x1678] sm:$0xff]  ;;  %v2647_v19 = vld [vmem:[%s7687_s8 + $0x2870] sm:$0xff] }
 0x37e   : > { %4427 = vmatpush.msrb.mxu3 %v3189_v20  ;;  %4554 = vmatpush.msrb.mxu1 %v1943_v22  ;;  %v1528_v20 = vld [vmem:[%s7687_s8 + $0x578] sm:$0xff]  ;;  %v3286_v22 = vld [vmem:[%s7687_s8 + $0x3c68] sm:$0xff] }
 0x37f   : > { %4492 = vmatpush.msra.mxu2 %v2518_v23  ;;  %4535 = vmatpush.msrb.mxu0 %v1399_v24  ;;  %v2040_v23 = vld [vmem:[%s7687_s8 + $0x1578] sm:$0xff]  ;;  %v2615_v24 = vld [vmem:[%s7687_s8 + $0x2770] sm:$0xff] }
 0x380   : > { %4428 = vmatpush.msrb.mxu3 %v3157_v25  ;;  %4555 = vmatpush.msrb.mxu1 %v1911_v27  ;;  %v1496_v25 = vld [vmem:[%s7687_s8 + $0x478] sm:$0xff]  ;;  %v3254_v27 = vld [vmem:[%s7687_s8 + $0x3b68] sm:$0xff] }
 0x381   : > { %4493 = vmatpush.msra.mxu2 %v2486_v28  ;;  %4536 = vmatpush.msrb.mxu0 %v1367_v29  ;;  %v2008_v28 = vld [vmem:[%s7687_s8 + $0x1478] sm:$0xff]  ;;  %v2583_v29 = vld [vmem:[%s7687_s8 + $0x2670] sm:$0xff] }
 0x382   : > { %4429 = vmatpush.msrb.mxu3 %v3125_v30  ;;  %4556 = vmatpush.msrb.mxu1 %v1879_v31  ;;  %v1464_v30 = vld [vmem:[%s7687_s8 + $0x378] sm:$0xff]  ;;  %v3222_v31 = vld [vmem:[%s7687_s8 + $0x3a68] sm:$0xff] }
 0x383   : > { %4537 = vmatmul.f32.vlgmr.msrb.gmra.mxu0 %v8284_v40  ;;  %4557 = vmatmul.f32.vlgmr.msrb.gmra.mxu1 %v8288_v43 }
 0x384   : > { %4601 = vmatpush.msra.mxu0 %v1848_v1  ;;  %4621 = vmatpush.msra.mxu1 %v2360_v33  ;;  %v1976_v1 = vld [vmem:[%s7687_s8 + $0x1378] sm:$0xff]  ;;  %v2551_v33 = vld [vmem:[%s7687_s8 + $0x2570] sm:$0xff] }
 0x385   : > { %4430 = vmatpush.msrb.mxu3 %v3093_v34  ;;  %4494 = vmatpush.msra.mxu2 %v2454_v35  ;;  %v1432_v34 = vld [vmem:[%s7687_s8 + $0x278] sm:$0xff]  ;;  %v3190_v35 = vld [vmem:[%s7687_s8 + $0x3968] sm:$0xff] }
 0x386   : > { %4602 = vmatpush.msra.mxu0 %v1816_v16  ;;  %4622 = vmatpush.msra.mxu1 %v2328_v36  ;;  %v1944_v16 = vld [vmem:[%s7687_s8 + $0x1278] sm:$0xff]  ;;  %v2519_v36 = vld [vmem:[%s7687_s8 + $0x2470] sm:$0xff] }
 0x387   : > { %4431 = vmatpush.msrb.mxu3 %v3061_v2  ;;  %4495 = vmatpush.msra.mxu2 %v2422_v37  ;;  %v1400_v2 = vld [vmem:[%s7687_s8 + $0x178] sm:$0xff]  ;;  %v3158_v37 = vld [vmem:[%s7687_s8 + $0x3868] sm:$0xff] }
 0x388   : > { %4603 = vmatpush.msra.mxu0 %v1784_v39  ;;  %4623 = vmatpush.msra.mxu1 %v2296_v41  ;;  %v1912_v39 = vld [vmem:[%s7687_s8 + $0x1178] sm:$0xff]  ;;  %v2487_v41 = vld [vmem:[%s7687_s8 + $0x2370] sm:$0xff] }
 0x389   : > { %4432 = vmatpush.msrb.mxu3 %v3029_v42  ;;  %4496 = vmatpush.msra.mxu2 %v2390_v21  ;;  %v1368_v42 = vld [vmem:[%s7687_s8 + $0x78] sm:$0xff]  ;;  %v3126_v21 = vld [vmem:[%s7687_s8 + $0x3768] sm:$0xff] }
 0x38a   : > { %4497 = vmatmul.f32.vlgmr.msra.gmra.mxu2 %v8401_v38  ;;  %4604 = vmatpush.msra.mxu0 %v1752_v44  ;;  %v1880_v44 = vld [vmem:[%s7687_s8 + $0x1078] sm:$0xff] }
 0x38b   : > { %4561 = vmatpush.msrb.mxu2 %v2871_v60  ;;  %4624 = vmatpush.msra.mxu1 %v2264_v47  ;;  %v3094_v60 = vld [vmem:[%s7687_s8 + $0x3668] sm:$0xff]  ;;  %v2455_v47 = vld [vmem:[%s7687_s8 + $0x2270] sm:$0xff] }
 0x38c   : > { %4433 = vmatpush.msrb.mxu3 %v2997_v26  ;;  %4605 = vmatpush.msra.mxu0 %v1720_v32  ;;  %v1817_v26 = vld [vmem:[%s7687_s8 + $0xe80] sm:$0xff] }
 0x38d   : > { %4562 = vmatpush.msrb.mxu2 %v2839_v49  ;;  %4625 = vmatpush.msra.mxu1 %v2232_v50  ;;  %v2329_v32 = vld [vmem:[%s7687_s8 + $0x1e80] sm:$0xff]  ;;  %v2423_v49 = vld [vmem:[%s7687_s8 + $0x2170] sm:$0xff] }
 0x38e   : > { %4434 = vmatpush.msrb.mxu3 %v2965_v3  ;;  %4606 = vmatpush.msra.mxu0 %v1688_v52  ;;  %v4118_v63 = vpop.f32.mrf.mxu3  ;;  %v1785_v50 = vld [vmem:[%s7687_s8 + $0xd80] sm:$0xff]  ;;  %v3030_v3 = vld [vmem:[%s7687_s8 + $0x3468] sm:$0xff]  ;;  %v2391_v52 = vld [vmem:[%s7687_s8 + $0x2070] sm:$0xff] }
 0x38f   : > { %4563 = vmatpush.msrb.mxu2 %v2807_v53  ;;  %4626 = vmatpush.msra.mxu1 %v2200_v54  ;;  %v4119_v5 = vadd.f32 %v4118_v63, %v4099_v56  ;;  %v1753_v53 = vld [vmem:[%s7687_s8 + $0xc80] sm:$0xff]  ;;  %v4138_v54 = vpop.f32.mrf.mxu0  ;;  %v4158_v56 = vpop.f32.mrf.mxu1  ;;  %v2840_v63 = vld [vmem:[%s7687_s8 + $0x2e78] sm:$0xff] }
 0x390   : > { %4435 = vmatpush.msrb.mxu3 %v2933_v57  ;;  %4607 = vmatpush.msra.mxu0 %v1656_v58  ;;  %v2872_v57 = vld [vmem:[%s7687_s8 + $0x2f78] sm:$0xff]  ;;  %v2265_v58 = vld [vmem:[%s7687_s8 + $0x1c80] sm:$0xff] }
 0x391   : > { %4564 = vmatpush.msrb.mxu2 %v2775_v59  ;;  %4627 = vmatpush.msra.mxu1 %v2168_v61  ;;  %v5969_v9 = vadd.f32 %v4119_v5, %v1329_v62  ;;  %v2998_v59 = vld [vmem:[%s7687_s8 + $0x3368] sm:$0xff]  ;;  %v1721_v61 = vld [vmem:[%s7687_s8 + $0xb80] sm:$0xff]  ;;  %v4178_v62 = vpop.f32.mrf.mxu2 }
 0x392   : > { %4436 = vmatpush.msrb.mxu3 %v2901_v0  ;;  %4608 = vmatpush.msra.mxu0 %v1624_v4  ;;  %v2233_v0 = vld [vmem:[%s7687_s8 + $0x1b80] sm:$0xff]  ;;  %v4159_v4 = vadd.f32 %v4158_v56, %v4138_v54  ;;  %v2966_v5 = vld [vmem:[%s7687_s8 + $0x3268] sm:$0xff] }
 0x393   : > { %4437 = vmatmul.f32.vlgmr.msrb.gmra.mxu3 %v8477_v55  ;;  %4565 = vmatpush.msrb.mxu2 %v2743_v6  ;;  %6001 = vst [vmem:[#allocation2 + $0x80] sm:$0xff] %v5969_v9  ;;  %v1689_v6 = vld [vmem:[%s7687_s8 + $0xa80] sm:$0xff]  ;;  %v1850_v54 = vld [vmem:[%s7687_s8 + $0xf88] sm:$0xff] }
 0x394   : > { %4501 = vmatpush.msra.mxu3 %v3382_v7  ;;  %4628 = vmatpush.msra.mxu1 %v2136_v8  ;;  %v2808_v7 = vld [vmem:[%s7687_s8 + $0x2d78] sm:$0xff]  ;;  %v2201_v8 = vld [vmem:[%s7687_s8 + $0x1a80] sm:$0xff]  ;;  %v4179_v9 = vadd.f32 %v4178_v62, %v4159_v4  ;;  %v2362_v56 = vld [vmem:[%s7687_s8 + $0x1f88] sm:$0xff] }
 0x395   : > { %4566 = vmatpush.msrb.mxu2 %v2711_v10  ;;  %4609 = vmatpush.msra.mxu0 %v1592_v11  ;;  %v2934_v10 = vld [vmem:[%s7687_s8 + $0x3168] sm:$0xff]  ;;  %v1657_v11 = vld [vmem:[%s7687_s8 + $0x980] sm:$0xff]  ;;  %v3063_v62 = vld [vmem:[%s7687_s8 + $0x3570] sm:$0xff] }
 0x396   : > { %4502 = vmatpush.msra.mxu3 %v3350_v12  ;;  %4629 = vmatpush.msra.mxu1 %v2104_v13  ;;  %v2776_v12 = vld [vmem:[%s7687_s8 + $0x2c78] sm:$0xff]  ;;  %v2169_v13 = vld [vmem:[%s7687_s8 + $0x1980] sm:$0xff]  ;;  %v2298_v4 = vld [vmem:[%s7687_s8 + $0x1d88] sm:$0xff] }
 0x397   : > { %4567 = vmatpush.msrb.mxu2 %v2679_v14  ;;  %4610 = vmatpush.msra.mxu0 %v1560_v15  ;;  %v1330_v14 = vld [vmem:[#allocation2 + $0x88] sm:$0xff] }
 0x398   : > { %4503 = vmatpush.msra.mxu3 %v3318_v17  ;;  %4630 = vmatpush.msra.mxu1 %v2072_v18  ;;  %v2902_v17 = vld [vmem:[%s7687_s8 + $0x3068] sm:$0xff]  ;;  %v1625_v18 = vld [vmem:[%s7687_s8 + $0x880] sm:$0xff] }
 0x399   : > { %4568 = vmatpush.msrb.mxu2 %v2647_v19  ;;  %4611 = vmatpush.msra.mxu0 %v1528_v20  ;;  %v2744_v20 = vld [vmem:[%s7687_s8 + $0x2b78] sm:$0xff] }
 0x39a   : > { %4504 = vmatpush.msra.mxu3 %v3286_v22  ;;  %4631 = vmatpush.msra.mxu1 %v2040_v23  ;;  %v3383_v22 = vld [vmem:[%s7687_s8 + $0x3f70] sm:$0xff]  ;;  %v2137_v23 = vld [vmem:[%s7687_s8 + $0x1880] sm:$0xff] }
 0x39b   : > { %4569 = vmatpush.msrb.mxu2 %v2615_v24  ;;  %4612 = vmatpush.msra.mxu0 %v1496_v25  ;;  %v2712_v25 = vld [vmem:[%s7687_s8 + $0x2a78] sm:$0xff] }
 0x39c   : > { %4505 = vmatpush.msra.mxu3 %v3254_v27  ;;  %4632 = vmatpush.msra.mxu1 %v2008_v28  ;;  %v1593_v27 = vld [vmem:[%s7687_s8 + $0x780] sm:$0xff]  ;;  %v3351_v28 = vld [vmem:[%s7687_s8 + $0x3e70] sm:$0xff] }
 0x39d   : > { %4570 = vmatpush.msrb.mxu2 %v2583_v29  ;;  %4613 = vmatpush.msra.mxu0 %v1464_v30  ;;  %v2105_v29 = vld [vmem:[%s7687_s8 + $0x1780] sm:$0xff]  ;;  %v2680_v30 = vld [vmem:[%s7687_s8 + $0x2978] sm:$0xff] }
 0x39e   : > { %4506 = vmatpush.msra.mxu3 %v3222_v31  ;;  %4633 = vmatpush.msra.mxu1 %v1976_v1  ;;  %v1561_v31 = vld [vmem:[%s7687_s8 + $0x680] sm:$0xff]  ;;  %v3319_v1 = vld [vmem:[%s7687_s8 + $0x3d70] sm:$0xff] }
 0x39f   : > { %4571 = vmatpush.msrb.mxu2 %v2551_v33  ;;  %4614 = vmatpush.msra.mxu0 %v1432_v34  ;;  %v2073_v33 = vld [vmem:[%s7687_s8 + $0x1680] sm:$0xff]  ;;  %v2648_v34 = vld [vmem:[%s7687_s8 + $0x2878] sm:$0xff] }
 0x3a0   : > { %4507 = vmatpush.msra.mxu3 %v3190_v35  ;;  %4634 = vmatpush.msra.mxu1 %v1944_v16  ;;  %v1529_v35 = vld [vmem:[%s7687_s8 + $0x580] sm:$0xff]  ;;  %v3287_v16 = vld [vmem:[%s7687_s8 + $0x3c70] sm:$0xff] }
 0x3a1   : > { %4572 = vmatpush.msrb.mxu2 %v2519_v36  ;;  %4615 = vmatpush.msra.mxu0 %v1400_v2  ;;  %v2041_v36 = vld [vmem:[%s7687_s8 + $0x1580] sm:$0xff]  ;;  %v2616_v2 = vld [vmem:[%s7687_s8 + $0x2778] sm:$0xff] }
 0x3a2   : > { %4508 = vmatpush.msra.mxu3 %v3158_v37  ;;  %4635 = vmatpush.msra.mxu1 %v1912_v39  ;;  %v1497_v37 = vld [vmem:[%s7687_s8 + $0x480] sm:$0xff]  ;;  %v3255_v39 = vld [vmem:[%s7687_s8 + $0x3b70] sm:$0xff] }
 0x3a3   : > { %4573 = vmatpush.msrb.mxu2 %v2487_v41  ;;  %4616 = vmatpush.msra.mxu0 %v1368_v42  ;;  %v2009_v41 = vld [vmem:[%s7687_s8 + $0x1480] sm:$0xff]  ;;  %v2584_v42 = vld [vmem:[%s7687_s8 + $0x2678] sm:$0xff] }
 0x3a4   : > { %4509 = vmatpush.msra.mxu3 %v3126_v21  ;;  %4636 = vmatpush.msra.mxu1 %v1880_v44  ;;  %v1465_v21 = vld [vmem:[%s7687_s8 + $0x380] sm:$0xff]  ;;  %v3223_v44 = vld [vmem:[%s7687_s8 + $0x3a70] sm:$0xff] }
 0x3a5   : > { %4617 = vmatmul.f32.vlgmr.msra.gmra.mxu0 %v8284_v40  ;;  %4637 = vmatmul.f32.vlgmr.msra.gmra.mxu1 %v8288_v43 }
 0x3a6   : > { %4681 = vmatpush.msrb.mxu0 %v1849_v45  ;;  %4701 = vmatpush.msrb.mxu1 %v2361_v46  ;;  %v1977_v45 = vld [vmem:[%s7687_s8 + $0x1380] sm:$0xff]  ;;  %v2552_v46 = vld [vmem:[%s7687_s8 + $0x2578] sm:$0xff] }
 0x3a7   : > { %4510 = vmatpush.msra.mxu3 %v3094_v60  ;;  %4574 = vmatpush.msrb.mxu2 %v2455_v47  ;;  %v1433_v60 = vld [vmem:[%s7687_s8 + $0x280] sm:$0xff]  ;;  %v3191_v47 = vld [vmem:[%s7687_s8 + $0x3970] sm:$0xff] }
 0x3a8   : > { %4682 = vmatpush.msrb.mxu0 %v1817_v26  ;;  %4702 = vmatpush.msrb.mxu1 %v2329_v32  ;;  %v1945_v26 = vld [vmem:[%s7687_s8 + $0x1280] sm:$0xff]  ;;  %v2520_v32 = vld [vmem:[%s7687_s8 + $0x2478] sm:$0xff] }
 0x3a9   : > { %4511 = vmatpush.msra.mxu3 %v3062_v48  ;;  %4575 = vmatpush.msrb.mxu2 %v2423_v49  ;;  %v1401_v48 = vld [vmem:[%s7687_s8 + $0x180] sm:$0xff]  ;;  %v3159_v49 = vld [vmem:[%s7687_s8 + $0x3870] sm:$0xff] }
 0x3aa   : > { %4683 = vmatpush.msrb.mxu0 %v1785_v50  ;;  %4703 = vmatpush.msrb.mxu1 %v2297_v51  ;;  %v1913_v50 = vld [vmem:[%s7687_s8 + $0x1180] sm:$0xff]  ;;  %v2488_v51 = vld [vmem:[%s7687_s8 + $0x2378] sm:$0xff] }
 0x3ab   : > { %4512 = vmatpush.msra.mxu3 %v3030_v3  ;;  %4576 = vmatpush.msrb.mxu2 %v2391_v52  ;;  %v1369_v3 = vld [vmem:[%s7687_s8 + $0x80] sm:$0xff]  ;;  %v3127_v52 = vld [vmem:[%s7687_s8 + $0x3770] sm:$0xff] }
 0x3ac   : > { %4577 = vmatmul.f32.vlgmr.msrb.gmra.mxu2 %v8401_v38  ;;  %4684 = vmatpush.msrb.mxu0 %v1753_v53  ;;  %v1881_v53 = vld [vmem:[%s7687_s8 + $0x1080] sm:$0xff] }
 0x3ad   : > { %4641 = vmatpush.msra.mxu2 %v2872_v57  ;;  %4704 = vmatpush.msrb.mxu1 %v2265_v58  ;;  %v3095_v57 = vld [vmem:[%s7687_s8 + $0x3670] sm:$0xff]  ;;  %v2456_v58 = vld [vmem:[%s7687_s8 + $0x2278] sm:$0xff] }
 0x3ae   : > { %4513 = vmatpush.msra.mxu3 %v2998_v59  ;;  %4685 = vmatpush.msrb.mxu0 %v1721_v61  ;;  %v1818_v59 = vld [vmem:[%s7687_s8 + $0xe88] sm:$0xff] }
 0x3af   : > { %4642 = vmatpush.msra.mxu2 %v2840_v63  ;;  %4705 = vmatpush.msrb.mxu1 %v2233_v0  ;;  %v2330_v61 = vld [vmem:[%s7687_s8 + $0x1e88] sm:$0xff]  ;;  %v2424_v63 = vld [vmem:[%s7687_s8 + $0x2178] sm:$0xff] }
 0x3b0   : > { %4514 = vmatpush.msra.mxu3 %v2966_v5  ;;  %4686 = vmatpush.msrb.mxu0 %v1689_v6  ;;  %v4198_v15 = vpop.f32.mrf.mxu3  ;;  %v1786_v0 = vld [vmem:[%s7687_s8 + $0xd88] sm:$0xff]  ;;  %v3031_v5 = vld [vmem:[%s7687_s8 + $0x3470] sm:$0xff]  ;;  %v2392_v6 = vld [vmem:[%s7687_s8 + $0x2078] sm:$0xff] }
 0x3b1   : > { %4643 = vmatpush.msra.mxu2 %v2808_v7  ;;  %4706 = vmatpush.msrb.mxu1 %v2201_v8  ;;  %v4199_v19 = vadd.f32 %v4198_v15, %v4179_v9  ;;  %v1754_v7 = vld [vmem:[%s7687_s8 + $0xc88] sm:$0xff]  ;;  %v4218_v8 = vpop.f32.mrf.mxu0  ;;  %v4238_v9 = vpop.f32.mrf.mxu1  ;;  %v2841_v15 = vld [vmem:[%s7687_s8 + $0x2e80] sm:$0xff] }
 0x3b2   : > { %4515 = vmatpush.msra.mxu3 %v2934_v10  ;;  %4687 = vmatpush.msrb.mxu0 %v1657_v11  ;;  %v2873_v10 = vld [vmem:[%s7687_s8 + $0x2f80] sm:$0xff]  ;;  %v2266_v11 = vld [vmem:[%s7687_s8 + $0x1c88] sm:$0xff] }
 0x3b3   : > { %4644 = vmatpush.msra.mxu2 %v2776_v12  ;;  %4707 = vmatpush.msrb.mxu1 %v2169_v13  ;;  %v5970_v24 = vadd.f32 %v4199_v19, %v1330_v14  ;;  %v2999_v12 = vld [vmem:[%s7687_s8 + $0x3370] sm:$0xff]  ;;  %v1722_v13 = vld [vmem:[%s7687_s8 + $0xb88] sm:$0xff]  ;;  %v4258_v14 = vpop.f32.mrf.mxu2 }
 0x3b4   : > { %4516 = vmatpush.msra.mxu3 %v2902_v17  ;;  %4688 = vmatpush.msrb.mxu0 %v1625_v18  ;;  %v2234_v17 = vld [vmem:[%s7687_s8 + $0x1b88] sm:$0xff]  ;;  %v4239_v18 = vadd.f32 %v4238_v9, %v4218_v8  ;;  %v2967_v19 = vld [vmem:[%s7687_s8 + $0x3270] sm:$0xff] }
 0x3b5   : > { %4517 = vmatmul.f32.vlgmr.msra.gmra.mxu3 %v8477_v55  ;;  %4645 = vmatpush.msra.mxu2 %v2744_v20  ;;  %6002 = vst [vmem:[#allocation2 + $0x88] sm:$0xff] %v5970_v24  ;;  %v1690_v20 = vld [vmem:[%s7687_s8 + $0xa88] sm:$0xff]  ;;  %v1851_v8 = vld [vmem:[%s7687_s8 + $0xf90] sm:$0xff] }
 0x3b6   : > { %4581 = vmatpush.msrb.mxu3 %v3383_v22  ;;  %4708 = vmatpush.msrb.mxu1 %v2137_v23  ;;  %v2809_v22 = vld [vmem:[%s7687_s8 + $0x2d80] sm:$0xff]  ;;  %v2202_v23 = vld [vmem:[%s7687_s8 + $0x1a88] sm:$0xff]  ;;  %v4259_v24 = vadd.f32 %v4258_v14, %v4239_v18  ;;  %v2363_v9 = vld [vmem:[%s7687_s8 + $0x1f90] sm:$0xff] }
 0x3b7   : > { %4646 = vmatpush.msra.mxu2 %v2712_v25  ;;  %4689 = vmatpush.msrb.mxu0 %v1593_v27  ;;  %v2935_v25 = vld [vmem:[%s7687_s8 + $0x3170] sm:$0xff]  ;;  %v1658_v27 = vld [vmem:[%s7687_s8 + $0x988] sm:$0xff]  ;;  %v3064_v14 = vld [vmem:[%s7687_s8 + $0x3578] sm:$0xff] }
 0x3b8   : > { %4582 = vmatpush.msrb.mxu3 %v3351_v28  ;;  %4709 = vmatpush.msrb.mxu1 %v2105_v29  ;;  %v2777_v28 = vld [vmem:[%s7687_s8 + $0x2c80] sm:$0xff]  ;;  %v2170_v29 = vld [vmem:[%s7687_s8 + $0x1988] sm:$0xff]  ;;  %v2299_v18 = vld [vmem:[%s7687_s8 + $0x1d90] sm:$0xff] }
 0x3b9   : > { %4647 = vmatpush.msra.mxu2 %v2680_v30  ;;  %4690 = vmatpush.msrb.mxu0 %v1561_v31  ;;  %v1331_v30 = vld [vmem:[#allocation2 + $0xe8] sm:$0xff] }
 0x3ba   : > { %4583 = vmatpush.msrb.mxu3 %v3319_v1  ;;  %4710 = vmatpush.msrb.mxu1 %v2073_v33  ;;  %v2903_v1 = vld [vmem:[%s7687_s8 + $0x3070] sm:$0xff]  ;;  %v1626_v33 = vld [vmem:[%s7687_s8 + $0x888] sm:$0xff] }
 0x3bb   : > { %4648 = vmatpush.msra.mxu2 %v2648_v34  ;;  %4691 = vmatpush.msrb.mxu0 %v1529_v35  ;;  %v2745_v35 = vld [vmem:[%s7687_s8 + $0x2b80] sm:$0xff] }
 0x3bc   : > { %4584 = vmatpush.msrb.mxu3 %v3287_v16  ;;  %4711 = vmatpush.msrb.mxu1 %v2041_v36  ;;  %v3384_v16 = vld [vmem:[%s7687_s8 + $0x3f78] sm:$0xff]  ;;  %v2138_v36 = vld [vmem:[%s7687_s8 + $0x1888] sm:$0xff] }
 0x3bd   : > { %4649 = vmatpush.msra.mxu2 %v2616_v2  ;;  %4692 = vmatpush.msrb.mxu0 %v1497_v37  ;;  %v2713_v37 = vld [vmem:[%s7687_s8 + $0x2a80] sm:$0xff] }
 0x3be   : > { %4585 = vmatpush.msrb.mxu3 %v3255_v39  ;;  %4712 = vmatpush.msrb.mxu1 %v2009_v41  ;;  %v1594_v39 = vld [vmem:[%s7687_s8 + $0x788] sm:$0xff]  ;;  %v3352_v41 = vld [vmem:[%s7687_s8 + $0x3e78] sm:$0xff] }
 0x3bf   : > { %4650 = vmatpush.msra.mxu2 %v2584_v42  ;;  %4693 = vmatpush.msrb.mxu0 %v1465_v21  ;;  %v2106_v42 = vld [vmem:[%s7687_s8 + $0x1788] sm:$0xff]  ;;  %v2681_v21 = vld [vmem:[%s7687_s8 + $0x2980] sm:$0xff] }
 0x3c0   : > { %4586 = vmatpush.msrb.mxu3 %v3223_v44  ;;  %4713 = vmatpush.msrb.mxu1 %v1977_v45  ;;  %v1562_v44 = vld [vmem:[%s7687_s8 + $0x688] sm:$0xff]  ;;  %v3320_v45 = vld [vmem:[%s7687_s8 + $0x3d78] sm:$0xff] }
 0x3c1   : > { %4651 = vmatpush.msra.mxu2 %v2552_v46  ;;  %4694 = vmatpush.msrb.mxu0 %v1433_v60  ;;  %v2074_v46 = vld [vmem:[%s7687_s8 + $0x1688] sm:$0xff]  ;;  %v2649_v60 = vld [vmem:[%s7687_s8 + $0x2880] sm:$0xff] }
 0x3c2   : > { %4587 = vmatpush.msrb.mxu3 %v3191_v47  ;;  %4714 = vmatpush.msrb.mxu1 %v1945_v26  ;;  %v1530_v47 = vld [vmem:[%s7687_s8 + $0x588] sm:$0xff]  ;;  %v3288_v26 = vld [vmem:[%s7687_s8 + $0x3c78] sm:$0xff] }
 0x3c3   : > { %4652 = vmatpush.msra.mxu2 %v2520_v32  ;;  %4695 = vmatpush.msrb.mxu0 %v1401_v48  ;;  %v2042_v32 = vld [vmem:[%s7687_s8 + $0x1588] sm:$0xff]  ;;  %v2617_v48 = vld [vmem:[%s7687_s8 + $0x2780] sm:$0xff] }
 0x3c4   : > { %4588 = vmatpush.msrb.mxu3 %v3159_v49  ;;  %4715 = vmatpush.msrb.mxu1 %v1913_v50  ;;  %v1498_v49 = vld [vmem:[%s7687_s8 + $0x488] sm:$0xff]  ;;  %v3256_v50 = vld [vmem:[%s7687_s8 + $0x3b78] sm:$0xff] }
 0x3c5   : > { %4653 = vmatpush.msra.mxu2 %v2488_v51  ;;  %4696 = vmatpush.msrb.mxu0 %v1369_v3  ;;  %v2010_v51 = vld [vmem:[%s7687_s8 + $0x1488] sm:$0xff]  ;;  %v2585_v3 = vld [vmem:[%s7687_s8 + $0x2680] sm:$0xff] }
 0x3c6   : > { %4589 = vmatpush.msrb.mxu3 %v3127_v52  ;;  %4716 = vmatpush.msrb.mxu1 %v1881_v53  ;;  %v1466_v52 = vld [vmem:[%s7687_s8 + $0x388] sm:$0xff]  ;;  %v3224_v53 = vld [vmem:[%s7687_s8 + $0x3a78] sm:$0xff] }
 0x3c7   : > { %4697 = vmatmul.f32.vlgmr.msrb.gmra.mxu0 %v8284_v40  ;;  %4717 = vmatmul.f32.vlgmr.msrb.gmra.mxu1 %v8288_v43 }
 0x3c8   : > { %4761 = vmatpush.msra.mxu0 %v1850_v54  ;;  %4781 = vmatpush.msra.mxu1 %v2362_v56  ;;  %v1978_v54 = vld [vmem:[%s7687_s8 + $0x1388] sm:$0xff]  ;;  %v2553_v56 = vld [vmem:[%s7687_s8 + $0x2580] sm:$0xff] }
 0x3c9   : > { %4590 = vmatpush.msrb.mxu3 %v3095_v57  ;;  %4654 = vmatpush.msra.mxu2 %v2456_v58  ;;  %v1434_v57 = vld [vmem:[%s7687_s8 + $0x288] sm:$0xff]  ;;  %v3192_v58 = vld [vmem:[%s7687_s8 + $0x3978] sm:$0xff] }
 0x3ca   : > { %4762 = vmatpush.msra.mxu0 %v1818_v59  ;;  %4782 = vmatpush.msra.mxu1 %v2330_v61  ;;  %v1946_v59 = vld [vmem:[%s7687_s8 + $0x1288] sm:$0xff]  ;;  %v2521_v61 = vld [vmem:[%s7687_s8 + $0x2480] sm:$0xff] }
 0x3cb   : > { %4591 = vmatpush.msrb.mxu3 %v3063_v62  ;;  %4655 = vmatpush.msra.mxu2 %v2424_v63  ;;  %v1402_v62 = vld [vmem:[%s7687_s8 + $0x188] sm:$0xff]  ;;  %v3160_v63 = vld [vmem:[%s7687_s8 + $0x3878] sm:$0xff] }
 0x3cc   : > { %4763 = vmatpush.msra.mxu0 %v1786_v0  ;;  %4783 = vmatpush.msra.mxu1 %v2298_v4  ;;  %v1914_v0 = vld [vmem:[%s7687_s8 + $0x1188] sm:$0xff]  ;;  %v2489_v4 = vld [vmem:[%s7687_s8 + $0x2380] sm:$0xff] }
 0x3cd   : > { %4592 = vmatpush.msrb.mxu3 %v3031_v5  ;;  %4656 = vmatpush.msra.mxu2 %v2392_v6  ;;  %v1370_v5 = vld [vmem:[%s7687_s8 + $0x88] sm:$0xff]  ;;  %v3128_v6 = vld [vmem:[%s7687_s8 + $0x3778] sm:$0xff] }
 0x3ce   : > { %4657 = vmatmul.f32.vlgmr.msra.gmra.mxu2 %v8401_v38  ;;  %4764 = vmatpush.msra.mxu0 %v1754_v7  ;;  %v1882_v7 = vld [vmem:[%s7687_s8 + $0x1088] sm:$0xff] }
 0x3cf   : > { %4721 = vmatpush.msrb.mxu2 %v2873_v10  ;;  %4784 = vmatpush.msra.mxu1 %v2266_v11  ;;  %v3096_v10 = vld [vmem:[%s7687_s8 + $0x3678] sm:$0xff]  ;;  %v2457_v11 = vld [vmem:[%s7687_s8 + $0x2280] sm:$0xff] }
 0x3d0   : > { %4593 = vmatpush.msrb.mxu3 %v2999_v12  ;;  %4765 = vmatpush.msra.mxu0 %v1722_v13  ;;  %v1819_v12 = vld [vmem:[%s7687_s8 + $0xe90] sm:$0xff] }
 0x3d1   : > { %4722 = vmatpush.msrb.mxu2 %v2841_v15  ;;  %4785 = vmatpush.msra.mxu1 %v2234_v17  ;;  %v2331_v13 = vld [vmem:[%s7687_s8 + $0x1e90] sm:$0xff]  ;;  %v2425_v15 = vld [vmem:[%s7687_s8 + $0x2180] sm:$0xff] }
 0x3d2   : > { %4594 = vmatpush.msrb.mxu3 %v2967_v19  ;;  %4766 = vmatpush.msra.mxu0 %v1690_v20  ;;  %v4278_v31 = vpop.f32.mrf.mxu3  ;;  %v1787_v17 = vld [vmem:[%s7687_s8 + $0xd90] sm:$0xff]  ;;  %v3032_v19 = vld [vmem:[%s7687_s8 + $0x3478] sm:$0xff]  ;;  %v2393_v20 = vld [vmem:[%s7687_s8 + $0x2080] sm:$0xff] }
 0x3d3   : > { %4723 = vmatpush.msrb.mxu2 %v2809_v22  ;;  %4786 = vmatpush.msra.mxu1 %v2202_v23  ;;  %v4279_v34 = vadd.f32 %v4278_v31, %v4259_v24  ;;  %v1755_v22 = vld [vmem:[%s7687_s8 + $0xc90] sm:$0xff]  ;;  %v4298_v23 = vpop.f32.mrf.mxu0  ;;  %v4318_v24 = vpop.f32.mrf.mxu1  ;;  %v2842_v31 = vld [vmem:[%s7687_s8 + $0x2e88] sm:$0xff] }
 0x3d4   : > { %4595 = vmatpush.msrb.mxu3 %v2935_v25  ;;  %4767 = vmatpush.msra.mxu0 %v1658_v27  ;;  %v2874_v25 = vld [vmem:[%s7687_s8 + $0x2f88] sm:$0xff]  ;;  %v2267_v27 = vld [vmem:[%s7687_s8 + $0x1c90] sm:$0xff] }
 0x3d5   : > { %4724 = vmatpush.msrb.mxu2 %v2777_v28  ;;  %4787 = vmatpush.msra.mxu1 %v2170_v29  ;;  %v5971_v2 = vadd.f32 %v4279_v34, %v1331_v30  ;;  %v3000_v28 = vld [vmem:[%s7687_s8 + $0x3378] sm:$0xff]  ;;  %v1723_v29 = vld [vmem:[%s7687_s8 + $0xb90] sm:$0xff]  ;;  %v4338_v30 = vpop.f32.mrf.mxu2 }
 0x3d6   : > { %4596 = vmatpush.msrb.mxu3 %v2903_v1  ;;  %4768 = vmatpush.msra.mxu0 %v1626_v33  ;;  %v2235_v1 = vld [vmem:[%s7687_s8 + $0x1b90] sm:$0xff]  ;;  %v4319_v33 = vadd.f32 %v4318_v24, %v4298_v23  ;;  %v2968_v34 = vld [vmem:[%s7687_s8 + $0x3278] sm:$0xff] }
 0x3d7   : > { %4597 = vmatmul.f32.vlgmr.msrb.gmra.mxu3 %v8477_v55  ;;  %4725 = vmatpush.msrb.mxu2 %v2745_v35  ;;  %6003 = vst [vmem:[#allocation2 + $0xe8] sm:$0xff] %v5971_v2  ;;  %v1691_v35 = vld [vmem:[%s7687_s8 + $0xa90] sm:$0xff]  ;;  %v1852_v23 = vld [vmem:[%s7687_s8 + $0xf98] sm:$0xff] }
 0x3d8   : > { %4661 = vmatpush.msra.mxu3 %v3384_v16  ;;  %4788 = vmatpush.msra.mxu1 %v2138_v36  ;;  %v2810_v16 = vld [vmem:[%s7687_s8 + $0x2d88] sm:$0xff]  ;;  %v2203_v36 = vld [vmem:[%s7687_s8 + $0x1a90] sm:$0xff]  ;;  %v4339_v2 = vadd.f32 %v4338_v30, %v4319_v33  ;;  %v2364_v24 = vld [vmem:[%s7687_s8 + $0x1f98] sm:$0xff] }
 0x3d9   : > { %4726 = vmatpush.msrb.mxu2 %v2713_v37  ;;  %4769 = vmatpush.msra.mxu0 %v1594_v39  ;;  %v2936_v37 = vld [vmem:[%s7687_s8 + $0x3178] sm:$0xff]  ;;  %v1659_v39 = vld [vmem:[%s7687_s8 + $0x990] sm:$0xff]  ;;  %v3065_v30 = vld [vmem:[%s7687_s8 + $0x3580] sm:$0xff] }
 0x3da   : > { %4662 = vmatpush.msra.mxu3 %v3352_v41  ;;  %4789 = vmatpush.msra.mxu1 %v2106_v42  ;;  %v2778_v41 = vld [vmem:[%s7687_s8 + $0x2c88] sm:$0xff]  ;;  %v2171_v42 = vld [vmem:[%s7687_s8 + $0x1990] sm:$0xff]  ;;  %v2300_v33 = vld [vmem:[%s7687_s8 + $0x1d98] sm:$0xff] }
 0x3db   : > { %4727 = vmatpush.msrb.mxu2 %v2681_v21  ;;  %4770 = vmatpush.msra.mxu0 %v1562_v44  ;;  %v1332_v21 = vld [vmem:[#allocation2 + $0xb8] sm:$0xff] }
 0x3dc   : > { %4663 = vmatpush.msra.mxu3 %v3320_v45  ;;  %4790 = vmatpush.msra.mxu1 %v2074_v46  ;;  %v2904_v45 = vld [vmem:[%s7687_s8 + $0x3078] sm:$0xff]  ;;  %v1627_v46 = vld [vmem:[%s7687_s8 + $0x890] sm:$0xff] }
 0x3dd   : > { %4728 = vmatpush.msrb.mxu2 %v2649_v60  ;;  %4771 = vmatpush.msra.mxu0 %v1530_v47  ;;  %v2746_v47 = vld [vmem:[%s7687_s8 + $0x2b88] sm:$0xff] }
 0x3de   : > { %4664 = vmatpush.msra.mxu3 %v3288_v26  ;;  %4791 = vmatpush.msra.mxu1 %v2042_v32  ;;  %v3385_v26 = vld [vmem:[%s7687_s8 + $0x3f80] sm:$0xff]  ;;  %v2139_v32 = vld [vmem:[%s7687_s8 + $0x1890] sm:$0xff] }
 0x3df   : > { %4729 = vmatpush.msrb.mxu2 %v2617_v48  ;;  %4772 = vmatpush.msra.mxu0 %v1498_v49  ;;  %v2714_v49 = vld [vmem:[%s7687_s8 + $0x2a88] sm:$0xff] }
 0x3e0   : > { %4665 = vmatpush.msra.mxu3 %v3256_v50  ;;  %4792 = vmatpush.msra.mxu1 %v2010_v51  ;;  %v1595_v50 = vld [vmem:[%s7687_s8 + $0x790] sm:$0xff]  ;;  %v3353_v51 = vld [vmem:[%s7687_s8 + $0x3e80] sm:$0xff] }
 0x3e1   : > { %4730 = vmatpush.msrb.mxu2 %v2585_v3  ;;  %4773 = vmatpush.msra.mxu0 %v1466_v52  ;;  %v2107_v3 = vld [vmem:[%s7687_s8 + $0x1790] sm:$0xff]  ;;  %v2682_v52 = vld [vmem:[%s7687_s8 + $0x2988] sm:$0xff] }
 0x3e2   : > { %4666 = vmatpush.msra.mxu3 %v3224_v53  ;;  %4793 = vmatpush.msra.mxu1 %v1978_v54  ;;  %v1563_v53 = vld [vmem:[%s7687_s8 + $0x690] sm:$0xff]  ;;  %v3321_v54 = vld [vmem:[%s7687_s8 + $0x3d80] sm:$0xff] }
 0x3e3   : > { %4731 = vmatpush.msrb.mxu2 %v2553_v56  ;;  %4774 = vmatpush.msra.mxu0 %v1434_v57  ;;  %v2075_v56 = vld [vmem:[%s7687_s8 + $0x1690] sm:$0xff]  ;;  %v2650_v57 = vld [vmem:[%s7687_s8 + $0x2888] sm:$0xff] }
 0x3e4   : > { %4667 = vmatpush.msra.mxu3 %v3192_v58  ;;  %4794 = vmatpush.msra.mxu1 %v1946_v59  ;;  %v1531_v58 = vld [vmem:[%s7687_s8 + $0x590] sm:$0xff]  ;;  %v3289_v59 = vld [vmem:[%s7687_s8 + $0x3c80] sm:$0xff] }
 0x3e5   : > { %4732 = vmatpush.msrb.mxu2 %v2521_v61  ;;  %4775 = vmatpush.msra.mxu0 %v1402_v62  ;;  %v2043_v61 = vld [vmem:[%s7687_s8 + $0x1590] sm:$0xff]  ;;  %v2618_v62 = vld [vmem:[%s7687_s8 + $0x2788] sm:$0xff] }
 0x3e6   : > { %4668 = vmatpush.msra.mxu3 %v3160_v63  ;;  %4795 = vmatpush.msra.mxu1 %v1914_v0  ;;  %v1499_v63 = vld [vmem:[%s7687_s8 + $0x490] sm:$0xff]  ;;  %v3257_v0 = vld [vmem:[%s7687_s8 + $0x3b80] sm:$0xff] }
 0x3e7   : > { %4733 = vmatpush.msrb.mxu2 %v2489_v4  ;;  %4776 = vmatpush.msra.mxu0 %v1370_v5  ;;  %v2011_v4 = vld [vmem:[%s7687_s8 + $0x1490] sm:$0xff]  ;;  %v2586_v5 = vld [vmem:[%s7687_s8 + $0x2688] sm:$0xff] }
 0x3e8   : > { %4669 = vmatpush.msra.mxu3 %v3128_v6  ;;  %4796 = vmatpush.msra.mxu1 %v1882_v7  ;;  %v1467_v6 = vld [vmem:[%s7687_s8 + $0x390] sm:$0xff]  ;;  %v3225_v7 = vld [vmem:[%s7687_s8 + $0x3a80] sm:$0xff] }
 0x3e9   : > { %4777 = vmatmul.f32.vlgmr.msra.gmra.mxu0 %v8284_v40  ;;  %4797 = vmatmul.f32.vlgmr.msra.gmra.mxu1 %v8288_v43 }
 0x3ea   : > { %4841 = vmatpush.msrb.mxu0 %v1851_v8  ;;  %4861 = vmatpush.msrb.mxu1 %v2363_v9  ;;  %v1979_v8 = vld [vmem:[%s7687_s8 + $0x1390] sm:$0xff]  ;;  %v2554_v9 = vld [vmem:[%s7687_s8 + $0x2588] sm:$0xff] }
 0x3eb   : > { %4670 = vmatpush.msra.mxu3 %v3096_v10  ;;  %4734 = vmatpush.msrb.mxu2 %v2457_v11  ;;  %v1435_v10 = vld [vmem:[%s7687_s8 + $0x290] sm:$0xff]  ;;  %v3193_v11 = vld [vmem:[%s7687_s8 + $0x3980] sm:$0xff] }
 0x3ec   : > { %4842 = vmatpush.msrb.mxu0 %v1819_v12  ;;  %4862 = vmatpush.msrb.mxu1 %v2331_v13  ;;  %v1947_v12 = vld [vmem:[%s7687_s8 + $0x1290] sm:$0xff]  ;;  %v2522_v13 = vld [vmem:[%s7687_s8 + $0x2488] sm:$0xff] }
 0x3ed   : > { %4671 = vmatpush.msra.mxu3 %v3064_v14  ;;  %4735 = vmatpush.msrb.mxu2 %v2425_v15  ;;  %v1403_v14 = vld [vmem:[%s7687_s8 + $0x190] sm:$0xff]  ;;  %v3161_v15 = vld [vmem:[%s7687_s8 + $0x3880] sm:$0xff] }
 0x3ee   : > { %4843 = vmatpush.msrb.mxu0 %v1787_v17  ;;  %4863 = vmatpush.msrb.mxu1 %v2299_v18  ;;  %v1915_v17 = vld [vmem:[%s7687_s8 + $0x1190] sm:$0xff]  ;;  %v2490_v18 = vld [vmem:[%s7687_s8 + $0x2388] sm:$0xff] }
 0x3ef   : > { %4672 = vmatpush.msra.mxu3 %v3032_v19  ;;  %4736 = vmatpush.msrb.mxu2 %v2393_v20  ;;  %v1371_v19 = vld [vmem:[%s7687_s8 + $0x90] sm:$0xff]  ;;  %v3129_v20 = vld [vmem:[%s7687_s8 + $0x3780] sm:$0xff] }
 0x3f0   : > { %4737 = vmatmul.f32.vlgmr.msrb.gmra.mxu2 %v8401_v38  ;;  %4844 = vmatpush.msrb.mxu0 %v1755_v22  ;;  %v1883_v22 = vld [vmem:[%s7687_s8 + $0x1090] sm:$0xff] }
 0x3f1   : > { %4801 = vmatpush.msra.mxu2 %v2874_v25  ;;  %4864 = vmatpush.msrb.mxu1 %v2267_v27  ;;  %v3097_v25 = vld [vmem:[%s7687_s8 + $0x3680] sm:$0xff]  ;;  %v2458_v27 = vld [vmem:[%s7687_s8 + $0x2288] sm:$0xff] }
 0x3f2   : > { %4673 = vmatpush.msra.mxu3 %v3000_v28  ;;  %4845 = vmatpush.msrb.mxu0 %v1723_v29  ;;  %v1820_v28 = vld [vmem:[%s7687_s8 + $0xe98] sm:$0xff] }
 0x3f3   : > { %4802 = vmatpush.msra.mxu2 %v2842_v31  ;;  %4865 = vmatpush.msrb.mxu1 %v2235_v1  ;;  %v2332_v29 = vld [vmem:[%s7687_s8 + $0x1e98] sm:$0xff]  ;;  %v2426_v31 = vld [vmem:[%s7687_s8 + $0x2188] sm:$0xff] }
 0x3f4   : > { %4674 = vmatpush.msra.mxu3 %v2968_v34  ;;  %4846 = vmatpush.msrb.mxu0 %v1691_v35  ;;  %v4358_v44 = vpop.f32.mrf.mxu3  ;;  %v1788_v1 = vld [vmem:[%s7687_s8 + $0xd98] sm:$0xff]  ;;  %v3033_v34 = vld [vmem:[%s7687_s8 + $0x3480] sm:$0xff]  ;;  %v2394_v35 = vld [vmem:[%s7687_s8 + $0x2088] sm:$0xff] }
 0x3f5   : > { %4803 = vmatpush.msra.mxu2 %v2810_v16  ;;  %4866 = vmatpush.msrb.mxu1 %v2203_v36  ;;  %v4359_v60 = vadd.f32 %v4358_v44, %v4339_v2  ;;  %v1756_v16 = vld [vmem:[%s7687_s8 + $0xc98] sm:$0xff]  ;;  %v4378_v36 = vpop.f32.mrf.mxu0  ;;  %v4398_v2 = vpop.f32.mrf.mxu1  ;;  %v2843_v44 = vld [vmem:[%s7687_s8 + $0x2e90] sm:$0xff] }
 0x3f6   : > { %4675 = vmatpush.msra.mxu3 %v2936_v37  ;;  %4847 = vmatpush.msrb.mxu0 %v1659_v39  ;;  %v2875_v37 = vld [vmem:[%s7687_s8 + $0x2f90] sm:$0xff]  ;;  %v2268_v39 = vld [vmem:[%s7687_s8 + $0x1c98] sm:$0xff] }
 0x3f7   : > { %4804 = vmatpush.msra.mxu2 %v2778_v41  ;;  %4867 = vmatpush.msrb.mxu1 %v2171_v42  ;;  %v5972_v48 = vadd.f32 %v4359_v60, %v1332_v21  ;;  %v3001_v41 = vld [vmem:[%s7687_s8 + $0x3380] sm:$0xff]  ;;  %v1724_v42 = vld [vmem:[%s7687_s8 + $0xb98] sm:$0xff]  ;;  %v4418_v21 = vpop.f32.mrf.mxu2 }
 0x3f8   : > { %4676 = vmatpush.msra.mxu3 %v2904_v45  ;;  %4848 = vmatpush.msrb.mxu0 %v1627_v46  ;;  %v2236_v45 = vld [vmem:[%s7687_s8 + $0x1b98] sm:$0xff]  ;;  %v4399_v46 = vadd.f32 %v4398_v2, %v4378_v36  ;;  %v2969_v60 = vld [vmem:[%s7687_s8 + $0x3280] sm:$0xff] }
 0x3f9   : > { %4677 = vmatmul.f32.vlgmr.msra.gmra.mxu3 %v8477_v55  ;;  %4805 = vmatpush.msra.mxu2 %v2746_v47  ;;  %6004 = vst [vmem:[#allocation2 + $0xb8] sm:$0xff] %v5972_v48  ;;  %v1692_v47 = vld [vmem:[%s7687_s8 + $0xa98] sm:$0xff]  ;;  %v1853_v36 = vld [vmem:[%s7687_s8 + $0xfa0] sm:$0xff] }
 0x3fa   : > { %4741 = vmatpush.msrb.mxu3 %v3385_v26  ;;  %4868 = vmatpush.msrb.mxu1 %v2139_v32  ;;  %v2811_v26 = vld [vmem:[%s7687_s8 + $0x2d90] sm:$0xff]  ;;  %v2204_v32 = vld [vmem:[%s7687_s8 + $0x1a98] sm:$0xff]  ;;  %v4419_v48 = vadd.f32 %v4418_v21, %v4399_v46  ;;  %v2365_v2 = vld [vmem:[%s7687_s8 + $0x1fa0] sm:$0xff] }
 0x3fb   : > { %4806 = vmatpush.msra.mxu2 %v2714_v49  ;;  %4849 = vmatpush.msrb.mxu0 %v1595_v50  ;;  %v2937_v49 = vld [vmem:[%s7687_s8 + $0x3180] sm:$0xff]  ;;  %v1660_v50 = vld [vmem:[%s7687_s8 + $0x998] sm:$0xff]  ;;  %v3066_v21 = vld [vmem:[%s7687_s8 + $0x3588] sm:$0xff] }
 0x3fc   : > { %4742 = vmatpush.msrb.mxu3 %v3353_v51  ;;  %4869 = vmatpush.msrb.mxu1 %v2107_v3  ;;  %v2779_v51 = vld [vmem:[%s7687_s8 + $0x2c90] sm:$0xff]  ;;  %v2172_v3 = vld [vmem:[%s7687_s8 + $0x1998] sm:$0xff]  ;;  %v2301_v46 = vld [vmem:[%s7687_s8 + $0x1da0] sm:$0xff] }
 0x3fd   : > { %4807 = vmatpush.msra.mxu2 %v2682_v52  ;;  %4850 = vmatpush.msrb.mxu0 %v1563_v53  ;;  %v1333_v52 = vld [vmem:[#allocation2 + $0x60] sm:$0xff] }
 0x3fe   : > { %4743 = vmatpush.msrb.mxu3 %v3321_v54  ;;  %4870 = vmatpush.msrb.mxu1 %v2075_v56  ;;  %v2905_v54 = vld [vmem:[%s7687_s8 + $0x3080] sm:$0xff]  ;;  %v1628_v56 = vld [vmem:[%s7687_s8 + $0x898] sm:$0xff] }
 0x3ff   : > { %4808 = vmatpush.msra.mxu2 %v2650_v57  ;;  %4851 = vmatpush.msrb.mxu0 %v1531_v58  ;;  %v2747_v58 = vld [vmem:[%s7687_s8 + $0x2b90] sm:$0xff] }
 0x400   : > { %4744 = vmatpush.msrb.mxu3 %v3289_v59  ;;  %4871 = vmatpush.msrb.mxu1 %v2043_v61  ;;  %v3386_v59 = vld [vmem:[%s7687_s8 + $0x3f88] sm:$0xff]  ;;  %v2140_v61 = vld [vmem:[%s7687_s8 + $0x1898] sm:$0xff] }
 0x401   : > { %4809 = vmatpush.msra.mxu2 %v2618_v62  ;;  %4852 = vmatpush.msrb.mxu0 %v1499_v63  ;;  %v2715_v63 = vld [vmem:[%s7687_s8 + $0x2a90] sm:$0xff] }
 0x402   : > { %4745 = vmatpush.msrb.mxu3 %v3257_v0  ;;  %4872 = vmatpush.msrb.mxu1 %v2011_v4  ;;  %v1596_v0 = vld [vmem:[%s7687_s8 + $0x798] sm:$0xff]  ;;  %v3354_v4 = vld [vmem:[%s7687_s8 + $0x3e88] sm:$0xff] }
 0x403   : > { %4810 = vmatpush.msra.mxu2 %v2586_v5  ;;  %4853 = vmatpush.msrb.mxu0 %v1467_v6  ;;  %v2108_v5 = vld [vmem:[%s7687_s8 + $0x1798] sm:$0xff]  ;;  %v2683_v6 = vld [vmem:[%s7687_s8 + $0x2990] sm:$0xff] }
 0x404   : > { %4746 = vmatpush.msrb.mxu3 %v3225_v7  ;;  %4873 = vmatpush.msrb.mxu1 %v1979_v8  ;;  %v1564_v7 = vld [vmem:[%s7687_s8 + $0x698] sm:$0xff]  ;;  %v3322_v8 = vld [vmem:[%s7687_s8 + $0x3d88] sm:$0xff] }
 0x405   : > { %4811 = vmatpush.msra.mxu2 %v2554_v9  ;;  %4854 = vmatpush.msrb.mxu0 %v1435_v10  ;;  %v2076_v9 = vld [vmem:[%s7687_s8 + $0x1698] sm:$0xff]  ;;  %v2651_v10 = vld [vmem:[%s7687_s8 + $0x2890] sm:$0xff] }
 0x406   : > { %4747 = vmatpush.msrb.mxu3 %v3193_v11  ;;  %4874 = vmatpush.msrb.mxu1 %v1947_v12  ;;  %v1532_v11 = vld [vmem:[%s7687_s8 + $0x598] sm:$0xff]  ;;  %v3290_v12 = vld [vmem:[%s7687_s8 + $0x3c88] sm:$0xff] }
 0x407   : > { %4812 = vmatpush.msra.mxu2 %v2522_v13  ;;  %4855 = vmatpush.msrb.mxu0 %v1403_v14  ;;  %v2044_v13 = vld [vmem:[%s7687_s8 + $0x1598] sm:$0xff]  ;;  %v2619_v14 = vld [vmem:[%s7687_s8 + $0x2790] sm:$0xff] }
 0x408   : > { %4748 = vmatpush.msrb.mxu3 %v3161_v15  ;;  %4875 = vmatpush.msrb.mxu1 %v1915_v17  ;;  %v1500_v15 = vld [vmem:[%s7687_s8 + $0x498] sm:$0xff]  ;;  %v3258_v17 = vld [vmem:[%s7687_s8 + $0x3b88] sm:$0xff] }
 0x409   : > { %4813 = vmatpush.msra.mxu2 %v2490_v18  ;;  %4856 = vmatpush.msrb.mxu0 %v1371_v19  ;;  %v2012_v18 = vld [vmem:[%s7687_s8 + $0x1498] sm:$0xff]  ;;  %v2587_v19 = vld [vmem:[%s7687_s8 + $0x2690] sm:$0xff] }
 0x40a   : > { %4749 = vmatpush.msrb.mxu3 %v3129_v20  ;;  %4876 = vmatpush.msrb.mxu1 %v1883_v22  ;;  %v1468_v20 = vld [vmem:[%s7687_s8 + $0x398] sm:$0xff]  ;;  %v3226_v22 = vld [vmem:[%s7687_s8 + $0x3a88] sm:$0xff] }
 0x40b   : > { %4857 = vmatmul.f32.vlgmr.msrb.gmra.mxu0 %v8284_v40  ;;  %4877 = vmatmul.f32.vlgmr.msrb.gmra.mxu1 %v8288_v43 }
 0x40c   : > { %4921 = vmatpush.msra.mxu0 %v1852_v23  ;;  %4941 = vmatpush.msra.mxu1 %v2364_v24  ;;  %v1980_v23 = vld [vmem:[%s7687_s8 + $0x1398] sm:$0xff]  ;;  %v2555_v24 = vld [vmem:[%s7687_s8 + $0x2590] sm:$0xff] }
 0x40d   : > { %4750 = vmatpush.msrb.mxu3 %v3097_v25  ;;  %4814 = vmatpush.msra.mxu2 %v2458_v27  ;;  %v1436_v25 = vld [vmem:[%s7687_s8 + $0x298] sm:$0xff]  ;;  %v3194_v27 = vld [vmem:[%s7687_s8 + $0x3988] sm:$0xff] }
 0x40e   : > { %4922 = vmatpush.msra.mxu0 %v1820_v28  ;;  %4942 = vmatpush.msra.mxu1 %v2332_v29  ;;  %v1948_v28 = vld [vmem:[%s7687_s8 + $0x1298] sm:$0xff]  ;;  %v2523_v29 = vld [vmem:[%s7687_s8 + $0x2490] sm:$0xff] }
 0x40f   : > { %4751 = vmatpush.msrb.mxu3 %v3065_v30  ;;  %4815 = vmatpush.msra.mxu2 %v2426_v31  ;;  %v1404_v30 = vld [vmem:[%s7687_s8 + $0x198] sm:$0xff]  ;;  %v3162_v31 = vld [vmem:[%s7687_s8 + $0x3888] sm:$0xff] }
 0x410   : > { %4923 = vmatpush.msra.mxu0 %v1788_v1  ;;  %4943 = vmatpush.msra.mxu1 %v2300_v33  ;;  %v1916_v1 = vld [vmem:[%s7687_s8 + $0x1198] sm:$0xff]  ;;  %v2491_v33 = vld [vmem:[%s7687_s8 + $0x2390] sm:$0xff] }
 0x411   : > { %4752 = vmatpush.msrb.mxu3 %v3033_v34  ;;  %4816 = vmatpush.msra.mxu2 %v2394_v35  ;;  %v1372_v34 = vld [vmem:[%s7687_s8 + $0x98] sm:$0xff]  ;;  %v3130_v35 = vld [vmem:[%s7687_s8 + $0x3788] sm:$0xff] }
 0x412   : > { %4817 = vmatmul.f32.vlgmr.msra.gmra.mxu2 %v8401_v38  ;;  %4924 = vmatpush.msra.mxu0 %v1756_v16  ;;  %v1884_v16 = vld [vmem:[%s7687_s8 + $0x1098] sm:$0xff] }
 0x413   : > { %4881 = vmatpush.msrb.mxu2 %v2875_v37  ;;  %4944 = vmatpush.msra.mxu1 %v2268_v39  ;;  %v3098_v37 = vld [vmem:[%s7687_s8 + $0x3688] sm:$0xff]  ;;  %v2459_v39 = vld [vmem:[%s7687_s8 + $0x2290] sm:$0xff] }
 0x414   : > { %4753 = vmatpush.msrb.mxu3 %v3001_v41  ;;  %4925 = vmatpush.msra.mxu0 %v1724_v42  ;;  %v1821_v41 = vld [vmem:[%s7687_s8 + $0xea0] sm:$0xff] }
 0x415   : > { %4882 = vmatpush.msrb.mxu2 %v2843_v44  ;;  %4945 = vmatpush.msra.mxu1 %v2236_v45  ;;  %v2333_v42 = vld [vmem:[%s7687_s8 + $0x1ea0] sm:$0xff]  ;;  %v2427_v44 = vld [vmem:[%s7687_s8 + $0x2190] sm:$0xff] }
 0x416   : > { %4754 = vmatpush.msrb.mxu3 %v2969_v60  ;;  %4926 = vmatpush.msra.mxu0 %v1692_v47  ;;  %v4438_v53 = vpop.f32.mrf.mxu3  ;;  %v1789_v45 = vld [vmem:[%s7687_s8 + $0xda0] sm:$0xff]  ;;  %v3034_v60 = vld [vmem:[%s7687_s8 + $0x3488] sm:$0xff]  ;;  %v2395_v47 = vld [vmem:[%s7687_s8 + $0x2090] sm:$0xff] }
 0x417   : > { %4883 = vmatpush.msrb.mxu2 %v2811_v26  ;;  %4946 = vmatpush.msra.mxu1 %v2204_v32  ;;  %v4439_v57 = vadd.f32 %v4438_v53, %v4419_v48  ;;  %v1757_v26 = vld [vmem:[%s7687_s8 + $0xca0] sm:$0xff]  ;;  %v4458_v32 = vpop.f32.mrf.mxu0  ;;  %v4478_v48 = vpop.f32.mrf.mxu1  ;;  %v2844_v53 = vld [vmem:[%s7687_s8 + $0x2e98] sm:$0xff] }
 0x418   : > { %4755 = vmatpush.msrb.mxu3 %v2937_v49  ;;  %4927 = vmatpush.msra.mxu0 %v1660_v50  ;;  %v2876_v49 = vld [vmem:[%s7687_s8 + $0x2f98] sm:$0xff]  ;;  %v2269_v50 = vld [vmem:[%s7687_s8 + $0x1ca0] sm:$0xff] }
 0x419   : > { %4884 = vmatpush.msrb.mxu2 %v2779_v51  ;;  %4947 = vmatpush.msra.mxu1 %v2172_v3  ;;  %v5973_v62 = vadd.f32 %v4439_v57, %v1333_v52  ;;  %v3002_v51 = vld [vmem:[%s7687_s8 + $0x3388] sm:$0xff]  ;;  %v1725_v3 = vld [vmem:[%s7687_s8 + $0xba0] sm:$0xff]  ;;  %v4498_v52 = vpop.f32.mrf.mxu2 }
 0x41a   : > { %4756 = vmatpush.msrb.mxu3 %v2905_v54  ;;  %4928 = vmatpush.msra.mxu0 %v1628_v56  ;;  %v2237_v54 = vld [vmem:[%s7687_s8 + $0x1ba0] sm:$0xff]  ;;  %v4479_v56 = vadd.f32 %v4478_v48, %v4458_v32  ;;  %v2970_v57 = vld [vmem:[%s7687_s8 + $0x3288] sm:$0xff] }
 0x41b   : > { %4757 = vmatmul.f32.vlgmr.msrb.gmra.mxu3 %v8477_v55  ;;  %4885 = vmatpush.msrb.mxu2 %v2747_v58  ;;  %6005 = vst [vmem:[#allocation2 + $0x60] sm:$0xff] %v5973_v62  ;;  %v1693_v58 = vld [vmem:[%s7687_s8 + $0xaa0] sm:$0xff]  ;;  %v1854_v32 = vld [vmem:[%s7687_s8 + $0xfa8] sm:$0xff] }
 0x41c   : > { %4821 = vmatpush.msra.mxu3 %v3386_v59  ;;  %4948 = vmatpush.msra.mxu1 %v2140_v61  ;;  %v2812_v59 = vld [vmem:[%s7687_s8 + $0x2d98] sm:$0xff]  ;;  %v2205_v61 = vld [vmem:[%s7687_s8 + $0x1aa0] sm:$0xff]  ;;  %v4499_v62 = vadd.f32 %v4498_v52, %v4479_v56  ;;  %v2366_v48 = vld [vmem:[%s7687_s8 + $0x1fa8] sm:$0xff] }
 0x41d   : > { %4886 = vmatpush.msrb.mxu2 %v2715_v63  ;;  %4929 = vmatpush.msra.mxu0 %v1596_v0  ;;  %v2938_v63 = vld [vmem:[%s7687_s8 + $0x3188] sm:$0xff]  ;;  %v1661_v0 = vld [vmem:[%s7687_s8 + $0x9a0] sm:$0xff]  ;;  %v3067_v52 = vld [vmem:[%s7687_s8 + $0x3590] sm:$0xff] }
 0x41e   : > { %4822 = vmatpush.msra.mxu3 %v3354_v4  ;;  %4949 = vmatpush.msra.mxu1 %v2108_v5  ;;  %v2780_v4 = vld [vmem:[%s7687_s8 + $0x2c98] sm:$0xff]  ;;  %v2173_v5 = vld [vmem:[%s7687_s8 + $0x19a0] sm:$0xff]  ;;  %v2302_v56 = vld [vmem:[%s7687_s8 + $0x1da8] sm:$0xff] }
 0x41f   : > { %4887 = vmatpush.msrb.mxu2 %v2683_v6  ;;  %4930 = vmatpush.msra.mxu0 %v1564_v7  ;;  %v1334_v6 = vld [vmem:[#allocation2 + $0xf0] sm:$0xff] }
 0x420   : > { %4823 = vmatpush.msra.mxu3 %v3322_v8  ;;  %4950 = vmatpush.msra.mxu1 %v2076_v9  ;;  %v2906_v8 = vld [vmem:[%s7687_s8 + $0x3088] sm:$0xff]  ;;  %v1629_v9 = vld [vmem:[%s7687_s8 + $0x8a0] sm:$0xff] }
 0x421   : > { %4888 = vmatpush.msrb.mxu2 %v2651_v10  ;;  %4931 = vmatpush.msra.mxu0 %v1532_v11  ;;  %v2748_v11 = vld [vmem:[%s7687_s8 + $0x2b98] sm:$0xff] }
 0x422   : > { %4824 = vmatpush.msra.mxu3 %v3290_v12  ;;  %4951 = vmatpush.msra.mxu1 %v2044_v13  ;;  %v3387_v12 = vld [vmem:[%s7687_s8 + $0x3f90] sm:$0xff]  ;;  %v2141_v13 = vld [vmem:[%s7687_s8 + $0x18a0] sm:$0xff] }
 0x423   : > { %4889 = vmatpush.msrb.mxu2 %v2619_v14  ;;  %4932 = vmatpush.msra.mxu0 %v1500_v15  ;;  %v2716_v15 = vld [vmem:[%s7687_s8 + $0x2a98] sm:$0xff] }
 0x424   : > { %4825 = vmatpush.msra.mxu3 %v3258_v17  ;;  %4952 = vmatpush.msra.mxu1 %v2012_v18  ;;  %v1597_v17 = vld [vmem:[%s7687_s8 + $0x7a0] sm:$0xff]  ;;  %v3355_v18 = vld [vmem:[%s7687_s8 + $0x3e90] sm:$0xff] }
 0x425   : > { %4890 = vmatpush.msrb.mxu2 %v2587_v19  ;;  %4933 = vmatpush.msra.mxu0 %v1468_v20  ;;  %v2109_v19 = vld [vmem:[%s7687_s8 + $0x17a0] sm:$0xff]  ;;  %v2684_v20 = vld [vmem:[%s7687_s8 + $0x2998] sm:$0xff] }
 0x426   : > { %4826 = vmatpush.msra.mxu3 %v3226_v22  ;;  %4953 = vmatpush.msra.mxu1 %v1980_v23  ;;  %v1565_v22 = vld [vmem:[%s7687_s8 + $0x6a0] sm:$0xff]  ;;  %v3323_v23 = vld [vmem:[%s7687_s8 + $0x3d90] sm:$0xff] }
 0x427   : > { %4891 = vmatpush.msrb.mxu2 %v2555_v24  ;;  %4934 = vmatpush.msra.mxu0 %v1436_v25  ;;  %v2077_v24 = vld [vmem:[%s7687_s8 + $0x16a0] sm:$0xff]  ;;  %v2652_v25 = vld [vmem:[%s7687_s8 + $0x2898] sm:$0xff] }
 0x428   : > { %4827 = vmatpush.msra.mxu3 %v3194_v27  ;;  %4954 = vmatpush.msra.mxu1 %v1948_v28  ;;  %v1533_v27 = vld [vmem:[%s7687_s8 + $0x5a0] sm:$0xff]  ;;  %v3291_v28 = vld [vmem:[%s7687_s8 + $0x3c90] sm:$0xff] }
 0x429   : > { %4892 = vmatpush.msrb.mxu2 %v2523_v29  ;;  %4935 = vmatpush.msra.mxu0 %v1404_v30  ;;  %v2045_v29 = vld [vmem:[%s7687_s8 + $0x15a0] sm:$0xff]  ;;  %v2620_v30 = vld [vmem:[%s7687_s8 + $0x2798] sm:$0xff] }
 0x42a   : > { %4828 = vmatpush.msra.mxu3 %v3162_v31  ;;  %4955 = vmatpush.msra.mxu1 %v1916_v1  ;;  %v1501_v31 = vld [vmem:[%s7687_s8 + $0x4a0] sm:$0xff]  ;;  %v3259_v1 = vld [vmem:[%s7687_s8 + $0x3b90] sm:$0xff] }
 0x42b   : > { %4893 = vmatpush.msrb.mxu2 %v2491_v33  ;;  %4936 = vmatpush.msra.mxu0 %v1372_v34  ;;  %v2013_v33 = vld [vmem:[%s7687_s8 + $0x14a0] sm:$0xff]  ;;  %v2588_v34 = vld [vmem:[%s7687_s8 + $0x2698] sm:$0xff] }
 0x42c   : > { %4829 = vmatpush.msra.mxu3 %v3130_v35  ;;  %4956 = vmatpush.msra.mxu1 %v1884_v16  ;;  %v1469_v35 = vld [vmem:[%s7687_s8 + $0x3a0] sm:$0xff]  ;;  %v3227_v16 = vld [vmem:[%s7687_s8 + $0x3a90] sm:$0xff] }
 0x42d   : > { %4937 = vmatmul.f32.vlgmr.msra.gmra.mxu0 %v8284_v40  ;;  %4957 = vmatmul.f32.vlgmr.msra.gmra.mxu1 %v8288_v43 }
 0x42e   : > { %5001 = vmatpush.msrb.mxu0 %v1853_v36  ;;  %5021 = vmatpush.msrb.mxu1 %v2365_v2  ;;  %v1981_v36 = vld [vmem:[%s7687_s8 + $0x13a0] sm:$0xff]  ;;  %v2556_v2 = vld [vmem:[%s7687_s8 + $0x2598] sm:$0xff] }
 0x42f   : > { %4830 = vmatpush.msra.mxu3 %v3098_v37  ;;  %4894 = vmatpush.msrb.mxu2 %v2459_v39  ;;  %v1437_v37 = vld [vmem:[%s7687_s8 + $0x2a0] sm:$0xff]  ;;  %v3195_v39 = vld [vmem:[%s7687_s8 + $0x3990] sm:$0xff] }
 0x430   : > { %5002 = vmatpush.msrb.mxu0 %v1821_v41  ;;  %5022 = vmatpush.msrb.mxu1 %v2333_v42  ;;  %v1949_v41 = vld [vmem:[%s7687_s8 + $0x12a0] sm:$0xff]  ;;  %v2524_v42 = vld [vmem:[%s7687_s8 + $0x2498] sm:$0xff] }
 0x431   : > { %4831 = vmatpush.msra.mxu3 %v3066_v21  ;;  %4895 = vmatpush.msrb.mxu2 %v2427_v44  ;;  %v1405_v21 = vld [vmem:[%s7687_s8 + $0x1a0] sm:$0xff]  ;;  %v3163_v44 = vld [vmem:[%s7687_s8 + $0x3890] sm:$0xff] }
 0x432   : > { %5003 = vmatpush.msrb.mxu0 %v1789_v45  ;;  %5023 = vmatpush.msrb.mxu1 %v2301_v46  ;;  %v1917_v45 = vld [vmem:[%s7687_s8 + $0x11a0] sm:$0xff]  ;;  %v2492_v46 = vld [vmem:[%s7687_s8 + $0x2398] sm:$0xff] }
 0x433   : > { %4832 = vmatpush.msra.mxu3 %v3034_v60  ;;  %4896 = vmatpush.msrb.mxu2 %v2395_v47  ;;  %v1373_v60 = vld [vmem:[%s7687_s8 + $0xa0] sm:$0xff]  ;;  %v3131_v47 = vld [vmem:[%s7687_s8 + $0x3790] sm:$0xff] }
 0x434   : > { %4897 = vmatmul.f32.vlgmr.msrb.gmra.mxu2 %v8401_v38  ;;  %5004 = vmatpush.msrb.mxu0 %v1757_v26  ;;  %v1885_v26 = vld [vmem:[%s7687_s8 + $0x10a0] sm:$0xff] }
 0x435   : > { %4961 = vmatpush.msra.mxu2 %v2876_v49  ;;  %5024 = vmatpush.msrb.mxu1 %v2269_v50  ;;  %v3099_v49 = vld [vmem:[%s7687_s8 + $0x3690] sm:$0xff]  ;;  %v2460_v50 = vld [vmem:[%s7687_s8 + $0x2298] sm:$0xff] }
 0x436   : > { %4833 = vmatpush.msra.mxu3 %v3002_v51  ;;  %5005 = vmatpush.msrb.mxu0 %v1725_v3  ;;  %v1822_v51 = vld [vmem:[%s7687_s8 + $0xea8] sm:$0xff] }
 0x437   : > { %4962 = vmatpush.msra.mxu2 %v2844_v53  ;;  %5025 = vmatpush.msrb.mxu1 %v2237_v54  ;;  %v2334_v3 = vld [vmem:[%s7687_s8 + $0x1ea8] sm:$0xff]  ;;  %v2428_v53 = vld [vmem:[%s7687_s8 + $0x2198] sm:$0xff] }
 0x438   : > { %4834 = vmatpush.msra.mxu3 %v2970_v57  ;;  %5006 = vmatpush.msrb.mxu0 %v1693_v58  ;;  %v4518_v7 = vpop.f32.mrf.mxu3  ;;  %v1790_v54 = vld [vmem:[%s7687_s8 + $0xda8] sm:$0xff]  ;;  %v3035_v57 = vld [vmem:[%s7687_s8 + $0x3490] sm:$0xff]  ;;  %v2396_v58 = vld [vmem:[%s7687_s8 + $0x2098] sm:$0xff] }
 0x439   : > { %4963 = vmatpush.msra.mxu2 %v2812_v59  ;;  %5026 = vmatpush.msrb.mxu1 %v2205_v61  ;;  %v4519_v10 = vadd.f32 %v4518_v7, %v4499_v62  ;;  %v1758_v59 = vld [vmem:[%s7687_s8 + $0xca8] sm:$0xff]  ;;  %v4538_v61 = vpop.f32.mrf.mxu0  ;;  %v4558_v62 = vpop.f32.mrf.mxu1  ;;  %v2845_v7 = vld [vmem:[%s7687_s8 + $0x2ea0] sm:$0xff] }
 0x43a   : > { %4835 = vmatpush.msra.mxu3 %v2938_v63  ;;  %5007 = vmatpush.msrb.mxu0 %v1661_v0  ;;  %v2877_v63 = vld [vmem:[%s7687_s8 + $0x2fa0] sm:$0xff]  ;;  %v2270_v0 = vld [vmem:[%s7687_s8 + $0x1ca8] sm:$0xff] }
 0x43b   : > { %4964 = vmatpush.msra.mxu2 %v2780_v4  ;;  %5027 = vmatpush.msrb.mxu1 %v2173_v5  ;;  %v5974_v14 = vadd.f32 %v4519_v10, %v1334_v6  ;;  %v3003_v4 = vld [vmem:[%s7687_s8 + $0x3390] sm:$0xff]  ;;  %v1726_v5 = vld [vmem:[%s7687_s8 + $0xba8] sm:$0xff]  ;;  %v4578_v6 = vpop.f32.mrf.mxu2 }
 0x43c   : > { %4836 = vmatpush.msra.mxu3 %v2906_v8  ;;  %5008 = vmatpush.msrb.mxu0 %v1629_v9  ;;  %v2238_v8 = vld [vmem:[%s7687_s8 + $0x1ba8] sm:$0xff]  ;;  %v4559_v9 = vadd.f32 %v4558_v62, %v4538_v61  ;;  %v2971_v10 = vld [vmem:[%s7687_s8 + $0x3290] sm:$0xff] }
 0x43d   : > { %4837 = vmatmul.f32.vlgmr.msra.gmra.mxu3 %v8477_v55  ;;  %4965 = vmatpush.msra.mxu2 %v2748_v11  ;;  %6006 = vst [vmem:[#allocation2 + $0xf0] sm:$0xff] %v5974_v14  ;;  %v1694_v11 = vld [vmem:[%s7687_s8 + $0xaa8] sm:$0xff]  ;;  %v1855_v61 = vld [vmem:[%s7687_s8 + $0xfb0] sm:$0xff] }
 0x43e   : > { %4901 = vmatpush.msrb.mxu3 %v3387_v12  ;;  %5028 = vmatpush.msrb.mxu1 %v2141_v13  ;;  %v2813_v12 = vld [vmem:[%s7687_s8 + $0x2da0] sm:$0xff]  ;;  %v2206_v13 = vld [vmem:[%s7687_s8 + $0x1aa8] sm:$0xff]  ;;  %v4579_v14 = vadd.f32 %v4578_v6, %v4559_v9  ;;  %v2367_v62 = vld [vmem:[%s7687_s8 + $0x1fb0] sm:$0xff] }
 0x43f   : > { %4966 = vmatpush.msra.mxu2 %v2716_v15  ;;  %5009 = vmatpush.msrb.mxu0 %v1597_v17  ;;  %v2939_v15 = vld [vmem:[%s7687_s8 + $0x3190] sm:$0xff]  ;;  %v1662_v17 = vld [vmem:[%s7687_s8 + $0x9a8] sm:$0xff]  ;;  %v3068_v6 = vld [vmem:[%s7687_s8 + $0x3598] sm:$0xff] }
 0x440   : > { %4902 = vmatpush.msrb.mxu3 %v3355_v18  ;;  %5029 = vmatpush.msrb.mxu1 %v2109_v19  ;;  %v2781_v18 = vld [vmem:[%s7687_s8 + $0x2ca0] sm:$0xff]  ;;  %v2174_v19 = vld [vmem:[%s7687_s8 + $0x19a8] sm:$0xff]  ;;  %v2303_v9 = vld [vmem:[%s7687_s8 + $0x1db0] sm:$0xff] }
 0x441   : > { %4967 = vmatpush.msra.mxu2 %v2684_v20  ;;  %5010 = vmatpush.msrb.mxu0 %v1565_v22  ;;  %v1335_v20 = vld [vmem:[#allocation2 + $0x8] sm:$0xff] }
 0x442   : > { %4903 = vmatpush.msrb.mxu3 %v3323_v23  ;;  %5030 = vmatpush.msrb.mxu1 %v2077_v24  ;;  %v2907_v23 = vld [vmem:[%s7687_s8 + $0x3090] sm:$0xff]  ;;  %v1630_v24 = vld [vmem:[%s7687_s8 + $0x8a8] sm:$0xff] }
 0x443   : > { %4968 = vmatpush.msra.mxu2 %v2652_v25  ;;  %5011 = vmatpush.msrb.mxu0 %v1533_v27  ;;  %v2749_v27 = vld [vmem:[%s7687_s8 + $0x2ba0] sm:$0xff] }
 0x444   : > { %4904 = vmatpush.msrb.mxu3 %v3291_v28  ;;  %5031 = vmatpush.msrb.mxu1 %v2045_v29  ;;  %v3388_v28 = vld [vmem:[%s7687_s8 + $0x3f98] sm:$0xff]  ;;  %v2142_v29 = vld [vmem:[%s7687_s8 + $0x18a8] sm:$0xff] }
 0x445   : > { %4969 = vmatpush.msra.mxu2 %v2620_v30  ;;  %5012 = vmatpush.msrb.mxu0 %v1501_v31  ;;  %v2717_v31 = vld [vmem:[%s7687_s8 + $0x2aa0] sm:$0xff] }
 0x446   : > { %4905 = vmatpush.msrb.mxu3 %v3259_v1  ;;  %5032 = vmatpush.msrb.mxu1 %v2013_v33  ;;  %v1598_v1 = vld [vmem:[%s7687_s8 + $0x7a8] sm:$0xff]  ;;  %v3356_v33 = vld [vmem:[%s7687_s8 + $0x3e98] sm:$0xff] }
 0x447   : > { %4970 = vmatpush.msra.mxu2 %v2588_v34  ;;  %5013 = vmatpush.msrb.mxu0 %v1469_v35  ;;  %v2110_v34 = vld [vmem:[%s7687_s8 + $0x17a8] sm:$0xff]  ;;  %v2685_v35 = vld [vmem:[%s7687_s8 + $0x29a0] sm:$0xff] }
 0x448   : > { %4906 = vmatpush.msrb.mxu3 %v3227_v16  ;;  %5033 = vmatpush.msrb.mxu1 %v1981_v36  ;;  %v1566_v16 = vld [vmem:[%s7687_s8 + $0x6a8] sm:$0xff]  ;;  %v3324_v36 = vld [vmem:[%s7687_s8 + $0x3d98] sm:$0xff] }
 0x449   : > { %4971 = vmatpush.msra.mxu2 %v2556_v2  ;;  %5014 = vmatpush.msrb.mxu0 %v1437_v37  ;;  %v2078_v2 = vld [vmem:[%s7687_s8 + $0x16a8] sm:$0xff]  ;;  %v2653_v37 = vld [vmem:[%s7687_s8 + $0x28a0] sm:$0xff] }
 0x44a   : > { %4907 = vmatpush.msrb.mxu3 %v3195_v39  ;;  %5034 = vmatpush.msrb.mxu1 %v1949_v41  ;;  %v1534_v39 = vld [vmem:[%s7687_s8 + $0x5a8] sm:$0xff]  ;;  %v3292_v41 = vld [vmem:[%s7687_s8 + $0x3c98] sm:$0xff] }
 0x44b   : > { %4972 = vmatpush.msra.mxu2 %v2524_v42  ;;  %5015 = vmatpush.msrb.mxu0 %v1405_v21  ;;  %v2046_v42 = vld [vmem:[%s7687_s8 + $0x15a8] sm:$0xff]  ;;  %v2621_v21 = vld [vmem:[%s7687_s8 + $0x27a0] sm:$0xff] }
 0x44c   : > { %4908 = vmatpush.msrb.mxu3 %v3163_v44  ;;  %5035 = vmatpush.msrb.mxu1 %v1917_v45  ;;  %v1502_v44 = vld [vmem:[%s7687_s8 + $0x4a8] sm:$0xff]  ;;  %v3260_v45 = vld [vmem:[%s7687_s8 + $0x3b98] sm:$0xff] }
 0x44d   : > { %4973 = vmatpush.msra.mxu2 %v2492_v46  ;;  %5016 = vmatpush.msrb.mxu0 %v1373_v60  ;;  %v2014_v46 = vld [vmem:[%s7687_s8 + $0x14a8] sm:$0xff]  ;;  %v2589_v60 = vld [vmem:[%s7687_s8 + $0x26a0] sm:$0xff] }
 0x44e   : > { %4909 = vmatpush.msrb.mxu3 %v3131_v47  ;;  %5036 = vmatpush.msrb.mxu1 %v1885_v26  ;;  %v1470_v47 = vld [vmem:[%s7687_s8 + $0x3a8] sm:$0xff]  ;;  %v3228_v26 = vld [vmem:[%s7687_s8 + $0x3a98] sm:$0xff] }
 0x44f   : > { %5017 = vmatmul.f32.vlgmr.msrb.gmra.mxu0 %v8284_v40  ;;  %5037 = vmatmul.f32.vlgmr.msrb.gmra.mxu1 %v8288_v43 }
 0x450   : > { %5081 = vmatpush.msra.mxu0 %v1854_v32  ;;  %5101 = vmatpush.msra.mxu1 %v2366_v48  ;;  %v1982_v32 = vld [vmem:[%s7687_s8 + $0x13a8] sm:$0xff]  ;;  %v2557_v48 = vld [vmem:[%s7687_s8 + $0x25a0] sm:$0xff] }
 0x451   : > { %4910 = vmatpush.msrb.mxu3 %v3099_v49  ;;  %4974 = vmatpush.msra.mxu2 %v2460_v50  ;;  %v1438_v49 = vld [vmem:[%s7687_s8 + $0x2a8] sm:$0xff]  ;;  %v3196_v50 = vld [vmem:[%s7687_s8 + $0x3998] sm:$0xff] }
 0x452   : > { %5082 = vmatpush.msra.mxu0 %v1822_v51  ;;  %5102 = vmatpush.msra.mxu1 %v2334_v3  ;;  %v1950_v51 = vld [vmem:[%s7687_s8 + $0x12a8] sm:$0xff]  ;;  %v2525_v3 = vld [vmem:[%s7687_s8 + $0x24a0] sm:$0xff] }
 0x453   : > { %4911 = vmatpush.msrb.mxu3 %v3067_v52  ;;  %4975 = vmatpush.msra.mxu2 %v2428_v53  ;;  %v1406_v52 = vld [vmem:[%s7687_s8 + $0x1a8] sm:$0xff]  ;;  %v3164_v53 = vld [vmem:[%s7687_s8 + $0x3898] sm:$0xff] }
 0x454   : > { %5083 = vmatpush.msra.mxu0 %v1790_v54  ;;  %5103 = vmatpush.msra.mxu1 %v2302_v56  ;;  %v1918_v54 = vld [vmem:[%s7687_s8 + $0x11a8] sm:$0xff]  ;;  %v2493_v56 = vld [vmem:[%s7687_s8 + $0x23a0] sm:$0xff] }
 0x455   : > { %4912 = vmatpush.msrb.mxu3 %v3035_v57  ;;  %4976 = vmatpush.msra.mxu2 %v2396_v58  ;;  %v1374_v57 = vld [vmem:[%s7687_s8 + $0xa8] sm:$0xff]  ;;  %v3132_v58 = vld [vmem:[%s7687_s8 + $0x3798] sm:$0xff] }
 0x456   : > { %4977 = vmatmul.f32.vlgmr.msra.gmra.mxu2 %v8401_v38  ;;  %5084 = vmatpush.msra.mxu0 %v1758_v59  ;;  %v1886_v59 = vld [vmem:[%s7687_s8 + $0x10a8] sm:$0xff] }
 0x457   : > { %5041 = vmatpush.msrb.mxu2 %v2877_v63  ;;  %5104 = vmatpush.msra.mxu1 %v2270_v0  ;;  %v3100_v63 = vld [vmem:[%s7687_s8 + $0x3698] sm:$0xff]  ;;  %v2461_v0 = vld [vmem:[%s7687_s8 + $0x22a0] sm:$0xff] }
 0x458   : > { %4913 = vmatpush.msrb.mxu3 %v3003_v4  ;;  %5085 = vmatpush.msra.mxu0 %v1726_v5  ;;  %v1823_v4 = vld [vmem:[%s7687_s8 + $0xeb0] sm:$0xff] }
 0x459   : > { %5042 = vmatpush.msrb.mxu2 %v2845_v7  ;;  %5105 = vmatpush.msra.mxu1 %v2238_v8  ;;  %v2335_v5 = vld [vmem:[%s7687_s8 + $0x1eb0] sm:$0xff]  ;;  %v2429_v7 = vld [vmem:[%s7687_s8 + $0x21a0] sm:$0xff] }
 0x45a   : > { %4914 = vmatpush.msrb.mxu3 %v2971_v10  ;;  %5086 = vmatpush.msra.mxu0 %v1694_v11  ;;  %v4598_v22 = vpop.f32.mrf.mxu3  ;;  %v1791_v8 = vld [vmem:[%s7687_s8 + $0xdb0] sm:$0xff]  ;;  %v3036_v10 = vld [vmem:[%s7687_s8 + $0x3498] sm:$0xff]  ;;  %v2397_v11 = vld [vmem:[%s7687_s8 + $0x20a0] sm:$0xff] }
 0x45b   : > { %5043 = vmatpush.msrb.mxu2 %v2813_v12  ;;  %5106 = vmatpush.msra.mxu1 %v2206_v13  ;;  %v4599_v25 = vadd.f32 %v4598_v22, %v4579_v14  ;;  %v1759_v12 = vld [vmem:[%s7687_s8 + $0xcb0] sm:$0xff]  ;;  %v4618_v13 = vpop.f32.mrf.mxu0  ;;  %v4638_v14 = vpop.f32.mrf.mxu1  ;;  %v2846_v22 = vld [vmem:[%s7687_s8 + $0x2ea8] sm:$0xff] }
 0x45c   : > { %4915 = vmatpush.msrb.mxu3 %v2939_v15  ;;  %5087 = vmatpush.msra.mxu0 %v1662_v17  ;;  %v2878_v15 = vld [vmem:[%s7687_s8 + $0x2fa8] sm:$0xff]  ;;  %v2271_v17 = vld [vmem:[%s7687_s8 + $0x1cb0] sm:$0xff] }
 0x45d   : > { %5044 = vmatpush.msrb.mxu2 %v2781_v18  ;;  %5107 = vmatpush.msra.mxu1 %v2174_v19  ;;  %v5975_v30 = vadd.f32 %v4599_v25, %v1335_v20  ;;  %v3004_v18 = vld [vmem:[%s7687_s8 + $0x3398] sm:$0xff]  ;;  %v1727_v19 = vld [vmem:[%s7687_s8 + $0xbb0] sm:$0xff]  ;;  %v4658_v20 = vpop.f32.mrf.mxu2 }
 0x45e   : > { %4916 = vmatpush.msrb.mxu3 %v2907_v23  ;;  %5088 = vmatpush.msra.mxu0 %v1630_v24  ;;  %v2239_v23 = vld [vmem:[%s7687_s8 + $0x1bb0] sm:$0xff]  ;;  %v4639_v24 = vadd.f32 %v4638_v14, %v4618_v13  ;;  %v2972_v25 = vld [vmem:[%s7687_s8 + $0x3298] sm:$0xff] }
 0x45f   : > { %4917 = vmatmul.f32.vlgmr.msrb.gmra.mxu3 %v8477_v55  ;;  %5045 = vmatpush.msrb.mxu2 %v2749_v27  ;;  %6007 = vst [vmem:[#allocation2 + $0x8] sm:$0xff] %v5975_v30  ;;  %v1695_v27 = vld [vmem:[%s7687_s8 + $0xab0] sm:$0xff]  ;;  %v1856_v13 = vld [vmem:[%s7687_s8 + $0xfb8] sm:$0xff] }
 0x460   : > { %4981 = vmatpush.msra.mxu3 %v3388_v28  ;;  %5108 = vmatpush.msra.mxu1 %v2142_v29  ;;  %v2814_v28 = vld [vmem:[%s7687_s8 + $0x2da8] sm:$0xff]  ;;  %v2207_v29 = vld [vmem:[%s7687_s8 + $0x1ab0] sm:$0xff]  ;;  %v4659_v30 = vadd.f32 %v4658_v20, %v4639_v24  ;;  %v2368_v14 = vld [vmem:[%s7687_s8 + $0x1fb8] sm:$0xff] }
 0x461   : > { %5046 = vmatpush.msrb.mxu2 %v2717_v31  ;;  %5089 = vmatpush.msra.mxu0 %v1598_v1  ;;  %v2940_v31 = vld [vmem:[%s7687_s8 + $0x3198] sm:$0xff]  ;;  %v1663_v1 = vld [vmem:[%s7687_s8 + $0x9b0] sm:$0xff]  ;;  %v3069_v20 = vld [vmem:[%s7687_s8 + $0x35a0] sm:$0xff] }
 0x462   : > { %4982 = vmatpush.msra.mxu3 %v3356_v33  ;;  %5109 = vmatpush.msra.mxu1 %v2110_v34  ;;  %v2782_v33 = vld [vmem:[%s7687_s8 + $0x2ca8] sm:$0xff]  ;;  %v2175_v34 = vld [vmem:[%s7687_s8 + $0x19b0] sm:$0xff]  ;;  %v2304_v24 = vld [vmem:[%s7687_s8 + $0x1db8] sm:$0xff] }
 0x463   : > { %5047 = vmatpush.msrb.mxu2 %v2685_v35  ;;  %5090 = vmatpush.msra.mxu0 %v1566_v16  ;;  %v1336_v35 = vld [vmem:[#allocation2 + $0x78] sm:$0xff] }
 0x464   : > { %4983 = vmatpush.msra.mxu3 %v3324_v36  ;;  %5110 = vmatpush.msra.mxu1 %v2078_v2  ;;  %v2908_v36 = vld [vmem:[%s7687_s8 + $0x3098] sm:$0xff]  ;;  %v1631_v2 = vld [vmem:[%s7687_s8 + $0x8b0] sm:$0xff] }
 0x465   : > { %5048 = vmatpush.msrb.mxu2 %v2653_v37  ;;  %5091 = vmatpush.msra.mxu0 %v1534_v39  ;;  %v2750_v39 = vld [vmem:[%s7687_s8 + $0x2ba8] sm:$0xff] }
 0x466   : > { %4984 = vmatpush.msra.mxu3 %v3292_v41  ;;  %5111 = vmatpush.msra.mxu1 %v2046_v42  ;;  %v3389_v41 = vld [vmem:[%s7687_s8 + $0x3fa0] sm:$0xff]  ;;  %v2143_v42 = vld [vmem:[%s7687_s8 + $0x18b0] sm:$0xff] }
 0x467   : > { %5049 = vmatpush.msrb.mxu2 %v2621_v21  ;;  %5092 = vmatpush.msra.mxu0 %v1502_v44  ;;  %v2718_v44 = vld [vmem:[%s7687_s8 + $0x2aa8] sm:$0xff] }
 0x468   : > { %4985 = vmatpush.msra.mxu3 %v3260_v45  ;;  %5112 = vmatpush.msra.mxu1 %v2014_v46  ;;  %v1599_v45 = vld [vmem:[%s7687_s8 + $0x7b0] sm:$0xff]  ;;  %v3357_v46 = vld [vmem:[%s7687_s8 + $0x3ea0] sm:$0xff] }
 0x469   : > { %5050 = vmatpush.msrb.mxu2 %v2589_v60  ;;  %5093 = vmatpush.msra.mxu0 %v1470_v47  ;;  %v2111_v60 = vld [vmem:[%s7687_s8 + $0x17b0] sm:$0xff]  ;;  %v2686_v47 = vld [vmem:[%s7687_s8 + $0x29a8] sm:$0xff] }
 0x46a   : > { %4986 = vmatpush.msra.mxu3 %v3228_v26  ;;  %5113 = vmatpush.msra.mxu1 %v1982_v32  ;;  %v1567_v26 = vld [vmem:[%s7687_s8 + $0x6b0] sm:$0xff]  ;;  %v3325_v32 = vld [vmem:[%s7687_s8 + $0x3da0] sm:$0xff] }
 0x46b   : > { %5051 = vmatpush.msrb.mxu2 %v2557_v48  ;;  %5094 = vmatpush.msra.mxu0 %v1438_v49  ;;  %v2079_v48 = vld [vmem:[%s7687_s8 + $0x16b0] sm:$0xff]  ;;  %v2654_v49 = vld [vmem:[%s7687_s8 + $0x28a8] sm:$0xff] }
 0x46c   : > { %4987 = vmatpush.msra.mxu3 %v3196_v50  ;;  %5114 = vmatpush.msra.mxu1 %v1950_v51  ;;  %v1535_v50 = vld [vmem:[%s7687_s8 + $0x5b0] sm:$0xff]  ;;  %v3293_v51 = vld [vmem:[%s7687_s8 + $0x3ca0] sm:$0xff] }
 0x46d   : > { %5052 = vmatpush.msrb.mxu2 %v2525_v3  ;;  %5095 = vmatpush.msra.mxu0 %v1406_v52  ;;  %v2047_v3 = vld [vmem:[%s7687_s8 + $0x15b0] sm:$0xff]  ;;  %v2622_v52 = vld [vmem:[%s7687_s8 + $0x27a8] sm:$0xff] }
 0x46e   : > { %4988 = vmatpush.msra.mxu3 %v3164_v53  ;;  %5115 = vmatpush.msra.mxu1 %v1918_v54  ;;  %v1503_v53 = vld [vmem:[%s7687_s8 + $0x4b0] sm:$0xff]  ;;  %v3261_v54 = vld [vmem:[%s7687_s8 + $0x3ba0] sm:$0xff] }
 0x46f   : > { %5053 = vmatpush.msrb.mxu2 %v2493_v56  ;;  %5096 = vmatpush.msra.mxu0 %v1374_v57  ;;  %v2015_v56 = vld [vmem:[%s7687_s8 + $0x14b0] sm:$0xff]  ;;  %v2590_v57 = vld [vmem:[%s7687_s8 + $0x26a8] sm:$0xff] }
 0x470   : > { %4989 = vmatpush.msra.mxu3 %v3132_v58  ;;  %5116 = vmatpush.msra.mxu1 %v1886_v59  ;;  %v1471_v58 = vld [vmem:[%s7687_s8 + $0x3b0] sm:$0xff]  ;;  %v3229_v59 = vld [vmem:[%s7687_s8 + $0x3aa0] sm:$0xff] }
 0x471   : > { %5097 = vmatmul.f32.vlgmr.msra.gmra.mxu0 %v8284_v40  ;;  %5117 = vmatmul.f32.vlgmr.msra.gmra.mxu1 %v8288_v43 }
 0x472   : > { %5161 = vmatpush.msrb.mxu0 %v1855_v61  ;;  %5181 = vmatpush.msrb.mxu1 %v2367_v62  ;;  %v1983_v61 = vld [vmem:[%s7687_s8 + $0x13b0] sm:$0xff]  ;;  %v2558_v62 = vld [vmem:[%s7687_s8 + $0x25a8] sm:$0xff] }
 0x473   : > { %4990 = vmatpush.msra.mxu3 %v3100_v63  ;;  %5054 = vmatpush.msrb.mxu2 %v2461_v0  ;;  %v1439_v63 = vld [vmem:[%s7687_s8 + $0x2b0] sm:$0xff]  ;;  %v3197_v0 = vld [vmem:[%s7687_s8 + $0x39a0] sm:$0xff] }
 0x474   : > { %5162 = vmatpush.msrb.mxu0 %v1823_v4  ;;  %5182 = vmatpush.msrb.mxu1 %v2335_v5  ;;  %v1951_v4 = vld [vmem:[%s7687_s8 + $0x12b0] sm:$0xff]  ;;  %v2526_v5 = vld [vmem:[%s7687_s8 + $0x24a8] sm:$0xff] }
 0x475   : > { %4991 = vmatpush.msra.mxu3 %v3068_v6  ;;  %5055 = vmatpush.msrb.mxu2 %v2429_v7  ;;  %v1407_v6 = vld [vmem:[%s7687_s8 + $0x1b0] sm:$0xff]  ;;  %v3165_v7 = vld [vmem:[%s7687_s8 + $0x38a0] sm:$0xff] }
 0x476   : > { %5163 = vmatpush.msrb.mxu0 %v1791_v8  ;;  %5183 = vmatpush.msrb.mxu1 %v2303_v9  ;;  %v1919_v8 = vld [vmem:[%s7687_s8 + $0x11b0] sm:$0xff]  ;;  %v2494_v9 = vld [vmem:[%s7687_s8 + $0x23a8] sm:$0xff] }
 0x477   : > { %4992 = vmatpush.msra.mxu3 %v3036_v10  ;;  %5056 = vmatpush.msrb.mxu2 %v2397_v11  ;;  %v1375_v10 = vld [vmem:[%s7687_s8 + $0xb0] sm:$0xff]  ;;  %v3133_v11 = vld [vmem:[%s7687_s8 + $0x37a0] sm:$0xff] }
 0x478   : > { %5057 = vmatmul.f32.vlgmr.msrb.gmra.mxu2 %v8401_v38  ;;  %5164 = vmatpush.msrb.mxu0 %v1759_v12  ;;  %v1887_v12 = vld [vmem:[%s7687_s8 + $0x10b0] sm:$0xff] }
 0x479   : > { %5121 = vmatpush.msra.mxu2 %v2878_v15  ;;  %5184 = vmatpush.msrb.mxu1 %v2271_v17  ;;  %v3101_v15 = vld [vmem:[%s7687_s8 + $0x36a0] sm:$0xff]  ;;  %v2462_v17 = vld [vmem:[%s7687_s8 + $0x22a8] sm:$0xff] }
 0x47a   : > { %4993 = vmatpush.msra.mxu3 %v3004_v18  ;;  %5165 = vmatpush.msrb.mxu0 %v1727_v19  ;;  %v1824_v18 = vld [vmem:[%s7687_s8 + $0xeb8] sm:$0xff] }
 0x47b   : > { %5122 = vmatpush.msra.mxu2 %v2846_v22  ;;  %5185 = vmatpush.msrb.mxu1 %v2239_v23  ;;  %v2336_v19 = vld [vmem:[%s7687_s8 + $0x1eb8] sm:$0xff]  ;;  %v2430_v22 = vld [vmem:[%s7687_s8 + $0x21a8] sm:$0xff] }
 0x47c   : > { %4994 = vmatpush.msra.mxu3 %v2972_v25  ;;  %5166 = vmatpush.msrb.mxu0 %v1695_v27  ;;  %v4678_v16 = vpop.f32.mrf.mxu3  ;;  %v1792_v23 = vld [vmem:[%s7687_s8 + $0xdb8] sm:$0xff]  ;;  %v3037_v25 = vld [vmem:[%s7687_s8 + $0x34a0] sm:$0xff]  ;;  %v2398_v27 = vld [vmem:[%s7687_s8 + $0x20a8] sm:$0xff] }
 0x47d   : > { %5123 = vmatpush.msra.mxu2 %v2814_v28  ;;  %5186 = vmatpush.msrb.mxu1 %v2207_v29  ;;  %v4679_v37 = vadd.f32 %v4678_v16, %v4659_v30  ;;  %v1760_v28 = vld [vmem:[%s7687_s8 + $0xcb8] sm:$0xff]  ;;  %v4698_v29 = vpop.f32.mrf.mxu0  ;;  %v4718_v30 = vpop.f32.mrf.mxu1  ;;  %v2847_v16 = vld [vmem:[%s7687_s8 + $0x2eb0] sm:$0xff] }
 0x47e   : > { %4995 = vmatpush.msra.mxu3 %v2940_v31  ;;  %5167 = vmatpush.msrb.mxu0 %v1663_v1  ;;  %v2879_v31 = vld [vmem:[%s7687_s8 + $0x2fb0] sm:$0xff]  ;;  %v2272_v1 = vld [vmem:[%s7687_s8 + $0x1cb8] sm:$0xff] }
 0x47f   : > { %5124 = vmatpush.msra.mxu2 %v2782_v33  ;;  %5187 = vmatpush.msrb.mxu1 %v2175_v34  ;;  %v5976_v21 = vadd.f32 %v4679_v37, %v1336_v35  ;;  %v3005_v33 = vld [vmem:[%s7687_s8 + $0x33a0] sm:$0xff]  ;;  %v1728_v34 = vld [vmem:[%s7687_s8 + $0xbb8] sm:$0xff]  ;;  %v4738_v35 = vpop.f32.mrf.mxu2 }
 0x480   : > { %4996 = vmatpush.msra.mxu3 %v2908_v36  ;;  %5168 = vmatpush.msrb.mxu0 %v1631_v2  ;;  %v2240_v36 = vld [vmem:[%s7687_s8 + $0x1bb8] sm:$0xff]  ;;  %v4719_v2 = vadd.f32 %v4718_v30, %v4698_v29  ;;  %v2973_v37 = vld [vmem:[%s7687_s8 + $0x32a0] sm:$0xff] }
 0x481   : > { %4997 = vmatmul.f32.vlgmr.msra.gmra.mxu3 %v8477_v55  ;;  %5125 = vmatpush.msra.mxu2 %v2750_v39  ;;  %6008 = vst [vmem:[#allocation2 + $0x78] sm:$0xff] %v5976_v21  ;;  %v1696_v39 = vld [vmem:[%s7687_s8 + $0xab8] sm:$0xff]  ;;  %v1857_v29 = vld [vmem:[%s7687_s8 + $0xfc0] sm:$0xff] }
 0x482   : > { %5061 = vmatpush.msrb.mxu3 %v3389_v41  ;;  %5188 = vmatpush.msrb.mxu1 %v2143_v42  ;;  %v2815_v41 = vld [vmem:[%s7687_s8 + $0x2db0] sm:$0xff]  ;;  %v2208_v42 = vld [vmem:[%s7687_s8 + $0x1ab8] sm:$0xff]  ;;  %v4739_v21 = vadd.f32 %v4738_v35, %v4719_v2  ;;  %v2369_v30 = vld [vmem:[%s7687_s8 + $0x1fc0] sm:$0xff] }
 0x483   : > { %5126 = vmatpush.msra.mxu2 %v2718_v44  ;;  %5169 = vmatpush.msrb.mxu0 %v1599_v45  ;;  %v2941_v44 = vld [vmem:[%s7687_s8 + $0x31a0] sm:$0xff]  ;;  %v1664_v45 = vld [vmem:[%s7687_s8 + $0x9b8] sm:$0xff]  ;;  %v3070_v35 = vld [vmem:[%s7687_s8 + $0x35a8] sm:$0xff] }
 0x484   : > { %5062 = vmatpush.msrb.mxu3 %v3357_v46  ;;  %5189 = vmatpush.msrb.mxu1 %v2111_v60  ;;  %v2783_v46 = vld [vmem:[%s7687_s8 + $0x2cb0] sm:$0xff]  ;;  %v2176_v60 = vld [vmem:[%s7687_s8 + $0x19b8] sm:$0xff]  ;;  %v2305_v2 = vld [vmem:[%s7687_s8 + $0x1dc0] sm:$0xff] }
 0x485   : > { %5127 = vmatpush.msra.mxu2 %v2686_v47  ;;  %5170 = vmatpush.msrb.mxu0 %v1567_v26  ;;  %v1337_v47 = vld [vmem:[#allocation2 + $0x38] sm:$0xff] }
 0x486   : > { %5063 = vmatpush.msrb.mxu3 %v3325_v32  ;;  %5190 = vmatpush.msrb.mxu1 %v2079_v48  ;;  %v2909_v32 = vld [vmem:[%s7687_s8 + $0x30a0] sm:$0xff]  ;;  %v1632_v48 = vld [vmem:[%s7687_s8 + $0x8b8] sm:$0xff] }
 0x487   : > { %5128 = vmatpush.msra.mxu2 %v2654_v49  ;;  %5171 = vmatpush.msrb.mxu0 %v1535_v50  ;;  %v2751_v50 = vld [vmem:[%s7687_s8 + $0x2bb0] sm:$0xff] }
 0x488   : > { %5064 = vmatpush.msrb.mxu3 %v3293_v51  ;;  %5191 = vmatpush.msrb.mxu1 %v2047_v3  ;;  %v3390_v51 = vld [vmem:[%s7687_s8 + $0x3fa8] sm:$0xff]  ;;  %v2144_v3 = vld [vmem:[%s7687_s8 + $0x18b8] sm:$0xff] }
 0x489   : > { %5129 = vmatpush.msra.mxu2 %v2622_v52  ;;  %5172 = vmatpush.msrb.mxu0 %v1503_v53  ;;  %v2719_v53 = vld [vmem:[%s7687_s8 + $0x2ab0] sm:$0xff] }
 0x48a   : > { %5065 = vmatpush.msrb.mxu3 %v3261_v54  ;;  %5192 = vmatpush.msrb.mxu1 %v2015_v56  ;;  %v1600_v54 = vld [vmem:[%s7687_s8 + $0x7b8] sm:$0xff]  ;;  %v3358_v56 = vld [vmem:[%s7687_s8 + $0x3ea8] sm:$0xff] }
 0x48b   : > { %5130 = vmatpush.msra.mxu2 %v2590_v57  ;;  %5173 = vmatpush.msrb.mxu0 %v1471_v58  ;;  %v2112_v57 = vld [vmem:[%s7687_s8 + $0x17b8] sm:$0xff]  ;;  %v2687_v58 = vld [vmem:[%s7687_s8 + $0x29b0] sm:$0xff] }
 0x48c   : > { %5066 = vmatpush.msrb.mxu3 %v3229_v59  ;;  %5193 = vmatpush.msrb.mxu1 %v1983_v61  ;;  %v1568_v59 = vld [vmem:[%s7687_s8 + $0x6b8] sm:$0xff]  ;;  %v3326_v61 = vld [vmem:[%s7687_s8 + $0x3da8] sm:$0xff] }
 0x48d   : > { %5131 = vmatpush.msra.mxu2 %v2558_v62  ;;  %5174 = vmatpush.msrb.mxu0 %v1439_v63  ;;  %v2080_v62 = vld [vmem:[%s7687_s8 + $0x16b8] sm:$0xff]  ;;  %v2655_v63 = vld [vmem:[%s7687_s8 + $0x28b0] sm:$0xff] }
 0x48e   : > { %5067 = vmatpush.msrb.mxu3 %v3197_v0  ;;  %5194 = vmatpush.msrb.mxu1 %v1951_v4  ;;  %v1536_v0 = vld [vmem:[%s7687_s8 + $0x5b8] sm:$0xff]  ;;  %v3294_v4 = vld [vmem:[%s7687_s8 + $0x3ca8] sm:$0xff] }
 0x48f   : > { %5132 = vmatpush.msra.mxu2 %v2526_v5  ;;  %5175 = vmatpush.msrb.mxu0 %v1407_v6  ;;  %v2048_v5 = vld [vmem:[%s7687_s8 + $0x15b8] sm:$0xff]  ;;  %v2623_v6 = vld [vmem:[%s7687_s8 + $0x27b0] sm:$0xff] }
 0x490   : > { %5068 = vmatpush.msrb.mxu3 %v3165_v7  ;;  %5195 = vmatpush.msrb.mxu1 %v1919_v8  ;;  %v1504_v7 = vld [vmem:[%s7687_s8 + $0x4b8] sm:$0xff]  ;;  %v3262_v8 = vld [vmem:[%s7687_s8 + $0x3ba8] sm:$0xff] }
 0x491   : > { %5133 = vmatpush.msra.mxu2 %v2494_v9  ;;  %5176 = vmatpush.msrb.mxu0 %v1375_v10  ;;  %v2016_v9 = vld [vmem:[%s7687_s8 + $0x14b8] sm:$0xff]  ;;  %v2591_v10 = vld [vmem:[%s7687_s8 + $0x26b0] sm:$0xff] }
 0x492   : > { %5069 = vmatpush.msrb.mxu3 %v3133_v11  ;;  %5196 = vmatpush.msrb.mxu1 %v1887_v12  ;;  %v1472_v11 = vld [vmem:[%s7687_s8 + $0x3b8] sm:$0xff]  ;;  %v3230_v12 = vld [vmem:[%s7687_s8 + $0x3aa8] sm:$0xff] }
 0x493   : > { %5177 = vmatmul.f32.vlgmr.msrb.gmra.mxu0 %v8284_v40  ;;  %5197 = vmatmul.f32.vlgmr.msrb.gmra.mxu1 %v8288_v43 }
 0x494   : > { %5241 = vmatpush.msra.mxu0 %v1856_v13  ;;  %5261 = vmatpush.msra.mxu1 %v2368_v14  ;;  %v1984_v13 = vld [vmem:[%s7687_s8 + $0x13b8] sm:$0xff]  ;;  %v2559_v14 = vld [vmem:[%s7687_s8 + $0x25b0] sm:$0xff] }
 0x495   : > { %5070 = vmatpush.msrb.mxu3 %v3101_v15  ;;  %5134 = vmatpush.msra.mxu2 %v2462_v17  ;;  %v1440_v15 = vld [vmem:[%s7687_s8 + $0x2b8] sm:$0xff]  ;;  %v3198_v17 = vld [vmem:[%s7687_s8 + $0x39a8] sm:$0xff] }
 0x496   : > { %5242 = vmatpush.msra.mxu0 %v1824_v18  ;;  %5262 = vmatpush.msra.mxu1 %v2336_v19  ;;  %v1952_v18 = vld [vmem:[%s7687_s8 + $0x12b8] sm:$0xff]  ;;  %v2527_v19 = vld [vmem:[%s7687_s8 + $0x24b0] sm:$0xff] }
 0x497   : > { %5071 = vmatpush.msrb.mxu3 %v3069_v20  ;;  %5135 = vmatpush.msra.mxu2 %v2430_v22  ;;  %v1408_v20 = vld [vmem:[%s7687_s8 + $0x1b8] sm:$0xff]  ;;  %v3166_v22 = vld [vmem:[%s7687_s8 + $0x38a8] sm:$0xff] }
 0x498   : > { %5243 = vmatpush.msra.mxu0 %v1792_v23  ;;  %5263 = vmatpush.msra.mxu1 %v2304_v24  ;;  %v1920_v23 = vld [vmem:[%s7687_s8 + $0x11b8] sm:$0xff]  ;;  %v2495_v24 = vld [vmem:[%s7687_s8 + $0x23b0] sm:$0xff] }
 0x499   : > { %5072 = vmatpush.msrb.mxu3 %v3037_v25  ;;  %5136 = vmatpush.msra.mxu2 %v2398_v27  ;;  %v1376_v25 = vld [vmem:[%s7687_s8 + $0xb8] sm:$0xff]  ;;  %v3134_v27 = vld [vmem:[%s7687_s8 + $0x37a8] sm:$0xff] }
 0x49a   : > { %5137 = vmatmul.f32.vlgmr.msra.gmra.mxu2 %v8401_v38  ;;  %5244 = vmatpush.msra.mxu0 %v1760_v28  ;;  %v1888_v28 = vld [vmem:[%s7687_s8 + $0x10b8] sm:$0xff] }
 0x49b   : > { %5201 = vmatpush.msrb.mxu2 %v2879_v31  ;;  %5264 = vmatpush.msra.mxu1 %v2272_v1  ;;  %v3102_v31 = vld [vmem:[%s7687_s8 + $0x36a8] sm:$0xff]  ;;  %v2463_v1 = vld [vmem:[%s7687_s8 + $0x22b0] sm:$0xff] }
 0x49c   : > { %5073 = vmatpush.msrb.mxu3 %v3005_v33  ;;  %5245 = vmatpush.msra.mxu0 %v1728_v34  ;;  %v1825_v33 = vld [vmem:[%s7687_s8 + $0xec0] sm:$0xff] }
 0x49d   : > { %5202 = vmatpush.msrb.mxu2 %v2847_v16  ;;  %5265 = vmatpush.msra.mxu1 %v2240_v36  ;;  %v2337_v34 = vld [vmem:[%s7687_s8 + $0x1ec0] sm:$0xff]  ;;  %v2431_v16 = vld [vmem:[%s7687_s8 + $0x21b0] sm:$0xff] }
 0x49e   : > { %5074 = vmatpush.msrb.mxu3 %v2973_v37  ;;  %5246 = vmatpush.msra.mxu0 %v1696_v39  ;;  %v4758_v26 = vpop.f32.mrf.mxu3  ;;  %v1793_v36 = vld [vmem:[%s7687_s8 + $0xdc0] sm:$0xff]  ;;  %v3038_v37 = vld [vmem:[%s7687_s8 + $0x34a8] sm:$0xff]  ;;  %v2399_v39 = vld [vmem:[%s7687_s8 + $0x20b0] sm:$0xff] }
 0x49f   : > { %5203 = vmatpush.msrb.mxu2 %v2815_v41  ;;  %5266 = vmatpush.msra.mxu1 %v2208_v42  ;;  %v4759_v49 = vadd.f32 %v4758_v26, %v4739_v21  ;;  %v1761_v41 = vld [vmem:[%s7687_s8 + $0xcc0] sm:$0xff]  ;;  %v4778_v42 = vpop.f32.mrf.mxu0  ;;  %v4798_v21 = vpop.f32.mrf.mxu1  ;;  %v2848_v26 = vld [vmem:[%s7687_s8 + $0x2eb8] sm:$0xff] }
 0x4a0   : > { %5075 = vmatpush.msrb.mxu3 %v2941_v44  ;;  %5247 = vmatpush.msra.mxu0 %v1664_v45  ;;  %v2880_v44 = vld [vmem:[%s7687_s8 + $0x2fb8] sm:$0xff]  ;;  %v2273_v45 = vld [vmem:[%s7687_s8 + $0x1cc0] sm:$0xff] }
 0x4a1   : > { %5204 = vmatpush.msrb.mxu2 %v2783_v46  ;;  %5267 = vmatpush.msra.mxu1 %v2176_v60  ;;  %v5977_v52 = vadd.f32 %v4759_v49, %v1337_v47  ;;  %v3006_v46 = vld [vmem:[%s7687_s8 + $0x33a8] sm:$0xff]  ;;  %v1729_v60 = vld [vmem:[%s7687_s8 + $0xbc0] sm:$0xff]  ;;  %v4818_v47 = vpop.f32.mrf.mxu2 }
 0x4a2   : > { %5076 = vmatpush.msrb.mxu3 %v2909_v32  ;;  %5248 = vmatpush.msra.mxu0 %v1632_v48  ;;  %v2241_v32 = vld [vmem:[%s7687_s8 + $0x1bc0] sm:$0xff]  ;;  %v4799_v48 = vadd.f32 %v4798_v21, %v4778_v42  ;;  %v2974_v49 = vld [vmem:[%s7687_s8 + $0x32a8] sm:$0xff] }
 0x4a3   : > { %5077 = vmatmul.f32.vlgmr.msrb.gmra.mxu3 %v8477_v55  ;;  %5205 = vmatpush.msrb.mxu2 %v2751_v50  ;;  %6009 = vst [vmem:[#allocation2 + $0x38] sm:$0xff] %v5977_v52  ;;  %v1697_v50 = vld [vmem:[%s7687_s8 + $0xac0] sm:$0xff]  ;;  %v1858_v42 = vld [vmem:[%s7687_s8 + $0xfc8] sm:$0xff] }
 0x4a4   : > { %5141 = vmatpush.msra.mxu3 %v3390_v51  ;;  %5268 = vmatpush.msra.mxu1 %v2144_v3  ;;  %v2816_v51 = vld [vmem:[%s7687_s8 + $0x2db8] sm:$0xff]  ;;  %v2209_v3 = vld [vmem:[%s7687_s8 + $0x1ac0] sm:$0xff]  ;;  %v4819_v52 = vadd.f32 %v4818_v47, %v4799_v48  ;;  %v2370_v21 = vld [vmem:[%s7687_s8 + $0x1fc8] sm:$0xff] }
 0x4a5   : > { %5206 = vmatpush.msrb.mxu2 %v2719_v53  ;;  %5249 = vmatpush.msra.mxu0 %v1600_v54  ;;  %v2942_v53 = vld [vmem:[%s7687_s8 + $0x31a8] sm:$0xff]  ;;  %v1665_v54 = vld [vmem:[%s7687_s8 + $0x9c0] sm:$0xff]  ;;  %v3071_v47 = vld [vmem:[%s7687_s8 + $0x35b0] sm:$0xff] }
 0x4a6   : > { %5142 = vmatpush.msra.mxu3 %v3358_v56  ;;  %5269 = vmatpush.msra.mxu1 %v2112_v57  ;;  %v2784_v56 = vld [vmem:[%s7687_s8 + $0x2cb8] sm:$0xff]  ;;  %v2177_v57 = vld [vmem:[%s7687_s8 + $0x19c0] sm:$0xff]  ;;  %v2306_v48 = vld [vmem:[%s7687_s8 + $0x1dc8] sm:$0xff] }
 0x4a7   : > { %5207 = vmatpush.msrb.mxu2 %v2687_v58  ;;  %5250 = vmatpush.msra.mxu0 %v1568_v59  ;;  %v1338_v58 = vld [vmem:[#allocation2 + $0x58] sm:$0xff] }
 0x4a8   : > { %5143 = vmatpush.msra.mxu3 %v3326_v61  ;;  %5270 = vmatpush.msra.mxu1 %v2080_v62  ;;  %v2910_v61 = vld [vmem:[%s7687_s8 + $0x30a8] sm:$0xff]  ;;  %v1633_v62 = vld [vmem:[%s7687_s8 + $0x8c0] sm:$0xff] }
 0x4a9   : > { %5208 = vmatpush.msrb.mxu2 %v2655_v63  ;;  %5251 = vmatpush.msra.mxu0 %v1536_v0  ;;  %v2752_v0 = vld [vmem:[%s7687_s8 + $0x2bb8] sm:$0xff] }
 0x4aa   : > { %5144 = vmatpush.msra.mxu3 %v3294_v4  ;;  %5271 = vmatpush.msra.mxu1 %v2048_v5  ;;  %v3391_v4 = vld [vmem:[%s7687_s8 + $0x3fb0] sm:$0xff]  ;;  %v2145_v5 = vld [vmem:[%s7687_s8 + $0x18c0] sm:$0xff] }
 0x4ab   : > { %5209 = vmatpush.msrb.mxu2 %v2623_v6  ;;  %5252 = vmatpush.msra.mxu0 %v1504_v7  ;;  %v2720_v7 = vld [vmem:[%s7687_s8 + $0x2ab8] sm:$0xff] }
 0x4ac   : > { %5145 = vmatpush.msra.mxu3 %v3262_v8  ;;  %5272 = vmatpush.msra.mxu1 %v2016_v9  ;;  %v1601_v8 = vld [vmem:[%s7687_s8 + $0x7c0] sm:$0xff]  ;;  %v3359_v9 = vld [vmem:[%s7687_s8 + $0x3eb0] sm:$0xff] }
 0x4ad   : > { %5210 = vmatpush.msrb.mxu2 %v2591_v10  ;;  %5253 = vmatpush.msra.mxu0 %v1472_v11  ;;  %v2113_v10 = vld [vmem:[%s7687_s8 + $0x17c0] sm:$0xff]  ;;  %v2688_v11 = vld [vmem:[%s7687_s8 + $0x29b8] sm:$0xff] }
 0x4ae   : > { %5146 = vmatpush.msra.mxu3 %v3230_v12  ;;  %5273 = vmatpush.msra.mxu1 %v1984_v13  ;;  %v1569_v12 = vld [vmem:[%s7687_s8 + $0x6c0] sm:$0xff]  ;;  %v3327_v13 = vld [vmem:[%s7687_s8 + $0x3db0] sm:$0xff] }
 0x4af   : > { %5211 = vmatpush.msrb.mxu2 %v2559_v14  ;;  %5254 = vmatpush.msra.mxu0 %v1440_v15  ;;  %v2081_v14 = vld [vmem:[%s7687_s8 + $0x16c0] sm:$0xff]  ;;  %v2656_v15 = vld [vmem:[%s7687_s8 + $0x28b8] sm:$0xff] }
 0x4b0   : > { %5147 = vmatpush.msra.mxu3 %v3198_v17  ;;  %5274 = vmatpush.msra.mxu1 %v1952_v18  ;;  %v1537_v17 = vld [vmem:[%s7687_s8 + $0x5c0] sm:$0xff]  ;;  %v3295_v18 = vld [vmem:[%s7687_s8 + $0x3cb0] sm:$0xff] }
 0x4b1   : > { %5212 = vmatpush.msrb.mxu2 %v2527_v19  ;;  %5255 = vmatpush.msra.mxu0 %v1408_v20  ;;  %v2049_v19 = vld [vmem:[%s7687_s8 + $0x15c0] sm:$0xff]  ;;  %v2624_v20 = vld [vmem:[%s7687_s8 + $0x27b8] sm:$0xff] }
 0x4b2   : > { %5148 = vmatpush.msra.mxu3 %v3166_v22  ;;  %5275 = vmatpush.msra.mxu1 %v1920_v23  ;;  %v1505_v22 = vld [vmem:[%s7687_s8 + $0x4c0] sm:$0xff]  ;;  %v3263_v23 = vld [vmem:[%s7687_s8 + $0x3bb0] sm:$0xff] }
 0x4b3   : > { %5213 = vmatpush.msrb.mxu2 %v2495_v24  ;;  %5256 = vmatpush.msra.mxu0 %v1376_v25  ;;  %v2017_v24 = vld [vmem:[%s7687_s8 + $0x14c0] sm:$0xff]  ;;  %v2592_v25 = vld [vmem:[%s7687_s8 + $0x26b8] sm:$0xff] }
 0x4b4   : > { %5149 = vmatpush.msra.mxu3 %v3134_v27  ;;  %5276 = vmatpush.msra.mxu1 %v1888_v28  ;;  %v1473_v27 = vld [vmem:[%s7687_s8 + $0x3c0] sm:$0xff]  ;;  %v3231_v28 = vld [vmem:[%s7687_s8 + $0x3ab0] sm:$0xff] }
 0x4b5   : > { %5257 = vmatmul.f32.vlgmr.msra.gmra.mxu0 %v8284_v40  ;;  %5277 = vmatmul.f32.vlgmr.msra.gmra.mxu1 %v8288_v43 }
 0x4b6   : > { %5321 = vmatpush.msrb.mxu0 %v1857_v29  ;;  %5341 = vmatpush.msrb.mxu1 %v2369_v30  ;;  %v1985_v29 = vld [vmem:[%s7687_s8 + $0x13c0] sm:$0xff]  ;;  %v2560_v30 = vld [vmem:[%s7687_s8 + $0x25b8] sm:$0xff] }
 0x4b7   : > { %5150 = vmatpush.msra.mxu3 %v3102_v31  ;;  %5214 = vmatpush.msrb.mxu2 %v2463_v1  ;;  %v1441_v31 = vld [vmem:[%s7687_s8 + $0x2c0] sm:$0xff]  ;;  %v3199_v1 = vld [vmem:[%s7687_s8 + $0x39b0] sm:$0xff] }
 0x4b8   : > { %5322 = vmatpush.msrb.mxu0 %v1825_v33  ;;  %5342 = vmatpush.msrb.mxu1 %v2337_v34  ;;  %v1953_v33 = vld [vmem:[%s7687_s8 + $0x12c0] sm:$0xff]  ;;  %v2528_v34 = vld [vmem:[%s7687_s8 + $0x24b8] sm:$0xff] }
 0x4b9   : > { %5151 = vmatpush.msra.mxu3 %v3070_v35  ;;  %5215 = vmatpush.msrb.mxu2 %v2431_v16  ;;  %v1409_v35 = vld [vmem:[%s7687_s8 + $0x1c0] sm:$0xff]  ;;  %v3167_v16 = vld [vmem:[%s7687_s8 + $0x38b0] sm:$0xff] }
 0x4ba   : > { %5323 = vmatpush.msrb.mxu0 %v1793_v36  ;;  %5343 = vmatpush.msrb.mxu1 %v2305_v2  ;;  %v1921_v36 = vld [vmem:[%s7687_s8 + $0x11c0] sm:$0xff]  ;;  %v2496_v2 = vld [vmem:[%s7687_s8 + $0x23b8] sm:$0xff] }
 0x4bb   : > { %5152 = vmatpush.msra.mxu3 %v3038_v37  ;;  %5216 = vmatpush.msrb.mxu2 %v2399_v39  ;;  %v1377_v37 = vld [vmem:[%s7687_s8 + $0xc0] sm:$0xff]  ;;  %v3135_v39 = vld [vmem:[%s7687_s8 + $0x37b0] sm:$0xff] }
 0x4bc   : > { %5217 = vmatmul.f32.vlgmr.msrb.gmra.mxu2 %v8401_v38  ;;  %5324 = vmatpush.msrb.mxu0 %v1761_v41  ;;  %v1889_v41 = vld [vmem:[%s7687_s8 + $0x10c0] sm:$0xff] }
 0x4bd   : > { %5281 = vmatpush.msra.mxu2 %v2880_v44  ;;  %5344 = vmatpush.msrb.mxu1 %v2273_v45  ;;  %v3103_v44 = vld [vmem:[%s7687_s8 + $0x36b0] sm:$0xff]  ;;  %v2464_v45 = vld [vmem:[%s7687_s8 + $0x22b8] sm:$0xff] }
 0x4be   : > { %5153 = vmatpush.msra.mxu3 %v3006_v46  ;;  %5325 = vmatpush.msrb.mxu0 %v1729_v60  ;;  %v1826_v46 = vld [vmem:[%s7687_s8 + $0xec8] sm:$0xff] }
 0x4bf   : > { %5282 = vmatpush.msra.mxu2 %v2848_v26  ;;  %5345 = vmatpush.msrb.mxu1 %v2241_v32  ;;  %v2338_v60 = vld [vmem:[%s7687_s8 + $0x1ec8] sm:$0xff]  ;;  %v2432_v26 = vld [vmem:[%s7687_s8 + $0x21b8] sm:$0xff] }
 0x4c0   : > { %5154 = vmatpush.msra.mxu3 %v2974_v49  ;;  %5326 = vmatpush.msrb.mxu0 %v1697_v50  ;;  %v4838_v59 = vpop.f32.mrf.mxu3  ;;  %v1794_v32 = vld [vmem:[%s7687_s8 + $0xdc8] sm:$0xff]  ;;  %v3039_v49 = vld [vmem:[%s7687_s8 + $0x34b0] sm:$0xff]  ;;  %v2400_v50 = vld [vmem:[%s7687_s8 + $0x20b8] sm:$0xff] }
 0x4c1   : > { %5283 = vmatpush.msra.mxu2 %v2816_v51  ;;  %5346 = vmatpush.msrb.mxu1 %v2209_v3  ;;  %v4839_v63 = vadd.f32 %v4838_v59, %v4819_v52  ;;  %v1762_v51 = vld [vmem:[%s7687_s8 + $0xcc8] sm:$0xff]  ;;  %v4858_v3 = vpop.f32.mrf.mxu0  ;;  %v4878_v52 = vpop.f32.mrf.mxu1  ;;  %v2849_v59 = vld [vmem:[%s7687_s8 + $0x2ec0] sm:$0xff] }
 0x4c2   : > { %5155 = vmatpush.msra.mxu3 %v2942_v53  ;;  %5327 = vmatpush.msrb.mxu0 %v1665_v54  ;;  %v2881_v53 = vld [vmem:[%s7687_s8 + $0x2fc0] sm:$0xff]  ;;  %v2274_v54 = vld [vmem:[%s7687_s8 + $0x1cc8] sm:$0xff] }
 0x4c3   : > { %5284 = vmatpush.msra.mxu2 %v2784_v56  ;;  %5347 = vmatpush.msrb.mxu1 %v2177_v57  ;;  %v5978_v6 = vadd.f32 %v4839_v63, %v1338_v58  ;;  %v3007_v56 = vld [vmem:[%s7687_s8 + $0x33b0] sm:$0xff]  ;;  %v1730_v57 = vld [vmem:[%s7687_s8 + $0xbc8] sm:$0xff]  ;;  %v4898_v58 = vpop.f32.mrf.mxu2 }
 0x4c4   : > { %5156 = vmatpush.msra.mxu3 %v2910_v61  ;;  %5328 = vmatpush.msrb.mxu0 %v1633_v62  ;;  %v2242_v61 = vld [vmem:[%s7687_s8 + $0x1bc8] sm:$0xff]  ;;  %v4879_v62 = vadd.f32 %v4878_v52, %v4858_v3  ;;  %v2975_v63 = vld [vmem:[%s7687_s8 + $0x32b0] sm:$0xff] }
 0x4c5   : > { %5157 = vmatmul.f32.vlgmr.msra.gmra.mxu3 %v8477_v55  ;;  %5285 = vmatpush.msra.mxu2 %v2752_v0  ;;  %6010 = vst [vmem:[#allocation2 + $0x58] sm:$0xff] %v5978_v6  ;;  %v1698_v0 = vld [vmem:[%s7687_s8 + $0xac8] sm:$0xff]  ;;  %v1859_v3 = vld [vmem:[%s7687_s8 + $0xfd0] sm:$0xff] }
 0x4c6   : > { %5221 = vmatpush.msrb.mxu3 %v3391_v4  ;;  %5348 = vmatpush.msrb.mxu1 %v2145_v5  ;;  %v2817_v4 = vld [vmem:[%s7687_s8 + $0x2dc0] sm:$0xff]  ;;  %v2210_v5 = vld [vmem:[%s7687_s8 + $0x1ac8] sm:$0xff]  ;;  %v4899_v6 = vadd.f32 %v4898_v58, %v4879_v62  ;;  %v2371_v52 = vld [vmem:[%s7687_s8 + $0x1fd0] sm:$0xff] }
 0x4c7   : > { %5286 = vmatpush.msra.mxu2 %v2720_v7  ;;  %5329 = vmatpush.msrb.mxu0 %v1601_v8  ;;  %v2943_v7 = vld [vmem:[%s7687_s8 + $0x31b0] sm:$0xff]  ;;  %v1666_v8 = vld [vmem:[%s7687_s8 + $0x9c8] sm:$0xff]  ;;  %v3072_v58 = vld [vmem:[%s7687_s8 + $0x35b8] sm:$0xff] }
 0x4c8   : > { %5222 = vmatpush.msrb.mxu3 %v3359_v9  ;;  %5349 = vmatpush.msrb.mxu1 %v2113_v10  ;;  %v2785_v9 = vld [vmem:[%s7687_s8 + $0x2cc0] sm:$0xff]  ;;  %v2178_v10 = vld [vmem:[%s7687_s8 + $0x19c8] sm:$0xff]  ;;  %v2307_v62 = vld [vmem:[%s7687_s8 + $0x1dd0] sm:$0xff] }
 0x4c9   : > { %5287 = vmatpush.msra.mxu2 %v2688_v11  ;;  %5330 = vmatpush.msrb.mxu0 %v1569_v12  ;;  %v1339_v11 = vld [vmem:[#allocation2 + $0x40] sm:$0xff] }
 0x4ca   : > { %5223 = vmatpush.msrb.mxu3 %v3327_v13  ;;  %5350 = vmatpush.msrb.mxu1 %v2081_v14  ;;  %v2911_v13 = vld [vmem:[%s7687_s8 + $0x30b0] sm:$0xff]  ;;  %v1634_v14 = vld [vmem:[%s7687_s8 + $0x8c8] sm:$0xff] }
 0x4cb   : > { %5288 = vmatpush.msra.mxu2 %v2656_v15  ;;  %5331 = vmatpush.msrb.mxu0 %v1537_v17  ;;  %v2753_v17 = vld [vmem:[%s7687_s8 + $0x2bc0] sm:$0xff] }
 0x4cc   : > { %5224 = vmatpush.msrb.mxu3 %v3295_v18  ;;  %5351 = vmatpush.msrb.mxu1 %v2049_v19  ;;  %v3392_v18 = vld [vmem:[%s7687_s8 + $0x3fb8] sm:$0xff]  ;;  %v2146_v19 = vld [vmem:[%s7687_s8 + $0x18c8] sm:$0xff] }
 0x4cd   : > { %5289 = vmatpush.msra.mxu2 %v2624_v20  ;;  %5332 = vmatpush.msrb.mxu0 %v1505_v22  ;;  %v2721_v22 = vld [vmem:[%s7687_s8 + $0x2ac0] sm:$0xff] }
 0x4ce   : > { %5225 = vmatpush.msrb.mxu3 %v3263_v23  ;;  %5352 = vmatpush.msrb.mxu1 %v2017_v24  ;;  %v1602_v23 = vld [vmem:[%s7687_s8 + $0x7c8] sm:$0xff]  ;;  %v3360_v24 = vld [vmem:[%s7687_s8 + $0x3eb8] sm:$0xff] }
 0x4cf   : > { %5290 = vmatpush.msra.mxu2 %v2592_v25  ;;  %5333 = vmatpush.msrb.mxu0 %v1473_v27  ;;  %v2114_v25 = vld [vmem:[%s7687_s8 + $0x17c8] sm:$0xff]  ;;  %v2689_v27 = vld [vmem:[%s7687_s8 + $0x29c0] sm:$0xff] }
 0x4d0   : > { %5226 = vmatpush.msrb.mxu3 %v3231_v28  ;;  %5353 = vmatpush.msrb.mxu1 %v1985_v29  ;;  %v1570_v28 = vld [vmem:[%s7687_s8 + $0x6c8] sm:$0xff]  ;;  %v3328_v29 = vld [vmem:[%s7687_s8 + $0x3db8] sm:$0xff] }
 0x4d1   : > { %5291 = vmatpush.msra.mxu2 %v2560_v30  ;;  %5334 = vmatpush.msrb.mxu0 %v1441_v31  ;;  %v2082_v30 = vld [vmem:[%s7687_s8 + $0x16c8] sm:$0xff]  ;;  %v2657_v31 = vld [vmem:[%s7687_s8 + $0x28c0] sm:$0xff] }
 0x4d2   : > { %5227 = vmatpush.msrb.mxu3 %v3199_v1  ;;  %5354 = vmatpush.msrb.mxu1 %v1953_v33  ;;  %v1538_v1 = vld [vmem:[%s7687_s8 + $0x5c8] sm:$0xff]  ;;  %v3296_v33 = vld [vmem:[%s7687_s8 + $0x3cb8] sm:$0xff] }
 0x4d3   : > { %5292 = vmatpush.msra.mxu2 %v2528_v34  ;;  %5335 = vmatpush.msrb.mxu0 %v1409_v35  ;;  %v2050_v34 = vld [vmem:[%s7687_s8 + $0x15c8] sm:$0xff]  ;;  %v2625_v35 = vld [vmem:[%s7687_s8 + $0x27c0] sm:$0xff] }
 0x4d4   : > { %5228 = vmatpush.msrb.mxu3 %v3167_v16  ;;  %5355 = vmatpush.msrb.mxu1 %v1921_v36  ;;  %v1506_v16 = vld [vmem:[%s7687_s8 + $0x4c8] sm:$0xff]  ;;  %v3264_v36 = vld [vmem:[%s7687_s8 + $0x3bb8] sm:$0xff] }
 0x4d5   : > { %5293 = vmatpush.msra.mxu2 %v2496_v2  ;;  %5336 = vmatpush.msrb.mxu0 %v1377_v37  ;;  %v2018_v2 = vld [vmem:[%s7687_s8 + $0x14c8] sm:$0xff]  ;;  %v2593_v37 = vld [vmem:[%s7687_s8 + $0x26c0] sm:$0xff] }
 0x4d6   : > { %5229 = vmatpush.msrb.mxu3 %v3135_v39  ;;  %5356 = vmatpush.msrb.mxu1 %v1889_v41  ;;  %v1474_v39 = vld [vmem:[%s7687_s8 + $0x3c8] sm:$0xff]  ;;  %v3232_v41 = vld [vmem:[%s7687_s8 + $0x3ab8] sm:$0xff] }
 0x4d7   : > { %5337 = vmatmul.f32.vlgmr.msrb.gmra.mxu0 %v8284_v40  ;;  %5357 = vmatmul.f32.vlgmr.msrb.gmra.mxu1 %v8288_v43 }
 0x4d8   : > { %5401 = vmatpush.msra.mxu0 %v1858_v42  ;;  %5421 = vmatpush.msra.mxu1 %v2370_v21  ;;  %v1986_v42 = vld [vmem:[%s7687_s8 + $0x13c8] sm:$0xff]  ;;  %v2561_v21 = vld [vmem:[%s7687_s8 + $0x25c0] sm:$0xff] }
 0x4d9   : > { %5230 = vmatpush.msrb.mxu3 %v3103_v44  ;;  %5294 = vmatpush.msra.mxu2 %v2464_v45  ;;  %v1442_v44 = vld [vmem:[%s7687_s8 + $0x2c8] sm:$0xff]  ;;  %v3200_v45 = vld [vmem:[%s7687_s8 + $0x39b8] sm:$0xff] }
 0x4da   : > { %5402 = vmatpush.msra.mxu0 %v1826_v46  ;;  %5422 = vmatpush.msra.mxu1 %v2338_v60  ;;  %v1954_v46 = vld [vmem:[%s7687_s8 + $0x12c8] sm:$0xff]  ;;  %v2529_v60 = vld [vmem:[%s7687_s8 + $0x24c0] sm:$0xff] }
 0x4db   : > { %5231 = vmatpush.msrb.mxu3 %v3071_v47  ;;  %5295 = vmatpush.msra.mxu2 %v2432_v26  ;;  %v1410_v47 = vld [vmem:[%s7687_s8 + $0x1c8] sm:$0xff]  ;;  %v3168_v26 = vld [vmem:[%s7687_s8 + $0x38b8] sm:$0xff] }
 0x4dc   : > { %5403 = vmatpush.msra.mxu0 %v1794_v32  ;;  %5423 = vmatpush.msra.mxu1 %v2306_v48  ;;  %v1922_v32 = vld [vmem:[%s7687_s8 + $0x11c8] sm:$0xff]  ;;  %v2497_v48 = vld [vmem:[%s7687_s8 + $0x23c0] sm:$0xff] }
 0x4dd   : > { %5232 = vmatpush.msrb.mxu3 %v3039_v49  ;;  %5296 = vmatpush.msra.mxu2 %v2400_v50  ;;  %v1378_v49 = vld [vmem:[%s7687_s8 + $0xc8] sm:$0xff]  ;;  %v3136_v50 = vld [vmem:[%s7687_s8 + $0x37b8] sm:$0xff] }
 0x4de   : > { %5297 = vmatmul.f32.vlgmr.msra.gmra.mxu2 %v8401_v38  ;;  %5404 = vmatpush.msra.mxu0 %v1762_v51  ;;  %v1890_v51 = vld [vmem:[%s7687_s8 + $0x10c8] sm:$0xff] }
 0x4df   : > { %5361 = vmatpush.msrb.mxu2 %v2881_v53  ;;  %5424 = vmatpush.msra.mxu1 %v2274_v54  ;;  %v3104_v53 = vld [vmem:[%s7687_s8 + $0x36b8] sm:$0xff]  ;;  %v2465_v54 = vld [vmem:[%s7687_s8 + $0x22c0] sm:$0xff] }
 0x4e0   : > { %5233 = vmatpush.msrb.mxu3 %v3007_v56  ;;  %5405 = vmatpush.msra.mxu0 %v1730_v57  ;;  %v1827_v56 = vld [vmem:[%s7687_s8 + $0xed0] sm:$0xff] }
 0x4e1   : > { %5362 = vmatpush.msrb.mxu2 %v2849_v59  ;;  %5425 = vmatpush.msra.mxu1 %v2242_v61  ;;  %v2339_v57 = vld [vmem:[%s7687_s8 + $0x1ed0] sm:$0xff]  ;;  %v2433_v59 = vld [vmem:[%s7687_s8 + $0x21c0] sm:$0xff] }
 0x4e2   : > { %5234 = vmatpush.msrb.mxu3 %v2975_v63  ;;  %5406 = vmatpush.msra.mxu0 %v1698_v0  ;;  %v4918_v12 = vpop.f32.mrf.mxu3  ;;  %v1795_v61 = vld [vmem:[%s7687_s8 + $0xdd0] sm:$0xff]  ;;  %v3040_v63 = vld [vmem:[%s7687_s8 + $0x34b8] sm:$0xff]  ;;  %v2401_v0 = vld [vmem:[%s7687_s8 + $0x20c0] sm:$0xff] }
 0x4e3   : > { %5363 = vmatpush.msrb.mxu2 %v2817_v4  ;;  %5426 = vmatpush.msra.mxu1 %v2210_v5  ;;  %v4919_v15 = vadd.f32 %v4918_v12, %v4899_v6  ;;  %v1763_v4 = vld [vmem:[%s7687_s8 + $0xcd0] sm:$0xff]  ;;  %v4938_v5 = vpop.f32.mrf.mxu0  ;;  %v4958_v6 = vpop.f32.mrf.mxu1  ;;  %v2850_v12 = vld [vmem:[%s7687_s8 + $0x2ec8] sm:$0xff] }
 0x4e4   : > { %5235 = vmatpush.msrb.mxu3 %v2943_v7  ;;  %5407 = vmatpush.msra.mxu0 %v1666_v8  ;;  %v2882_v7 = vld [vmem:[%s7687_s8 + $0x2fc8] sm:$0xff]  ;;  %v2275_v8 = vld [vmem:[%s7687_s8 + $0x1cd0] sm:$0xff] }
 0x4e5   : > { %5364 = vmatpush.msrb.mxu2 %v2785_v9  ;;  %5427 = vmatpush.msra.mxu1 %v2178_v10  ;;  %v5979_v20 = vadd.f32 %v4919_v15, %v1339_v11  ;;  %v3008_v9 = vld [vmem:[%s7687_s8 + $0x33b8] sm:$0xff]  ;;  %v1731_v10 = vld [vmem:[%s7687_s8 + $0xbd0] sm:$0xff]  ;;  %v4978_v11 = vpop.f32.mrf.mxu2 }
 0x4e6   : > { %5236 = vmatpush.msrb.mxu3 %v2911_v13  ;;  %5408 = vmatpush.msra.mxu0 %v1634_v14  ;;  %v2243_v13 = vld [vmem:[%s7687_s8 + $0x1bd0] sm:$0xff]  ;;  %v4959_v14 = vadd.f32 %v4958_v6, %v4938_v5  ;;  %v2976_v15 = vld [vmem:[%s7687_s8 + $0x32b8] sm:$0xff] }
 0x4e7   : > { %5237 = vmatmul.f32.vlgmr.msrb.gmra.mxu3 %v8477_v55  ;;  %5365 = vmatpush.msrb.mxu2 %v2753_v17  ;;  %6011 = vst [vmem:[#allocation2 + $0x40] sm:$0xff] %v5979_v20  ;;  %v1699_v17 = vld [vmem:[%s7687_s8 + $0xad0] sm:$0xff]  ;;  %v1860_v5 = vld [vmem:[%s7687_s8 + $0xfd8] sm:$0xff] }
 0x4e8   : > { %5301 = vmatpush.msra.mxu3 %v3392_v18  ;;  %5428 = vmatpush.msra.mxu1 %v2146_v19  ;;  %v2818_v18 = vld [vmem:[%s7687_s8 + $0x2dc8] sm:$0xff]  ;;  %v2211_v19 = vld [vmem:[%s7687_s8 + $0x1ad0] sm:$0xff]  ;;  %v4979_v20 = vadd.f32 %v4978_v11, %v4959_v14  ;;  %v2372_v6 = vld [vmem:[%s7687_s8 + $0x1fd8] sm:$0xff] }
 0x4e9   : > { %5366 = vmatpush.msrb.mxu2 %v2721_v22  ;;  %5409 = vmatpush.msra.mxu0 %v1602_v23  ;;  %v2944_v22 = vld [vmem:[%s7687_s8 + $0x31b8] sm:$0xff]  ;;  %v1667_v23 = vld [vmem:[%s7687_s8 + $0x9d0] sm:$0xff]  ;;  %v3073_v11 = vld [vmem:[%s7687_s8 + $0x35c0] sm:$0xff] }
 0x4ea   : > { %5302 = vmatpush.msra.mxu3 %v3360_v24  ;;  %5429 = vmatpush.msra.mxu1 %v2114_v25  ;;  %v2786_v24 = vld [vmem:[%s7687_s8 + $0x2cc8] sm:$0xff]  ;;  %v2179_v25 = vld [vmem:[%s7687_s8 + $0x19d0] sm:$0xff]  ;;  %v2308_v14 = vld [vmem:[%s7687_s8 + $0x1dd8] sm:$0xff] }
 0x4eb   : > { %5367 = vmatpush.msrb.mxu2 %v2689_v27  ;;  %5410 = vmatpush.msra.mxu0 %v1570_v28  ;;  %v1340_v27 = vld [vmem:[#allocation2 + $0xc8] sm:$0xff] }
 0x4ec   : > { %5303 = vmatpush.msra.mxu3 %v3328_v29  ;;  %5430 = vmatpush.msra.mxu1 %v2082_v30  ;;  %v2912_v29 = vld [vmem:[%s7687_s8 + $0x30b8] sm:$0xff]  ;;  %v1635_v30 = vld [vmem:[%s7687_s8 + $0x8d0] sm:$0xff] }
 0x4ed   : > { %5368 = vmatpush.msrb.mxu2 %v2657_v31  ;;  %5411 = vmatpush.msra.mxu0 %v1538_v1  ;;  %v2754_v1 = vld [vmem:[%s7687_s8 + $0x2bc8] sm:$0xff] }
 0x4ee   : > { %5304 = vmatpush.msra.mxu3 %v3296_v33  ;;  %5431 = vmatpush.msra.mxu1 %v2050_v34  ;;  %v3393_v33 = vld [vmem:[%s7687_s8 + $0x3fc0] sm:$0xff]  ;;  %v2147_v34 = vld [vmem:[%s7687_s8 + $0x18d0] sm:$0xff] }
 0x4ef   : > { %5369 = vmatpush.msrb.mxu2 %v2625_v35  ;;  %5412 = vmatpush.msra.mxu0 %v1506_v16  ;;  %v2722_v16 = vld [vmem:[%s7687_s8 + $0x2ac8] sm:$0xff] }
 0x4f0   : > { %5305 = vmatpush.msra.mxu3 %v3264_v36  ;;  %5432 = vmatpush.msra.mxu1 %v2018_v2  ;;  %v1603_v36 = vld [vmem:[%s7687_s8 + $0x7d0] sm:$0xff]  ;;  %v3361_v2 = vld [vmem:[%s7687_s8 + $0x3ec0] sm:$0xff] }
 0x4f1   : > { %5370 = vmatpush.msrb.mxu2 %v2593_v37  ;;  %5413 = vmatpush.msra.mxu0 %v1474_v39  ;;  %v2115_v37 = vld [vmem:[%s7687_s8 + $0x17d0] sm:$0xff]  ;;  %v2690_v39 = vld [vmem:[%s7687_s8 + $0x29c8] sm:$0xff] }
 0x4f2   : > { %5306 = vmatpush.msra.mxu3 %v3232_v41  ;;  %5433 = vmatpush.msra.mxu1 %v1986_v42  ;;  %v1571_v41 = vld [vmem:[%s7687_s8 + $0x6d0] sm:$0xff]  ;;  %v3329_v42 = vld [vmem:[%s7687_s8 + $0x3dc0] sm:$0xff] }
 0x4f3   : > { %5371 = vmatpush.msrb.mxu2 %v2561_v21  ;;  %5414 = vmatpush.msra.mxu0 %v1442_v44  ;;  %v2083_v21 = vld [vmem:[%s7687_s8 + $0x16d0] sm:$0xff]  ;;  %v2658_v44 = vld [vmem:[%s7687_s8 + $0x28c8] sm:$0xff] }
 0x4f4   : > { %5307 = vmatpush.msra.mxu3 %v3200_v45  ;;  %5434 = vmatpush.msra.mxu1 %v1954_v46  ;;  %v1539_v45 = vld [vmem:[%s7687_s8 + $0x5d0] sm:$0xff]  ;;  %v3297_v46 = vld [vmem:[%s7687_s8 + $0x3cc0] sm:$0xff] }
 0x4f5   : > { %5372 = vmatpush.msrb.mxu2 %v2529_v60  ;;  %5415 = vmatpush.msra.mxu0 %v1410_v47  ;;  %v2051_v60 = vld [vmem:[%s7687_s8 + $0x15d0] sm:$0xff]  ;;  %v2626_v47 = vld [vmem:[%s7687_s8 + $0x27c8] sm:$0xff] }
 0x4f6   : > { %5308 = vmatpush.msra.mxu3 %v3168_v26  ;;  %5435 = vmatpush.msra.mxu1 %v1922_v32  ;;  %v1507_v26 = vld [vmem:[%s7687_s8 + $0x4d0] sm:$0xff]  ;;  %v3265_v32 = vld [vmem:[%s7687_s8 + $0x3bc0] sm:$0xff] }
 0x4f7   : > { %5373 = vmatpush.msrb.mxu2 %v2497_v48  ;;  %5416 = vmatpush.msra.mxu0 %v1378_v49  ;;  %v2019_v48 = vld [vmem:[%s7687_s8 + $0x14d0] sm:$0xff]  ;;  %v2594_v49 = vld [vmem:[%s7687_s8 + $0x26c8] sm:$0xff] }
 0x4f8   : > { %5309 = vmatpush.msra.mxu3 %v3136_v50  ;;  %5436 = vmatpush.msra.mxu1 %v1890_v51  ;;  %v1475_v50 = vld [vmem:[%s7687_s8 + $0x3d0] sm:$0xff]  ;;  %v3233_v51 = vld [vmem:[%s7687_s8 + $0x3ac0] sm:$0xff] }
 0x4f9   : > { %5417 = vmatmul.f32.vlgmr.msra.gmra.mxu0 %v8284_v40  ;;  %5437 = vmatmul.f32.vlgmr.msra.gmra.mxu1 %v8288_v43 }
 0x4fa   : > { %5481 = vmatpush.msrb.mxu0 %v1859_v3  ;;  %5501 = vmatpush.msrb.mxu1 %v2371_v52  ;;  %v1987_v3 = vld [vmem:[%s7687_s8 + $0x13d0] sm:$0xff]  ;;  %v2562_v52 = vld [vmem:[%s7687_s8 + $0x25c8] sm:$0xff] }
 0x4fb   : > { %5310 = vmatpush.msra.mxu3 %v3104_v53  ;;  %5374 = vmatpush.msrb.mxu2 %v2465_v54  ;;  %v1443_v53 = vld [vmem:[%s7687_s8 + $0x2d0] sm:$0xff]  ;;  %v3201_v54 = vld [vmem:[%s7687_s8 + $0x39c0] sm:$0xff] }
 0x4fc   : > { %5482 = vmatpush.msrb.mxu0 %v1827_v56  ;;  %5502 = vmatpush.msrb.mxu1 %v2339_v57  ;;  %v1955_v56 = vld [vmem:[%s7687_s8 + $0x12d0] sm:$0xff]  ;;  %v2530_v57 = vld [vmem:[%s7687_s8 + $0x24c8] sm:$0xff] }
 0x4fd   : > { %5311 = vmatpush.msra.mxu3 %v3072_v58  ;;  %5375 = vmatpush.msrb.mxu2 %v2433_v59  ;;  %v1411_v58 = vld [vmem:[%s7687_s8 + $0x1d0] sm:$0xff]  ;;  %v3169_v59 = vld [vmem:[%s7687_s8 + $0x38c0] sm:$0xff] }
 0x4fe   : > { %5483 = vmatpush.msrb.mxu0 %v1795_v61  ;;  %5503 = vmatpush.msrb.mxu1 %v2307_v62  ;;  %v1923_v61 = vld [vmem:[%s7687_s8 + $0x11d0] sm:$0xff]  ;;  %v2498_v62 = vld [vmem:[%s7687_s8 + $0x23c8] sm:$0xff] }
 0x4ff   : > { %5312 = vmatpush.msra.mxu3 %v3040_v63  ;;  %5376 = vmatpush.msrb.mxu2 %v2401_v0  ;;  %v1379_v63 = vld [vmem:[%s7687_s8 + $0xd0] sm:$0xff]  ;;  %v3137_v0 = vld [vmem:[%s7687_s8 + $0x37c0] sm:$0xff] }
 0x500   : > { %5377 = vmatmul.f32.vlgmr.msrb.gmra.mxu2 %v8401_v38  ;;  %5484 = vmatpush.msrb.mxu0 %v1763_v4  ;;  %v1891_v4 = vld [vmem:[%s7687_s8 + $0x10d0] sm:$0xff] }
 0x501   : > { %5441 = vmatpush.msra.mxu2 %v2882_v7  ;;  %5504 = vmatpush.msrb.mxu1 %v2275_v8  ;;  %v3105_v7 = vld [vmem:[%s7687_s8 + $0x36c0] sm:$0xff]  ;;  %v2466_v8 = vld [vmem:[%s7687_s8 + $0x22c8] sm:$0xff] }
 0x502   : > { %5313 = vmatpush.msra.mxu3 %v3008_v9  ;;  %5485 = vmatpush.msrb.mxu0 %v1731_v10  ;;  %v1828_v9 = vld [vmem:[%s7687_s8 + $0xed8] sm:$0xff] }
 0x503   : > { %5442 = vmatpush.msra.mxu2 %v2850_v12  ;;  %5505 = vmatpush.msrb.mxu1 %v2243_v13  ;;  %v2340_v10 = vld [vmem:[%s7687_s8 + $0x1ed8] sm:$0xff]  ;;  %v2434_v12 = vld [vmem:[%s7687_s8 + $0x21c8] sm:$0xff] }
 0x504   : > { %5314 = vmatpush.msra.mxu3 %v2976_v15  ;;  %5486 = vmatpush.msrb.mxu0 %v1699_v17  ;;  %v4998_v28 = vpop.f32.mrf.mxu3  ;;  %v1796_v13 = vld [vmem:[%s7687_s8 + $0xdd8] sm:$0xff]  ;;  %v3041_v15 = vld [vmem:[%s7687_s8 + $0x34c0] sm:$0xff]  ;;  %v2402_v17 = vld [vmem:[%s7687_s8 + $0x20c8] sm:$0xff] }
 0x505   : > { %5443 = vmatpush.msra.mxu2 %v2818_v18  ;;  %5506 = vmatpush.msrb.mxu1 %v2211_v19  ;;  %v4999_v31 = vadd.f32 %v4998_v28, %v4979_v20  ;;  %v1764_v18 = vld [vmem:[%s7687_s8 + $0xcd8] sm:$0xff]  ;;  %v5018_v19 = vpop.f32.mrf.mxu0  ;;  %v5038_v20 = vpop.f32.mrf.mxu1  ;;  %v2851_v28 = vld [vmem:[%s7687_s8 + $0x2ed0] sm:$0xff] }
 0x506   : > { %5315 = vmatpush.msra.mxu3 %v2944_v22  ;;  %5487 = vmatpush.msrb.mxu0 %v1667_v23  ;;  %v2883_v22 = vld [vmem:[%s7687_s8 + $0x2fd0] sm:$0xff]  ;;  %v2276_v23 = vld [vmem:[%s7687_s8 + $0x1cd8] sm:$0xff] }
 0x507   : > { %5444 = vmatpush.msra.mxu2 %v2786_v24  ;;  %5507 = vmatpush.msrb.mxu1 %v2179_v25  ;;  %v5980_v35 = vadd.f32 %v4999_v31, %v1340_v27  ;;  %v3009_v24 = vld [vmem:[%s7687_s8 + $0x33c0] sm:$0xff]  ;;  %v1732_v25 = vld [vmem:[%s7687_s8 + $0xbd8] sm:$0xff]  ;;  %v5058_v27 = vpop.f32.mrf.mxu2 }
 0x508   : > { %5316 = vmatpush.msra.mxu3 %v2912_v29  ;;  %5488 = vmatpush.msrb.mxu0 %v1635_v30  ;;  %v2244_v29 = vld [vmem:[%s7687_s8 + $0x1bd8] sm:$0xff]  ;;  %v5039_v30 = vadd.f32 %v5038_v20, %v5018_v19  ;;  %v2977_v31 = vld [vmem:[%s7687_s8 + $0x32c0] sm:$0xff] }
 0x509   : > { %5317 = vmatmul.f32.vlgmr.msra.gmra.mxu3 %v8477_v55  ;;  %5445 = vmatpush.msra.mxu2 %v2754_v1  ;;  %6012 = vst [vmem:[#allocation2 + $0xc8] sm:$0xff] %v5980_v35  ;;  %v1700_v1 = vld [vmem:[%s7687_s8 + $0xad8] sm:$0xff]  ;;  %v1861_v19 = vld [vmem:[%s7687_s8 + $0xfe0] sm:$0xff] }
 0x50a   : > { %5381 = vmatpush.msrb.mxu3 %v3393_v33  ;;  %5508 = vmatpush.msrb.mxu1 %v2147_v34  ;;  %v2819_v33 = vld [vmem:[%s7687_s8 + $0x2dd0] sm:$0xff]  ;;  %v2212_v34 = vld [vmem:[%s7687_s8 + $0x1ad8] sm:$0xff]  ;;  %v5059_v35 = vadd.f32 %v5058_v27, %v5039_v30  ;;  %v2373_v20 = vld [vmem:[%s7687_s8 + $0x1fe0] sm:$0xff] }
 0x50b   : > { %5446 = vmatpush.msra.mxu2 %v2722_v16  ;;  %5489 = vmatpush.msrb.mxu0 %v1603_v36  ;;  %v2945_v16 = vld [vmem:[%s7687_s8 + $0x31c0] sm:$0xff]  ;;  %v1668_v36 = vld [vmem:[%s7687_s8 + $0x9d8] sm:$0xff]  ;;  %v3074_v27 = vld [vmem:[%s7687_s8 + $0x35c8] sm:$0xff] }
 0x50c   : > { %5382 = vmatpush.msrb.mxu3 %v3361_v2  ;;  %5509 = vmatpush.msrb.mxu1 %v2115_v37  ;;  %v2787_v2 = vld [vmem:[%s7687_s8 + $0x2cd0] sm:$0xff]  ;;  %v2180_v37 = vld [vmem:[%s7687_s8 + $0x19d8] sm:$0xff]  ;;  %v2309_v30 = vld [vmem:[%s7687_s8 + $0x1de0] sm:$0xff] }
 0x50d   : > { %5447 = vmatpush.msra.mxu2 %v2690_v39  ;;  %5490 = vmatpush.msrb.mxu0 %v1571_v41  ;;  %v1341_v39 = vld [vmem:[#allocation2 + $0xe0] sm:$0xff] }
 0x50e   : > { %5383 = vmatpush.msrb.mxu3 %v3329_v42  ;;  %5510 = vmatpush.msrb.mxu1 %v2083_v21  ;;  %v2913_v42 = vld [vmem:[%s7687_s8 + $0x30c0] sm:$0xff]  ;;  %v1636_v21 = vld [vmem:[%s7687_s8 + $0x8d8] sm:$0xff] }
 0x50f   : > { %5448 = vmatpush.msra.mxu2 %v2658_v44  ;;  %5491 = vmatpush.msrb.mxu0 %v1539_v45  ;;  %v2755_v45 = vld [vmem:[%s7687_s8 + $0x2bd0] sm:$0xff] }
 0x510   : > { %5384 = vmatpush.msrb.mxu3 %v3297_v46  ;;  %5511 = vmatpush.msrb.mxu1 %v2051_v60  ;;  %v3394_v46 = vld [vmem:[%s7687_s8 + $0x3fc8] sm:$0xff]  ;;  %v2148_v60 = vld [vmem:[%s7687_s8 + $0x18d8] sm:$0xff] }
 0x511   : > { %5449 = vmatpush.msra.mxu2 %v2626_v47  ;;  %5492 = vmatpush.msrb.mxu0 %v1507_v26  ;;  %v2723_v26 = vld [vmem:[%s7687_s8 + $0x2ad0] sm:$0xff] }
 0x512   : > { %5385 = vmatpush.msrb.mxu3 %v3265_v32  ;;  %5512 = vmatpush.msrb.mxu1 %v2019_v48  ;;  %v1604_v32 = vld [vmem:[%s7687_s8 + $0x7d8] sm:$0xff]  ;;  %v3362_v48 = vld [vmem:[%s7687_s8 + $0x3ec8] sm:$0xff] }
 0x513   : > { %5450 = vmatpush.msra.mxu2 %v2594_v49  ;;  %5493 = vmatpush.msrb.mxu0 %v1475_v50  ;;  %v2116_v49 = vld [vmem:[%s7687_s8 + $0x17d8] sm:$0xff]  ;;  %v2691_v50 = vld [vmem:[%s7687_s8 + $0x29d0] sm:$0xff] }
 0x514   : > { %5386 = vmatpush.msrb.mxu3 %v3233_v51  ;;  %5513 = vmatpush.msrb.mxu1 %v1987_v3  ;;  %v1572_v51 = vld [vmem:[%s7687_s8 + $0x6d8] sm:$0xff]  ;;  %v3330_v3 = vld [vmem:[%s7687_s8 + $0x3dc8] sm:$0xff] }
 0x515   : > { %5451 = vmatpush.msra.mxu2 %v2562_v52  ;;  %5494 = vmatpush.msrb.mxu0 %v1443_v53  ;;  %v2084_v52 = vld [vmem:[%s7687_s8 + $0x16d8] sm:$0xff]  ;;  %v2659_v53 = vld [vmem:[%s7687_s8 + $0x28d0] sm:$0xff] }
 0x516   : > { %5387 = vmatpush.msrb.mxu3 %v3201_v54  ;;  %5514 = vmatpush.msrb.mxu1 %v1955_v56  ;;  %v1540_v54 = vld [vmem:[%s7687_s8 + $0x5d8] sm:$0xff]  ;;  %v3298_v56 = vld [vmem:[%s7687_s8 + $0x3cc8] sm:$0xff] }
 0x517   : > { %5452 = vmatpush.msra.mxu2 %v2530_v57  ;;  %5495 = vmatpush.msrb.mxu0 %v1411_v58  ;;  %v2052_v57 = vld [vmem:[%s7687_s8 + $0x15d8] sm:$0xff]  ;;  %v2627_v58 = vld [vmem:[%s7687_s8 + $0x27d0] sm:$0xff] }
 0x518   : > { %5388 = vmatpush.msrb.mxu3 %v3169_v59  ;;  %5515 = vmatpush.msrb.mxu1 %v1923_v61  ;;  %v1508_v59 = vld [vmem:[%s7687_s8 + $0x4d8] sm:$0xff]  ;;  %v3266_v61 = vld [vmem:[%s7687_s8 + $0x3bc8] sm:$0xff] }
 0x519   : > { %5453 = vmatpush.msra.mxu2 %v2498_v62  ;;  %5496 = vmatpush.msrb.mxu0 %v1379_v63  ;;  %v2020_v62 = vld [vmem:[%s7687_s8 + $0x14d8] sm:$0xff]  ;;  %v2595_v63 = vld [vmem:[%s7687_s8 + $0x26d0] sm:$0xff] }
 0x51a   : > { %5389 = vmatpush.msrb.mxu3 %v3137_v0  ;;  %5516 = vmatpush.msrb.mxu1 %v1891_v4  ;;  %v1476_v0 = vld [vmem:[%s7687_s8 + $0x3d8] sm:$0xff]  ;;  %v3234_v4 = vld [vmem:[%s7687_s8 + $0x3ac8] sm:$0xff] }
 0x51b   : > { %5497 = vmatmul.f32.vlgmr.msrb.gmra.mxu0 %v8284_v40  ;;  %5517 = vmatmul.f32.vlgmr.msrb.gmra.mxu1 %v8288_v43 }
 0x51c   : > { %5561 = vmatpush.msra.mxu0 %v1860_v5  ;;  %5581 = vmatpush.msra.mxu1 %v2372_v6  ;;  %v1988_v5 = vld [vmem:[%s7687_s8 + $0x13d8] sm:$0xff]  ;;  %v2563_v6 = vld [vmem:[%s7687_s8 + $0x25d0] sm:$0xff] }
 0x51d   : > { %5390 = vmatpush.msrb.mxu3 %v3105_v7  ;;  %5454 = vmatpush.msra.mxu2 %v2466_v8  ;;  %v1444_v7 = vld [vmem:[%s7687_s8 + $0x2d8] sm:$0xff]  ;;  %v3202_v8 = vld [vmem:[%s7687_s8 + $0x39c8] sm:$0xff] }
 0x51e   : > { %5562 = vmatpush.msra.mxu0 %v1828_v9  ;;  %5582 = vmatpush.msra.mxu1 %v2340_v10  ;;  %v1956_v9 = vld [vmem:[%s7687_s8 + $0x12d8] sm:$0xff]  ;;  %v2531_v10 = vld [vmem:[%s7687_s8 + $0x24d0] sm:$0xff] }
 0x51f   : > { %5391 = vmatpush.msrb.mxu3 %v3073_v11  ;;  %5455 = vmatpush.msra.mxu2 %v2434_v12  ;;  %v1412_v11 = vld [vmem:[%s7687_s8 + $0x1d8] sm:$0xff]  ;;  %v3170_v12 = vld [vmem:[%s7687_s8 + $0x38c8] sm:$0xff] }
 0x520   : > { %5563 = vmatpush.msra.mxu0 %v1796_v13  ;;  %5583 = vmatpush.msra.mxu1 %v2308_v14  ;;  %v1924_v13 = vld [vmem:[%s7687_s8 + $0x11d8] sm:$0xff]  ;;  %v2499_v14 = vld [vmem:[%s7687_s8 + $0x23d0] sm:$0xff] }
 0x521   : > { %5392 = vmatpush.msrb.mxu3 %v3041_v15  ;;  %5456 = vmatpush.msra.mxu2 %v2402_v17  ;;  %v1380_v15 = vld [vmem:[%s7687_s8 + $0xd8] sm:$0xff]  ;;  %v3138_v17 = vld [vmem:[%s7687_s8 + $0x37c8] sm:$0xff] }
 0x522   : > { %5457 = vmatmul.f32.vlgmr.msra.gmra.mxu2 %v8401_v38  ;;  %5564 = vmatpush.msra.mxu0 %v1764_v18  ;;  %v1892_v18 = vld [vmem:[%s7687_s8 + $0x10d8] sm:$0xff] }
 0x523   : > { %5521 = vmatpush.msrb.mxu2 %v2883_v22  ;;  %5584 = vmatpush.msra.mxu1 %v2276_v23  ;;  %v3106_v22 = vld [vmem:[%s7687_s8 + $0x36c8] sm:$0xff]  ;;  %v2467_v23 = vld [vmem:[%s7687_s8 + $0x22d0] sm:$0xff] }
 0x524   : > { %5393 = vmatpush.msrb.mxu3 %v3009_v24  ;;  %5565 = vmatpush.msra.mxu0 %v1732_v25  ;;  %v1829_v24 = vld [vmem:[%s7687_s8 + $0xee0] sm:$0xff] }
 0x525   : > { %5522 = vmatpush.msrb.mxu2 %v2851_v28  ;;  %5585 = vmatpush.msra.mxu1 %v2244_v29  ;;  %v2341_v25 = vld [vmem:[%s7687_s8 + $0x1ee0] sm:$0xff]  ;;  %v2435_v28 = vld [vmem:[%s7687_s8 + $0x21d0] sm:$0xff] }
 0x526   : > { %5394 = vmatpush.msrb.mxu3 %v2977_v31  ;;  %5566 = vmatpush.msra.mxu0 %v1700_v1  ;;  %v5078_v41 = vpop.f32.mrf.mxu3  ;;  %v1797_v29 = vld [vmem:[%s7687_s8 + $0xde0] sm:$0xff]  ;;  %v3042_v31 = vld [vmem:[%s7687_s8 + $0x34c8] sm:$0xff]  ;;  %v2403_v1 = vld [vmem:[%s7687_s8 + $0x20d0] sm:$0xff] }
 0x527   : > { %5523 = vmatpush.msrb.mxu2 %v2819_v33  ;;  %5586 = vmatpush.msra.mxu1 %v2212_v34  ;;  %v5079_v44 = vadd.f32 %v5078_v41, %v5059_v35  ;;  %v1765_v33 = vld [vmem:[%s7687_s8 + $0xce0] sm:$0xff]  ;;  %v5098_v34 = vpop.f32.mrf.mxu0  ;;  %v5118_v35 = vpop.f32.mrf.mxu1  ;;  %v2852_v41 = vld [vmem:[%s7687_s8 + $0x2ed8] sm:$0xff] }
 0x528   : > { %5395 = vmatpush.msrb.mxu3 %v2945_v16  ;;  %5567 = vmatpush.msra.mxu0 %v1668_v36  ;;  %v2884_v16 = vld [vmem:[%s7687_s8 + $0x2fd8] sm:$0xff]  ;;  %v2277_v36 = vld [vmem:[%s7687_s8 + $0x1ce0] sm:$0xff] }
 0x529   : > { %5524 = vmatpush.msrb.mxu2 %v2787_v2  ;;  %5587 = vmatpush.msra.mxu1 %v2180_v37  ;;  %v5981_v47 = vadd.f32 %v5079_v44, %v1341_v39  ;;  %v3010_v2 = vld [vmem:[%s7687_s8 + $0x33c8] sm:$0xff]  ;;  %v1733_v37 = vld [vmem:[%s7687_s8 + $0xbe0] sm:$0xff]  ;;  %v5138_v39 = vpop.f32.mrf.mxu2 }
 0x52a   : > { %5396 = vmatpush.msrb.mxu3 %v2913_v42  ;;  %5568 = vmatpush.msra.mxu0 %v1636_v21  ;;  %v2245_v42 = vld [vmem:[%s7687_s8 + $0x1be0] sm:$0xff]  ;;  %v5119_v21 = vadd.f32 %v5118_v35, %v5098_v34  ;;  %v2978_v44 = vld [vmem:[%s7687_s8 + $0x32c8] sm:$0xff] }
 0x52b   : > { %5397 = vmatmul.f32.vlgmr.msrb.gmra.mxu3 %v8477_v55  ;;  %5525 = vmatpush.msrb.mxu2 %v2755_v45  ;;  %6013 = vst [vmem:[#allocation2 + $0xe0] sm:$0xff] %v5981_v47  ;;  %v1701_v45 = vld [vmem:[%s7687_s8 + $0xae0] sm:$0xff]  ;;  %v1862_v34 = vld [vmem:[%s7687_s8 + $0xfe8] sm:$0xff] }
 0x52c   : > { %5461 = vmatpush.msra.mxu3 %v3394_v46  ;;  %5588 = vmatpush.msra.mxu1 %v2148_v60  ;;  %v2820_v46 = vld [vmem:[%s7687_s8 + $0x2dd8] sm:$0xff]  ;;  %v2213_v60 = vld [vmem:[%s7687_s8 + $0x1ae0] sm:$0xff]  ;;  %v5139_v47 = vadd.f32 %v5138_v39, %v5119_v21  ;;  %v2374_v35 = vld [vmem:[%s7687_s8 + $0x1fe8] sm:$0xff] }
 0x52d   : > { %5526 = vmatpush.msrb.mxu2 %v2723_v26  ;;  %5569 = vmatpush.msra.mxu0 %v1604_v32  ;;  %v2946_v26 = vld [vmem:[%s7687_s8 + $0x31c8] sm:$0xff]  ;;  %v1669_v32 = vld [vmem:[%s7687_s8 + $0x9e0] sm:$0xff]  ;;  %v3075_v39 = vld [vmem:[%s7687_s8 + $0x35d0] sm:$0xff] }
 0x52e   : > { %5462 = vmatpush.msra.mxu3 %v3362_v48  ;;  %5589 = vmatpush.msra.mxu1 %v2116_v49  ;;  %v2788_v48 = vld [vmem:[%s7687_s8 + $0x2cd8] sm:$0xff]  ;;  %v2181_v49 = vld [vmem:[%s7687_s8 + $0x19e0] sm:$0xff]  ;;  %v2310_v21 = vld [vmem:[%s7687_s8 + $0x1de8] sm:$0xff] }
 0x52f   : > { %5527 = vmatpush.msrb.mxu2 %v2691_v50  ;;  %5570 = vmatpush.msra.mxu0 %v1572_v51  ;;  %v1342_v50 = vld [vmem:[#allocation2 + $0x90] sm:$0xff] }
 0x530   : > { %5463 = vmatpush.msra.mxu3 %v3330_v3  ;;  %5590 = vmatpush.msra.mxu1 %v2084_v52  ;;  %v2914_v3 = vld [vmem:[%s7687_s8 + $0x30c8] sm:$0xff]  ;;  %v1637_v52 = vld [vmem:[%s7687_s8 + $0x8e0] sm:$0xff] }
 0x531   : > { %5528 = vmatpush.msrb.mxu2 %v2659_v53  ;;  %5571 = vmatpush.msra.mxu0 %v1540_v54  ;;  %v2756_v54 = vld [vmem:[%s7687_s8 + $0x2bd8] sm:$0xff] }
 0x532   : > { %5464 = vmatpush.msra.mxu3 %v3298_v56  ;;  %5591 = vmatpush.msra.mxu1 %v2052_v57  ;;  %v3395_v56 = vld [vmem:[%s7687_s8 + $0x3fd0] sm:$0xff]  ;;  %v2149_v57 = vld [vmem:[%s7687_s8 + $0x18e0] sm:$0xff] }
 0x533   : > { %5529 = vmatpush.msrb.mxu2 %v2627_v58  ;;  %5572 = vmatpush.msra.mxu0 %v1508_v59  ;;  %v2724_v59 = vld [vmem:[%s7687_s8 + $0x2ad8] sm:$0xff] }
 0x534   : > { %5465 = vmatpush.msra.mxu3 %v3266_v61  ;;  %5592 = vmatpush.msra.mxu1 %v2020_v62  ;;  %v1605_v61 = vld [vmem:[%s7687_s8 + $0x7e0] sm:$0xff]  ;;  %v3363_v62 = vld [vmem:[%s7687_s8 + $0x3ed0] sm:$0xff] }
 0x535   : > { %5530 = vmatpush.msrb.mxu2 %v2595_v63  ;;  %5573 = vmatpush.msra.mxu0 %v1476_v0  ;;  %v2117_v63 = vld [vmem:[%s7687_s8 + $0x17e0] sm:$0xff]  ;;  %v2692_v0 = vld [vmem:[%s7687_s8 + $0x29d8] sm:$0xff] }
 0x536   : > { %5466 = vmatpush.msra.mxu3 %v3234_v4  ;;  %5593 = vmatpush.msra.mxu1 %v1988_v5  ;;  %v1573_v4 = vld [vmem:[%s7687_s8 + $0x6e0] sm:$0xff]  ;;  %v3331_v5 = vld [vmem:[%s7687_s8 + $0x3dd0] sm:$0xff] }
 0x537   : > { %5531 = vmatpush.msrb.mxu2 %v2563_v6  ;;  %5574 = vmatpush.msra.mxu0 %v1444_v7  ;;  %v2085_v6 = vld [vmem:[%s7687_s8 + $0x16e0] sm:$0xff]  ;;  %v2660_v7 = vld [vmem:[%s7687_s8 + $0x28d8] sm:$0xff] }
 0x538   : > { %5467 = vmatpush.msra.mxu3 %v3202_v8  ;;  %5594 = vmatpush.msra.mxu1 %v1956_v9  ;;  %v1541_v8 = vld [vmem:[%s7687_s8 + $0x5e0] sm:$0xff]  ;;  %v3299_v9 = vld [vmem:[%s7687_s8 + $0x3cd0] sm:$0xff] }
 0x539   : > { %5532 = vmatpush.msrb.mxu2 %v2531_v10  ;;  %5575 = vmatpush.msra.mxu0 %v1412_v11  ;;  %v2053_v10 = vld [vmem:[%s7687_s8 + $0x15e0] sm:$0xff]  ;;  %v2628_v11 = vld [vmem:[%s7687_s8 + $0x27d8] sm:$0xff] }
 0x53a   : > { %5468 = vmatpush.msra.mxu3 %v3170_v12  ;;  %5595 = vmatpush.msra.mxu1 %v1924_v13  ;;  %v1509_v12 = vld [vmem:[%s7687_s8 + $0x4e0] sm:$0xff]  ;;  %v3267_v13 = vld [vmem:[%s7687_s8 + $0x3bd0] sm:$0xff] }
 0x53b   : > { %5533 = vmatpush.msrb.mxu2 %v2499_v14  ;;  %5576 = vmatpush.msra.mxu0 %v1380_v15  ;;  %v2021_v14 = vld [vmem:[%s7687_s8 + $0x14e0] sm:$0xff]  ;;  %v2596_v15 = vld [vmem:[%s7687_s8 + $0x26d8] sm:$0xff] }
 0x53c   : > { %5469 = vmatpush.msra.mxu3 %v3138_v17  ;;  %5596 = vmatpush.msra.mxu1 %v1892_v18  ;;  %v1477_v17 = vld [vmem:[%s7687_s8 + $0x3e0] sm:$0xff]  ;;  %v3235_v18 = vld [vmem:[%s7687_s8 + $0x3ad0] sm:$0xff] }
 0x53d   : > { %5577 = vmatmul.f32.vlgmr.msra.gmra.mxu0 %v8284_v40  ;;  %5597 = vmatmul.f32.vlgmr.msra.gmra.mxu1 %v8288_v43 }
 0x53e   : > { %5641 = vmatpush.msrb.mxu0 %v1861_v19  ;;  %5661 = vmatpush.msrb.mxu1 %v2373_v20  ;;  %v1989_v19 = vld [vmem:[%s7687_s8 + $0x13e0] sm:$0xff]  ;;  %v2564_v20 = vld [vmem:[%s7687_s8 + $0x25d8] sm:$0xff] }
 0x53f   : > { %5470 = vmatpush.msra.mxu3 %v3106_v22  ;;  %5534 = vmatpush.msrb.mxu2 %v2467_v23  ;;  %v1445_v22 = vld [vmem:[%s7687_s8 + $0x2e0] sm:$0xff]  ;;  %v3203_v23 = vld [vmem:[%s7687_s8 + $0x39d0] sm:$0xff] }
 0x540   : > { %5642 = vmatpush.msrb.mxu0 %v1829_v24  ;;  %5662 = vmatpush.msrb.mxu1 %v2341_v25  ;;  %v1957_v24 = vld [vmem:[%s7687_s8 + $0x12e0] sm:$0xff]  ;;  %v2532_v25 = vld [vmem:[%s7687_s8 + $0x24d8] sm:$0xff] }
 0x541   : > { %5471 = vmatpush.msra.mxu3 %v3074_v27  ;;  %5535 = vmatpush.msrb.mxu2 %v2435_v28  ;;  %v1413_v27 = vld [vmem:[%s7687_s8 + $0x1e0] sm:$0xff]  ;;  %v3171_v28 = vld [vmem:[%s7687_s8 + $0x38d0] sm:$0xff] }
 0x542   : > { %5643 = vmatpush.msrb.mxu0 %v1797_v29  ;;  %5663 = vmatpush.msrb.mxu1 %v2309_v30  ;;  %v1925_v29 = vld [vmem:[%s7687_s8 + $0x11e0] sm:$0xff]  ;;  %v2500_v30 = vld [vmem:[%s7687_s8 + $0x23d8] sm:$0xff] }
 0x543   : > { %5472 = vmatpush.msra.mxu3 %v3042_v31  ;;  %5536 = vmatpush.msrb.mxu2 %v2403_v1  ;;  %v1381_v31 = vld [vmem:[%s7687_s8 + $0xe0] sm:$0xff]  ;;  %v3139_v1 = vld [vmem:[%s7687_s8 + $0x37d0] sm:$0xff] }
 0x544   : > { %5537 = vmatmul.f32.vlgmr.msrb.gmra.mxu2 %v8401_v38  ;;  %5644 = vmatpush.msrb.mxu0 %v1765_v33  ;;  %v1893_v33 = vld [vmem:[%s7687_s8 + $0x10e0] sm:$0xff] }
 0x545   : > { %5601 = vmatpush.msra.mxu2 %v2884_v16  ;;  %5664 = vmatpush.msrb.mxu1 %v2277_v36  ;;  %v3107_v16 = vld [vmem:[%s7687_s8 + $0x36d0] sm:$0xff]  ;;  %v2468_v36 = vld [vmem:[%s7687_s8 + $0x22d8] sm:$0xff] }
 0x546   : > { %5473 = vmatpush.msra.mxu3 %v3010_v2  ;;  %5645 = vmatpush.msrb.mxu0 %v1733_v37  ;;  %v1830_v2 = vld [vmem:[%s7687_s8 + $0xee8] sm:$0xff] }
 0x547   : > { %5602 = vmatpush.msra.mxu2 %v2852_v41  ;;  %5665 = vmatpush.msrb.mxu1 %v2245_v42  ;;  %v2342_v37 = vld [vmem:[%s7687_s8 + $0x1ee8] sm:$0xff]  ;;  %v2436_v41 = vld [vmem:[%s7687_s8 + $0x21d8] sm:$0xff] }
 0x548   : > { %5474 = vmatpush.msra.mxu3 %v2978_v44  ;;  %5646 = vmatpush.msrb.mxu0 %v1701_v45  ;;  %v5158_v51 = vpop.f32.mrf.mxu3  ;;  %v1798_v42 = vld [vmem:[%s7687_s8 + $0xde8] sm:$0xff]  ;;  %v3043_v44 = vld [vmem:[%s7687_s8 + $0x34d0] sm:$0xff]  ;;  %v2404_v45 = vld [vmem:[%s7687_s8 + $0x20d8] sm:$0xff] }
 0x549   : > { %5603 = vmatpush.msra.mxu2 %v2820_v46  ;;  %5666 = vmatpush.msrb.mxu1 %v2213_v60  ;;  %v5159_v53 = vadd.f32 %v5158_v51, %v5139_v47  ;;  %v1766_v46 = vld [vmem:[%s7687_s8 + $0xce8] sm:$0xff]  ;;  %v5178_v60 = vpop.f32.mrf.mxu0  ;;  %v5198_v47 = vpop.f32.mrf.mxu1  ;;  %v2853_v51 = vld [vmem:[%s7687_s8 + $0x2ee0] sm:$0xff] }
 0x54a   : > { %5475 = vmatpush.msra.mxu3 %v2946_v26  ;;  %5647 = vmatpush.msrb.mxu0 %v1669_v32  ;;  %v2885_v26 = vld [vmem:[%s7687_s8 + $0x2fe0] sm:$0xff]  ;;  %v2278_v32 = vld [vmem:[%s7687_s8 + $0x1ce8] sm:$0xff] }
 0x54b   : > { %5604 = vmatpush.msra.mxu2 %v2788_v48  ;;  %5667 = vmatpush.msrb.mxu1 %v2181_v49  ;;  %v5982_v58 = vadd.f32 %v5159_v53, %v1342_v50  ;;  %v3011_v48 = vld [vmem:[%s7687_s8 + $0x33d0] sm:$0xff]  ;;  %v1734_v49 = vld [vmem:[%s7687_s8 + $0xbe8] sm:$0xff]  ;;  %v5218_v50 = vpop.f32.mrf.mxu2 }
 0x54c   : > { %5476 = vmatpush.msra.mxu3 %v2914_v3  ;;  %5648 = vmatpush.msrb.mxu0 %v1637_v52  ;;  %v2246_v3 = vld [vmem:[%s7687_s8 + $0x1be8] sm:$0xff]  ;;  %v5199_v52 = vadd.f32 %v5198_v47, %v5178_v60  ;;  %v2979_v53 = vld [vmem:[%s7687_s8 + $0x32d0] sm:$0xff] }
 0x54d   : > { %5477 = vmatmul.f32.vlgmr.msra.gmra.mxu3 %v8477_v55  ;;  %5605 = vmatpush.msra.mxu2 %v2756_v54  ;;  %6014 = vst [vmem:[#allocation2 + $0x90] sm:$0xff] %v5982_v58  ;;  %v1702_v54 = vld [vmem:[%s7687_s8 + $0xae8] sm:$0xff]  ;;  %v1863_v60 = vld [vmem:[%s7687_s8 + $0xff0] sm:$0xff] }
 0x54e   : > { %5541 = vmatpush.msrb.mxu3 %v3395_v56  ;;  %5668 = vmatpush.msrb.mxu1 %v2149_v57  ;;  %v2821_v56 = vld [vmem:[%s7687_s8 + $0x2de0] sm:$0xff]  ;;  %v2214_v57 = vld [vmem:[%s7687_s8 + $0x1ae8] sm:$0xff]  ;;  %v5219_v58 = vadd.f32 %v5218_v50, %v5199_v52  ;;  %v2375_v47 = vld [vmem:[%s7687_s8 + $0x1ff0] sm:$0xff] }
 0x54f   : > { %5606 = vmatpush.msra.mxu2 %v2724_v59  ;;  %5649 = vmatpush.msrb.mxu0 %v1605_v61  ;;  %v2947_v59 = vld [vmem:[%s7687_s8 + $0x31d0] sm:$0xff]  ;;  %v1670_v61 = vld [vmem:[%s7687_s8 + $0x9e8] sm:$0xff]  ;;  %v3076_v50 = vld [vmem:[%s7687_s8 + $0x35d8] sm:$0xff] }
 0x550   : > { %5542 = vmatpush.msrb.mxu3 %v3363_v62  ;;  %5669 = vmatpush.msrb.mxu1 %v2117_v63  ;;  %v2789_v62 = vld [vmem:[%s7687_s8 + $0x2ce0] sm:$0xff]  ;;  %v2182_v63 = vld [vmem:[%s7687_s8 + $0x19e8] sm:$0xff]  ;;  %v2311_v52 = vld [vmem:[%s7687_s8 + $0x1df0] sm:$0xff] }
 0x551   : > { %5607 = vmatpush.msra.mxu2 %v2692_v0  ;;  %5650 = vmatpush.msrb.mxu0 %v1573_v4  ;;  %v1343_v0 = vld [vmem:[#allocation2 + $0x70] sm:$0xff] }
 0x552   : > { %5543 = vmatpush.msrb.mxu3 %v3331_v5  ;;  %5670 = vmatpush.msrb.mxu1 %v2085_v6  ;;  %v2915_v5 = vld [vmem:[%s7687_s8 + $0x30d0] sm:$0xff]  ;;  %v1638_v6 = vld [vmem:[%s7687_s8 + $0x8e8] sm:$0xff] }
 0x553   : > { %5608 = vmatpush.msra.mxu2 %v2660_v7  ;;  %5651 = vmatpush.msrb.mxu0 %v1541_v8  ;;  %v2757_v8 = vld [vmem:[%s7687_s8 + $0x2be0] sm:$0xff] }
 0x554   : > { %5544 = vmatpush.msrb.mxu3 %v3299_v9  ;;  %5671 = vmatpush.msrb.mxu1 %v2053_v10  ;;  %v3396_v9 = vld [vmem:[%s7687_s8 + $0x3fd8] sm:$0xff]  ;;  %v2150_v10 = vld [vmem:[%s7687_s8 + $0x18e8] sm:$0xff] }
 0x555   : > { %5609 = vmatpush.msra.mxu2 %v2628_v11  ;;  %5652 = vmatpush.msrb.mxu0 %v1509_v12  ;;  %v2725_v12 = vld [vmem:[%s7687_s8 + $0x2ae0] sm:$0xff] }
 0x556   : > { %5545 = vmatpush.msrb.mxu3 %v3267_v13  ;;  %5672 = vmatpush.msrb.mxu1 %v2021_v14  ;;  %v1606_v13 = vld [vmem:[%s7687_s8 + $0x7e8] sm:$0xff]  ;;  %v3364_v14 = vld [vmem:[%s7687_s8 + $0x3ed8] sm:$0xff] }
 0x557   : > { %5610 = vmatpush.msra.mxu2 %v2596_v15  ;;  %5653 = vmatpush.msrb.mxu0 %v1477_v17  ;;  %v2118_v15 = vld [vmem:[%s7687_s8 + $0x17e8] sm:$0xff]  ;;  %v2693_v17 = vld [vmem:[%s7687_s8 + $0x29e0] sm:$0xff] }
 0x558   : > { %5546 = vmatpush.msrb.mxu3 %v3235_v18  ;;  %5673 = vmatpush.msrb.mxu1 %v1989_v19  ;;  %v1574_v18 = vld [vmem:[%s7687_s8 + $0x6e8] sm:$0xff]  ;;  %v3332_v19 = vld [vmem:[%s7687_s8 + $0x3dd8] sm:$0xff] }
 0x559   : > { %5611 = vmatpush.msra.mxu2 %v2564_v20  ;;  %5654 = vmatpush.msrb.mxu0 %v1445_v22  ;;  %v2086_v20 = vld [vmem:[%s7687_s8 + $0x16e8] sm:$0xff]  ;;  %v2661_v22 = vld [vmem:[%s7687_s8 + $0x28e0] sm:$0xff] }
 0x55a   : > { %5547 = vmatpush.msrb.mxu3 %v3203_v23  ;;  %5674 = vmatpush.msrb.mxu1 %v1957_v24  ;;  %v1542_v23 = vld [vmem:[%s7687_s8 + $0x5e8] sm:$0xff]  ;;  %v3300_v24 = vld [vmem:[%s7687_s8 + $0x3cd8] sm:$0xff] }
 0x55b   : > { %5612 = vmatpush.msra.mxu2 %v2532_v25  ;;  %5655 = vmatpush.msrb.mxu0 %v1413_v27  ;;  %v2054_v25 = vld [vmem:[%s7687_s8 + $0x15e8] sm:$0xff]  ;;  %v2629_v27 = vld [vmem:[%s7687_s8 + $0x27e0] sm:$0xff] }
 0x55c   : > { %5548 = vmatpush.msrb.mxu3 %v3171_v28  ;;  %5675 = vmatpush.msrb.mxu1 %v1925_v29  ;;  %v1510_v28 = vld [vmem:[%s7687_s8 + $0x4e8] sm:$0xff]  ;;  %v3268_v29 = vld [vmem:[%s7687_s8 + $0x3bd8] sm:$0xff] }
 0x55d   : > { %5613 = vmatpush.msra.mxu2 %v2500_v30  ;;  %5656 = vmatpush.msrb.mxu0 %v1381_v31  ;;  %v2022_v30 = vld [vmem:[%s7687_s8 + $0x14e8] sm:$0xff]  ;;  %v2597_v31 = vld [vmem:[%s7687_s8 + $0x26e0] sm:$0xff] }
 0x55e   : > { %5549 = vmatpush.msrb.mxu3 %v3139_v1  ;;  %5676 = vmatpush.msrb.mxu1 %v1893_v33  ;;  %v1478_v1 = vld [vmem:[%s7687_s8 + $0x3e8] sm:$0xff]  ;;  %v3236_v33 = vld [vmem:[%s7687_s8 + $0x3ad8] sm:$0xff] }
 0x55f   : > { %5657 = vmatmul.f32.vlgmr.msrb.gmra.mxu0 %v8284_v40  ;;  %5677 = vmatmul.f32.vlgmr.msrb.gmra.mxu1 %v8288_v43 }
 0x560   : > { %5721 = vmatpush.msra.mxu0 %v1862_v34  ;;  %5741 = vmatpush.msra.mxu1 %v2374_v35  ;;  %v1990_v34 = vld [vmem:[%s7687_s8 + $0x13e8] sm:$0xff]  ;;  %v2565_v35 = vld [vmem:[%s7687_s8 + $0x25e0] sm:$0xff] }
 0x561   : > { %5550 = vmatpush.msrb.mxu3 %v3107_v16  ;;  %5614 = vmatpush.msra.mxu2 %v2468_v36  ;;  %v1446_v16 = vld [vmem:[%s7687_s8 + $0x2e8] sm:$0xff]  ;;  %v3204_v36 = vld [vmem:[%s7687_s8 + $0x39d8] sm:$0xff] }
 0x562   : > { %5722 = vmatpush.msra.mxu0 %v1830_v2  ;;  %5742 = vmatpush.msra.mxu1 %v2342_v37  ;;  %v1958_v2 = vld [vmem:[%s7687_s8 + $0x12e8] sm:$0xff]  ;;  %v2533_v37 = vld [vmem:[%s7687_s8 + $0x24e0] sm:$0xff] }
 0x563   : > { %5551 = vmatpush.msrb.mxu3 %v3075_v39  ;;  %5615 = vmatpush.msra.mxu2 %v2436_v41  ;;  %v1414_v39 = vld [vmem:[%s7687_s8 + $0x1e8] sm:$0xff]  ;;  %v3172_v41 = vld [vmem:[%s7687_s8 + $0x38d8] sm:$0xff] }
 0x564   : > { %5723 = vmatpush.msra.mxu0 %v1798_v42  ;;  %5743 = vmatpush.msra.mxu1 %v2310_v21  ;;  %v1926_v42 = vld [vmem:[%s7687_s8 + $0x11e8] sm:$0xff]  ;;  %v2501_v21 = vld [vmem:[%s7687_s8 + $0x23e0] sm:$0xff] }
 0x565   : > { %5552 = vmatpush.msrb.mxu3 %v3043_v44  ;;  %5616 = vmatpush.msra.mxu2 %v2404_v45  ;;  %v1382_v44 = vld [vmem:[%s7687_s8 + $0xe8] sm:$0xff]  ;;  %v3140_v45 = vld [vmem:[%s7687_s8 + $0x37d8] sm:$0xff] }
 0x566   : > { %5617 = vmatmul.f32.vlgmr.msra.gmra.mxu2 %v8401_v38  ;;  %5724 = vmatpush.msra.mxu0 %v1766_v46  ;;  %v1894_v46 = vld [vmem:[%s7687_s8 + $0x10e8] sm:$0xff] }
 0x567   : > { %5681 = vmatpush.msrb.mxu2 %v2885_v26  ;;  %5744 = vmatpush.msra.mxu1 %v2278_v32  ;;  %v3108_v26 = vld [vmem:[%s7687_s8 + $0x36d8] sm:$0xff]  ;;  %v2469_v32 = vld [vmem:[%s7687_s8 + $0x22e0] sm:$0xff] }
 0x568   : > { %5553 = vmatpush.msrb.mxu3 %v3011_v48  ;;  %5725 = vmatpush.msra.mxu0 %v1734_v49  ;;  %v1831_v48 = vld [vmem:[%s7687_s8 + $0xef0] sm:$0xff] }
 0x569   : > { %5682 = vmatpush.msrb.mxu2 %v2853_v51  ;;  %5745 = vmatpush.msra.mxu1 %v2246_v3  ;;  %v2343_v49 = vld [vmem:[%s7687_s8 + $0x1ef0] sm:$0xff]  ;;  %v2437_v51 = vld [vmem:[%s7687_s8 + $0x21e0] sm:$0xff] }
 0x56a   : > { %5554 = vmatpush.msrb.mxu3 %v2979_v53  ;;  %5726 = vmatpush.msra.mxu0 %v1702_v54  ;;  %v5238_v4 = vpop.f32.mrf.mxu3  ;;  %v1799_v3 = vld [vmem:[%s7687_s8 + $0xdf0] sm:$0xff]  ;;  %v3044_v53 = vld [vmem:[%s7687_s8 + $0x34d8] sm:$0xff]  ;;  %v2405_v54 = vld [vmem:[%s7687_s8 + $0x20e0] sm:$0xff] }
 0x56b   : > { %5683 = vmatpush.msrb.mxu2 %v2821_v56  ;;  %5746 = vmatpush.msra.mxu1 %v2214_v57  ;;  %v5239_v7 = vadd.f32 %v5238_v4, %v5219_v58  ;;  %v1767_v56 = vld [vmem:[%s7687_s8 + $0xcf0] sm:$0xff]  ;;  %v5258_v57 = vpop.f32.mrf.mxu0  ;;  %v5278_v58 = vpop.f32.mrf.mxu1  ;;  %v2854_v4 = vld [vmem:[%s7687_s8 + $0x2ee8] sm:$0xff] }
 0x56c   : > { %5555 = vmatpush.msrb.mxu3 %v2947_v59  ;;  %5727 = vmatpush.msra.mxu0 %v1670_v61  ;;  %v2886_v59 = vld [vmem:[%s7687_s8 + $0x2fe8] sm:$0xff]  ;;  %v2279_v61 = vld [vmem:[%s7687_s8 + $0x1cf0] sm:$0xff] }
 0x56d   : > { %5684 = vmatpush.msrb.mxu2 %v2789_v62  ;;  %5747 = vmatpush.msra.mxu1 %v2182_v63  ;;  %v5983_v11 = vadd.f32 %v5239_v7, %v1343_v0  ;;  %v3012_v62 = vld [vmem:[%s7687_s8 + $0x33d8] sm:$0xff]  ;;  %v1735_v63 = vld [vmem:[%s7687_s8 + $0xbf0] sm:$0xff]  ;;  %v5298_v0 = vpop.f32.mrf.mxu2 }
 0x56e   : > { %5556 = vmatpush.msrb.mxu3 %v2915_v5  ;;  %5728 = vmatpush.msra.mxu0 %v1638_v6  ;;  %v2247_v5 = vld [vmem:[%s7687_s8 + $0x1bf0] sm:$0xff]  ;;  %v5279_v6 = vadd.f32 %v5278_v58, %v5258_v57  ;;  %v2980_v7 = vld [vmem:[%s7687_s8 + $0x32d8] sm:$0xff] }
 0x56f   : > { %5557 = vmatmul.f32.vlgmr.msrb.gmra.mxu3 %v8477_v55  ;;  %5685 = vmatpush.msrb.mxu2 %v2757_v8  ;;  %6015 = vst [vmem:[#allocation2 + $0x70] sm:$0xff] %v5983_v11  ;;  %v1703_v8 = vld [vmem:[%s7687_s8 + $0xaf0] sm:$0xff]  ;;  %v1864_v57 = vld [vmem:[%s7687_s8 + $0xff8] sm:$0xff] }
 0x570   : > { %5621 = vmatpush.msra.mxu3 %v3396_v9  ;;  %5748 = vmatpush.msra.mxu1 %v2150_v10  ;;  %v2822_v9 = vld [vmem:[%s7687_s8 + $0x2de8] sm:$0xff]  ;;  %v2215_v10 = vld [vmem:[%s7687_s8 + $0x1af0] sm:$0xff]  ;;  %v5299_v11 = vadd.f32 %v5298_v0, %v5279_v6  ;;  %v2376_v58 = vld [vmem:[%s7687_s8 + $0x1ff8] sm:$0xff] }
 0x571   : > { %5686 = vmatpush.msrb.mxu2 %v2725_v12  ;;  %5729 = vmatpush.msra.mxu0 %v1606_v13  ;;  %v2948_v12 = vld [vmem:[%s7687_s8 + $0x31d8] sm:$0xff]  ;;  %v1671_v13 = vld [vmem:[%s7687_s8 + $0x9f0] sm:$0xff]  ;;  %v3077_v0 = vld [vmem:[%s7687_s8 + $0x35e0] sm:$0xff] }
 0x572   : > { %5622 = vmatpush.msra.mxu3 %v3364_v14  ;;  %5749 = vmatpush.msra.mxu1 %v2118_v15  ;;  %v2790_v14 = vld [vmem:[%s7687_s8 + $0x2ce8] sm:$0xff]  ;;  %v2183_v15 = vld [vmem:[%s7687_s8 + $0x19f0] sm:$0xff]  ;;  %v2312_v6 = vld [vmem:[%s7687_s8 + $0x1df8] sm:$0xff] }
 0x573   : > { %5687 = vmatpush.msrb.mxu2 %v2693_v17  ;;  %5730 = vmatpush.msra.mxu0 %v1574_v18  ;;  %v1344_v17 = vld [vmem:[#allocation2 + $0xc0] sm:$0xff] }
 0x574   : > { %5623 = vmatpush.msra.mxu3 %v3332_v19  ;;  %5750 = vmatpush.msra.mxu1 %v2086_v20  ;;  %v2916_v19 = vld [vmem:[%s7687_s8 + $0x30d8] sm:$0xff]  ;;  %v1639_v20 = vld [vmem:[%s7687_s8 + $0x8f0] sm:$0xff] }
 0x575   : > { %5688 = vmatpush.msrb.mxu2 %v2661_v22  ;;  %5731 = vmatpush.msra.mxu0 %v1542_v23  ;;  %v2758_v23 = vld [vmem:[%s7687_s8 + $0x2be8] sm:$0xff] }
 0x576   : > { %5624 = vmatpush.msra.mxu3 %v3300_v24  ;;  %5751 = vmatpush.msra.mxu1 %v2054_v25  ;;  %v3397_v24 = vld [vmem:[%s7687_s8 + $0x3fe0] sm:$0xff]  ;;  %v2151_v25 = vld [vmem:[%s7687_s8 + $0x18f0] sm:$0xff] }
 0x577   : > { %5689 = vmatpush.msrb.mxu2 %v2629_v27  ;;  %5732 = vmatpush.msra.mxu0 %v1510_v28  ;;  %v2726_v28 = vld [vmem:[%s7687_s8 + $0x2ae8] sm:$0xff] }
 0x578   : > { %5625 = vmatpush.msra.mxu3 %v3268_v29  ;;  %5752 = vmatpush.msra.mxu1 %v2022_v30  ;;  %v1607_v29 = vld [vmem:[%s7687_s8 + $0x7f0] sm:$0xff]  ;;  %v3365_v30 = vld [vmem:[%s7687_s8 + $0x3ee0] sm:$0xff] }
 0x579   : > { %5690 = vmatpush.msrb.mxu2 %v2597_v31  ;;  %5733 = vmatpush.msra.mxu0 %v1478_v1  ;;  %v2119_v31 = vld [vmem:[%s7687_s8 + $0x17f0] sm:$0xff]  ;;  %v2694_v1 = vld [vmem:[%s7687_s8 + $0x29e8] sm:$0xff] }
 0x57a   : > { %5626 = vmatpush.msra.mxu3 %v3236_v33  ;;  %5753 = vmatpush.msra.mxu1 %v1990_v34  ;;  %v1575_v33 = vld [vmem:[%s7687_s8 + $0x6f0] sm:$0xff]  ;;  %v3333_v34 = vld [vmem:[%s7687_s8 + $0x3de0] sm:$0xff] }
 0x57b   : > { %5691 = vmatpush.msrb.mxu2 %v2565_v35  ;;  %5734 = vmatpush.msra.mxu0 %v1446_v16  ;;  %v2087_v35 = vld [vmem:[%s7687_s8 + $0x16f0] sm:$0xff]  ;;  %v2662_v16 = vld [vmem:[%s7687_s8 + $0x28e8] sm:$0xff] }
 0x57c   : > { %5627 = vmatpush.msra.mxu3 %v3204_v36  ;;  %5754 = vmatpush.msra.mxu1 %v1958_v2  ;;  %v1543_v36 = vld [vmem:[%s7687_s8 + $0x5f0] sm:$0xff]  ;;  %v3301_v2 = vld [vmem:[%s7687_s8 + $0x3ce0] sm:$0xff] }
 0x57d   : > { %5692 = vmatpush.msrb.mxu2 %v2533_v37  ;;  %5735 = vmatpush.msra.mxu0 %v1414_v39  ;;  %v2055_v37 = vld [vmem:[%s7687_s8 + $0x15f0] sm:$0xff]  ;;  %v2630_v39 = vld [vmem:[%s7687_s8 + $0x27e8] sm:$0xff] }
 0x57e   : > { %5628 = vmatpush.msra.mxu3 %v3172_v41  ;;  %5755 = vmatpush.msra.mxu1 %v1926_v42  ;;  %v1511_v41 = vld [vmem:[%s7687_s8 + $0x4f0] sm:$0xff]  ;;  %v3269_v42 = vld [vmem:[%s7687_s8 + $0x3be0] sm:$0xff] }
 0x57f   : > { %5693 = vmatpush.msrb.mxu2 %v2501_v21  ;;  %5736 = vmatpush.msra.mxu0 %v1382_v44  ;;  %v2023_v21 = vld [vmem:[%s7687_s8 + $0x14f0] sm:$0xff]  ;;  %v2598_v44 = vld [vmem:[%s7687_s8 + $0x26e8] sm:$0xff] }
 0x580   : > { %5629 = vmatpush.msra.mxu3 %v3140_v45  ;;  %5756 = vmatpush.msra.mxu1 %v1894_v46  ;;  %v1479_v45 = vld [vmem:[%s7687_s8 + $0x3f0] sm:$0xff]  ;;  %v3237_v46 = vld [vmem:[%s7687_s8 + $0x3ae0] sm:$0xff] }
 0x581   : > { %5737 = vmatmul.f32.vlgmr.msra.gmra.mxu0 %v8284_v40  ;;  %5757 = vmatmul.f32.vlgmr.msra.gmra.mxu1 %v8288_v43 }
 0x582   : > { %5801 = vmatpush.msrb.mxu0 %v1863_v60  ;;  %5821 = vmatpush.msrb.mxu1 %v2375_v47  ;;  %v1991_v60 = vld [vmem:[%s7687_s8 + $0x13f0] sm:$0xff]  ;;  %v2566_v47 = vld [vmem:[%s7687_s8 + $0x25e8] sm:$0xff] }
 0x583   : > { %5630 = vmatpush.msra.mxu3 %v3108_v26  ;;  %5694 = vmatpush.msrb.mxu2 %v2469_v32  ;;  %v1447_v26 = vld [vmem:[%s7687_s8 + $0x2f0] sm:$0xff]  ;;  %v3205_v32 = vld [vmem:[%s7687_s8 + $0x39e0] sm:$0xff] }
 0x584   : > { %5802 = vmatpush.msrb.mxu0 %v1831_v48  ;;  %5822 = vmatpush.msrb.mxu1 %v2343_v49  ;;  %v1959_v48 = vld [vmem:[%s7687_s8 + $0x12f0] sm:$0xff]  ;;  %v2534_v49 = vld [vmem:[%s7687_s8 + $0x24e8] sm:$0xff] }
 0x585   : > { %5631 = vmatpush.msra.mxu3 %v3076_v50  ;;  %5695 = vmatpush.msrb.mxu2 %v2437_v51  ;;  %v1415_v50 = vld [vmem:[%s7687_s8 + $0x1f0] sm:$0xff]  ;;  %v3173_v51 = vld [vmem:[%s7687_s8 + $0x38e0] sm:$0xff] }
 0x586   : > { %5803 = vmatpush.msrb.mxu0 %v1799_v3  ;;  %5823 = vmatpush.msrb.mxu1 %v2311_v52  ;;  %v1927_v3 = vld [vmem:[%s7687_s8 + $0x11f0] sm:$0xff]  ;;  %v2502_v52 = vld [vmem:[%s7687_s8 + $0x23e8] sm:$0xff] }
 0x587   : > { %5632 = vmatpush.msra.mxu3 %v3044_v53  ;;  %5696 = vmatpush.msrb.mxu2 %v2405_v54  ;;  %v1383_v53 = vld [vmem:[%s7687_s8 + $0xf0] sm:$0xff]  ;;  %v3141_v54 = vld [vmem:[%s7687_s8 + $0x37e0] sm:$0xff] }
 0x588   : > { %5697 = vmatmul.f32.vlgmr.msrb.gmra.mxu2 %v8401_v38  ;;  %5804 = vmatpush.msrb.mxu0 %v1767_v56  ;;  %v1895_v56 = vld [vmem:[%s7687_s8 + $0x10f0] sm:$0xff] }
 0x589   : > { %5761 = vmatpush.msra.mxu2 %v2886_v59  ;;  %5824 = vmatpush.msrb.mxu1 %v2279_v61  ;;  %v3109_v59 = vld [vmem:[%s7687_s8 + $0x36e0] sm:$0xff]  ;;  %v2470_v61 = vld [vmem:[%s7687_s8 + $0x22e8] sm:$0xff] }
 0x58a   : > { %5633 = vmatpush.msra.mxu3 %v3012_v62  ;;  %5805 = vmatpush.msrb.mxu0 %v1735_v63  ;;  %v1832_v62 = vld [vmem:[%s7687_s8 + $0xef8] sm:$0xff] }
 0x58b   : > { %5762 = vmatpush.msra.mxu2 %v2854_v4  ;;  %5825 = vmatpush.msrb.mxu1 %v2247_v5  ;;  %v2344_v63 = vld [vmem:[%s7687_s8 + $0x1ef8] sm:$0xff]  ;;  %v2438_v4 = vld [vmem:[%s7687_s8 + $0x21e8] sm:$0xff] }
 0x58c   : > { %5634 = vmatpush.msra.mxu3 %v2980_v7  ;;  %5806 = vmatpush.msrb.mxu0 %v1703_v8  ;;  %v5318_v18 = vpop.f32.mrf.mxu3  ;;  %v1800_v5 = vld [vmem:[%s7687_s8 + $0xdf8] sm:$0xff]  ;;  %v3045_v7 = vld [vmem:[%s7687_s8 + $0x34e0] sm:$0xff]  ;;  %v2406_v8 = vld [vmem:[%s7687_s8 + $0x20e8] sm:$0xff] }
 0x58d   : > { %5763 = vmatpush.msra.mxu2 %v2822_v9  ;;  %5826 = vmatpush.msrb.mxu1 %v2215_v10  ;;  %v5319_v22 = vadd.f32 %v5318_v18, %v5299_v11  ;;  %v1768_v9 = vld [vmem:[%s7687_s8 + $0xcf8] sm:$0xff]  ;;  %v5338_v10 = vpop.f32.mrf.mxu0  ;;  %v5358_v11 = vpop.f32.mrf.mxu1  ;;  %v2855_v18 = vld [vmem:[%s7687_s8 + $0x2ef0] sm:$0xff] }
 0x58e   : > { %5635 = vmatpush.msra.mxu3 %v2948_v12  ;;  %5807 = vmatpush.msrb.mxu0 %v1671_v13  ;;  %v2887_v12 = vld [vmem:[%s7687_s8 + $0x2ff0] sm:$0xff]  ;;  %v2280_v13 = vld [vmem:[%s7687_s8 + $0x1cf8] sm:$0xff] }
 0x58f   : > { %5764 = vmatpush.msra.mxu2 %v2790_v14  ;;  %5827 = vmatpush.msrb.mxu1 %v2183_v15  ;;  %v5984_v27 = vadd.f32 %v5319_v22, %v1344_v17  ;;  %v3013_v14 = vld [vmem:[%s7687_s8 + $0x33e0] sm:$0xff]  ;;  %v1736_v15 = vld [vmem:[%s7687_s8 + $0xbf8] sm:$0xff]  ;;  %v5378_v17 = vpop.f32.mrf.mxu2 }
 0x590   : > { %5636 = vmatpush.msra.mxu3 %v2916_v19  ;;  %5808 = vmatpush.msrb.mxu0 %v1639_v20  ;;  %v2248_v19 = vld [vmem:[%s7687_s8 + $0x1bf8] sm:$0xff]  ;;  %v5359_v20 = vadd.f32 %v5358_v11, %v5338_v10  ;;  %v2981_v22 = vld [vmem:[%s7687_s8 + $0x32e0] sm:$0xff]  ;;  %v3110_v10 = vld [vmem:[%s7687_s8 + $0x36e8] sm:$0xff] }
 0x591   : > { %5637 = vmatmul.f32.vlgmr.msra.gmra.mxu3 %v8477_v55  ;;  %5765 = vmatpush.msra.mxu2 %v2758_v23  ;;  %6016 = vst [vmem:[#allocation2 + $0xc0] sm:$0xff] %v5984_v27  ;;  %v1704_v23 = vld [vmem:[%s7687_s8 + $0xaf8] sm:$0xff]  ;;  %v2471_v11 = vld [vmem:[%s7687_s8 + $0x22f0] sm:$0xff] }
 0x592   : > { %5701 = vmatpush.msrb.mxu3 %v3397_v24  ;;  %5828 = vmatpush.msrb.mxu1 %v2151_v25  ;;  %v2823_v24 = vld [vmem:[%s7687_s8 + $0x2df0] sm:$0xff]  ;;  %v2216_v25 = vld [vmem:[%s7687_s8 + $0x1af8] sm:$0xff]  ;;  %v5379_v27 = vadd.f32 %v5378_v17, %v5359_v20 }
 0x593   : > { %5766 = vmatpush.msra.mxu2 %v2726_v28  ;;  %5809 = vmatpush.msrb.mxu0 %v1607_v29  ;;  %v2949_v28 = vld [vmem:[%s7687_s8 + $0x31e0] sm:$0xff]  ;;  %v1672_v29 = vld [vmem:[%s7687_s8 + $0x9f8] sm:$0xff] }
 0x594   : > { %5702 = vmatpush.msrb.mxu3 %v3365_v30  ;;  %5829 = vmatpush.msrb.mxu1 %v2119_v31  ;;  %v2791_v30 = vld [vmem:[%s7687_s8 + $0x2cf0] sm:$0xff]  ;;  %v2184_v31 = vld [vmem:[%s7687_s8 + $0x19f8] sm:$0xff] }
 0x595   : > { %5767 = vmatpush.msra.mxu2 %v2694_v1  ;;  %5810 = vmatpush.msrb.mxu0 %v1575_v33  ;;  %v1345_v1 = vld [vmem:[#allocation2 + $0xa8] sm:$0xff]  ;;  %v2888_v17 = vld [vmem:[%s7687_s8 + $0x2ff8] sm:$0xff]  ;;  %v5438_v20 = vpop.f32.mrf.mxu1 }
 0x596   : > { %5703 = vmatpush.msrb.mxu3 %v3333_v34  ;;  %5830 = vmatpush.msrb.mxu1 %v2087_v35  ;;  %v2917_v34 = vld [vmem:[%s7687_s8 + $0x30e0] sm:$0xff]  ;;  %v1640_v35 = vld [vmem:[%s7687_s8 + $0x8f8] sm:$0xff] }
 0x597   : > { %5768 = vmatpush.msra.mxu2 %v2662_v16  ;;  %5811 = vmatpush.msrb.mxu0 %v1543_v36  ;;  %v2759_v36 = vld [vmem:[%s7687_s8 + $0x2bf0] sm:$0xff] }
 0x598   : > { %5704 = vmatpush.msrb.mxu3 %v3301_v2  ;;  %5831 = vmatpush.msrb.mxu1 %v2055_v37  ;;  %v3398_v2 = vld [vmem:[%s7687_s8 + $0x3fe8] sm:$0xff]  ;;  %v2152_v37 = vld [vmem:[%s7687_s8 + $0x18f8] sm:$0xff] }
 0x599   : > { %5769 = vmatpush.msra.mxu2 %v2630_v39  ;;  %5812 = vmatpush.msrb.mxu0 %v1511_v41  ;;  %v2727_v41 = vld [vmem:[%s7687_s8 + $0x2af0] sm:$0xff] }
 0x59a   : > { %5705 = vmatpush.msrb.mxu3 %v3269_v42  ;;  %5832 = vmatpush.msrb.mxu1 %v2023_v21  ;;  %v1608_v42 = vld [vmem:[%s7687_s8 + $0x7f8] sm:$0xff]  ;;  %v3366_v21 = vld [vmem:[%s7687_s8 + $0x3ee8] sm:$0xff] }
 0x59b   : > { %5770 = vmatpush.msra.mxu2 %v2598_v44  ;;  %5813 = vmatpush.msrb.mxu0 %v1479_v45  ;;  %v2120_v44 = vld [vmem:[%s7687_s8 + $0x17f8] sm:$0xff]  ;;  %v2695_v45 = vld [vmem:[%s7687_s8 + $0x29f0] sm:$0xff] }
 0x59c   : > { %5706 = vmatpush.msrb.mxu3 %v3237_v46  ;;  %5833 = vmatpush.msrb.mxu1 %v1991_v60  ;;  %v1576_v46 = vld [vmem:[%s7687_s8 + $0x6f8] sm:$0xff]  ;;  %v3334_v60 = vld [vmem:[%s7687_s8 + $0x3de8] sm:$0xff] }
 0x59d   : > { %5771 = vmatpush.msra.mxu2 %v2566_v47  ;;  %5814 = vmatpush.msrb.mxu0 %v1447_v26  ;;  %v2088_v47 = vld [vmem:[%s7687_s8 + $0x16f8] sm:$0xff]  ;;  %v2663_v26 = vld [vmem:[%s7687_s8 + $0x28f0] sm:$0xff] }
 0x59e   : > { %5707 = vmatpush.msrb.mxu3 %v3205_v32  ;;  %5834 = vmatpush.msrb.mxu1 %v1959_v48  ;;  %v1544_v32 = vld [vmem:[%s7687_s8 + $0x5f8] sm:$0xff]  ;;  %v3302_v48 = vld [vmem:[%s7687_s8 + $0x3ce8] sm:$0xff] }
 0x59f   : > { %5772 = vmatpush.msra.mxu2 %v2534_v49  ;;  %5815 = vmatpush.msrb.mxu0 %v1415_v50  ;;  %v2056_v49 = vld [vmem:[%s7687_s8 + $0x15f8] sm:$0xff]  ;;  %v2631_v50 = vld [vmem:[%s7687_s8 + $0x27f0] sm:$0xff] }
 0x5a0   : > { %5708 = vmatpush.msrb.mxu3 %v3173_v51  ;;  %5835 = vmatpush.msrb.mxu1 %v1927_v3  ;;  %v1512_v51 = vld [vmem:[%s7687_s8 + $0x4f8] sm:$0xff]  ;;  %v3270_v3 = vld [vmem:[%s7687_s8 + $0x3be8] sm:$0xff] }
 0x5a1   : > { %5773 = vmatpush.msra.mxu2 %v2502_v52  ;;  %5816 = vmatpush.msrb.mxu0 %v1383_v53  ;;  %v2024_v52 = vld [vmem:[%s7687_s8 + $0x14f8] sm:$0xff]  ;;  %v2599_v53 = vld [vmem:[%s7687_s8 + $0x26f0] sm:$0xff] }
 0x5a2   : > { %5709 = vmatpush.msrb.mxu3 %v3141_v54  ;;  %5836 = vmatpush.msrb.mxu1 %v1895_v56  ;;  %v1480_v54 = vld [vmem:[%s7687_s8 + $0x3f8] sm:$0xff]  ;;  %v3238_v56 = vld [vmem:[%s7687_s8 + $0x3ae8] sm:$0xff] }
 0x5a3   : > { %5817 = vmatmul.f32.vlgmr.msrb.gmra.mxu0 %v8284_v40  ;;  %5837 = vmatmul.f32.vlgmr.msrb.gmra.mxu1 %v8288_v43 }
 0x5a4   : > { %5881 = vmatpush.msra.mxu0 %v1864_v57  ;;  %5901 = vmatpush.msra.mxu1 %v2376_v58  ;;  %v1992_v57 = vld [vmem:[%s7687_s8 + $0x13f8] sm:$0xff]  ;;  %v2567_v58 = vld [vmem:[%s7687_s8 + $0x25f0] sm:$0xff] }
 0x5a5   : > { %5710 = vmatpush.msrb.mxu3 %v3109_v59  ;;  %5774 = vmatpush.msra.mxu2 %v2470_v61  ;;  %v1448_v59 = vld [vmem:[%s7687_s8 + $0x2f8] sm:$0xff]  ;;  %v3206_v61 = vld [vmem:[%s7687_s8 + $0x39e8] sm:$0xff] }
 0x5a6   : > { %5882 = vmatpush.msra.mxu0 %v1832_v62  ;;  %5902 = vmatpush.msra.mxu1 %v2344_v63  ;;  %v1960_v62 = vld [vmem:[%s7687_s8 + $0x12f8] sm:$0xff]  ;;  %v2535_v63 = vld [vmem:[%s7687_s8 + $0x24f0] sm:$0xff] }
 0x5a7   : > { %5711 = vmatpush.msrb.mxu3 %v3077_v0  ;;  %5775 = vmatpush.msra.mxu2 %v2438_v4  ;;  %v1416_v0 = vld [vmem:[%s7687_s8 + $0x1f8] sm:$0xff]  ;;  %v3174_v4 = vld [vmem:[%s7687_s8 + $0x38e8] sm:$0xff] }
 0x5a8   : > { %5883 = vmatpush.msra.mxu0 %v1800_v5  ;;  %5903 = vmatpush.msra.mxu1 %v2312_v6  ;;  %v1928_v5 = vld [vmem:[%s7687_s8 + $0x11f8] sm:$0xff]  ;;  %v2503_v6 = vld [vmem:[%s7687_s8 + $0x23f0] sm:$0xff] }
 0x5a9   : > { %5712 = vmatpush.msrb.mxu3 %v3045_v7  ;;  %5776 = vmatpush.msra.mxu2 %v2406_v8  ;;  %v1384_v7 = vld [vmem:[%s7687_s8 + $0xf8] sm:$0xff]  ;;  %v3142_v8 = vld [vmem:[%s7687_s8 + $0x37e8] sm:$0xff] }
 0x5aa   : > { %5777 = vmatmul.f32.vlgmr.msra.gmra.mxu2 %v8401_v38  ;;  %5884 = vmatpush.msra.mxu0 %v1768_v9  ;;  %v1896_v9 = vld [vmem:[%s7687_s8 + $0x10f8] sm:$0xff] }
 0x5ab   : > { %5841 = vmatpush.msrb.mxu2 %v2887_v12  ;;  %5904 = vmatpush.msra.mxu1 %v2280_v13  ;;  %v3078_v12 = vld [vmem:[%s7687_s8 + $0x35e8] sm:$0xff]  ;;  %v2439_v13 = vld [vmem:[%s7687_s8 + $0x21f0] sm:$0xff] }
 0x5ac   : > { %5713 = vmatpush.msrb.mxu3 %v3013_v14  ;;  %5885 = vmatpush.msra.mxu0 %v1736_v15  ;;  %v3046_v14 = vld [vmem:[%s7687_s8 + $0x34e8] sm:$0xff]  ;;  %v2407_v15 = vld [vmem:[%s7687_s8 + $0x20f0] sm:$0xff] }
 0x5ad   : > { %5842 = vmatpush.msrb.mxu2 %v2855_v18  ;;  %5905 = vmatpush.msra.mxu1 %v2248_v19  ;;  %v3014_v18 = vld [vmem:[%s7687_s8 + $0x33e8] sm:$0xff]  ;;  %v5418_v19 = vpop.f32.mrf.mxu0 }
 0x5ae   : > { %5714 = vmatpush.msrb.mxu3 %v2981_v22  ;;  %5886 = vmatpush.msra.mxu0 %v1704_v23  ;;  %v5398_v33 = vpop.f32.mrf.mxu3  ;;  %v5458_v22 = vpop.f32.mrf.mxu2  ;;  %v5439_v23 = vadd.f32 %v5438_v20, %v5418_v19  ;;  %v3048_v19 = vld [vmem:[%s7687_s8 + $0x34f8] sm:$0xff] }
 0x5af   : > { %5843 = vmatpush.msrb.mxu2 %v2823_v24  ;;  %5906 = vmatpush.msra.mxu1 %v2216_v25  ;;  %v5399_v16 = vadd.f32 %v5398_v33, %v5379_v27  ;;  %v2824_v24 = vld [vmem:[%s7687_s8 + $0x2df8] sm:$0xff]  ;;  %v2950_v25 = vld [vmem:[%s7687_s8 + $0x31e8] sm:$0xff] }
 0x5b0   : > { %5715 = vmatpush.msrb.mxu3 %v2949_v28  ;;  %5887 = vmatpush.msra.mxu0 %v1672_v29  ;;  %v5459_v27 = vadd.f32 %v5458_v22, %v5439_v23  ;;  %v2792_v28 = vld [vmem:[%s7687_s8 + $0x2cf8] sm:$0xff]  ;;  %v2918_v29 = vld [vmem:[%s7687_s8 + $0x30e8] sm:$0xff] }
 0x5b1   : > { %5844 = vmatpush.msrb.mxu2 %v2791_v30  ;;  %5907 = vmatpush.msra.mxu1 %v2184_v31  ;;  %v5985_v39 = vadd.f32 %v5399_v16, %v1345_v1  ;;  %v1346_v30 = vld [vmem:[#allocation2 + $0xd0] sm:$0xff]  ;;  %v2760_v33 = vld [vmem:[%s7687_s8 + $0x2bf8] sm:$0xff] }
 0x5b2   : > { %5716 = vmatpush.msrb.mxu3 %v2917_v34  ;;  %5888 = vmatpush.msra.mxu0 %v1640_v35  ;;  %v3399_v1 = vld [vmem:[%s7687_s8 + $0x3ff0] sm:$0xff]  ;;  %v2728_v16 = vld [vmem:[%s7687_s8 + $0x2af8] sm:$0xff] }
 0x5b3   : > { %5717 = vmatmul.f32.vlgmr.msrb.gmra.mxu3 %v8477_v55  ;;  %5845 = vmatpush.msrb.mxu2 %v2759_v36  ;;  %6017 = vst [vmem:[#allocation2 + $0xa8] sm:$0xff] %v5985_v39  ;;  %v3367_v35 = vld [vmem:[%s7687_s8 + $0x3ef0] sm:$0xff]  ;;  %v3016_v20 = vld [vmem:[%s7687_s8 + $0x33f8] sm:$0xff] }
 0x5b4   : > { %5781 = vmatpush.msra.mxu3 %v3398_v2  ;;  %5908 = vmatpush.msra.mxu1 %v2152_v37  ;;  %v3335_v2 = vld [vmem:[%s7687_s8 + $0x3df0] sm:$0xff]  ;;  %v2696_v37 = vld [vmem:[%s7687_s8 + $0x29f8] sm:$0xff] }
 0x5b5   : > { %5846 = vmatpush.msrb.mxu2 %v2727_v41  ;;  %5889 = vmatpush.msra.mxu0 %v1608_v42  ;;  %v3303_v39 = vld [vmem:[%s7687_s8 + $0x3cf0] sm:$0xff]  ;;  %v2664_v41 = vld [vmem:[%s7687_s8 + $0x28f8] sm:$0xff] }
 0x5b6   : > { %5782 = vmatpush.msra.mxu3 %v3366_v21  ;;  %5909 = vmatpush.msra.mxu1 %v2120_v44  ;;  %v3271_v42 = vld [vmem:[%s7687_s8 + $0x3bf0] sm:$0xff]  ;;  %v2632_v21 = vld [vmem:[%s7687_s8 + $0x27f8] sm:$0xff] }
 0x5b7   : > { %5847 = vmatpush.msrb.mxu2 %v2695_v45  ;;  %5890 = vmatpush.msra.mxu0 %v1576_v46  ;;  %v3239_v44 = vld [vmem:[%s7687_s8 + $0x3af0] sm:$0xff]  ;;  %v2600_v45 = vld [vmem:[%s7687_s8 + $0x26f8] sm:$0xff] }
 0x5b8   : > { %5783 = vmatpush.msra.mxu3 %v3334_v60  ;;  %5910 = vmatpush.msra.mxu1 %v2088_v47  ;;  %v3207_v46 = vld [vmem:[%s7687_s8 + $0x39f0] sm:$0xff]  ;;  %v2568_v60 = vld [vmem:[%s7687_s8 + $0x25f8] sm:$0xff] }
 0x5b9   : > { %5848 = vmatpush.msrb.mxu2 %v2663_v26  ;;  %5891 = vmatpush.msra.mxu0 %v1544_v32  ;;  %v3175_v47 = vld [vmem:[%s7687_s8 + $0x38f0] sm:$0xff]  ;;  %v2536_v26 = vld [vmem:[%s7687_s8 + $0x24f8] sm:$0xff] }
 0x5ba   : > { %5784 = vmatpush.msra.mxu3 %v3302_v48  ;;  %5911 = vmatpush.msra.mxu1 %v2056_v49  ;;  %v3143_v32 = vld [vmem:[%s7687_s8 + $0x37f0] sm:$0xff]  ;;  %v2504_v48 = vld [vmem:[%s7687_s8 + $0x23f8] sm:$0xff] }
 0x5bb   : > { %5849 = vmatpush.msrb.mxu2 %v2631_v50  ;;  %5892 = vmatpush.msra.mxu0 %v1512_v51  ;;  %v3111_v49 = vld [vmem:[%s7687_s8 + $0x36f0] sm:$0xff]  ;;  %v2472_v50 = vld [vmem:[%s7687_s8 + $0x22f8] sm:$0xff] }
 0x5bc   : > { %5785 = vmatpush.msra.mxu3 %v3270_v3  ;;  %5912 = vmatpush.msra.mxu1 %v2024_v52  ;;  %v3079_v51 = vld [vmem:[%s7687_s8 + $0x35f0] sm:$0xff]  ;;  %v2440_v3 = vld [vmem:[%s7687_s8 + $0x21f8] sm:$0xff] }
 0x5bd   : > { %5850 = vmatpush.msrb.mxu2 %v2599_v53  ;;  %5893 = vmatpush.msra.mxu0 %v1480_v54  ;;  %v3047_v52 = vld [vmem:[%s7687_s8 + $0x34f0] sm:$0xff]  ;;  %v2408_v53 = vld [vmem:[%s7687_s8 + $0x20f8] sm:$0xff] }
 0x5be   : > { %5786 = vmatpush.msra.mxu3 %v3238_v56  ;;  %5913 = vmatpush.msra.mxu1 %v1992_v57  ;;  %v3015_v54 = vld [vmem:[%s7687_s8 + $0x33f0] sm:$0xff]  ;;  %v5498_v57 = vpop.f32.mrf.mxu0 }
 0x5bf   : > { %5851 = vmatpush.msrb.mxu2 %v2567_v58  ;;  %5894 = vmatpush.msra.mxu0 %v1448_v59  ;;  %v2983_v56 = vld [vmem:[%s7687_s8 + $0x32f0] sm:$0xff]  ;;  %v5518_v58 = vpop.f32.mrf.mxu1 }
 0x5c0   : > { %5787 = vmatpush.msra.mxu3 %v3206_v61  ;;  %5914 = vmatpush.msra.mxu1 %v1960_v62  ;;  %v2951_v59 = vld [vmem:[%s7687_s8 + $0x31f0] sm:$0xff]  ;;  %v5519_v62 = vadd.f32 %v5518_v58, %v5498_v57 }
 0x5c1   : > { %5852 = vmatpush.msrb.mxu2 %v2535_v63  ;;  %5895 = vmatpush.msra.mxu0 %v1416_v0  ;;  %v2919_v63 = vld [vmem:[%s7687_s8 + $0x30f0] sm:$0xff] }
 0x5c2   : > { %5788 = vmatpush.msra.mxu3 %v3174_v4  ;;  %5915 = vmatpush.msra.mxu1 %v1928_v5  ;;  %v3400_v4 = vld [vmem:[%s7687_s8 + $0x3ff8] sm:$0xff]  ;;  %v1347_v5 = vld [vmem:[#allocation2 + $0x10] sm:$0xff] }
 0x5c3   : > { %5853 = vmatpush.msrb.mxu2 %v2503_v6  ;;  %5896 = vmatpush.msra.mxu0 %v1384_v7  ;;  %v3368_v6 = vld [vmem:[%s7687_s8 + $0x3ef8] sm:$0xff] }
 0x5c4   : > { %5789 = vmatpush.msra.mxu3 %v3142_v8  ;;  %5916 = vmatpush.msra.mxu1 %v1896_v9  ;;  %v3336_v8 = vld [vmem:[%s7687_s8 + $0x3df8] sm:$0xff] }
 0x5c5   : > { %5897 = vmatmul.f32.vlgmr.msra.gmra.mxu0 %v8284_v40  ;;  %5917 = vmatmul.f32.vlgmr.msra.gmra.mxu1 %v8288_v43  ;;  %v2856_v40 = vld [vmem:[%s7687_s8 + $0x2ef8] sm:$0xff]  ;;  %v2982_v43 = vld [vmem:[%s7687_s8 + $0x32e8] sm:$0xff] }
 0x5c6   : > { %5790 = vmatpush.msra.mxu3 %v3110_v10  ;;  %5854 = vmatpush.msrb.mxu2 %v2471_v11  ;;  %v3304_v10 = vld [vmem:[%s7687_s8 + $0x3cf8] sm:$0xff]  ;;  %v5578_v22 = vpop.f32.mrf.mxu0 }
 0x5c7   : > { %v5538_v61 = vpop.f32.mrf.mxu2  ;;  %v3272_v11 = vld [vmem:[%s7687_s8 + $0x3bf8] sm:$0xff]  ;;  %v5598_v23 = vpop.f32.mrf.mxu1 }
 0x5c8   : > { %5791 = vmatpush.msra.mxu3 %v3078_v12  ;;  %5855 = vmatpush.msrb.mxu2 %v2439_v13  ;;  %v5539_v0 = vadd.f32 %v5538_v61, %v5519_v62  ;;  %v3240_v12 = vld [vmem:[%s7687_s8 + $0x3af8] sm:$0xff] }
 0x5c9   : > { %v3208_v13 = vld [vmem:[%s7687_s8 + $0x39f8] sm:$0xff] }
 0x5ca   : > { %5792 = vmatpush.msra.mxu3 %v3046_v14  ;;  %5856 = vmatpush.msrb.mxu2 %v2407_v15  ;;  %v3176_v14 = vld [vmem:[%s7687_s8 + $0x38f8] sm:$0xff] }
 0x5cb   : > { %5857 = vmatmul.f32.vlgmr.msrb.gmra.mxu2 %v8401_v38  ;;  %v3144_v15 = vld [vmem:[%s7687_s8 + $0x37f8] sm:$0xff] }
 0x5cc   : > { %5921 = vmatpush.msra.mxu2 %v2888_v17  ;;  %5793 = vmatpush.msra.mxu3 %v3014_v18  ;;  %v3112_v17 = vld [vmem:[%s7687_s8 + $0x36f8] sm:$0xff] }
 0x5cd   : > { %v3080_v18 = vld [vmem:[%s7687_s8 + $0x35f8] sm:$0xff] }
 0x5ce   : > { %5922 = vmatpush.msra.mxu2 %v2856_v40  ;;  %5794 = vmatpush.msra.mxu3 %v2982_v43  ;;  %v2984_v40 = vld [vmem:[%s7687_s8 + $0x32f8] sm:$0xff] }
 0x5cf   : > { %v2952_v43 = vld [vmem:[%s7687_s8 + $0x31f8] sm:$0xff] }
 0x5d0   : > { %5923 = vmatpush.msra.mxu2 %v2824_v24  ;;  %5795 = vmatpush.msra.mxu3 %v2950_v25  ;;  %v5478_v31 = vpop.f32.mrf.mxu3  ;;  %v2920_v24 = vld [vmem:[%s7687_s8 + $0x30f8] sm:$0xff] }
 0x5d1   : > { %v5479_v34 = vadd.f32 %v5478_v31, %v5459_v27  ;;  %v5599_v27 = vadd.f32 %v5598_v23, %v5578_v22  ;;  %v1352_v62 = vld [vmem:[#allocation2 + $0x98] sm:$0xff] }
 0x5d2   : > { %5924 = vmatpush.msra.mxu2 %v2792_v28  ;;  %5796 = vmatpush.msra.mxu3 %v2918_v29  ;;  %v1348_v29 = vld [vmem:[#allocation2 + $0x28] sm:$0xff] }
 0x5d3   : > { %5797 = vmatmul.f32.vlgmr.msra.gmra.mxu3 %v8477_v55  ;;  %v5986_v36 = vadd.f32 %v5479_v34, %v1346_v30 }
 0x5d4   : > { %5861 = vmatpush.msrb.mxu3 %v3399_v1  ;;  %5925 = vmatpush.msra.mxu2 %v2760_v33 }
 0x5d5   : > { %6018 = vst [vmem:[#allocation2 + $0xd0] sm:$0xff] %v5986_v36 }
 0x5d6   : > { %5862 = vmatpush.msrb.mxu3 %v3367_v35  ;;  %5926 = vmatpush.msra.mxu2 %v2728_v16 }
 0x5d8   : > { %5863 = vmatpush.msrb.mxu3 %v3335_v2  ;;  %5927 = vmatpush.msra.mxu2 %v2696_v37  ;;  %v1349_v2 = vld [vmem:[#allocation2 + $0xa0] sm:$0xff] }
 0x5da   : > { %5864 = vmatpush.msrb.mxu3 %v3303_v39  ;;  %5928 = vmatpush.msra.mxu2 %v2664_v41 }
 0x5dc   : > { %5865 = vmatpush.msrb.mxu3 %v3271_v42  ;;  %5929 = vmatpush.msra.mxu2 %v2632_v21  ;;  %v5658_v33 = vpop.f32.mrf.mxu0  ;;  %v5678_v34 = vpop.f32.mrf.mxu1 }
 0x5dd   : > { %v5679_v16 = vadd.f32 %v5678_v34, %v5658_v33 }
 0x5de   : > { %5866 = vmatpush.msrb.mxu3 %v3239_v44  ;;  %5930 = vmatpush.msra.mxu2 %v2600_v45 }
 0x5e0   : > { %5867 = vmatpush.msrb.mxu3 %v3207_v46  ;;  %5931 = vmatpush.msra.mxu2 %v2568_v60  ;;  %v1350_v46 = vld [vmem:[#allocation2 + $0xf8] sm:$0xff] }
 0x5e2   : > { %5868 = vmatpush.msrb.mxu3 %v3175_v47  ;;  %5932 = vmatpush.msra.mxu2 %v2536_v26 }
 0x5e4   : > { %5869 = vmatpush.msrb.mxu3 %v3143_v32  ;;  %5933 = vmatpush.msra.mxu2 %v2504_v48 }
 0x5e6   : > { %5870 = vmatpush.msrb.mxu3 %v3111_v49  ;;  %5934 = vmatpush.msra.mxu2 %v2472_v50 }
 0x5e8   : > { %5871 = vmatpush.msrb.mxu3 %v3079_v51  ;;  %5935 = vmatpush.msra.mxu2 %v2440_v3  ;;  %v1351_v3 = vld [vmem:[#allocation2 + $0x20] sm:$0xff] }
 0x5e9   : > { %v5618_v25 = vpop.f32.mrf.mxu2 }
 0x5ea   : > { %5872 = vmatpush.msrb.mxu3 %v3047_v52  ;;  %5936 = vmatpush.msra.mxu2 %v2408_v53  ;;  %v5619_v28 = vadd.f32 %v5618_v25, %v5599_v27 }
 0x5eb   : > { %5937 = vmatmul.f32.vlgmr.msra.gmra.mxu2 %v8401_v38 }
 0x5ec   : > { %5873 = vmatpush.msrb.mxu3 %v3015_v54 }
 0x5ee   : > { %5874 = vmatpush.msrb.mxu3 %v2983_v56 }
 0x5f0   : > { %5875 = vmatpush.msrb.mxu3 %v2951_v59 }
 0x5f2   : > { %5876 = vmatpush.msrb.mxu3 %v2919_v63  ;;  %v5558_v38 = vpop.f32.mrf.mxu3 }
 0x5f3   : > { %5877 = vmatmul.f32.vlgmr.msrb.gmra.mxu3 %v8477_v55  ;;  %v5559_v7 = vadd.f32 %v5558_v38, %v5539_v0 }
 0x5f4   : > { %5941 = vmatpush.msra.mxu3 %v3400_v4 }
 0x5f5   : > { %v5987_v9 = vadd.f32 %v5559_v7, %v1347_v5 }
 0x5f6   : > { %5942 = vmatpush.msra.mxu3 %v3368_v6 }
 0x5f7   : > { %6019 = vst [vmem:[#allocation2 + $0x10] sm:$0xff] %v5987_v9 }
 0x5f8   : > { %5943 = vmatpush.msra.mxu3 %v3336_v8 }
 0x5fa   : > { %5944 = vmatpush.msra.mxu3 %v3304_v10 }
 0x5fc   : > { %5945 = vmatpush.msra.mxu3 %v3272_v11 }
 0x5fe   : > { %5946 = vmatpush.msra.mxu3 %v3240_v12  ;;  %v5738_v42 = vpop.f32.mrf.mxu0  ;;  %v5758_v21 = vpop.f32.mrf.mxu1 }
 0x5ff   : > { %v5759_v45 = vadd.f32 %v5758_v21, %v5738_v42 }
 0x600   : > { %5947 = vmatpush.msra.mxu3 %v3208_v13 }
 0x602   : > { %5948 = vmatpush.msra.mxu3 %v3176_v14 }
 0x604   : > { %5949 = vmatpush.msra.mxu3 %v3144_v15 }
 0x606   : > { %5950 = vmatpush.msra.mxu3 %v3112_v17 }
 0x608   : > { %5951 = vmatpush.msra.mxu3 %v3080_v18 }
 0x60a   : > { %5952 = vmatpush.msra.mxu3 %v3048_v19 }
 0x60b   : > { %v5698_v35 = vpop.f32.mrf.mxu2 }
 0x60c   : > { %5953 = vmatpush.msra.mxu3 %v3016_v20  ;;  %v5699_v36 = vadd.f32 %v5698_v35, %v5679_v16 }
 0x60e   : > { %5954 = vmatpush.msra.mxu3 %v2984_v40 }
 0x610   : > { %5955 = vmatpush.msra.mxu3 %v2952_v43 }
 0x612   : > { %5956 = vmatpush.msra.mxu3 %v2920_v24 }
 0x613   : > { %5957 = vmatmul.f32.vlgmr.msra.gmra.mxu3 %v8477_v55 }
 0x614   : > { %v5638_v30 = vpop.f32.mrf.mxu3 }
 0x615   : > { %v5639_v31 = vadd.f32 %v5638_v30, %v5619_v28 }
 0x617   : > { %v5988_v1 = vadd.f32 %v5639_v31, %v1348_v29 }
 0x619   : > { %6020 = vst [vmem:[#allocation2 + $0x28] sm:$0xff] %v5988_v1 }
 0x620   : > { %v5818_v32 = vpop.f32.mrf.mxu0  ;;  %v5838_v48 = vpop.f32.mrf.mxu1 }
 0x621   : > { %v5839_v50 = vadd.f32 %v5838_v48, %v5818_v32 }
 0x62d   : > { %v5778_v44 = vpop.f32.mrf.mxu2 }
 0x62e   : > { %v5779_v55 = vadd.f32 %v5778_v44, %v5759_v45 }
 0x636   : > { %v5718_v37 = vpop.f32.mrf.mxu3 }
 0x637   : > { %v5719_v39 = vadd.f32 %v5718_v37, %v5699_v36 }
 0x639   : > { %v5989_v41 = vadd.f32 %v5719_v39, %v1349_v2 }
 0x63b   : > { %6021 = vst [vmem:[#allocation2 + $0xa0] sm:$0xff] %v5989_v41 }
 0x642   : > { %v5898_v56 = vpop.f32.mrf.mxu0  ;;  %v5918_v57 = vpop.f32.mrf.mxu1 }
 0x643   : > { %v5919_v59 = vadd.f32 %v5918_v57, %v5898_v56 }
 0x64e   : > { %v5858_v49 = vpop.f32.mrf.mxu2 }
 0x64f   : > { %v5859_v51 = vadd.f32 %v5858_v49, %v5839_v50 }
 0x656   : > { %v5798_v60 = vpop.f32.mrf.mxu3 }
 0x657   : > { %v5799_v47 = vadd.f32 %v5798_v60, %v5779_v55 }
 0x659   : > { %v5990_v26 = vadd.f32 %v5799_v47, %v1350_v46 }
 0x65b   : > { %6022 = vst [vmem:[#allocation2 + $0xf8] sm:$0xff] %v5990_v26 }
 0x66e   : > { %v5938_v58 = vpop.f32.mrf.mxu2 }
 0x66f   : > { %v5939_v61 = vadd.f32 %v5938_v58, %v5919_v59 }
 0x676   : > { %v5878_v52 = vpop.f32.mrf.mxu3 }
 0x677   : > { %v5879_v53 = vadd.f32 %v5878_v52, %v5859_v51 }
 0x679   : > { %v5991_v54 = vadd.f32 %v5879_v53, %v1351_v3 }
 0x67b   : > { %6023 = vst [vmem:[#allocation2 + $0x20] sm:$0xff] %v5991_v54 }
 0x696   : > { %v5958_v63 = vpop.f32.mrf.mxu3 }
 0x697   : > { %v5959_v0 = vadd.f32 %v5958_v63, %v5939_v61  ;;  %6028 = sbr.rel (%p7331_p1) target bundleno = 2100 (0x834), region = 56 }
 0x699   : > { %v5992_v4 = vadd.f32 %v5959_v0, %v1352_v62 }
 0x69b   : > { %6024 = vst [vmem:[#allocation2 + $0x98] sm:$0xff] %v5992_v4 }
 0x69c   : > { %v6108_v5 = vld [vmem:[#allocation7 + $0x78] sm:$0xff]  ;;  %v6107_v6 = vld [vmem:[#allocation7 + $0x70] sm:$0xff]  ;;  %v6106_v10 = vld [vmem:[#allocation7 + $0x68] sm:$0xff] }
 0x69d   : > { %v6140_v38 = vld [vmem:[#allocation7 + $0x178] sm:$0xff]  ;;  %6605 = vmatpush.msra.mxu0 %v6108_v5  ;;  %v6139_v8 = vld [vmem:[#allocation7 + $0x170] sm:$0xff]  ;;  %v6138_v12 = vld [vmem:[#allocation7 + $0x168] sm:$0xff] }
 0x69e   : > { %6645 = vmatpush.msra.mxu2 %v6140_v38  ;;  %v6124_v7 = vld [vmem:[#allocation7 + $0xf8] sm:$0xff]  ;;  %v6123_v11 = vld [vmem:[#allocation7 + $0xf0] sm:$0xff]  ;;  %v6122_v14 = vld [vmem:[#allocation7 + $0xe8] sm:$0xff] }
 0x69f   : > { %v6156_v9 = vld [vmem:[#allocation7 + $0x1f8] sm:$0xff]  ;;  %6625 = vmatpush.msra.mxu1 %v6124_v7  ;;  %6606 = vmatpush.msra.mxu0 %v6107_v6  ;;  %v6155_v13 = vld [vmem:[#allocation7 + $0x1f0] sm:$0xff]  ;;  %v6105_v15 = vld [vmem:[#allocation7 + $0x60] sm:$0xff] }
 0x6a0   : > { %6665 = vmatpush.msra.mxu3 %v6156_v9  ;;  %6646 = vmatpush.msra.mxu2 %v6139_v8  ;;  %v6137_v17 = vld [vmem:[#allocation7 + $0x160] sm:$0xff]  ;;  %v6154_v18 = vld [vmem:[#allocation7 + $0x1e8] sm:$0xff]  ;;  %v6104_v40 = vld [vmem:[#allocation7 + $0x58] sm:$0xff] }
 0x6a1   : > { %6626 = vmatpush.msra.mxu1 %v6123_v11  ;;  %6607 = vmatpush.msra.mxu0 %v6106_v10  ;;  %v6121_v19 = vld [vmem:[#allocation7 + $0xe0] sm:$0xff]  ;;  %v6136_v43 = vld [vmem:[#allocation7 + $0x158] sm:$0xff]  ;;  %v6103_v24 = vld [vmem:[#allocation7 + $0x50] sm:$0xff] }
 0x6a2   : > { %6666 = vmatpush.msra.mxu3 %v6155_v13  ;;  %6647 = vmatpush.msra.mxu2 %v6138_v12  ;;  %v6153_v20 = vld [vmem:[#allocation7 + $0x1e0] sm:$0xff]  ;;  %v6120_v22 = vld [vmem:[#allocation7 + $0xd8] sm:$0xff]  ;;  %v6135_v25 = vld [vmem:[#allocation7 + $0x150] sm:$0xff] }
 0x6a3   : > { %6627 = vmatpush.msra.mxu1 %v6122_v14  ;;  %6608 = vmatpush.msra.mxu0 %v6105_v15  ;;  %v6152_v23 = vld [vmem:[#allocation7 + $0x1d8] sm:$0xff]  ;;  %v6119_v27 = vld [vmem:[#allocation7 + $0xd0] sm:$0xff]  ;;  %v6102_v29 = vld [vmem:[#allocation7 + $0x48] sm:$0xff] }
 0x6a4   : > { %6667 = vmatpush.msra.mxu3 %v6154_v18  ;;  %6648 = vmatpush.msra.mxu2 %v6137_v17  ;;  %v6151_v28 = vld [vmem:[#allocation7 + $0x1d0] sm:$0xff]  ;;  %v6134_v30 = vld [vmem:[#allocation7 + $0x148] sm:$0xff]  ;;  %v6101_v33 = vld [vmem:[#allocation7 + $0x40] sm:$0xff] }
 0x6a5   : > { %6628 = vmatpush.msra.mxu1 %v6121_v19  ;;  %6609 = vmatpush.msra.mxu0 %v6104_v40  ;;  %v6118_v31 = vld [vmem:[#allocation7 + $0xc8] sm:$0xff]  ;;  %v6133_v34 = vld [vmem:[#allocation7 + $0x140] sm:$0xff]  ;;  %v6100_v36 = vld [vmem:[#allocation7 + $0x38] sm:$0xff] }
 0x6a6   : > { %6668 = vmatpush.msra.mxu3 %v6153_v20  ;;  %6649 = vmatpush.msra.mxu2 %v6136_v43  ;;  %v6150_v1 = vld [vmem:[#allocation7 + $0x1c8] sm:$0xff]  ;;  %v6117_v35 = vld [vmem:[#allocation7 + $0xc0] sm:$0xff]  ;;  %v6132_v2 = vld [vmem:[#allocation7 + $0x138] sm:$0xff] }
 0x6a7   : > { %6629 = vmatpush.msra.mxu1 %v6120_v22  ;;  %6610 = vmatpush.msra.mxu0 %v6103_v24  ;;  %v6149_v16 = vld [vmem:[#allocation7 + $0x1c0] sm:$0xff]  ;;  %v6116_v37 = vld [vmem:[#allocation7 + $0xb8] sm:$0xff]  ;;  %v6099_v41 = vld [vmem:[#allocation7 + $0x30] sm:$0xff] }
 0x6a8   : > { %6669 = vmatpush.msra.mxu3 %v6152_v23  ;;  %6650 = vmatpush.msra.mxu2 %v6135_v25  ;;  %v6148_v39 = vld [vmem:[#allocation7 + $0x1b8] sm:$0xff]  ;;  %v6131_v42 = vld [vmem:[#allocation7 + $0x130] sm:$0xff]  ;;  %v6098_v45 = vld [vmem:[#allocation7 + $0x28] sm:$0xff] }
 0x6a9   : > { %6630 = vmatpush.msra.mxu1 %v6119_v27  ;;  %6611 = vmatpush.msra.mxu0 %v6102_v29  ;;  %v6115_v21 = vld [vmem:[#allocation7 + $0xb0] sm:$0xff]  ;;  %v6130_v55 = vld [vmem:[#allocation7 + $0x128] sm:$0xff]  ;;  %v6097_v47 = vld [vmem:[#allocation7 + $0x20] sm:$0xff] }
 0x6aa   : > { %6670 = vmatpush.msra.mxu3 %v6151_v28  ;;  %6651 = vmatpush.msra.mxu2 %v6134_v30  ;;  %v6147_v44 = vld [vmem:[#allocation7 + $0x1b0] sm:$0xff]  ;;  %v6114_v46 = vld [vmem:[#allocation7 + $0xa8] sm:$0xff]  ;;  %v6129_v26 = vld [vmem:[#allocation7 + $0x120] sm:$0xff] }
 0x6ab   : > { %6631 = vmatpush.msra.mxu1 %v6118_v31  ;;  %6612 = vmatpush.msra.mxu0 %v6101_v33  ;;  %v6146_v60 = vld [vmem:[#allocation7 + $0x1a8] sm:$0xff]  ;;  %v6113_v32 = vld [vmem:[#allocation7 + $0xa0] sm:$0xff]  ;;  %v6096_v49 = vld [vmem:[#allocation7 + $0x18] sm:$0xff] }
 0x6ac   : > { %6671 = vmatpush.msra.mxu3 %v6150_v1  ;;  %6652 = vmatpush.msra.mxu2 %v6133_v34  ;;  %v6145_v48 = vld [vmem:[#allocation7 + $0x1a0] sm:$0xff]  ;;  %v6128_v50 = vld [vmem:[#allocation7 + $0x118] sm:$0xff]  ;;  %v6095_v52 = vld [vmem:[#allocation7 + $0x10] sm:$0xff] }
 0x6ad   : > { %6632 = vmatpush.msra.mxu1 %v6117_v35  ;;  %6613 = vmatpush.msra.mxu0 %v6100_v36  ;;  %v6112_v51 = vld [vmem:[#allocation7 + $0x98] sm:$0xff]  ;;  %v6127_v53 = vld [vmem:[#allocation7 + $0x110] sm:$0xff]  ;;  %v6094_v57 = vld [vmem:[#allocation7 + $0x8] sm:$0xff] }
 0x6ae   : > { %6672 = vmatpush.msra.mxu3 %v6149_v16  ;;  %6653 = vmatpush.msra.mxu2 %v6132_v2  ;;  %v6144_v3 = vld [vmem:[#allocation7 + $0x198] sm:$0xff]  ;;  %v6111_v54 = vld [vmem:[#allocation7 + $0x90] sm:$0xff]  ;;  %v6126_v58 = vld [vmem:[#allocation7 + $0x108] sm:$0xff] }
 0x6af   : > { %6633 = vmatpush.msra.mxu1 %v6116_v37  ;;  %6614 = vmatpush.msra.mxu0 %v6099_v41  ;;  %v6143_v56 = vld [vmem:[#allocation7 + $0x190] sm:$0xff]  ;;  %v6110_v59 = vld [vmem:[#allocation7 + $0x88] sm:$0xff]  ;;  %v6093_v62 = vld [vmem:[#allocation7] sm:$0xff] }
 0x6b0   : > { %6673 = vmatpush.msra.mxu3 %v6148_v39  ;;  %6654 = vmatpush.msra.mxu2 %v6131_v42  ;;  %v6142_v61 = vld [vmem:[#allocation7 + $0x188] sm:$0xff]  ;;  %v6125_v63 = vld [vmem:[#allocation7 + $0x100] sm:$0xff]  ;;  %v6172_v0 = vld [vmem:[#allocation7 + $0x278] sm:$0xff] }
 0x6b1   : > { %6634 = vmatpush.msra.mxu1 %v6115_v21  ;;  %6615 = vmatpush.msra.mxu0 %v6098_v45  ;;  %v6204_v4 = vld [vmem:[#allocation7 + $0x378] sm:$0xff]  ;;  %v6109_v5 = vld [vmem:[#allocation7 + $0x80] sm:$0xff]  ;;  %v6171_v6 = vld [vmem:[#allocation7 + $0x270] sm:$0xff] }
 0x6b2   : > { %6674 = vmatpush.msra.mxu3 %v6147_v44  ;;  %6655 = vmatpush.msra.mxu2 %v6130_v55  ;;  %v6141_v38 = vld [vmem:[#allocation7 + $0x180] sm:$0xff]  ;;  %v6188_v7 = vld [vmem:[#allocation7 + $0x2f8] sm:$0xff]  ;;  %v6203_v8 = vld [vmem:[#allocation7 + $0x370] sm:$0xff] }
 0x6b3   : > { %6635 = vmatpush.msra.mxu1 %v6114_v46  ;;  %6616 = vmatpush.msra.mxu0 %v6097_v47  ;;  %v6220_v9 = vld [vmem:[#allocation7 + $0x3f8] sm:$0xff]  ;;  %v6170_v10 = vld [vmem:[#allocation7 + $0x268] sm:$0xff]  ;;  %v6187_v11 = vld [vmem:[#allocation7 + $0x2f0] sm:$0xff] }
 0x6b4   : > { %6675 = vmatpush.msra.mxu3 %v6146_v60  ;;  %6656 = vmatpush.msra.mxu2 %v6129_v26  ;;  %v6202_v12 = vld [vmem:[#allocation7 + $0x368] sm:$0xff]  ;;  %v6219_v13 = vld [vmem:[#allocation7 + $0x3f0] sm:$0xff]  ;;  %v6169_v14 = vld [vmem:[#allocation7 + $0x260] sm:$0xff] }
 0x6b5   : > { %6636 = vmatpush.msra.mxu1 %v6113_v32  ;;  %6617 = vmatpush.msra.mxu0 %v6096_v49  ;;  %v6186_v15 = vld [vmem:[#allocation7 + $0x2e8] sm:$0xff]  ;;  %v6201_v17 = vld [vmem:[#allocation7 + $0x360] sm:$0xff]  ;;  %v6168_v19 = vld [vmem:[#allocation7 + $0x258] sm:$0xff] }
 0x6b6   : > { %6676 = vmatpush.msra.mxu3 %v6145_v48  ;;  %6657 = vmatpush.msra.mxu2 %v6128_v50  ;;  %v6218_v18 = vld [vmem:[#allocation7 + $0x3e8] sm:$0xff]  ;;  %v6185_v20 = vld [vmem:[#allocation7 + $0x2e0] sm:$0xff]  ;;  %v6200_v40 = vld [vmem:[#allocation7 + $0x358] sm:$0xff] }
 0x6b7   : > { %6637 = vmatpush.msra.mxu1 %v6112_v51  ;;  %6618 = vmatpush.msra.mxu0 %v6095_v52  ;;  %v6217_v43 = vld [vmem:[#allocation7 + $0x3e0] sm:$0xff]  ;;  %v6167_v22 = vld [vmem:[#allocation7 + $0x250] sm:$0xff]  ;;  %v6184_v23 = vld [vmem:[#allocation7 + $0x2d8] sm:$0xff] }
 0x6b8   : > { %6677 = vmatpush.msra.mxu3 %v6144_v3  ;;  %6658 = vmatpush.msra.mxu2 %v6127_v53  ;;  %v6199_v24 = vld [vmem:[#allocation7 + $0x350] sm:$0xff]  ;;  %v6216_v25 = vld [vmem:[#allocation7 + $0x3d8] sm:$0xff]  ;;  %v6166_v27 = vld [vmem:[#allocation7 + $0x248] sm:$0xff] }
 0x6b9   : > { %6638 = vmatpush.msra.mxu1 %v6111_v54  ;;  %6619 = vmatpush.msra.mxu0 %v6094_v57  ;;  %v6183_v28 = vld [vmem:[#allocation7 + $0x2d0] sm:$0xff]  ;;  %v6198_v29 = vld [vmem:[#allocation7 + $0x348] sm:$0xff]  ;;  %v6165_v31 = vld [vmem:[#allocation7 + $0x240] sm:$0xff] }
 0x6ba   : > { %6678 = vmatpush.msra.mxu3 %v6143_v56  ;;  %6659 = vmatpush.msra.mxu2 %v6126_v58  ;;  %v6215_v30 = vld [vmem:[#allocation7 + $0x3d0] sm:$0xff]  ;;  %v6182_v1 = vld [vmem:[#allocation7 + $0x2c8] sm:$0xff]  ;;  %v6197_v33 = vld [vmem:[#allocation7 + $0x340] sm:$0xff] }
 0x6bb   : > { %6639 = vmatpush.msra.mxu1 %v6110_v59  ;;  %6620 = vmatpush.msra.mxu0 %v6093_v62  ;;  %v6214_v34 = vld [vmem:[#allocation7 + $0x3c8] sm:$0xff]  ;;  %v6164_v35 = vld [vmem:[#allocation7 + $0x238] sm:$0xff]  ;;  %v6181_v16 = vld [vmem:[#allocation7 + $0x2c0] sm:$0xff] }
 0x6bc   : > { %6679 = vmatpush.msra.mxu3 %v6142_v61  ;;  %6660 = vmatpush.msra.mxu2 %v6125_v63  ;;  %v6196_v36 = vld [vmem:[#allocation7 + $0x338] sm:$0xff]  ;;  %v6213_v2 = vld [vmem:[#allocation7 + $0x3c0] sm:$0xff]  ;;  %v6163_v37 = vld [vmem:[#allocation7 + $0x230] sm:$0xff] }
 0x6bd   : > { %6685 = vmatpush.msrb.mxu0 %v6172_v0  ;;  %6640 = vmatpush.msra.mxu1 %v6109_v5  ;;  %v6180_v39 = vld [vmem:[#allocation7 + $0x2b8] sm:$0xff]  ;;  %v6195_v41 = vld [vmem:[#allocation7 + $0x330] sm:$0xff]  ;;  %v6162_v21 = vld [vmem:[#allocation7 + $0x228] sm:$0xff] }
 0x6be   : > { %6725 = vmatpush.msrb.mxu2 %v6204_v4  ;;  %6680 = vmatpush.msra.mxu3 %v6141_v38  ;;  %v6212_v42 = vld [vmem:[#allocation7 + $0x3b8] sm:$0xff]  ;;  %v6179_v44 = vld [vmem:[#allocation7 + $0x2b0] sm:$0xff]  ;;  %v6194_v45 = vld [vmem:[#allocation7 + $0x328] sm:$0xff] }
 0x6bf   : > { %6686 = vmatpush.msrb.mxu0 %v6171_v6  ;;  %6705 = vmatpush.msrb.mxu1 %v6188_v7  ;;  %v6211_v55 = vld [vmem:[#allocation7 + $0x3b0] sm:$0xff]  ;;  %v6161_v46 = vld [vmem:[#allocation7 + $0x220] sm:$0xff]  ;;  %v6178_v60 = vld [vmem:[#allocation7 + $0x2a8] sm:$0xff] }
 0x6c0   : > { %6726 = vmatpush.msrb.mxu2 %v6203_v8  ;;  %6745 = vmatpush.msrb.mxu3 %v6220_v9  ;;  %v6193_v47 = vld [vmem:[#allocation7 + $0x320] sm:$0xff]  ;;  %v6210_v26 = vld [vmem:[#allocation7 + $0x3a8] sm:$0xff]  ;;  %v6160_v32 = vld [vmem:[#allocation7 + $0x218] sm:$0xff] }
 0x6c1   : > { %6687 = vmatpush.msrb.mxu0 %v6170_v10  ;;  %6706 = vmatpush.msrb.mxu1 %v6187_v11  ;;  %v6177_v48 = vld [vmem:[#allocation7 + $0x2a0] sm:$0xff]  ;;  %v6192_v49 = vld [vmem:[#allocation7 + $0x318] sm:$0xff]  ;;  %v6159_v51 = vld [vmem:[#allocation7 + $0x210] sm:$0xff] }
 0x6c2   : > { %6727 = vmatpush.msrb.mxu2 %v6202_v12  ;;  %6746 = vmatpush.msrb.mxu3 %v6219_v13  ;;  %v6209_v50 = vld [vmem:[#allocation7 + $0x3a0] sm:$0xff]  ;;  %v6176_v3 = vld [vmem:[#allocation7 + $0x298] sm:$0xff]  ;;  %v6191_v53 = vld [vmem:[#allocation7 + $0x310] sm:$0xff] }
 0x6c3   : > { %6688 = vmatpush.msrb.mxu0 %v6169_v14  ;;  %6707 = vmatpush.msrb.mxu1 %v6186_v15  ;;  %v6031_v52 = vld [vmem:[#allocation2 + $0xd8] sm:$0xff]  ;;  %v6158_v56 = vld [vmem:[#allocation7 + $0x208] sm:$0xff]  ;;  %v6175_v57 = vld [vmem:[#allocation7 + $0x290] sm:$0xff] }
 0x6c4   : > { %6728 = vmatpush.msrb.mxu2 %v6201_v17  ;;  %6747 = vmatpush.msrb.mxu3 %v6218_v18  ;;  %v6208_v54 = vld [vmem:[#allocation7 + $0x398] sm:$0xff]  ;;  %v6029_v58 = vld [vmem:[#allocation2 + $0xb0] sm:$0xff]  ;;  %v6190_v59 = vld [vmem:[#allocation7 + $0x308] sm:$0xff]  ;;  %v6063_v62 = vmax.f32 %v6031_v52, 0.0 }
 0x6c5   : > { %6689 = vmatpush.msrb.mxu0 %v6168_v19  ;;  %6708 = vmatpush.msrb.mxu1 %v6185_v20  ;;  %v6207_v61 = vld [vmem:[#allocation7 + $0x390] sm:$0xff]  ;;  %v6032_v63 = vld [vmem:[#allocation2 + $0x18] sm:$0xff]  ;;  %v6157_v0 = vld [vmem:[#allocation7 + $0x200] sm:$0xff]  ;;  %v6061_v38 = vmax.f32 %v6029_v58, 0.0 }
 0x6c6   : > { %6729 = vmatpush.msrb.mxu2 %v6200_v40  ;;  %6748 = vmatpush.msrb.mxu3 %v6217_v43  ;;  %v6174_v4 = vld [vmem:[#allocation7 + $0x288] sm:$0xff]  ;;  %v6189_v5 = vld [vmem:[#allocation7 + $0x300] sm:$0xff]  ;;  %v6064_v8 = vmax.f32 %v6032_v63, 0.0  ;;  %v6236_v9 = vld [vmem:[#allocation7 + $0x478] sm:$0xff] }
 0x6c7   : > { %6690 = vmatpush.msrb.mxu0 %v6167_v22  ;;  %6709 = vmatpush.msrb.mxu1 %v6184_v23  ;;  %v6030_v6 = vld [vmem:[#allocation2] sm:$0xff]  ;;  %v6206_v7 = vld [vmem:[#allocation7 + $0x388] sm:$0xff]  ;;  %v6268_v10 = vld [vmem:[#allocation7 + $0x578] sm:$0xff] }
 0x6c8   : > { %6730 = vmatpush.msrb.mxu2 %v6199_v24  ;;  %6749 = vmatpush.msrb.mxu3 %v6216_v25  ;;  %v6173_v11 = vld [vmem:[#allocation7 + $0x280] sm:$0xff]  ;;  %v6062_v12 = vmax.f32 %v6030_v6, 0.0  ;;  %v6235_v14 = vld [vmem:[#allocation7 + $0x470] sm:$0xff]  ;;  %v6252_v15 = vld [vmem:[#allocation7 + $0x4f8] sm:$0xff] }
 0x6c9   : > { %6691 = vmatpush.msrb.mxu0 %v6166_v27  ;;  %6710 = vmatpush.msrb.mxu1 %v6183_v28  ;;  %v6205_v13 = vld [vmem:[#allocation7 + $0x380] sm:$0xff]  ;;  %v6035_v17 = vld [vmem:[#allocation2 + $0x30] sm:$0xff]  ;;  %v6284_v19 = vld [vmem:[#allocation7 + $0x5f8] sm:$0xff] }
 0x6ca   : > { %6731 = vmatpush.msrb.mxu2 %v6198_v29  ;;  %6750 = vmatpush.msrb.mxu3 %v6215_v30  ;;  %v6267_v18 = vld [vmem:[#allocation7 + $0x570] sm:$0xff]  ;;  %v6234_v20 = vld [vmem:[#allocation7 + $0x468] sm:$0xff]  ;;  %v6067_v24 = vmax.f32 %v6035_v17, 0.0  ;;  %v6233_v27 = vld [vmem:[#allocation7 + $0x460] sm:$0xff] }
 0x6cb   : > { %6692 = vmatpush.msrb.mxu0 %v6165_v31  ;;  %6711 = vmatpush.msrb.mxu1 %v6182_v1  ;;  %v6251_v40 = vld [vmem:[#allocation7 + $0x4f0] sm:$0xff]  ;;  %v6266_v22 = vld [vmem:[#allocation7 + $0x568] sm:$0xff]  ;;  %v6265_v29 = vld [vmem:[#allocation7 + $0x560] sm:$0xff] }
 0x6cc   : > { %6732 = vmatpush.msrb.mxu2 %v6197_v33  ;;  %6751 = vmatpush.msrb.mxu3 %v6214_v34  ;;  %v6033_v43 = vld [vmem:[#allocation2 + $0x50] sm:$0xff]  ;;  %v6036_v25 = vld [vmem:[#allocation2 + $0x48] sm:$0xff]  ;;  %v6232_v34 = vld [vmem:[#allocation7 + $0x458] sm:$0xff] }
 0x6cd   : > { %6693 = vmatpush.msrb.mxu0 %v6164_v35  ;;  %6712 = vmatpush.msrb.mxu1 %v6181_v16  ;;  %v6283_v23 = vld [vmem:[#allocation7 + $0x5f0] sm:$0xff]  ;;  %v6250_v28 = vld [vmem:[#allocation7 + $0x4e8] sm:$0xff]  ;;  %v6065_v30 = vmax.f32 %v6033_v43, 0.0  ;;  %v6068_v33 = vmax.f32 %v6036_v25, 0.0  ;;  %v6249_v35 = vld [vmem:[#allocation7 + $0x4e0] sm:$0xff] }
 0x6ce   : > { %6733 = vmatpush.msrb.mxu2 %v6196_v36  ;;  %6752 = vmatpush.msrb.mxu3 %v6213_v2  ;;  %v6034_v31 = vld [vmem:[#allocation2 + $0x68] sm:$0xff]  ;;  %v6264_v16 = vld [vmem:[#allocation7 + $0x558] sm:$0xff]  ;;  %v6281_v2 = vld [vmem:[#allocation7 + $0x5e0] sm:$0xff] }
 0x6cf   : > { %6694 = vmatpush.msrb.mxu0 %v6163_v37  ;;  %6713 = vmatpush.msrb.mxu1 %v6180_v39  ;;  %v6282_v1 = vld [vmem:[#allocation7 + $0x5e8] sm:$0xff]  ;;  %v6066_v36 = vmax.f32 %v6034_v31, 0.0  ;;  %v6231_v37 = vld [vmem:[#allocation7 + $0x450] sm:$0xff]  ;;  %v6248_v39 = vld [vmem:[#allocation7 + $0x4d8] sm:$0xff] }
 0x6d0   : > { %6734 = vmatpush.msrb.mxu2 %v6195_v41  ;;  %6753 = vmatpush.msrb.mxu3 %v6212_v42  ;;  %v6263_v41 = vld [vmem:[#allocation7 + $0x550] sm:$0xff]  ;;  %v6280_v42 = vld [vmem:[#allocation7 + $0x5d8] sm:$0xff]  ;;  %v6274_v63 = vld [vmem:[#allocation7 + $0x5a8] sm:$0xff] }
 0x6d1   : > { %6695 = vmatpush.msrb.mxu0 %v6162_v21  ;;  %6714 = vmatpush.msrb.mxu1 %v6179_v44  ;;  %v6230_v21 = vld [vmem:[#allocation7 + $0x448] sm:$0xff]  ;;  %v6247_v44 = vld [vmem:[#allocation7 + $0x4d0] sm:$0xff]  ;;  %v6221_v17 = vld [vmem:[#allocation7 + $0x400] sm:$0xff] }
 0x6d2   : > { %6735 = vmatpush.msrb.mxu2 %v6194_v45  ;;  %6754 = vmatpush.msrb.mxu3 %v6211_v55  ;;  %v6262_v45 = vld [vmem:[#allocation7 + $0x548] sm:$0xff]  ;;  %v6279_v55 = vld [vmem:[#allocation7 + $0x5d0] sm:$0xff]  ;;  %v6332_v25 = vld [vmem:[#allocation7 + $0x778] sm:$0xff] }
 0x6d3   : > { %6696 = vmatpush.msrb.mxu0 %v6161_v46  ;;  %6715 = vmatpush.msrb.mxu1 %v6178_v60  ;;  %v6229_v46 = vld [vmem:[#allocation7 + $0x440] sm:$0xff]  ;;  %v6246_v60 = vld [vmem:[#allocation7 + $0x4c8] sm:$0xff]  ;;  %v6259_v52 = vld [vmem:[#allocation7 + $0x530] sm:$0xff] }
 0x6d4   : > { %6736 = vmatpush.msrb.mxu2 %v6193_v47  ;;  %6755 = vmatpush.msrb.mxu3 %v6210_v26  ;;  %v6261_v47 = vld [vmem:[#allocation7 + $0x540] sm:$0xff]  ;;  %v6278_v26 = vld [vmem:[#allocation7 + $0x5c8] sm:$0xff]  ;;  %v6275_v58 = vld [vmem:[#allocation7 + $0x5b0] sm:$0xff] }
 0x6d5   : > { %6697 = vmatpush.msrb.mxu0 %v6160_v32  ;;  %6716 = vmatpush.msrb.mxu1 %v6177_v48  ;;  %v6228_v32 = vld [vmem:[#allocation7 + $0x438] sm:$0xff]  ;;  %v6245_v48 = vld [vmem:[#allocation7 + $0x4c0] sm:$0xff]  ;;  %v6223_v6 = vld [vmem:[#allocation7 + $0x410] sm:$0xff] }
 0x6d6   : > { %6737 = vmatpush.msrb.mxu2 %v6192_v49  ;;  %6756 = vmatpush.msrb.mxu3 %v6209_v50  ;;  %v6260_v49 = vld [vmem:[#allocation7 + $0x538] sm:$0xff]  ;;  %v6277_v50 = vld [vmem:[#allocation7 + $0x5c0] sm:$0xff]  ;;  %v6299_v31 = vld [vmem:[#allocation7 + $0x670] sm:$0xff] }
 0x6d7   : > { %6698 = vmatpush.msrb.mxu0 %v6159_v51  ;;  %6717 = vmatpush.msrb.mxu1 %v6176_v3  ;;  %v6227_v51 = vld [vmem:[#allocation7 + $0x430] sm:$0xff]  ;;  %v6244_v3 = vld [vmem:[#allocation7 + $0x4b8] sm:$0xff] }
 0x6d8   : > { %6738 = vmatpush.msrb.mxu2 %v6191_v53  ;;  %6757 = vmatpush.msrb.mxu3 %v6208_v54  ;;  %v6276_v53 = vld [vmem:[#allocation7 + $0x5b8] sm:$0xff]  ;;  %v6226_v54 = vld [vmem:[#allocation7 + $0x428] sm:$0xff] }
 0x6d9   : > { %6699 = vmatpush.msrb.mxu0 %v6158_v56  ;;  %6718 = vmatpush.msrb.mxu1 %v6175_v57  ;;  %v6243_v56 = vld [vmem:[#allocation7 + $0x4b0] sm:$0xff]  ;;  %v6258_v57 = vld [vmem:[#allocation7 + $0x528] sm:$0xff] }
 0x6da   : > { %6739 = vmatpush.msrb.mxu2 %v6190_v59  ;;  %6758 = vmatpush.msrb.mxu3 %v6207_v61  ;;  %v6225_v59 = vld [vmem:[#allocation7 + $0x420] sm:$0xff]  ;;  %v6242_v61 = vld [vmem:[#allocation7 + $0x4a8] sm:$0xff] }
 0x6db   : > { %6661 = vmatmul.f32.vlgmr.msra.gmra.mxu2 %v6063_v62  ;;  %6700 = vmatpush.msrb.mxu0 %v6157_v0  ;;  %v6257_v62 = vld [vmem:[#allocation7 + $0x520] sm:$0xff]  ;;  %v6224_v0 = vld [vmem:[#allocation7 + $0x418] sm:$0xff] }
 0x6dc   : > { %6719 = vmatpush.msrb.mxu1 %v6174_v4  ;;  %6740 = vmatpush.msrb.mxu2 %v6189_v5  ;;  %v6241_v4 = vld [vmem:[#allocation7 + $0x4a0] sm:$0xff]  ;;  %v6256_v5 = vld [vmem:[#allocation7 + $0x518] sm:$0xff] }
 0x6dd   : > { %6759 = vmatpush.msrb.mxu3 %v6206_v7  ;;  %6621 = vmatmul.f32.vlgmr.msra.gmra.mxu0 %v6061_v38  ;;  %v6273_v38 = vld [vmem:[#allocation7 + $0x5a0] sm:$0xff]  ;;  %v6240_v7 = vld [vmem:[#allocation7 + $0x498] sm:$0xff] }
 0x6de   : > { %6681 = vmatmul.f32.vlgmr.msra.gmra.mxu3 %v6064_v8  ;;  %6765 = vmatpush.msra.mxu0 %v6236_v9  ;;  %v6255_v8 = vld [vmem:[#allocation7 + $0x510] sm:$0xff]  ;;  %v6272_v9 = vld [vmem:[#allocation7 + $0x598] sm:$0xff] }
 0x6df   : > { %6805 = vmatpush.msra.mxu2 %v6268_v10  ;;  %6720 = vmatpush.msrb.mxu1 %v6173_v11  ;;  %v6222_v10 = vld [vmem:[#allocation7 + $0x408] sm:$0xff]  ;;  %v6239_v11 = vld [vmem:[#allocation7 + $0x490] sm:$0xff] }
 0x6e0   : > { %6760 = vmatpush.msrb.mxu3 %v6205_v13  ;;  %6641 = vmatmul.f32.vlgmr.msra.gmra.mxu1 %v6062_v12  ;;  %v6037_v12 = vld [vmem:[#allocation2 + $0x80] sm:$0xff]  ;;  %v6039_v13 = vld [vmem:[#allocation2 + $0xe8] sm:$0xff] }
 0x6e1   : > { %6766 = vmatpush.msra.mxu0 %v6235_v14  ;;  %6785 = vmatpush.msra.mxu1 %v6252_v15  ;;  %v6254_v14 = vld [vmem:[#allocation7 + $0x508] sm:$0xff]  ;;  %v6271_v15 = vld [vmem:[#allocation7 + $0x590] sm:$0xff]  ;;  %v6071_v43 = vmax.f32 %v6039_v13, 0.0  ;;  %v6337_v13 = vld [vmem:[#allocation7 + $0x7a0] sm:$0xff] }
 0x6e2   : > { %6806 = vmatpush.msra.mxu2 %v6267_v18  ;;  %6825 = vmatpush.msra.mxu3 %v6284_v19  ;;  %v6238_v18 = vld [vmem:[#allocation7 + $0x488] sm:$0xff]  ;;  %v6253_v19 = vld [vmem:[#allocation7 + $0x500] sm:$0xff] }
 0x6e3   : > { %6767 = vmatpush.msra.mxu0 %v6234_v20  ;;  %6786 = vmatpush.msra.mxu1 %v6251_v40  ;;  %v6270_v20 = vld [vmem:[#allocation7 + $0x588] sm:$0xff]  ;;  %v6069_v40 = vmax.f32 %v6037_v12, 0.0  ;;  %v6320_v12 = vld [vmem:[#allocation7 + $0x718] sm:$0xff] }
 0x6e4   : > { %6807 = vmatpush.msra.mxu2 %v6266_v22  ;;  %6826 = vmatpush.msra.mxu3 %v6283_v23  ;;  %v6038_v22 = vld [vmem:[#allocation2 + $0x88] sm:$0xff]  ;;  %v6040_v23 = vld [vmem:[#allocation2 + $0xb8] sm:$0xff] }
 0x6e5   : > { %6741 = vmatmul.f32.vlgmr.msrb.gmra.mxu2 %v6067_v24  ;;  %6768 = vmatpush.msra.mxu0 %v6233_v27  ;;  %v6300_v24 = vld [vmem:[#allocation7 + $0x678] sm:$0xff]  ;;  %v6237_v27 = vld [vmem:[#allocation7 + $0x480] sm:$0xff] }
 0x6e6   : > { %6787 = vmatpush.msra.mxu1 %v6250_v28  ;;  %6808 = vmatpush.msra.mxu2 %v6265_v29  ;;  %v6269_v28 = vld [vmem:[#allocation7 + $0x580] sm:$0xff]  ;;  %v6070_v29 = vmax.f32 %v6038_v22, 0.0  ;;  %v6318_v22 = vld [vmem:[#allocation7 + $0x708] sm:$0xff] }
 0x6e7   : > { %6827 = vmatpush.msra.mxu3 %v6282_v1  ;;  %6701 = vmatmul.f32.vlgmr.msrb.gmra.mxu0 %v6065_v30  ;;  %v6072_v30 = vmax.f32 %v6040_v23, 0.0  ;;  %v6316_v1 = vld [vmem:[#allocation7 + $0x6f8] sm:$0xff]  ;;  %v6335_v23 = vld [vmem:[#allocation7 + $0x790] sm:$0xff] }
 0x6e8   : > { %6761 = vmatmul.f32.vlgmr.msrb.gmra.mxu3 %v6068_v33  ;;  %6769 = vmatpush.msra.mxu0 %v6232_v34  ;;  %v6331_v33 = vld [vmem:[#allocation7 + $0x770] sm:$0xff]  ;;  %v6348_v34 = vld [vmem:[#allocation7 + $0x7f8] sm:$0xff] }
 0x6e9   : > { %6788 = vmatpush.msra.mxu1 %v6249_v35  ;;  %6809 = vmatpush.msra.mxu2 %v6264_v16  ;;  %v6298_v35 = vld [vmem:[#allocation7 + $0x668] sm:$0xff]  ;;  %v6315_v16 = vld [vmem:[#allocation7 + $0x6f0] sm:$0xff] }
 0x6ea   : > { %6828 = vmatpush.msra.mxu3 %v6281_v2  ;;  %6721 = vmatmul.f32.vlgmr.msrb.gmra.mxu1 %v6066_v36  ;;  %v6330_v36 = vld [vmem:[#allocation7 + $0x768] sm:$0xff]  ;;  %v6347_v2 = vld [vmem:[#allocation7 + $0x7f0] sm:$0xff] }
 0x6eb   : > { %6770 = vmatpush.msra.mxu0 %v6231_v37  ;;  %6789 = vmatpush.msra.mxu1 %v6248_v39  ;;  %v6297_v37 = vld [vmem:[#allocation7 + $0x660] sm:$0xff]  ;;  %v6314_v39 = vld [vmem:[#allocation7 + $0x6e8] sm:$0xff] }
 0x6ec   : > { %6810 = vmatpush.msra.mxu2 %v6263_v41  ;;  %6829 = vmatpush.msra.mxu3 %v6280_v42  ;;  %v6329_v41 = vld [vmem:[#allocation7 + $0x760] sm:$0xff]  ;;  %v6346_v42 = vld [vmem:[#allocation7 + $0x7e8] sm:$0xff] }
 0x6ed   : > { %6771 = vmatpush.msra.mxu0 %v6230_v21  ;;  %6790 = vmatpush.msra.mxu1 %v6247_v44  ;;  %v6296_v21 = vld [vmem:[#allocation7 + $0x658] sm:$0xff]  ;;  %v6313_v44 = vld [vmem:[#allocation7 + $0x6e0] sm:$0xff] }
 0x6ee   : > { %6811 = vmatpush.msra.mxu2 %v6262_v45  ;;  %6830 = vmatpush.msra.mxu3 %v6279_v55  ;;  %v6328_v45 = vld [vmem:[#allocation7 + $0x758] sm:$0xff]  ;;  %v6345_v55 = vld [vmem:[#allocation7 + $0x7e0] sm:$0xff] }
 0x6ef   : > { %6772 = vmatpush.msra.mxu0 %v6229_v46  ;;  %6791 = vmatpush.msra.mxu1 %v6246_v60  ;;  %v6295_v46 = vld [vmem:[#allocation7 + $0x650] sm:$0xff]  ;;  %v6312_v60 = vld [vmem:[#allocation7 + $0x6d8] sm:$0xff] }
 0x6f0   : > { %6812 = vmatpush.msra.mxu2 %v6261_v47  ;;  %6831 = vmatpush.msra.mxu3 %v6278_v26  ;;  %v6327_v47 = vld [vmem:[#allocation7 + $0x750] sm:$0xff]  ;;  %v6344_v26 = vld [vmem:[#allocation7 + $0x7d8] sm:$0xff] }
 0x6f1   : > { %6773 = vmatpush.msra.mxu0 %v6228_v32  ;;  %6792 = vmatpush.msra.mxu1 %v6245_v48  ;;  %v6294_v32 = vld [vmem:[#allocation7 + $0x648] sm:$0xff]  ;;  %v6311_v48 = vld [vmem:[#allocation7 + $0x6d0] sm:$0xff] }
 0x6f2   : > { %6813 = vmatpush.msra.mxu2 %v6260_v49  ;;  %6832 = vmatpush.msra.mxu3 %v6277_v50  ;;  %v6326_v49 = vld [vmem:[#allocation7 + $0x748] sm:$0xff]  ;;  %v6343_v50 = vld [vmem:[#allocation7 + $0x7d0] sm:$0xff] }
 0x6f3   : > { %6774 = vmatpush.msra.mxu0 %v6227_v51  ;;  %6793 = vmatpush.msra.mxu1 %v6244_v3  ;;  %v6293_v51 = vld [vmem:[#allocation7 + $0x640] sm:$0xff]  ;;  %v6310_v3 = vld [vmem:[#allocation7 + $0x6c8] sm:$0xff] }
 0x6f4   : > { %6814 = vmatpush.msra.mxu2 %v6259_v52  ;;  %6833 = vmatpush.msra.mxu3 %v6276_v53  ;;  %v6325_v52 = vld [vmem:[#allocation7 + $0x740] sm:$0xff]  ;;  %v6342_v53 = vld [vmem:[#allocation7 + $0x7c8] sm:$0xff] }
 0x6f5   : > { %6775 = vmatpush.msra.mxu0 %v6226_v54  ;;  %6794 = vmatpush.msra.mxu1 %v6243_v56  ;;  %v6292_v54 = vld [vmem:[#allocation7 + $0x638] sm:$0xff]  ;;  %v6309_v56 = vld [vmem:[#allocation7 + $0x6c0] sm:$0xff] }
 0x6f6   : > { %6815 = vmatpush.msra.mxu2 %v6258_v57  ;;  %6834 = vmatpush.msra.mxu3 %v6275_v58  ;;  %v6324_v57 = vld [vmem:[#allocation7 + $0x738] sm:$0xff]  ;;  %v6341_v58 = vld [vmem:[#allocation7 + $0x7c0] sm:$0xff] }
 0x6f7   : > { %6776 = vmatpush.msra.mxu0 %v6225_v59  ;;  %6795 = vmatpush.msra.mxu1 %v6242_v61  ;;  %v6291_v59 = vld [vmem:[#allocation7 + $0x630] sm:$0xff]  ;;  %v6308_v61 = vld [vmem:[#allocation7 + $0x6b8] sm:$0xff] }
 0x6f8   : > { %6816 = vmatpush.msra.mxu2 %v6257_v62  ;;  %6835 = vmatpush.msra.mxu3 %v6274_v63  ;;  %v6323_v62 = vld [vmem:[#allocation7 + $0x730] sm:$0xff]  ;;  %v6340_v63 = vld [vmem:[#allocation7 + $0x7b8] sm:$0xff] }
 0x6f9   : > { %6777 = vmatpush.msra.mxu0 %v6224_v0  ;;  %6796 = vmatpush.msra.mxu1 %v6241_v4  ;;  %v6290_v0 = vld [vmem:[#allocation7 + $0x628] sm:$0xff]  ;;  %v6307_v4 = vld [vmem:[#allocation7 + $0x6b0] sm:$0xff] }
 0x6fa   : > { %6817 = vmatpush.msra.mxu2 %v6256_v5  ;;  %6836 = vmatpush.msra.mxu3 %v6273_v38  ;;  %v6322_v5 = vld [vmem:[#allocation7 + $0x728] sm:$0xff]  ;;  %v6339_v38 = vld [vmem:[#allocation7 + $0x7b0] sm:$0xff] }
 0x6fb   : > { %6778 = vmatpush.msra.mxu0 %v6223_v6  ;;  %6797 = vmatpush.msra.mxu1 %v6240_v7  ;;  %v6289_v6 = vld [vmem:[#allocation7 + $0x620] sm:$0xff]  ;;  %v6306_v7 = vld [vmem:[#allocation7 + $0x6a8] sm:$0xff] }
 0x6fc   : > { %6818 = vmatpush.msra.mxu2 %v6255_v8  ;;  %6837 = vmatpush.msra.mxu3 %v6272_v9  ;;  %v6321_v8 = vld [vmem:[#allocation7 + $0x720] sm:$0xff]  ;;  %v6338_v9 = vld [vmem:[#allocation7 + $0x7a8] sm:$0xff] }
 0x6fd   : > { %6779 = vmatpush.msra.mxu0 %v6222_v10  ;;  %6798 = vmatpush.msra.mxu1 %v6239_v11  ;;  %v6288_v10 = vld [vmem:[#allocation7 + $0x618] sm:$0xff]  ;;  %v6305_v11 = vld [vmem:[#allocation7 + $0x6a0] sm:$0xff] }
 0x6fe   : > { %6819 = vmatpush.msra.mxu2 %v6254_v14  ;;  %6838 = vmatpush.msra.mxu3 %v6271_v15  ;;  %v6287_v14 = vld [vmem:[#allocation7 + $0x610] sm:$0xff]  ;;  %v6304_v15 = vld [vmem:[#allocation7 + $0x698] sm:$0xff] }
 0x6ff   : > { %6780 = vmatpush.msra.mxu0 %v6221_v17  ;;  %6799 = vmatpush.msra.mxu1 %v6238_v18  ;;  %v6319_v17 = vld [vmem:[#allocation7 + $0x710] sm:$0xff]  ;;  %v6336_v18 = vld [vmem:[#allocation7 + $0x798] sm:$0xff] }
 0x700   : > { %6820 = vmatpush.msra.mxu2 %v6253_v19  ;;  %6839 = vmatpush.msra.mxu3 %v6270_v20  ;;  %v6286_v19 = vld [vmem:[#allocation7 + $0x608] sm:$0xff]  ;;  %v6303_v20 = vld [vmem:[#allocation7 + $0x690] sm:$0xff] }
 0x701   : > { %6781 = vmatmul.f32.vlgmr.msra.gmra.mxu0 %v6069_v40  ;;  %6821 = vmatmul.f32.vlgmr.msra.gmra.mxu2 %v6071_v43  ;;  %v6041_v40 = vld [vmem:[#allocation2 + $0x60] sm:$0xff]  ;;  %v6043_v43 = vld [vmem:[#allocation2 + $0x8] sm:$0xff] }
 0x702   : > { %6845 = vmatpush.msrb.mxu0 %v6300_v24  ;;  %6885 = vmatpush.msrb.mxu2 %v6332_v25  ;;  %v6285_v24 = vld [vmem:[#allocation7 + $0x600] sm:$0xff]  ;;  %v6302_v25 = vld [vmem:[#allocation7 + $0x688] sm:$0xff] }
 0x703   : > { %6800 = vmatpush.msra.mxu1 %v6237_v27  ;;  %6840 = vmatpush.msra.mxu3 %v6269_v28  ;;  %v6317_v27 = vld [vmem:[#allocation7 + $0x700] sm:$0xff]  ;;  %v6334_v28 = vld [vmem:[#allocation7 + $0x788] sm:$0xff] }
 0x704   : > { %6801 = vmatmul.f32.vlgmr.msra.gmra.mxu1 %v6070_v29  ;;  %6841 = vmatmul.f32.vlgmr.msra.gmra.mxu3 %v6072_v30  ;;  %v6073_v29 = vmax.f32 %v6041_v40, 0.0  ;;  %v6075_v30 = vmax.f32 %v6043_v43, 0.0  ;;  %v6384_v40 = vld [vmem:[#allocation7 + $0x918] sm:$0xff]  ;;  %v6401_v43 = vld [vmem:[#allocation7 + $0x9a0] sm:$0xff] }
 0x705   : > { %6846 = vmatpush.msrb.mxu0 %v6299_v31  ;;  %6865 = vmatpush.msrb.mxu1 %v6316_v1  ;;  %v6042_v31 = vld [vmem:[#allocation2 + $0xf0] sm:$0xff]  ;;  %v6044_v1 = vld [vmem:[#allocation2 + $0x78] sm:$0xff] }
 0x706   : > { %6886 = vmatpush.msrb.mxu2 %v6331_v33  ;;  %6905 = vmatpush.msrb.mxu3 %v6348_v34  ;;  %v6364_v33 = vld [vmem:[#allocation7 + $0x878] sm:$0xff] }
 0x707   : > { %6847 = vmatpush.msrb.mxu0 %v6298_v35  ;;  %6866 = vmatpush.msrb.mxu1 %v6315_v16  ;;  %v6396_v34 = vld [vmem:[#allocation7 + $0x978] sm:$0xff]  ;;  %v6301_v35 = vld [vmem:[#allocation7 + $0x680] sm:$0xff] }
 0x708   : > { %6887 = vmatpush.msrb.mxu2 %v6330_v36  ;;  %6906 = vmatpush.msrb.mxu3 %v6347_v2  ;;  %v6333_v16 = vld [vmem:[#allocation7 + $0x780] sm:$0xff]  ;;  %v6074_v36 = vmax.f32 %v6042_v31, 0.0  ;;  %v6076_v2 = vmax.f32 %v6044_v1, 0.0  ;;  %v6382_v31 = vld [vmem:[#allocation7 + $0x908] sm:$0xff]  ;;  %v6399_v1 = vld [vmem:[#allocation7 + $0x990] sm:$0xff] }
 0x709   : > { %6848 = vmatpush.msrb.mxu0 %v6297_v37  ;;  %6867 = vmatpush.msrb.mxu1 %v6314_v39  ;;  %v6363_v37 = vld [vmem:[#allocation7 + $0x870] sm:$0xff]  ;;  %v6380_v39 = vld [vmem:[#allocation7 + $0x8f8] sm:$0xff] }
 0x70a   : > { %6888 = vmatpush.msrb.mxu2 %v6329_v41  ;;  %6907 = vmatpush.msrb.mxu3 %v6346_v42  ;;  %v6395_v41 = vld [vmem:[#allocation7 + $0x970] sm:$0xff]  ;;  %v6412_v42 = vld [vmem:[#allocation7 + $0x9f8] sm:$0xff] }
 0x70b   : > { %6849 = vmatpush.msrb.mxu0 %v6296_v21  ;;  %6868 = vmatpush.msrb.mxu1 %v6313_v44  ;;  %v6362_v21 = vld [vmem:[#allocation7 + $0x868] sm:$0xff]  ;;  %v6379_v44 = vld [vmem:[#allocation7 + $0x8f0] sm:$0xff] }
 0x70c   : > { %6889 = vmatpush.msrb.mxu2 %v6328_v45  ;;  %6908 = vmatpush.msrb.mxu3 %v6345_v55  ;;  %v6394_v45 = vld [vmem:[#allocation7 + $0x968] sm:$0xff]  ;;  %v6411_v55 = vld [vmem:[#allocation7 + $0x9f0] sm:$0xff] }
 0x70d   : > { %6850 = vmatpush.msrb.mxu0 %v6295_v46  ;;  %6869 = vmatpush.msrb.mxu1 %v6312_v60  ;;  %v6361_v46 = vld [vmem:[#allocation7 + $0x860] sm:$0xff]  ;;  %v6378_v60 = vld [vmem:[#allocation7 + $0x8e8] sm:$0xff] }
 0x70e   : > { %6890 = vmatpush.msrb.mxu2 %v6327_v47  ;;  %6909 = vmatpush.msrb.mxu3 %v6344_v26  ;;  %v6393_v47 = vld [vmem:[#allocation7 + $0x960] sm:$0xff]  ;;  %v6410_v26 = vld [vmem:[#allocation7 + $0x9e8] sm:$0xff] }
 0x70f   : > { %6851 = vmatpush.msrb.mxu0 %v6294_v32  ;;  %6870 = vmatpush.msrb.mxu1 %v6311_v48  ;;  %v6360_v32 = vld [vmem:[#allocation7 + $0x858] sm:$0xff]  ;;  %v6377_v48 = vld [vmem:[#allocation7 + $0x8e0] sm:$0xff] }
 0x710   : > { %6891 = vmatpush.msrb.mxu2 %v6326_v49  ;;  %6910 = vmatpush.msrb.mxu3 %v6343_v50  ;;  %v6392_v49 = vld [vmem:[#allocation7 + $0x958] sm:$0xff]  ;;  %v6409_v50 = vld [vmem:[#allocation7 + $0x9e0] sm:$0xff] }
 0x711   : > { %6852 = vmatpush.msrb.mxu0 %v6293_v51  ;;  %6871 = vmatpush.msrb.mxu1 %v6310_v3  ;;  %v6359_v51 = vld [vmem:[#allocation7 + $0x850] sm:$0xff]  ;;  %v6376_v3 = vld [vmem:[#allocation7 + $0x8d8] sm:$0xff] }
 0x712   : > { %6892 = vmatpush.msrb.mxu2 %v6325_v52  ;;  %6911 = vmatpush.msrb.mxu3 %v6342_v53  ;;  %v6391_v52 = vld [vmem:[#allocation7 + $0x950] sm:$0xff]  ;;  %v6408_v53 = vld [vmem:[#allocation7 + $0x9d8] sm:$0xff] }
 0x713   : > { %6853 = vmatpush.msrb.mxu0 %v6292_v54  ;;  %6872 = vmatpush.msrb.mxu1 %v6309_v56  ;;  %v6358_v54 = vld [vmem:[#allocation7 + $0x848] sm:$0xff]  ;;  %v6375_v56 = vld [vmem:[#allocation7 + $0x8d0] sm:$0xff] }
 0x714   : > { %6893 = vmatpush.msrb.mxu2 %v6324_v57  ;;  %6912 = vmatpush.msrb.mxu3 %v6341_v58  ;;  %v6390_v57 = vld [vmem:[#allocation7 + $0x948] sm:$0xff]  ;;  %v6407_v58 = vld [vmem:[#allocation7 + $0x9d0] sm:$0xff] }
 0x715   : > { %6854 = vmatpush.msrb.mxu0 %v6291_v59  ;;  %6873 = vmatpush.msrb.mxu1 %v6308_v61  ;;  %v6357_v59 = vld [vmem:[#allocation7 + $0x840] sm:$0xff]  ;;  %v6374_v61 = vld [vmem:[#allocation7 + $0x8c8] sm:$0xff] }
 0x716   : > { %6894 = vmatpush.msrb.mxu2 %v6323_v62  ;;  %6913 = vmatpush.msrb.mxu3 %v6340_v63  ;;  %v6389_v62 = vld [vmem:[#allocation7 + $0x940] sm:$0xff]  ;;  %v6406_v63 = vld [vmem:[#allocation7 + $0x9c8] sm:$0xff] }
 0x717   : > { %6855 = vmatpush.msrb.mxu0 %v6290_v0  ;;  %6874 = vmatpush.msrb.mxu1 %v6307_v4  ;;  %v6356_v0 = vld [vmem:[#allocation7 + $0x838] sm:$0xff]  ;;  %v6373_v4 = vld [vmem:[#allocation7 + $0x8c0] sm:$0xff] }
 0x718   : > { %6895 = vmatpush.msrb.mxu2 %v6322_v5  ;;  %6914 = vmatpush.msrb.mxu3 %v6339_v38  ;;  %v6388_v5 = vld [vmem:[#allocation7 + $0x938] sm:$0xff]  ;;  %v6405_v38 = vld [vmem:[#allocation7 + $0x9c0] sm:$0xff] }
 0x719   : > { %6856 = vmatpush.msrb.mxu0 %v6289_v6  ;;  %6875 = vmatpush.msrb.mxu1 %v6306_v7  ;;  %v6355_v6 = vld [vmem:[#allocation7 + $0x830] sm:$0xff]  ;;  %v6372_v7 = vld [vmem:[#allocation7 + $0x8b8] sm:$0xff] }
 0x71a   : > { %6896 = vmatpush.msrb.mxu2 %v6321_v8  ;;  %6915 = vmatpush.msrb.mxu3 %v6338_v9  ;;  %v6387_v8 = vld [vmem:[#allocation7 + $0x930] sm:$0xff]  ;;  %v6404_v9 = vld [vmem:[#allocation7 + $0x9b8] sm:$0xff] }
 0x71b   : > { %6857 = vmatpush.msrb.mxu0 %v6288_v10  ;;  %6876 = vmatpush.msrb.mxu1 %v6305_v11  ;;  %v6354_v10 = vld [vmem:[#allocation7 + $0x828] sm:$0xff]  ;;  %v6371_v11 = vld [vmem:[#allocation7 + $0x8b0] sm:$0xff] }
 0x71c   : > { %6897 = vmatpush.msrb.mxu2 %v6320_v12  ;;  %6916 = vmatpush.msrb.mxu3 %v6337_v13  ;;  %v6386_v12 = vld [vmem:[#allocation7 + $0x928] sm:$0xff]  ;;  %v6403_v13 = vld [vmem:[#allocation7 + $0x9b0] sm:$0xff] }
 0x71d   : > { %6858 = vmatpush.msrb.mxu0 %v6287_v14  ;;  %6877 = vmatpush.msrb.mxu1 %v6304_v15  ;;  %v6353_v14 = vld [vmem:[#allocation7 + $0x820] sm:$0xff]  ;;  %v6370_v15 = vld [vmem:[#allocation7 + $0x8a8] sm:$0xff] }
 0x71e   : > { %6898 = vmatpush.msrb.mxu2 %v6319_v17  ;;  %6917 = vmatpush.msrb.mxu3 %v6336_v18  ;;  %v6385_v17 = vld [vmem:[#allocation7 + $0x920] sm:$0xff]  ;;  %v6402_v18 = vld [vmem:[#allocation7 + $0x9a8] sm:$0xff] }
 0x71f   : > { %6859 = vmatpush.msrb.mxu0 %v6286_v19  ;;  %6878 = vmatpush.msrb.mxu1 %v6303_v20  ;;  %v6352_v19 = vld [vmem:[#allocation7 + $0x818] sm:$0xff]  ;;  %v6369_v20 = vld [vmem:[#allocation7 + $0x8a0] sm:$0xff] }
 0x720   : > { %6899 = vmatpush.msrb.mxu2 %v6318_v22  ;;  %6918 = vmatpush.msrb.mxu3 %v6335_v23  ;;  %v6351_v22 = vld [vmem:[#allocation7 + $0x810] sm:$0xff]  ;;  %v6368_v23 = vld [vmem:[#allocation7 + $0x898] sm:$0xff] }
 0x721   : > { %6860 = vmatpush.msrb.mxu0 %v6285_v24  ;;  %6879 = vmatpush.msrb.mxu1 %v6302_v25  ;;  %v6383_v24 = vld [vmem:[#allocation7 + $0x910] sm:$0xff]  ;;  %v6400_v25 = vld [vmem:[#allocation7 + $0x998] sm:$0xff] }
 0x722   : > { %6900 = vmatpush.msrb.mxu2 %v6317_v27  ;;  %6919 = vmatpush.msrb.mxu3 %v6334_v28  ;;  %v6350_v27 = vld [vmem:[#allocation7 + $0x808] sm:$0xff]  ;;  %v6367_v28 = vld [vmem:[#allocation7 + $0x890] sm:$0xff] }
 0x723   : > { %6861 = vmatmul.f32.vlgmr.msrb.gmra.mxu0 %v6073_v29  ;;  %6901 = vmatmul.f32.vlgmr.msrb.gmra.mxu2 %v6075_v30  ;;  %v6045_v29 = vld [vmem:[#allocation2 + $0x38] sm:$0xff]  ;;  %v6047_v30 = vld [vmem:[#allocation2 + $0x40] sm:$0xff] }
 0x724   : > { %6925 = vmatpush.msra.mxu0 %v6364_v33  ;;  %6965 = vmatpush.msra.mxu2 %v6396_v34  ;;  %v6349_v33 = vld [vmem:[#allocation7 + $0x800] sm:$0xff]  ;;  %v6366_v34 = vld [vmem:[#allocation7 + $0x888] sm:$0xff] }
 0x725   : > { %6880 = vmatpush.msrb.mxu1 %v6301_v35  ;;  %6920 = vmatpush.msrb.mxu3 %v6333_v16  ;;  %v6381_v35 = vld [vmem:[#allocation7 + $0x900] sm:$0xff]  ;;  %v6398_v16 = vld [vmem:[#allocation7 + $0x988] sm:$0xff] }
 0x726   : > { %6881 = vmatmul.f32.vlgmr.msrb.gmra.mxu1 %v6074_v36  ;;  %6921 = vmatmul.f32.vlgmr.msrb.gmra.mxu3 %v6076_v2  ;;  %v6077_v36 = vmax.f32 %v6045_v29, 0.0  ;;  %v6079_v2 = vmax.f32 %v6047_v30, 0.0  ;;  %v6448_v29 = vld [vmem:[#allocation7 + $0xb18] sm:$0xff]  ;;  %v6465_v30 = vld [vmem:[#allocation7 + $0xba0] sm:$0xff] }
 0x727   : > { %6926 = vmatpush.msra.mxu0 %v6363_v37  ;;  %6945 = vmatpush.msra.mxu1 %v6380_v39  ;;  %v6046_v37 = vld [vmem:[#allocation2 + $0x58] sm:$0xff]  ;;  %v6048_v39 = vld [vmem:[#allocation2 + $0xc8] sm:$0xff] }
 0x728   : > { %6966 = vmatpush.msra.mxu2 %v6395_v41  ;;  %6985 = vmatpush.msra.mxu3 %v6412_v42  ;;  %v6428_v41 = vld [vmem:[#allocation7 + $0xa78] sm:$0xff] }
 0x729   : > { %6927 = vmatpush.msra.mxu0 %v6362_v21  ;;  %6946 = vmatpush.msra.mxu1 %v6379_v44  ;;  %v6460_v42 = vld [vmem:[#allocation7 + $0xb78] sm:$0xff]  ;;  %v6365_v21 = vld [vmem:[#allocation7 + $0x880] sm:$0xff] }
 0x72a   : > { %6967 = vmatpush.msra.mxu2 %v6394_v45  ;;  %6986 = vmatpush.msra.mxu3 %v6411_v55  ;;  %v6397_v44 = vld [vmem:[#allocation7 + $0x980] sm:$0xff]  ;;  %v6078_v45 = vmax.f32 %v6046_v37, 0.0  ;;  %v6080_v55 = vmax.f32 %v6048_v39, 0.0  ;;  %v6446_v37 = vld [vmem:[#allocation7 + $0xb08] sm:$0xff]  ;;  %v6463_v39 = vld [vmem:[#allocation7 + $0xb90] sm:$0xff] }
 0x72b   : > { %6928 = vmatpush.msra.mxu0 %v6361_v46  ;;  %6947 = vmatpush.msra.mxu1 %v6378_v60  ;;  %v6427_v46 = vld [vmem:[#allocation7 + $0xa70] sm:$0xff]  ;;  %v6444_v60 = vld [vmem:[#allocation7 + $0xaf8] sm:$0xff] }
 0x72c   : > { %6968 = vmatpush.msra.mxu2 %v6393_v47  ;;  %6987 = vmatpush.msra.mxu3 %v6410_v26  ;;  %v6459_v47 = vld [vmem:[#allocation7 + $0xb70] sm:$0xff]  ;;  %v6476_v26 = vld [vmem:[#allocation7 + $0xbf8] sm:$0xff] }
 0x72d   : > { %6929 = vmatpush.msra.mxu0 %v6360_v32  ;;  %6948 = vmatpush.msra.mxu1 %v6377_v48  ;;  %v6426_v32 = vld [vmem:[#allocation7 + $0xa68] sm:$0xff]  ;;  %v6443_v48 = vld [vmem:[#allocation7 + $0xaf0] sm:$0xff] }
 0x72e   : > { %6969 = vmatpush.msra.mxu2 %v6392_v49  ;;  %6988 = vmatpush.msra.mxu3 %v6409_v50  ;;  %v6458_v49 = vld [vmem:[#allocation7 + $0xb68] sm:$0xff]  ;;  %v6475_v50 = vld [vmem:[#allocation7 + $0xbf0] sm:$0xff] }
 0x72f   : > { %6930 = vmatpush.msra.mxu0 %v6359_v51  ;;  %6949 = vmatpush.msra.mxu1 %v6376_v3  ;;  %v6425_v51 = vld [vmem:[#allocation7 + $0xa60] sm:$0xff]  ;;  %v6442_v3 = vld [vmem:[#allocation7 + $0xae8] sm:$0xff] }
 0x730   : > { %6970 = vmatpush.msra.mxu2 %v6391_v52  ;;  %6989 = vmatpush.msra.mxu3 %v6408_v53  ;;  %v6457_v52 = vld [vmem:[#allocation7 + $0xb60] sm:$0xff]  ;;  %v6474_v53 = vld [vmem:[#allocation7 + $0xbe8] sm:$0xff] }
 0x731   : > { %6931 = vmatpush.msra.mxu0 %v6358_v54  ;;  %6950 = vmatpush.msra.mxu1 %v6375_v56  ;;  %v6424_v54 = vld [vmem:[#allocation7 + $0xa58] sm:$0xff]  ;;  %v6441_v56 = vld [vmem:[#allocation7 + $0xae0] sm:$0xff] }
 0x732   : > { %6971 = vmatpush.msra.mxu2 %v6390_v57  ;;  %6990 = vmatpush.msra.mxu3 %v6407_v58  ;;  %v6456_v57 = vld [vmem:[#allocation7 + $0xb58] sm:$0xff]  ;;  %v6473_v58 = vld [vmem:[#allocation7 + $0xbe0] sm:$0xff] }
 0x733   : > { %6932 = vmatpush.msra.mxu0 %v6357_v59  ;;  %6951 = vmatpush.msra.mxu1 %v6374_v61  ;;  %v6423_v59 = vld [vmem:[#allocation7 + $0xa50] sm:$0xff]  ;;  %v6440_v61 = vld [vmem:[#allocation7 + $0xad8] sm:$0xff] }
 0x734   : > { %6972 = vmatpush.msra.mxu2 %v6389_v62  ;;  %6991 = vmatpush.msra.mxu3 %v6406_v63  ;;  %v6455_v62 = vld [vmem:[#allocation7 + $0xb50] sm:$0xff]  ;;  %v6472_v63 = vld [vmem:[#allocation7 + $0xbd8] sm:$0xff] }
 0x735   : > { %6933 = vmatpush.msra.mxu0 %v6356_v0  ;;  %6952 = vmatpush.msra.mxu1 %v6373_v4  ;;  %v6422_v0 = vld [vmem:[#allocation7 + $0xa48] sm:$0xff]  ;;  %v6439_v4 = vld [vmem:[#allocation7 + $0xad0] sm:$0xff] }
 0x736   : > { %6973 = vmatpush.msra.mxu2 %v6388_v5  ;;  %6992 = vmatpush.msra.mxu3 %v6405_v38  ;;  %v6454_v5 = vld [vmem:[#allocation7 + $0xb48] sm:$0xff]  ;;  %v6471_v38 = vld [vmem:[#allocation7 + $0xbd0] sm:$0xff] }
 0x737   : > { %6934 = vmatpush.msra.mxu0 %v6355_v6  ;;  %6953 = vmatpush.msra.mxu1 %v6372_v7  ;;  %v6421_v6 = vld [vmem:[#allocation7 + $0xa40] sm:$0xff]  ;;  %v6438_v7 = vld [vmem:[#allocation7 + $0xac8] sm:$0xff] }
 0x738   : > { %6974 = vmatpush.msra.mxu2 %v6387_v8  ;;  %6993 = vmatpush.msra.mxu3 %v6404_v9  ;;  %v6453_v8 = vld [vmem:[#allocation7 + $0xb40] sm:$0xff]  ;;  %v6470_v9 = vld [vmem:[#allocation7 + $0xbc8] sm:$0xff] }
 0x739   : > { %6935 = vmatpush.msra.mxu0 %v6354_v10  ;;  %6954 = vmatpush.msra.mxu1 %v6371_v11  ;;  %v6420_v10 = vld [vmem:[#allocation7 + $0xa38] sm:$0xff]  ;;  %v6437_v11 = vld [vmem:[#allocation7 + $0xac0] sm:$0xff] }
 0x73a   : > { %6975 = vmatpush.msra.mxu2 %v6386_v12  ;;  %6994 = vmatpush.msra.mxu3 %v6403_v13  ;;  %v6452_v12 = vld [vmem:[#allocation7 + $0xb38] sm:$0xff]  ;;  %v6469_v13 = vld [vmem:[#allocation7 + $0xbc0] sm:$0xff] }
 0x73b   : > { %6936 = vmatpush.msra.mxu0 %v6353_v14  ;;  %6955 = vmatpush.msra.mxu1 %v6370_v15  ;;  %v6419_v14 = vld [vmem:[#allocation7 + $0xa30] sm:$0xff]  ;;  %v6436_v15 = vld [vmem:[#allocation7 + $0xab8] sm:$0xff] }
 0x73c   : > { %6976 = vmatpush.msra.mxu2 %v6385_v17  ;;  %6995 = vmatpush.msra.mxu3 %v6402_v18  ;;  %v6451_v17 = vld [vmem:[#allocation7 + $0xb30] sm:$0xff]  ;;  %v6468_v18 = vld [vmem:[#allocation7 + $0xbb8] sm:$0xff] }
 0x73d   : > { %6937 = vmatpush.msra.mxu0 %v6352_v19  ;;  %6956 = vmatpush.msra.mxu1 %v6369_v20  ;;  %v6418_v19 = vld [vmem:[#allocation7 + $0xa28] sm:$0xff]  ;;  %v6435_v20 = vld [vmem:[#allocation7 + $0xab0] sm:$0xff] }
 0x73e   : > { %6977 = vmatpush.msra.mxu2 %v6384_v40  ;;  %6996 = vmatpush.msra.mxu3 %v6401_v43  ;;  %v6450_v40 = vld [vmem:[#allocation7 + $0xb28] sm:$0xff]  ;;  %v6467_v43 = vld [vmem:[#allocation7 + $0xbb0] sm:$0xff] }
 0x73f   : > { %6938 = vmatpush.msra.mxu0 %v6351_v22  ;;  %6957 = vmatpush.msra.mxu1 %v6368_v23  ;;  %v6417_v22 = vld [vmem:[#allocation7 + $0xa20] sm:$0xff]  ;;  %v6434_v23 = vld [vmem:[#allocation7 + $0xaa8] sm:$0xff] }
 0x740   : > { %6978 = vmatpush.msra.mxu2 %v6383_v24  ;;  %6997 = vmatpush.msra.mxu3 %v6400_v25  ;;  %v6449_v24 = vld [vmem:[#allocation7 + $0xb20] sm:$0xff]  ;;  %v6466_v25 = vld [vmem:[#allocation7 + $0xba8] sm:$0xff] }
 0x741   : > { %6939 = vmatpush.msra.mxu0 %v6350_v27  ;;  %6958 = vmatpush.msra.mxu1 %v6367_v28  ;;  %v6416_v27 = vld [vmem:[#allocation7 + $0xa18] sm:$0xff]  ;;  %v6433_v28 = vld [vmem:[#allocation7 + $0xaa0] sm:$0xff] }
 0x742   : > { %6979 = vmatpush.msra.mxu2 %v6382_v31  ;;  %6998 = vmatpush.msra.mxu3 %v6399_v1  ;;  %v6415_v31 = vld [vmem:[#allocation7 + $0xa10] sm:$0xff]  ;;  %v6432_v1 = vld [vmem:[#allocation7 + $0xa98] sm:$0xff] }
 0x743   : > { %6940 = vmatpush.msra.mxu0 %v6349_v33  ;;  %6959 = vmatpush.msra.mxu1 %v6366_v34  ;;  %v6447_v33 = vld [vmem:[#allocation7 + $0xb10] sm:$0xff]  ;;  %v6464_v34 = vld [vmem:[#allocation7 + $0xb98] sm:$0xff] }
 0x744   : > { %6980 = vmatpush.msra.mxu2 %v6381_v35  ;;  %6999 = vmatpush.msra.mxu3 %v6398_v16  ;;  %v6414_v35 = vld [vmem:[#allocation7 + $0xa08] sm:$0xff]  ;;  %v6431_v16 = vld [vmem:[#allocation7 + $0xa90] sm:$0xff] }
 0x745   : > { %6941 = vmatmul.f32.vlgmr.msra.gmra.mxu0 %v6077_v36  ;;  %6981 = vmatmul.f32.vlgmr.msra.gmra.mxu2 %v6079_v2  ;;  %v6049_v36 = vld [vmem:[#allocation2 + $0xe0] sm:$0xff]  ;;  %v6051_v2 = vld [vmem:[#allocation2 + $0x70] sm:$0xff] }
 0x746   : > { %7005 = vmatpush.msrb.mxu0 %v6428_v41  ;;  %7045 = vmatpush.msrb.mxu2 %v6460_v42  ;;  %v6413_v41 = vld [vmem:[#allocation7 + $0xa00] sm:$0xff]  ;;  %v6430_v42 = vld [vmem:[#allocation7 + $0xa88] sm:$0xff] }
 0x747   : > { %6960 = vmatpush.msra.mxu1 %v6365_v21  ;;  %7000 = vmatpush.msra.mxu3 %v6397_v44  ;;  %v6445_v21 = vld [vmem:[#allocation7 + $0xb00] sm:$0xff]  ;;  %v6462_v44 = vld [vmem:[#allocation7 + $0xb88] sm:$0xff] }
 0x748   : > { %6961 = vmatmul.f32.vlgmr.msra.gmra.mxu1 %v6078_v45  ;;  %7001 = vmatmul.f32.vlgmr.msra.gmra.mxu3 %v6080_v55  ;;  %v6081_v45 = vmax.f32 %v6049_v36, 0.0  ;;  %v6083_v55 = vmax.f32 %v6051_v2, 0.0  ;;  %v6512_v36 = vld [vmem:[#allocation7 + $0xd18] sm:$0xff]  ;;  %v6529_v2 = vld [vmem:[#allocation7 + $0xda0] sm:$0xff] }
 0x749   : > { %7006 = vmatpush.msrb.mxu0 %v6427_v46  ;;  %7025 = vmatpush.msrb.mxu1 %v6444_v60  ;;  %v6050_v46 = vld [vmem:[#allocation2 + $0x90] sm:$0xff]  ;;  %v6052_v60 = vld [vmem:[#allocation2 + $0xc0] sm:$0xff] }
 0x74a   : > { %7046 = vmatpush.msrb.mxu2 %v6459_v47  ;;  %7065 = vmatpush.msrb.mxu3 %v6476_v26  ;;  %v6492_v47 = vld [vmem:[#allocation7 + $0xc78] sm:$0xff] }
 0x74b   : > { %7007 = vmatpush.msrb.mxu0 %v6426_v32  ;;  %7026 = vmatpush.msrb.mxu1 %v6443_v48  ;;  %v6524_v26 = vld [vmem:[#allocation7 + $0xd78] sm:$0xff]  ;;  %v6429_v32 = vld [vmem:[#allocation7 + $0xa80] sm:$0xff] }
 0x74c   : > { %7047 = vmatpush.msrb.mxu2 %v6458_v49  ;;  %7066 = vmatpush.msrb.mxu3 %v6475_v50  ;;  %v6461_v48 = vld [vmem:[#allocation7 + $0xb80] sm:$0xff]  ;;  %v6082_v49 = vmax.f32 %v6050_v46, 0.0  ;;  %v6084_v50 = vmax.f32 %v6052_v60, 0.0  ;;  %v6510_v46 = vld [vmem:[#allocation7 + $0xd08] sm:$0xff]  ;;  %v6527_v60 = vld [vmem:[#allocation7 + $0xd90] sm:$0xff] }
 0x74d   : > { %7008 = vmatpush.msrb.mxu0 %v6425_v51  ;;  %7027 = vmatpush.msrb.mxu1 %v6442_v3  ;;  %v6491_v51 = vld [vmem:[#allocation7 + $0xc70] sm:$0xff]  ;;  %v6508_v3 = vld [vmem:[#allocation7 + $0xcf8] sm:$0xff] }
 0x74e   : > { %7048 = vmatpush.msrb.mxu2 %v6457_v52  ;;  %7067 = vmatpush.msrb.mxu3 %v6474_v53  ;;  %v6523_v52 = vld [vmem:[#allocation7 + $0xd70] sm:$0xff]  ;;  %v6540_v53 = vld [vmem:[#allocation7 + $0xdf8] sm:$0xff] }
 0x74f   : > { %7009 = vmatpush.msrb.mxu0 %v6424_v54  ;;  %7028 = vmatpush.msrb.mxu1 %v6441_v56  ;;  %v6490_v54 = vld [vmem:[#allocation7 + $0xc68] sm:$0xff]  ;;  %v6507_v56 = vld [vmem:[#allocation7 + $0xcf0] sm:$0xff] }
 0x750   : > { %7049 = vmatpush.msrb.mxu2 %v6456_v57  ;;  %7068 = vmatpush.msrb.mxu3 %v6473_v58  ;;  %v6522_v57 = vld [vmem:[#allocation7 + $0xd68] sm:$0xff]  ;;  %v6539_v58 = vld [vmem:[#allocation7 + $0xdf0] sm:$0xff] }
 0x751   : > { %7010 = vmatpush.msrb.mxu0 %v6423_v59  ;;  %7029 = vmatpush.msrb.mxu1 %v6440_v61  ;;  %v6489_v59 = vld [vmem:[#allocation7 + $0xc60] sm:$0xff]  ;;  %v6506_v61 = vld [vmem:[#allocation7 + $0xce8] sm:$0xff] }
 0x752   : > { %7050 = vmatpush.msrb.mxu2 %v6455_v62  ;;  %7069 = vmatpush.msrb.mxu3 %v6472_v63  ;;  %v6521_v62 = vld [vmem:[#allocation7 + $0xd60] sm:$0xff]  ;;  %v6538_v63 = vld [vmem:[#allocation7 + $0xde8] sm:$0xff] }
 0x753   : > { %7011 = vmatpush.msrb.mxu0 %v6422_v0  ;;  %7030 = vmatpush.msrb.mxu1 %v6439_v4  ;;  %v6488_v0 = vld [vmem:[#allocation7 + $0xc58] sm:$0xff]  ;;  %v6505_v4 = vld [vmem:[#allocation7 + $0xce0] sm:$0xff] }
 0x754   : > { %7051 = vmatpush.msrb.mxu2 %v6454_v5  ;;  %7070 = vmatpush.msrb.mxu3 %v6471_v38  ;;  %v6520_v5 = vld [vmem:[#allocation7 + $0xd58] sm:$0xff]  ;;  %v6537_v38 = vld [vmem:[#allocation7 + $0xde0] sm:$0xff] }
 0x755   : > { %7012 = vmatpush.msrb.mxu0 %v6421_v6  ;;  %7031 = vmatpush.msrb.mxu1 %v6438_v7  ;;  %v6487_v6 = vld [vmem:[#allocation7 + $0xc50] sm:$0xff]  ;;  %v6504_v7 = vld [vmem:[#allocation7 + $0xcd8] sm:$0xff] }
 0x756   : > { %7052 = vmatpush.msrb.mxu2 %v6453_v8  ;;  %7071 = vmatpush.msrb.mxu3 %v6470_v9  ;;  %v6519_v8 = vld [vmem:[#allocation7 + $0xd50] sm:$0xff]  ;;  %v6536_v9 = vld [vmem:[#allocation7 + $0xdd8] sm:$0xff] }
 0x757   : > { %7013 = vmatpush.msrb.mxu0 %v6420_v10  ;;  %7032 = vmatpush.msrb.mxu1 %v6437_v11  ;;  %v6486_v10 = vld [vmem:[#allocation7 + $0xc48] sm:$0xff]  ;;  %v6503_v11 = vld [vmem:[#allocation7 + $0xcd0] sm:$0xff] }
 0x758   : > { %7053 = vmatpush.msrb.mxu2 %v6452_v12  ;;  %7072 = vmatpush.msrb.mxu3 %v6469_v13  ;;  %v6518_v12 = vld [vmem:[#allocation7 + $0xd48] sm:$0xff]  ;;  %v6535_v13 = vld [vmem:[#allocation7 + $0xdd0] sm:$0xff] }
 0x759   : > { %7014 = vmatpush.msrb.mxu0 %v6419_v14  ;;  %7033 = vmatpush.msrb.mxu1 %v6436_v15  ;;  %v6485_v14 = vld [vmem:[#allocation7 + $0xc40] sm:$0xff]  ;;  %v6502_v15 = vld [vmem:[#allocation7 + $0xcc8] sm:$0xff] }
 0x75a   : > { %7054 = vmatpush.msrb.mxu2 %v6451_v17  ;;  %7073 = vmatpush.msrb.mxu3 %v6468_v18  ;;  %v6517_v17 = vld [vmem:[#allocation7 + $0xd40] sm:$0xff]  ;;  %v6534_v18 = vld [vmem:[#allocation7 + $0xdc8] sm:$0xff] }
 0x75b   : > { %7015 = vmatpush.msrb.mxu0 %v6418_v19  ;;  %7034 = vmatpush.msrb.mxu1 %v6435_v20  ;;  %v6484_v19 = vld [vmem:[#allocation7 + $0xc38] sm:$0xff]  ;;  %v6501_v20 = vld [vmem:[#allocation7 + $0xcc0] sm:$0xff] }
 0x75c   : > { %7055 = vmatpush.msrb.mxu2 %v6450_v40  ;;  %7074 = vmatpush.msrb.mxu3 %v6467_v43  ;;  %v6516_v40 = vld [vmem:[#allocation7 + $0xd38] sm:$0xff]  ;;  %v6533_v43 = vld [vmem:[#allocation7 + $0xdc0] sm:$0xff] }
 0x75d   : > { %7016 = vmatpush.msrb.mxu0 %v6417_v22  ;;  %7035 = vmatpush.msrb.mxu1 %v6434_v23  ;;  %v6483_v22 = vld [vmem:[#allocation7 + $0xc30] sm:$0xff]  ;;  %v6500_v23 = vld [vmem:[#allocation7 + $0xcb8] sm:$0xff] }
 0x75e   : > { %7056 = vmatpush.msrb.mxu2 %v6449_v24  ;;  %7075 = vmatpush.msrb.mxu3 %v6466_v25  ;;  %v6515_v24 = vld [vmem:[#allocation7 + $0xd30] sm:$0xff]  ;;  %v6532_v25 = vld [vmem:[#allocation7 + $0xdb8] sm:$0xff] }
 0x75f   : > { %7017 = vmatpush.msrb.mxu0 %v6416_v27  ;;  %7036 = vmatpush.msrb.mxu1 %v6433_v28  ;;  %v6482_v27 = vld [vmem:[#allocation7 + $0xc28] sm:$0xff]  ;;  %v6499_v28 = vld [vmem:[#allocation7 + $0xcb0] sm:$0xff] }
 0x760   : > { %7057 = vmatpush.msrb.mxu2 %v6448_v29  ;;  %7076 = vmatpush.msrb.mxu3 %v6465_v30  ;;  %v6514_v29 = vld [vmem:[#allocation7 + $0xd28] sm:$0xff]  ;;  %v6531_v30 = vld [vmem:[#allocation7 + $0xdb0] sm:$0xff] }
 0x761   : > { %7018 = vmatpush.msrb.mxu0 %v6415_v31  ;;  %7037 = vmatpush.msrb.mxu1 %v6432_v1  ;;  %v6481_v31 = vld [vmem:[#allocation7 + $0xc20] sm:$0xff]  ;;  %v6498_v1 = vld [vmem:[#allocation7 + $0xca8] sm:$0xff] }
 0x762   : > { %7058 = vmatpush.msrb.mxu2 %v6447_v33  ;;  %7077 = vmatpush.msrb.mxu3 %v6464_v34  ;;  %v6513_v33 = vld [vmem:[#allocation7 + $0xd20] sm:$0xff]  ;;  %v6530_v34 = vld [vmem:[#allocation7 + $0xda8] sm:$0xff] }
 0x763   : > { %7019 = vmatpush.msrb.mxu0 %v6414_v35  ;;  %7038 = vmatpush.msrb.mxu1 %v6431_v16  ;;  %v6480_v35 = vld [vmem:[#allocation7 + $0xc18] sm:$0xff]  ;;  %v6497_v16 = vld [vmem:[#allocation7 + $0xca0] sm:$0xff] }
 0x764   : > { %7059 = vmatpush.msrb.mxu2 %v6446_v37  ;;  %7078 = vmatpush.msrb.mxu3 %v6463_v39  ;;  %v6479_v37 = vld [vmem:[#allocation7 + $0xc10] sm:$0xff]  ;;  %v6496_v39 = vld [vmem:[#allocation7 + $0xc98] sm:$0xff] }
 0x765   : > { %7020 = vmatpush.msrb.mxu0 %v6413_v41  ;;  %7039 = vmatpush.msrb.mxu1 %v6430_v42  ;;  %v6511_v41 = vld [vmem:[#allocation7 + $0xd10] sm:$0xff]  ;;  %v6528_v42 = vld [vmem:[#allocation7 + $0xd98] sm:$0xff] }
 0x766   : > { %7060 = vmatpush.msrb.mxu2 %v6445_v21  ;;  %7079 = vmatpush.msrb.mxu3 %v6462_v44  ;;  %v6478_v21 = vld [vmem:[#allocation7 + $0xc08] sm:$0xff]  ;;  %v6495_v44 = vld [vmem:[#allocation7 + $0xc90] sm:$0xff] }
 0x767   : > { %7021 = vmatmul.f32.vlgmr.msrb.gmra.mxu0 %v6081_v45  ;;  %7061 = vmatmul.f32.vlgmr.msrb.gmra.mxu2 %v6083_v55  ;;  %v6053_v45 = vld [vmem:[#allocation2 + $0xa8] sm:$0xff]  ;;  %v6055_v55 = vld [vmem:[#allocation2 + $0x10] sm:$0xff] }
 0x768   : > { %7085 = vmatpush.msra.mxu0 %v6492_v47  ;;  %7125 = vmatpush.msra.mxu2 %v6524_v26  ;;  %v6477_v47 = vld [vmem:[#allocation7 + $0xc00] sm:$0xff]  ;;  %v6494_v26 = vld [vmem:[#allocation7 + $0xc88] sm:$0xff] }
 0x769   : > { %7040 = vmatpush.msrb.mxu1 %v6429_v32  ;;  %7080 = vmatpush.msrb.mxu3 %v6461_v48  ;;  %v6509_v32 = vld [vmem:[#allocation7 + $0xd00] sm:$0xff]  ;;  %v6526_v48 = vld [vmem:[#allocation7 + $0xd88] sm:$0xff] }
 0x76a   : > { %7041 = vmatmul.f32.vlgmr.msrb.gmra.mxu1 %v6082_v49  ;;  %7081 = vmatmul.f32.vlgmr.msrb.gmra.mxu3 %v6084_v50  ;;  %v6085_v49 = vmax.f32 %v6053_v45, 0.0  ;;  %v6087_v50 = vmax.f32 %v6055_v55, 0.0  ;;  %v6576_v45 = vld [vmem:[#allocation7 + $0xf18] sm:$0xff]  ;;  %v6593_v55 = vld [vmem:[#allocation7 + $0xfa0] sm:$0xff] }
 0x76b   : > { %7086 = vmatpush.msra.mxu0 %v6491_v51  ;;  %7105 = vmatpush.msra.mxu1 %v6508_v3  ;;  %v6054_v51 = vld [vmem:[#allocation2 + $0xd0] sm:$0xff]  ;;  %v6056_v3 = vld [vmem:[#allocation2 + $0x28] sm:$0xff] }
 0x76c   : > { %7126 = vmatpush.msra.mxu2 %v6523_v52  ;;  %7145 = vmatpush.msra.mxu3 %v6540_v53  ;;  %v6556_v52 = vld [vmem:[#allocation7 + $0xe78] sm:$0xff] }
 0x76d   : > { %7087 = vmatpush.msra.mxu0 %v6490_v54  ;;  %7106 = vmatpush.msra.mxu1 %v6507_v56  ;;  %v6588_v53 = vld [vmem:[#allocation7 + $0xf78] sm:$0xff]  ;;  %v6493_v54 = vld [vmem:[#allocation7 + $0xc80] sm:$0xff] }
 0x76e   : > { %7127 = vmatpush.msra.mxu2 %v6522_v57  ;;  %7146 = vmatpush.msra.mxu3 %v6539_v58  ;;  %v6525_v56 = vld [vmem:[#allocation7 + $0xd80] sm:$0xff]  ;;  %v6086_v57 = vmax.f32 %v6054_v51, 0.0  ;;  %v6088_v58 = vmax.f32 %v6056_v3, 0.0  ;;  %v6574_v51 = vld [vmem:[#allocation7 + $0xf08] sm:$0xff]  ;;  %v6591_v3 = vld [vmem:[#allocation7 + $0xf90] sm:$0xff] }
 0x76f   : > { %7088 = vmatpush.msra.mxu0 %v6489_v59  ;;  %7107 = vmatpush.msra.mxu1 %v6506_v61  ;;  %v6555_v59 = vld [vmem:[#allocation7 + $0xe70] sm:$0xff]  ;;  %v6572_v61 = vld [vmem:[#allocation7 + $0xef8] sm:$0xff] }
 0x770   : > { %7128 = vmatpush.msra.mxu2 %v6521_v62  ;;  %7147 = vmatpush.msra.mxu3 %v6538_v63  ;;  %v6587_v62 = vld [vmem:[#allocation7 + $0xf70] sm:$0xff]  ;;  %v6604_v63 = vld [vmem:[#allocation7 + $0xff8] sm:$0xff] }
 0x771   : > { %7089 = vmatpush.msra.mxu0 %v6488_v0  ;;  %7108 = vmatpush.msra.mxu1 %v6505_v4  ;;  %v6554_v0 = vld [vmem:[#allocation7 + $0xe68] sm:$0xff]  ;;  %v6571_v4 = vld [vmem:[#allocation7 + $0xef0] sm:$0xff] }
 0x772   : > { %7129 = vmatpush.msra.mxu2 %v6520_v5  ;;  %7148 = vmatpush.msra.mxu3 %v6537_v38  ;;  %v6586_v5 = vld [vmem:[#allocation7 + $0xf68] sm:$0xff]  ;;  %v6603_v38 = vld [vmem:[#allocation7 + $0xff0] sm:$0xff] }
 0x773   : > { %7090 = vmatpush.msra.mxu0 %v6487_v6  ;;  %7109 = vmatpush.msra.mxu1 %v6504_v7  ;;  %v6553_v6 = vld [vmem:[#allocation7 + $0xe60] sm:$0xff]  ;;  %v6570_v7 = vld [vmem:[#allocation7 + $0xee8] sm:$0xff] }
 0x774   : > { %7130 = vmatpush.msra.mxu2 %v6519_v8  ;;  %7149 = vmatpush.msra.mxu3 %v6536_v9  ;;  %v6585_v8 = vld [vmem:[#allocation7 + $0xf60] sm:$0xff]  ;;  %v6602_v9 = vld [vmem:[#allocation7 + $0xfe8] sm:$0xff] }
 0x775   : > { %7091 = vmatpush.msra.mxu0 %v6486_v10  ;;  %7110 = vmatpush.msra.mxu1 %v6503_v11  ;;  %v6552_v10 = vld [vmem:[#allocation7 + $0xe58] sm:$0xff]  ;;  %v6569_v11 = vld [vmem:[#allocation7 + $0xee0] sm:$0xff] }
 0x776   : > { %7131 = vmatpush.msra.mxu2 %v6518_v12  ;;  %7150 = vmatpush.msra.mxu3 %v6535_v13  ;;  %v6584_v12 = vld [vmem:[#allocation7 + $0xf58] sm:$0xff]  ;;  %v6601_v13 = vld [vmem:[#allocation7 + $0xfe0] sm:$0xff] }
 0x777   : > { %7092 = vmatpush.msra.mxu0 %v6485_v14  ;;  %7111 = vmatpush.msra.mxu1 %v6502_v15  ;;  %v6551_v14 = vld [vmem:[#allocation7 + $0xe50] sm:$0xff]  ;;  %v6568_v15 = vld [vmem:[#allocation7 + $0xed8] sm:$0xff] }
 0x778   : > { %7132 = vmatpush.msra.mxu2 %v6517_v17  ;;  %7151 = vmatpush.msra.mxu3 %v6534_v18  ;;  %v6583_v17 = vld [vmem:[#allocation7 + $0xf50] sm:$0xff]  ;;  %v6600_v18 = vld [vmem:[#allocation7 + $0xfd8] sm:$0xff] }
 0x779   : > { %7093 = vmatpush.msra.mxu0 %v6484_v19  ;;  %7112 = vmatpush.msra.mxu1 %v6501_v20  ;;  %v6550_v19 = vld [vmem:[#allocation7 + $0xe48] sm:$0xff]  ;;  %v6567_v20 = vld [vmem:[#allocation7 + $0xed0] sm:$0xff] }
 0x77a   : > { %7133 = vmatpush.msra.mxu2 %v6516_v40  ;;  %7152 = vmatpush.msra.mxu3 %v6533_v43  ;;  %v6582_v40 = vld [vmem:[#allocation7 + $0xf48] sm:$0xff]  ;;  %v6599_v43 = vld [vmem:[#allocation7 + $0xfd0] sm:$0xff] }
 0x77b   : > { %7094 = vmatpush.msra.mxu0 %v6483_v22  ;;  %7113 = vmatpush.msra.mxu1 %v6500_v23  ;;  %v6549_v22 = vld [vmem:[#allocation7 + $0xe40] sm:$0xff]  ;;  %v6566_v23 = vld [vmem:[#allocation7 + $0xec8] sm:$0xff] }
 0x77c   : > { %7134 = vmatpush.msra.mxu2 %v6515_v24  ;;  %7153 = vmatpush.msra.mxu3 %v6532_v25  ;;  %v6581_v24 = vld [vmem:[#allocation7 + $0xf40] sm:$0xff]  ;;  %v6598_v25 = vld [vmem:[#allocation7 + $0xfc8] sm:$0xff] }
 0x77d   : > { %7095 = vmatpush.msra.mxu0 %v6482_v27  ;;  %7114 = vmatpush.msra.mxu1 %v6499_v28  ;;  %v6548_v27 = vld [vmem:[#allocation7 + $0xe38] sm:$0xff]  ;;  %v6565_v28 = vld [vmem:[#allocation7 + $0xec0] sm:$0xff] }
 0x77e   : > { %7135 = vmatpush.msra.mxu2 %v6514_v29  ;;  %7154 = vmatpush.msra.mxu3 %v6531_v30  ;;  %v6580_v29 = vld [vmem:[#allocation7 + $0xf38] sm:$0xff]  ;;  %v6597_v30 = vld [vmem:[#allocation7 + $0xfc0] sm:$0xff] }
 0x77f   : > { %7096 = vmatpush.msra.mxu0 %v6481_v31  ;;  %7115 = vmatpush.msra.mxu1 %v6498_v1  ;;  %v6547_v31 = vld [vmem:[#allocation7 + $0xe30] sm:$0xff]  ;;  %v6564_v1 = vld [vmem:[#allocation7 + $0xeb8] sm:$0xff] }
 0x780   : > { %7136 = vmatpush.msra.mxu2 %v6513_v33  ;;  %7155 = vmatpush.msra.mxu3 %v6530_v34  ;;  %v6579_v33 = vld [vmem:[#allocation7 + $0xf30] sm:$0xff]  ;;  %v6596_v34 = vld [vmem:[#allocation7 + $0xfb8] sm:$0xff] }
 0x781   : > { %7097 = vmatpush.msra.mxu0 %v6480_v35  ;;  %7116 = vmatpush.msra.mxu1 %v6497_v16  ;;  %v6546_v35 = vld [vmem:[#allocation7 + $0xe28] sm:$0xff]  ;;  %v6563_v16 = vld [vmem:[#allocation7 + $0xeb0] sm:$0xff] }
 0x782   : > { %7137 = vmatpush.msra.mxu2 %v6512_v36  ;;  %7156 = vmatpush.msra.mxu3 %v6529_v2  ;;  %v6578_v36 = vld [vmem:[#allocation7 + $0xf28] sm:$0xff]  ;;  %v6595_v2 = vld [vmem:[#allocation7 + $0xfb0] sm:$0xff] }
 0x783   : > { %7098 = vmatpush.msra.mxu0 %v6479_v37  ;;  %7117 = vmatpush.msra.mxu1 %v6496_v39  ;;  %v6545_v37 = vld [vmem:[#allocation7 + $0xe20] sm:$0xff]  ;;  %v6562_v39 = vld [vmem:[#allocation7 + $0xea8] sm:$0xff] }
 0x784   : > { %7138 = vmatpush.msra.mxu2 %v6511_v41  ;;  %7157 = vmatpush.msra.mxu3 %v6528_v42  ;;  %v6577_v41 = vld [vmem:[#allocation7 + $0xf20] sm:$0xff]  ;;  %v6594_v42 = vld [vmem:[#allocation7 + $0xfa8] sm:$0xff] }
 0x785   : > { %7099 = vmatpush.msra.mxu0 %v6478_v21  ;;  %7118 = vmatpush.msra.mxu1 %v6495_v44  ;;  %v6544_v21 = vld [vmem:[#allocation7 + $0xe18] sm:$0xff]  ;;  %v6561_v44 = vld [vmem:[#allocation7 + $0xea0] sm:$0xff] }
 0x786   : > { %7139 = vmatpush.msra.mxu2 %v6510_v46  ;;  %7158 = vmatpush.msra.mxu3 %v6527_v60  ;;  %v6543_v46 = vld [vmem:[#allocation7 + $0xe10] sm:$0xff]  ;;  %v6560_v60 = vld [vmem:[#allocation7 + $0xe98] sm:$0xff] }
 0x787   : > { %7100 = vmatpush.msra.mxu0 %v6477_v47  ;;  %7119 = vmatpush.msra.mxu1 %v6494_v26  ;;  %v6575_v47 = vld [vmem:[#allocation7 + $0xf10] sm:$0xff]  ;;  %v6592_v26 = vld [vmem:[#allocation7 + $0xf98] sm:$0xff] }
 0x788   : > { %7140 = vmatpush.msra.mxu2 %v6509_v32  ;;  %7159 = vmatpush.msra.mxu3 %v6526_v48  ;;  %v6542_v32 = vld [vmem:[#allocation7 + $0xe08] sm:$0xff]  ;;  %v6559_v48 = vld [vmem:[#allocation7 + $0xe90] sm:$0xff] }
 0x789   : > { %7101 = vmatmul.f32.vlgmr.msra.gmra.mxu0 %v6085_v49  ;;  %7141 = vmatmul.f32.vlgmr.msra.gmra.mxu2 %v6087_v50  ;;  %v6057_v49 = vld [vmem:[#allocation2 + $0xa0] sm:$0xff] }
 0x78a   : > { %7165 = vmatpush.msrb.mxu0 %v6556_v52  ;;  %7205 = vmatpush.msrb.mxu2 %v6588_v53  ;;  %v6059_v50 = vld [vmem:[#allocation2 + $0x20] sm:$0xff]  ;;  %v6558_v53 = vld [vmem:[#allocation7 + $0xe88] sm:$0xff] }
 0x78b   : > { %7120 = vmatpush.msra.mxu1 %v6493_v54  ;;  %7160 = vmatpush.msra.mxu3 %v6525_v56  ;;  %v6541_v52 = vld [vmem:[#allocation7 + $0xe00] sm:$0xff]  ;;  %v6058_v54 = vld [vmem:[#allocation2 + $0xf8] sm:$0xff] }
 0x78c   : > { %7121 = vmatmul.f32.vlgmr.msra.gmra.mxu1 %v6086_v57  ;;  %7161 = vmatmul.f32.vlgmr.msra.gmra.mxu3 %v6088_v58  ;;  %v6060_v56 = vld [vmem:[#allocation2 + $0x98] sm:$0xff]  ;;  %v6573_v57 = vld [vmem:[#allocation7 + $0xf00] sm:$0xff]  ;;  %v6590_v58 = vld [vmem:[#allocation7 + $0xf88] sm:$0xff] }
 0x78d   : > { %7166 = vmatpush.msrb.mxu0 %v6555_v59  ;;  %7185 = vmatpush.msrb.mxu1 %v6572_v61  ;;  %v6089_v59 = vmax.f32 %v6057_v49, 0.0  ;;  %v6091_v61 = vmax.f32 %v6059_v50, 0.0 }
 0x78e   : > { %7206 = vmatpush.msrb.mxu2 %v6587_v62  ;;  %7225 = vmatpush.msrb.mxu3 %v6604_v63  ;;  %v6557_v62 = vld [vmem:[#allocation7 + $0xe80] sm:$0xff] }
 0x78f   : > { %7167 = vmatpush.msrb.mxu0 %v6554_v0  ;;  %7186 = vmatpush.msrb.mxu1 %v6571_v4  ;;  %v6589_v63 = vld [vmem:[#allocation7 + $0xf80] sm:$0xff]  ;;  %v6090_v0 = vmax.f32 %v6058_v54, 0.0  ;;  %v6092_v4 = vmax.f32 %v6060_v56, 0.0 }
 0x790   : > { %7207 = vmatpush.msrb.mxu2 %v6586_v5  ;;  %7226 = vmatpush.msrb.mxu3 %v6603_v38  ;;  %v6642_v5 = vpop.f32.mrf.mxu1  ;;  %v6622_v38 = vpop.f32.mrf.mxu0 }
 0x791   : > { %7168 = vmatpush.msrb.mxu0 %v6553_v6  ;;  %7187 = vmatpush.msrb.mxu1 %v6570_v7  ;;  %v6643_v6 = vadd.f32 %v6642_v5, %v6622_v38  ;;  %v6662_v7 = vpop.f32.mrf.mxu2 }
 0x792   : > { %7208 = vmatpush.msrb.mxu2 %v6585_v8  ;;  %7227 = vmatpush.msrb.mxu3 %v6602_v9  ;;  %v6682_v9 = vpop.f32.mrf.mxu3 }
 0x793   : > { %7169 = vmatpush.msrb.mxu0 %v6552_v10  ;;  %7188 = vmatpush.msrb.mxu1 %v6569_v11  ;;  %v6663_v8 = vadd.f32 %v6662_v7, %v6643_v6 }
 0x794   : > { %7209 = vmatpush.msrb.mxu2 %v6584_v12  ;;  %7228 = vmatpush.msrb.mxu3 %v6601_v13 }
 0x795   : > { %7170 = vmatpush.msrb.mxu0 %v6551_v14  ;;  %7189 = vmatpush.msrb.mxu1 %v6568_v15  ;;  %v6683_v10 = vadd.f32 %v6682_v9, %v6663_v8 }
 0x796   : > { %7210 = vmatpush.msrb.mxu2 %v6583_v17  ;;  %7229 = vmatpush.msrb.mxu3 %v6600_v18 }
 0x797   : > { %7171 = vmatpush.msrb.mxu0 %v6550_v19  ;;  %7190 = vmatpush.msrb.mxu1 %v6567_v20 }
 0x798   : > { %7211 = vmatpush.msrb.mxu2 %v6582_v40  ;;  %7230 = vmatpush.msrb.mxu3 %v6599_v43  ;;  %v6702_v11 = vpop.f32.mrf.mxu0  ;;  %v6722_v13 = vpop.f32.mrf.mxu1 }
 0x799   : > { %7172 = vmatpush.msrb.mxu0 %v6549_v22  ;;  %7191 = vmatpush.msrb.mxu1 %v6566_v23  ;;  %v6703_v12 = vadd.f32 %v6702_v11, %v6683_v10  ;;  %v6742_v15 = vpop.f32.mrf.mxu2 }
 0x79a   : > { %7212 = vmatpush.msrb.mxu2 %v6581_v24  ;;  %7231 = vmatpush.msrb.mxu3 %v6598_v25  ;;  %v6762_v18 = vpop.f32.mrf.mxu3 }
 0x79b   : > { %7173 = vmatpush.msrb.mxu0 %v6548_v27  ;;  %7192 = vmatpush.msrb.mxu1 %v6565_v28  ;;  %v6723_v14 = vadd.f32 %v6722_v13, %v6703_v12 }
 0x79c   : > { %7213 = vmatpush.msrb.mxu2 %v6580_v29  ;;  %7232 = vmatpush.msrb.mxu3 %v6597_v30 }
 0x79d   : > { %7174 = vmatpush.msrb.mxu0 %v6547_v31  ;;  %7193 = vmatpush.msrb.mxu1 %v6564_v1  ;;  %v6743_v17 = vadd.f32 %v6742_v15, %v6723_v14 }
 0x79e   : > { %7214 = vmatpush.msrb.mxu2 %v6579_v33  ;;  %7233 = vmatpush.msrb.mxu3 %v6596_v34 }
 0x79f   : > { %7175 = vmatpush.msrb.mxu0 %v6546_v35  ;;  %7194 = vmatpush.msrb.mxu1 %v6563_v16  ;;  %v6763_v20 = vadd.f32 %v6762_v18, %v6743_v17 }
 0x7a0   : > { %7215 = vmatpush.msrb.mxu2 %v6578_v36  ;;  %7234 = vmatpush.msrb.mxu3 %v6595_v2  ;;  %v6782_v19 = vpop.f32.mrf.mxu0  ;;  %v6802_v43 = vpop.f32.mrf.mxu1 }
 0x7a1   : > { %7176 = vmatpush.msrb.mxu0 %v6545_v37  ;;  %7195 = vmatpush.msrb.mxu1 %v6562_v39  ;;  %v6783_v40 = vadd.f32 %v6782_v19, %v6763_v20  ;;  %v6822_v22 = vpop.f32.mrf.mxu2 }
 0x7a2   : > { %7216 = vmatpush.msrb.mxu2 %v6577_v41  ;;  %7235 = vmatpush.msrb.mxu3 %v6594_v42  ;;  %v6842_v25 = vpop.f32.mrf.mxu3 }
 0x7a3   : > { %7177 = vmatpush.msrb.mxu0 %v6544_v21  ;;  %7196 = vmatpush.msrb.mxu1 %v6561_v44  ;;  %v6803_v23 = vadd.f32 %v6802_v43, %v6783_v40 }
 0x7a4   : > { %7217 = vmatpush.msrb.mxu2 %v6576_v45  ;;  %7236 = vmatpush.msrb.mxu3 %v6593_v55 }
 0x7a5   : > { %7178 = vmatpush.msrb.mxu0 %v6543_v46  ;;  %7197 = vmatpush.msrb.mxu1 %v6560_v60  ;;  %v6823_v24 = vadd.f32 %v6822_v22, %v6803_v23 }
 0x7a6   : > { %7218 = vmatpush.msrb.mxu2 %v6575_v47  ;;  %7237 = vmatpush.msrb.mxu3 %v6592_v26 }
 0x7a7   : > { %7179 = vmatpush.msrb.mxu0 %v6542_v32  ;;  %7198 = vmatpush.msrb.mxu1 %v6559_v48  ;;  %v6843_v28 = vadd.f32 %v6842_v25, %v6823_v24 }
 0x7a8   : > { %7219 = vmatpush.msrb.mxu2 %v6574_v51  ;;  %7238 = vmatpush.msrb.mxu3 %v6591_v3  ;;  %v6862_v27 = vpop.f32.mrf.mxu0  ;;  %v6882_v30 = vpop.f32.mrf.mxu1 }
 0x7a9   : > { %7180 = vmatpush.msrb.mxu0 %v6541_v52  ;;  %7199 = vmatpush.msrb.mxu1 %v6558_v53  ;;  %v6863_v29 = vadd.f32 %v6862_v27, %v6843_v28  ;;  %v6902_v31 = vpop.f32.mrf.mxu2 }
 0x7aa   : > { %7220 = vmatpush.msrb.mxu2 %v6573_v57  ;;  %7239 = vmatpush.msrb.mxu3 %v6590_v58  ;;  %v6922_v34 = vpop.f32.mrf.mxu3 }
 0x7ab   : > { %7181 = vmatmul.f32.vlgmr.msrb.gmra.mxu0 %v6089_v59  ;;  %7221 = vmatmul.f32.vlgmr.msrb.gmra.mxu2 %v6091_v61  ;;  %v6883_v1 = vadd.f32 %v6882_v30, %v6863_v29 }
 0x7ac   : > { %7200 = vmatpush.msrb.mxu1 %v6557_v62  ;;  %7240 = vmatpush.msrb.mxu3 %v6589_v63 }
 0x7ad   : > { %7201 = vmatmul.f32.vlgmr.msrb.gmra.mxu1 %v6090_v0  ;;  %7241 = vmatmul.f32.vlgmr.msrb.gmra.mxu3 %v6092_v4  ;;  %v6903_v33 = vadd.f32 %v6902_v31, %v6883_v1 }
 0x7af   : > { %v6923_v16 = vadd.f32 %v6922_v34, %v6903_v33 }
 0x7c2   : > { %v6942_v35 = vpop.f32.mrf.mxu0 }
 0x7c3   : > { %v6943_v36 = vadd.f32 %v6942_v35, %v6923_v16 }
 0x7c5   : > { %v6962_v2 = vpop.f32.mrf.mxu1 }
 0x7c6   : > { %v6963_v39 = vadd.f32 %v6962_v2, %v6943_v36 }
 0x7c8   : > { %v6982_v37 = vpop.f32.mrf.mxu2 }
 0x7c9   : > { %v6983_v41 = vadd.f32 %v6982_v37, %v6963_v39 }
 0x7cb   : > { %v7002_v42 = vpop.f32.mrf.mxu3 }
 0x7cc   : > { %v7003_v44 = vadd.f32 %v7002_v42, %v6983_v41 }
 0x7e4   : > { %v7022_v21 = vpop.f32.mrf.mxu0 }
 0x7e5   : > { %v7023_v45 = vadd.f32 %v7022_v21, %v7003_v44 }
 0x7e7   : > { %v7042_v55 = vpop.f32.mrf.mxu1 }
 0x7e8   : > { %v7043_v60 = vadd.f32 %v7042_v55, %v7023_v45 }
 0x7ea   : > { %v7062_v46 = vpop.f32.mrf.mxu2 }
 0x7eb   : > { %v7063_v47 = vadd.f32 %v7062_v46, %v7043_v60 }
 0x7ed   : > { %v7082_v26 = vpop.f32.mrf.mxu3 }
 0x7ee   : > { %v7083_v48 = vadd.f32 %v7082_v26, %v7063_v47 }
 0x806   : > { %v7102_v32 = vpop.f32.mrf.mxu0 }
 0x807   : > { %v7103_v49 = vadd.f32 %v7102_v32, %v7083_v48 }
 0x809   : > { %v7122_v50 = vpop.f32.mrf.mxu1 }
 0x80a   : > { %v7123_v3 = vadd.f32 %v7122_v50, %v7103_v49 }
 0x80c   : > { %v7142_v51 = vpop.f32.mrf.mxu2 }
 0x80d   : > { %v7143_v52 = vadd.f32 %v7142_v51, %v7123_v3 }
 0x80f   : > { %v7162_v53 = vpop.f32.mrf.mxu3 }
 0x810   : > { %v7163_v54 = vadd.f32 %v7162_v53, %v7143_v52 }
 0x828   : > { %v7182_v56 = vpop.f32.mrf.mxu0 }
 0x829   : > { %v7183_v57 = vadd.f32 %v7182_v56, %v7163_v54 }
 0x82a   : > { %v7202_v58 = vpop.f32.mrf.mxu1 }
 0x82b   : > { %v7203_v59 = vadd.f32 %v7202_v58, %v7183_v57 }
 0x82e   : > { %v7222_v61 = vpop.f32.mrf.mxu2 }
 0x82f   : > { %v7223_v62 = vadd.f32 %v7222_v61, %v7203_v59 }
 0x830   : > { %v7242_v63 = vpop.f32.mrf.mxu3 }
 0x831   : > { %v7243_v0 = vadd.f32 %v7242_v63, %v7223_v62 }
 0x833   : > { %7245 = vst [vmem:[%s10444_s4] sm:$0xff] %v7243_v0 }
 0x834 PF: > { %p17_p4 = scmp.ge.s32.totalorder %s7619_s27, 10   ;;  %s10452_s15 = smov %s7532_s16 }
 0x835   : > { %s10453_s16 = smov %s7536_s17  ;;  %s10454_s17 = smov %s7629_s6 }
 0x836   : > { %s10455_s18 = smov %s7619_s27  ;;  %19 = sbr.rel (!%p17_p4) target bundleno = 8 (0x8), region = 97 }
 0x83b   :  { %7257 = vsyncpa [#allocation4], 1 }
 0x83c   :  { %7259 = vsyncpa [#allocation4 + $0x1], 1 }
 0x83d   :  { %7260 = vsyncpa [#allocation6], 1 }
 0x83e   :  { %7262 = vsyncpa [#allocation6 + $0x1], 1 }

</bundles_post_ra>
